<compile_context>
chip_gen: v6e
topology: v6e:2x2x1
jax: 0.10.0
libtpu: 0.0.40
codegen_flags: <defaults>
</compile_context>

<pallas_src>
import functools

import jax
import jax.numpy as jnp
from jax.experimental import pallas as pl
from jax.experimental.pallas import tpu as pltpu

_BN_EPS = 1e-5
_WGT_DTYPE = jnp.bfloat16     # MXU operands
_ACT_DTYPE = jnp.float32      # inter-kernel activations / epilogue math


def _vmem_spec():
    return pl.BlockSpec(memory_space=pltpu.MemorySpace.VMEM)


def _smem_spec():
    return pl.BlockSpec(memory_space=pltpu.MemorySpace.SMEM)


# ----------------------------------------------------------------------------
# Pallas kernels
# ----------------------------------------------------------------------------
def _conv3x3_acc(ph_ref, w9_ref, taps, n, ho, wo):
    """3x3 conv as 9 shifted MXU dots accumulated in f32.

    ph_ref : (P, N, Hs, Ws, Cin) phase-plane stack of the padded activation.
    w9_ref : (9, Cin, Cout) weight slabs (tap order dy*3+dx).
    taps   : static tuple of (plane, row_off, col_off) per tap.
    """
    m = n * ho * wo
    cout = w9_ref.shape[-1]
    acc = jnp.zeros((m, cout), jnp.float32)
    for t, (p, ro, co) in enumerate(taps):
        win = ph_ref[p, :, pl.ds(ro, ho), pl.ds(co, wo), :]     # (N, ho, wo, Cin)
        cin = win.shape[-1]
        lhs = win.reshape(m, cin).astype(w9_ref.dtype)          # bf16 MXU operand
        acc = acc + jnp.dot(lhs, w9_ref[t], preferred_element_type=jnp.float32)
    return acc


def _stem_kernel(ph_ref, w9_ref, s_ref, b_ref, out_ref, *, taps, n, ho, wo):
    """conv3x3 + BN(eval) + ReLU; output stored zero-padded for the next conv."""
    acc = _conv3x3_acc(ph_ref, w9_ref, taps, n, ho, wo)
    y = jnp.maximum(acc * s_ref[...] + b_ref[...], 0.0)
    cout = y.shape[-1]
    out_ref[...] = jnp.zeros(out_ref.shape, out_ref.dtype)
    out_ref[:, pl.ds(1, ho), pl.ds(1, wo), :] = (
        y.reshape(n, ho, wo, cout).astype(out_ref.dtype))


def _cell_kernel(ph_ref, w9_ref, s_ref, b_ref, wlin_ref, coef_ref,
                 out_ref, feat_ref, *, taps, n, ho, wo, pad_out):
    """Fused cell: conv3x3 + BN + ReLU -> exp(coeff*x) -> 1x1 conv.

    Emits:
      out_ref  : the cell activation (zero-padded for the next 3x3 conv unless
                 this is the last cell).
      feat_ref : linear_trans(exp(coeff * out))  (middle_out feature map, NHWC).
    """
    acc = _conv3x3_acc(ph_ref, w9_ref, taps, n, ho, wo)
    y = jnp.maximum(acc * s_ref[...] + b_ref[...], 0.0)          # (M, Cout) f32
    cout = y.shape[-1]

    # exp epilogue (EUP) feeding straight into the 1x1 conv (MXU) -- no HBM trip.
    feat = jnp.exp(y * coef_ref[0])
    feat = jnp.dot(feat.astype(wlin_ref.dtype), wlin_ref[...],
                   preferred_element_type=jnp.float32)
    feat_ref[...] = feat.reshape(n, ho, wo, cout).astype(feat_ref.dtype)

    y4 = y.reshape(n, ho, wo, cout).astype(out_ref.dtype)
    if pad_out:      # next layer is another 3x3 conv: store zero-padded
        out_ref[...] = jnp.zeros(out_ref.shape, out_ref.dtype)
        out_ref[:, pl.ds(1, ho), pl.ds(1, wo), :] = y4
    else:            # last cell: header (1x1) needs the raw activation
        out_ref[...] = y4


def _head_kernel(x_ref, wh_ref, sh_ref, bh_ref, wf_ref, bf_ref, o_ref, *, n, hw):
    """Fused header conv1x1 + BN + ReLU -> global avg pool -> fc."""
    x = x_ref[...]                                              # (N, Ho, Wo, Cin)
    cin = x.shape[-1]
    h = jnp.dot(x.reshape(n * hw, cin).astype(wh_ref.dtype), wh_ref[...],
                preferred_element_type=jnp.float32)
    h = jnp.maximum(h * sh_ref[...] + bh_ref[...], 0.0)         # (N*HW, Ch)
    ch = h.shape[-1]
    pooled = jnp.sum(h.reshape(n, hw, ch), axis=1) * (1.0 / hw)  # (N, Ch)
    o_ref[...] = (jnp.dot(pooled, wf_ref[...], preferred_element_type=jnp.float32)
                  + bf_ref[...]).astype(o_ref.dtype)


# ----------------------------------------------------------------------------
# Wrappers
# ----------------------------------------------------------------------------
def _make_phases(xp, stride):
    """xp: zero-padded NHWC activation (N, H+2, W+2, C).

    Returns (phase stack, taps, (ho, wo)).  Every conv tap becomes a plain
    contiguous slice of one phase plane, so no strided access is needed inside
    the kernel and no 9x im2col duplication lands in HBM.
    """
    n, hp, wp, c = xp.shape
    del n, c
    ho = (hp - 3) // stride + 1
    wo = (wp - 3) // stride + 1
    if stride == 1:
        phases = xp[None]                                       # (1, N, Hp, Wp, C)
        taps = tuple((0, dy, dx) for dy in range(3) for dx in range(3))
    elif stride == 2:
        assert hp % 2 == 0 and wp % 2 == 0
        phases = jnp.stack(                                     # (4, N, Hp/2, Wp/2, C)
            [xp[:, 0::2, 0::2, :], xp[:, 0::2, 1::2, :],
             xp[:, 1::2, 0::2, :], xp[:, 1::2, 1::2, :]], axis=0)
        taps = tuple(((dy % 2) * 2 + (dx % 2), dy // 2, dx // 2)
                     for dy in range(3) for dx in range(3))
    else:
        raise NotImplementedError(f"unsupported stride {stride}")
    return phases, taps, (ho, wo)


def _stem_forward(xp, p, stride):
    phases, taps, (ho, wo) = _make_phases(xp, stride)
    n = xp.shape[0]
    cout = p['w9'].shape[-1]
    return pl.pallas_call(
        functools.partial(_stem_kernel, taps=taps, n=n, ho=ho, wo=wo),
        out_shape=jax.ShapeDtypeStruct((n, ho + 2, wo + 2, cout), _ACT_DTYPE),
        in_specs=[_vmem_spec()] * 4,
        out_specs=_vmem_spec(),
    )(phases, p['w9'], p['scale'], p['bias'])


def _cell_forward(xp, p, stride, coeff, last):
    phases, taps, (ho, wo) = _make_phases(xp, stride)
    n = xp.shape[0]
    cout = p['w9'].shape[-1]
    out_shape = (n, ho, wo, cout) if last else (n, ho + 2, wo + 2, cout)
    out, feat = pl.pallas_call(
        functools.partial(_cell_kernel, taps=taps, n=n, ho=ho, wo=wo,
                          pad_out=not last),
        out_shape=(jax.ShapeDtypeStruct(out_shape, _ACT_DTYPE),
                   jax.ShapeDtypeStruct((n, ho, wo, cout), jnp.float32)),
        in_specs=[_vmem_spec()] * 5 + [_smem_spec()],
        out_specs=(_vmem_spec(), _vmem_spec()),
    )(phases, p['w9'], p['scale'], p['bias'], p['wlin'],
      jnp.asarray(coeff, jnp.float32).reshape(1))
    return out, feat


def _head_forward(x, p_head, p_fc):
    n, ho, wo, _ = x.shape
    ncls = p_fc['w'].shape[-1]
    return pl.pallas_call(
        functools.partial(_head_kernel, n=n, hw=ho * wo),
        out_shape=jax.ShapeDtypeStruct((n, ncls), jnp.float32),
        in_specs=[_vmem_spec()] * 6,
        out_specs=_vmem_spec(),
    )(x, p_head['w'], p_head['scale'], p_head['bias'], p_fc['w'], p_fc['b'])


# ----------------------------------------------------------------------------
# FBNet_Infer parameters + forward
# ----------------------------------------------------------------------------
class Config:
    num_classes = 10
    num_layer_list = [1, 1]
    num_channel_list = [8, 16]
    stride_list = [1, 2]
    stem_channel = 8
    header_channel = 32
    search_space = 'OnlyConv'
    dataset = 'cifar10'          # -> stride_init = 1


def _kaiming_oihw(key, cout, cin, kh, kw):
    std = (2.0 / (cout * kh * kw)) ** 0.5
    return jax.random.normal(key, (cout, cin, kh, kw), jnp.float32) * std


def _conv3x3_to_slabs(w_oihw):
    """(Cout, Cin, 3, 3) -> (9, Cin, Cout), tap order t = kh*3 + kw."""
    cout, cin = w_oihw.shape[0], w_oihw.shape[1]
    return jnp.transpose(w_oihw, (2, 3, 1, 0)).reshape(9, cin, cout)


def _bn_affine(c):
    # eval-mode BN with init_params() stats: mean=0, var=1, gamma=1, beta=0.
    scale = jnp.full((1, c), (1.0 + _BN_EPS) ** -0.5, jnp.float32)
    bias = jnp.zeros((1, c), jnp.float32)
    return scale, bias


def _cell_strides(cfg):
    strides = []
    for stage_id, num_layer in enumerate(cfg.num_layer_list):
        for i in range(num_layer):
            strides.append(cfg.stride_list[stage_id] if i == 0 else 1)
    return strides


def init_fbnet_params(key, cfg):
    """Weights are pre-reshaped/transposed for the kernels (hoisted out of the
    forward per the perf review) and cast to bf16; BN affines precomputed."""
    keys = jax.random.split(key, 64)
    ki = 0

    def nxt():
        nonlocal ki
        k = keys[ki]
        ki += 1
        return k

    params = {}

    w = _kaiming_oihw(nxt(), cfg.stem_channel, 3, 3, 3)
    sc, bi = _bn_affine(cfg.stem_channel)
    params['stem'] = {'w9': _conv3x3_to_slabs(w).astype(_WGT_DTYPE),
                      'scale': sc, 'bias': bi}

    cells = []
    c_prev = cfg.stem_channel
    for stage_id, num_layer in enumerate(cfg.num_layer_list):
        for i in range(num_layer):
            c_out = cfg.num_channel_list[stage_id]
            w = _kaiming_oihw(nxt(), c_out, c_prev, 3, 3)
            sc, bi = _bn_affine(c_out)
            wl = _kaiming_oihw(nxt(), c_out, c_out, 1, 1)
            cells.append({
                'w9': _conv3x3_to_slabs(w).astype(_WGT_DTYPE),
                'scale': sc, 'bias': bi,
                'wlin': wl.reshape(c_out, c_out).T.astype(_WGT_DTYPE),
            })
            c_prev = c_out
    params['cells'] = cells

    wh = _kaiming_oihw(nxt(), cfg.header_channel, c_prev, 1, 1)
    sc, bi = _bn_affine(cfg.header_channel)
    params['head'] = {'w': wh.reshape(cfg.header_channel, c_prev).T.astype(_WGT_DTYPE),
                      'scale': sc, 'bias': bi}

    wf = jax.random.normal(nxt(), (cfg.num_classes, cfg.header_channel),
                           jnp.float32) * 0.001
    params['fc'] = {'w': wf.T,                                   # (Ch, num_classes) f32
                    'b': jnp.zeros((1, cfg.num_classes), jnp.float32)}

    # sita = ones(sum(num_layer_list))  (variance parameters)
    params['sita'] = jnp.ones((sum(cfg.num_layer_list),), jnp.float32)
    return params


def fbnet_infer_forward(params, x_nchw, op_idx_list, cfg, flag=False):
    """Returns (logits (N, num_classes), middle_out list of NCHW feature maps)."""
    stride_init = 2 if cfg.dataset == 'imagenet' else 1
    strides = _cell_strides(cfg)

    x = jnp.transpose(x_nchw, (0, 2, 3, 1)).astype(_ACT_DTYPE)   # NCHW -> NHWC
    xp = jnp.pad(x, ((0, 0), (1, 1), (1, 1), (0, 0)))            # pad=1 for stem conv

    out = _stem_forward(xp, params['stem'], stride_init)         # padded NHWC

    sita = params['sita']
    n_cells = len(params['cells'])
    middle_out = []
    for i, cell in enumerate(params['cells']):
        if flag or op_idx_list[i] < 6 or op_idx_list[i] == 12:
            # exp(-out / 2 * sita * sita)  ==  exp(out * (-0.5 * sita^2))
            coeff = -0.5 * sita[i] * sita[i]
        else:
            # exp(-out / sita)
            coeff = -1.0 / sita[i]
        last = i == n_cells - 1
        out, feat = _cell_forward(out, cell, strides[i], coeff, last)
        # middle_out is NCHW in the reference module -> one small transpose/cell.
        middle_out.append(jnp.transpose(feat, (0, 3, 1, 2)))

    logits = _head_forward(out, params['head'], params['fc'])
    return logits, middle_out


# ----------------------------------------------------------------------------
if __name__ == "__main__":
    cfg = Config()
    key = jax.random.PRNGKey(0)
    k_param, k_data = jax.random.split(key)

    params = init_fbnet_params(k_param, cfg)

    # One chosen primitive index per layer (argmax of softmax(alpha) in the
    # reference); both < 6 so the exp(-out/2 * sita^2) branch is exercised.
    op_idx_list = (0, 3)

    # PyTorch-convention NCHW input: batch=2, channels=3, spatial=16x16
    x = jax.random.normal(k_data, (2, 3, 16, 16), jnp.float32)

    fwd = jax.jit(lambda p, xin: fbnet_infer_forward(p, xin, op_idx_list, cfg))
    logits, middle_out = fwd(params, x)

    jax.block_until_ready(logits)
    for m in middle_out:
        jax.block_until_ready(m)

    assert logits.shape == (2, cfg.num_classes)
    assert middle_out[0].shape == (2, 8, 16, 16)
    assert middle_out[1].shape == (2, 16, 8, 8)
    print("KERNEL_OK")
</pallas_src>

<mosaic_0001>
module attributes {stable_mosaic.version = 11 : i64} {
  func.func @_cell_kernel(%arg0: memref<1x2x18x18x8xf32, #tpu.memory_space<vmem>>, %arg1: memref<9x8x8xbf16, #tpu.memory_space<vmem>>, %arg2: memref<1x8xf32, #tpu.memory_space<vmem>>, %arg3: memref<1x8xf32, #tpu.memory_space<vmem>>, %arg4: memref<8x8xbf16, #tpu.memory_space<vmem>>, %arg5: memref<1xf32, #tpu.memory_space<smem>>, %arg6: memref<2x18x18x8xf32, #tpu.memory_space<vmem>>, %arg7: memref<2x16x16x8xf32, #tpu.memory_space<vmem>>) attributes {dimension_semantics = [], scalar_prefetch = 0 : i64, scratch_operands = 0 : i64, tpu.core_type = #tpu.core_type<tc>} {
    %cst = arith.constant 0.000000e+00 : f32
    %0 = vector.broadcast %cst : f32 to vector<512x8xf32>
    %c0 = arith.constant 0 : index
    %c0_0 = arith.constant 0 : index
    %c0_1 = arith.constant 0 : index
    %c0_2 = arith.constant 0 : index
    %c0_3 = arith.constant 0 : index
    %1 = vector.load %arg0[%c0, %c0_0, %c0_1, %c0_2, %c0_3] : memref<1x2x18x18x8xf32, #tpu.memory_space<vmem>>, vector<1x2x16x16x8xf32>
    %2 = vector.shape_cast %1 : vector<1x2x16x16x8xf32> to vector<2x16x16x8xf32>
    %3 = vector.shape_cast %2 : vector<2x16x16x8xf32> to vector<512x8xf32>
    %4 = arith.truncf %3 : vector<512x8xf32> to vector<512x8xbf16>
    %c0_4 = arith.constant 0 : index
    %c0_5 = arith.constant 0 : index
    %c0_6 = arith.constant 0 : index
    %5 = vector.load %arg1[%c0_4, %c0_5, %c0_6] : memref<9x8x8xbf16, #tpu.memory_space<vmem>>, vector<1x8x8xbf16>
    %6 = vector.shape_cast %5 : vector<1x8x8xbf16> to vector<8x8xbf16>
    %cst_7 = arith.constant dense<0.000000e+00> : vector<512x8xf32>
    %7 = tpu.matmul %4, %6, %cst_7 {dimension_numbers = #tpu.dot_dimension_numbers<[1], [0], [0], [1], [0, 0, 1, 1], [], []>} : vector<512x8xbf16>, vector<8x8xbf16>, vector<512x8xf32> -> vector<512x8xf32>
    %8 = arith.addf %0, %7 : vector<512x8xf32>
    %c0_8 = arith.constant 0 : index
    %c0_9 = arith.constant 0 : index
    %c0_10 = arith.constant 0 : index
    %c1 = arith.constant 1 : index
    %c0_11 = arith.constant 0 : index
    %9 = vector.load %arg0[%c0_8, %c0_9, %c0_10, %c1, %c0_11] : memref<1x2x18x18x8xf32, #tpu.memory_space<vmem>>, vector<1x2x16x16x8xf32>
    %10 = vector.shape_cast %9 : vector<1x2x16x16x8xf32> to vector<2x16x16x8xf32>
    %11 = vector.shape_cast %10 : vector<2x16x16x8xf32> to vector<512x8xf32>
    %12 = arith.truncf %11 : vector<512x8xf32> to vector<512x8xbf16>
    %c1_12 = arith.constant 1 : index
    %c0_13 = arith.constant 0 : index
    %c0_14 = arith.constant 0 : index
    %13 = vector.load %arg1[%c1_12, %c0_13, %c0_14] : memref<9x8x8xbf16, #tpu.memory_space<vmem>>, vector<1x8x8xbf16>
    %14 = vector.shape_cast %13 : vector<1x8x8xbf16> to vector<8x8xbf16>
    %cst_15 = arith.constant dense<0.000000e+00> : vector<512x8xf32>
    %15 = tpu.matmul %12, %14, %cst_15 {dimension_numbers = #tpu.dot_dimension_numbers<[1], [0], [0], [1], [0, 0, 1, 1], [], []>} : vector<512x8xbf16>, vector<8x8xbf16>, vector<512x8xf32> -> vector<512x8xf32>
    %16 = arith.addf %8, %15 : vector<512x8xf32>
    %c0_16 = arith.constant 0 : index
    %c0_17 = arith.constant 0 : index
    %c0_18 = arith.constant 0 : index
    %c2 = arith.constant 2 : index
    %c0_19 = arith.constant 0 : index
    %17 = vector.load %arg0[%c0_16, %c0_17, %c0_18, %c2, %c0_19] : memref<1x2x18x18x8xf32, #tpu.memory_space<vmem>>, vector<1x2x16x16x8xf32>
    %18 = vector.shape_cast %17 : vector<1x2x16x16x8xf32> to vector<2x16x16x8xf32>
    %19 = vector.shape_cast %18 : vector<2x16x16x8xf32> to vector<512x8xf32>
    %20 = arith.truncf %19 : vector<512x8xf32> to vector<512x8xbf16>
    %c2_20 = arith.constant 2 : index
    %c0_21 = arith.constant 0 : index
    %c0_22 = arith.constant 0 : index
    %21 = vector.load %arg1[%c2_20, %c0_21, %c0_22] : memref<9x8x8xbf16, #tpu.memory_space<vmem>>, vector<1x8x8xbf16>
    %22 = vector.shape_cast %21 : vector<1x8x8xbf16> to vector<8x8xbf16>
    %cst_23 = arith.constant dense<0.000000e+00> : vector<512x8xf32>
    %23 = tpu.matmul %20, %22, %cst_23 {dimension_numbers = #tpu.dot_dimension_numbers<[1], [0], [0], [1], [0, 0, 1, 1], [], []>} : vector<512x8xbf16>, vector<8x8xbf16>, vector<512x8xf32> -> vector<512x8xf32>
    %24 = arith.addf %16, %23 : vector<512x8xf32>
    %c0_24 = arith.constant 0 : index
    %c0_25 = arith.constant 0 : index
    %c1_26 = arith.constant 1 : index
    %c0_27 = arith.constant 0 : index
    %c0_28 = arith.constant 0 : index
    %25 = vector.load %arg0[%c0_24, %c0_25, %c1_26, %c0_27, %c0_28] : memref<1x2x18x18x8xf32, #tpu.memory_space<vmem>>, vector<1x2x16x16x8xf32>
    %26 = vector.shape_cast %25 : vector<1x2x16x16x8xf32> to vector<2x16x16x8xf32>
    %27 = vector.shape_cast %26 : vector<2x16x16x8xf32> to vector<512x8xf32>
    %28 = arith.truncf %27 : vector<512x8xf32> to vector<512x8xbf16>
    %c3 = arith.constant 3 : index
    %c0_29 = arith.constant 0 : index
    %c0_30 = arith.constant 0 : index
    %29 = vector.load %arg1[%c3, %c0_29, %c0_30] : memref<9x8x8xbf16, #tpu.memory_space<vmem>>, vector<1x8x8xbf16>
    %30 = vector.shape_cast %29 : vector<1x8x8xbf16> to vector<8x8xbf16>
    %cst_31 = arith.constant dense<0.000000e+00> : vector<512x8xf32>
    %31 = tpu.matmul %28, %30, %cst_31 {dimension_numbers = #tpu.dot_dimension_numbers<[1], [0], [0], [1], [0, 0, 1, 1], [], []>} : vector<512x8xbf16>, vector<8x8xbf16>, vector<512x8xf32> -> vector<512x8xf32>
    %32 = arith.addf %24, %31 : vector<512x8xf32>
    %c0_32 = arith.constant 0 : index
    %c0_33 = arith.constant 0 : index
    %c1_34 = arith.constant 1 : index
    %c1_35 = arith.constant 1 : index
    %c0_36 = arith.constant 0 : index
    %33 = vector.load %arg0[%c0_32, %c0_33, %c1_34, %c1_35, %c0_36] : memref<1x2x18x18x8xf32, #tpu.memory_space<vmem>>, vector<1x2x16x16x8xf32>
    %34 = vector.shape_cast %33 : vector<1x2x16x16x8xf32> to vector<2x16x16x8xf32>
    %35 = vector.shape_cast %34 : vector<2x16x16x8xf32> to vector<512x8xf32>
    %36 = arith.truncf %35 : vector<512x8xf32> to vector<512x8xbf16>
    %c4 = arith.constant 4 : index
    %c0_37 = arith.constant 0 : index
    %c0_38 = arith.constant 0 : index
    %37 = vector.load %arg1[%c4, %c0_37, %c0_38] : memref<9x8x8xbf16, #tpu.memory_space<vmem>>, vector<1x8x8xbf16>
    %38 = vector.shape_cast %37 : vector<1x8x8xbf16> to vector<8x8xbf16>
    %cst_39 = arith.constant dense<0.000000e+00> : vector<512x8xf32>
    %39 = tpu.matmul %36, %38, %cst_39 {dimension_numbers = #tpu.dot_dimension_numbers<[1], [0], [0], [1], [0, 0, 1, 1], [], []>} : vector<512x8xbf16>, vector<8x8xbf16>, vector<512x8xf32> -> vector<512x8xf32>
    %40 = arith.addf %32, %39 : vector<512x8xf32>
    %c0_40 = arith.constant 0 : index
    %c0_41 = arith.constant 0 : index
    %c1_42 = arith.constant 1 : index
    %c2_43 = arith.constant 2 : index
    %c0_44 = arith.constant 0 : index
    %41 = vector.load %arg0[%c0_40, %c0_41, %c1_42, %c2_43, %c0_44] : memref<1x2x18x18x8xf32, #tpu.memory_space<vmem>>, vector<1x2x16x16x8xf32>
    %42 = vector.shape_cast %41 : vector<1x2x16x16x8xf32> to vector<2x16x16x8xf32>
    %43 = vector.shape_cast %42 : vector<2x16x16x8xf32> to vector<512x8xf32>
    %44 = arith.truncf %43 : vector<512x8xf32> to vector<512x8xbf16>
    %c5 = arith.constant 5 : index
    %c0_45 = arith.constant 0 : index
    %c0_46 = arith.constant 0 : index
    %45 = vector.load %arg1[%c5, %c0_45, %c0_46] : memref<9x8x8xbf16, #tpu.memory_space<vmem>>, vector<1x8x8xbf16>
    %46 = vector.shape_cast %45 : vector<1x8x8xbf16> to vector<8x8xbf16>
    %cst_47 = arith.constant dense<0.000000e+00> : vector<512x8xf32>
    %47 = tpu.matmul %44, %46, %cst_47 {dimension_numbers = #tpu.dot_dimension_numbers<[1], [0], [0], [1], [0, 0, 1, 1], [], []>} : vector<512x8xbf16>, vector<8x8xbf16>, vector<512x8xf32> -> vector<512x8xf32>
    %48 = arith.addf %40, %47 : vector<512x8xf32>
    %c0_48 = arith.constant 0 : index
    %c0_49 = arith.constant 0 : index
    %c2_50 = arith.constant 2 : index
    %c0_51 = arith.constant 0 : index
    %c0_52 = arith.constant 0 : index
    %49 = vector.load %arg0[%c0_48, %c0_49, %c2_50, %c0_51, %c0_52] : memref<1x2x18x18x8xf32, #tpu.memory_space<vmem>>, vector<1x2x16x16x8xf32>
    %50 = vector.shape_cast %49 : vector<1x2x16x16x8xf32> to vector<2x16x16x8xf32>
    %51 = vector.shape_cast %50 : vector<2x16x16x8xf32> to vector<512x8xf32>
    %52 = arith.truncf %51 : vector<512x8xf32> to vector<512x8xbf16>
    %c6 = arith.constant 6 : index
    %c0_53 = arith.constant 0 : index
    %c0_54 = arith.constant 0 : index
    %53 = vector.load %arg1[%c6, %c0_53, %c0_54] : memref<9x8x8xbf16, #tpu.memory_space<vmem>>, vector<1x8x8xbf16>
    %54 = vector.shape_cast %53 : vector<1x8x8xbf16> to vector<8x8xbf16>
    %cst_55 = arith.constant dense<0.000000e+00> : vector<512x8xf32>
    %55 = tpu.matmul %52, %54, %cst_55 {dimension_numbers = #tpu.dot_dimension_numbers<[1], [0], [0], [1], [0, 0, 1, 1], [], []>} : vector<512x8xbf16>, vector<8x8xbf16>, vector<512x8xf32> -> vector<512x8xf32>
    %56 = arith.addf %48, %55 : vector<512x8xf32>
    %c0_56 = arith.constant 0 : index
    %c0_57 = arith.constant 0 : index
    %c2_58 = arith.constant 2 : index
    %c1_59 = arith.constant 1 : index
    %c0_60 = arith.constant 0 : index
    %57 = vector.load %arg0[%c0_56, %c0_57, %c2_58, %c1_59, %c0_60] : memref<1x2x18x18x8xf32, #tpu.memory_space<vmem>>, vector<1x2x16x16x8xf32>
    %58 = vector.shape_cast %57 : vector<1x2x16x16x8xf32> to vector<2x16x16x8xf32>
    %59 = vector.shape_cast %58 : vector<2x16x16x8xf32> to vector<512x8xf32>
    %60 = arith.truncf %59 : vector<512x8xf32> to vector<512x8xbf16>
    %c7 = arith.constant 7 : index
    %c0_61 = arith.constant 0 : index
    %c0_62 = arith.constant 0 : index
    %61 = vector.load %arg1[%c7, %c0_61, %c0_62] : memref<9x8x8xbf16, #tpu.memory_space<vmem>>, vector<1x8x8xbf16>
    %62 = vector.shape_cast %61 : vector<1x8x8xbf16> to vector<8x8xbf16>
    %cst_63 = arith.constant dense<0.000000e+00> : vector<512x8xf32>
    %63 = tpu.matmul %60, %62, %cst_63 {dimension_numbers = #tpu.dot_dimension_numbers<[1], [0], [0], [1], [0, 0, 1, 1], [], []>} : vector<512x8xbf16>, vector<8x8xbf16>, vector<512x8xf32> -> vector<512x8xf32>
    %64 = arith.addf %56, %63 : vector<512x8xf32>
    %c0_64 = arith.constant 0 : index
    %c0_65 = arith.constant 0 : index
    %c2_66 = arith.constant 2 : index
    %c2_67 = arith.constant 2 : index
    %c0_68 = arith.constant 0 : index
    %65 = vector.load %arg0[%c0_64, %c0_65, %c2_66, %c2_67, %c0_68] : memref<1x2x18x18x8xf32, #tpu.memory_space<vmem>>, vector<1x2x16x16x8xf32>
    %66 = vector.shape_cast %65 : vector<1x2x16x16x8xf32> to vector<2x16x16x8xf32>
    %67 = vector.shape_cast %66 : vector<2x16x16x8xf32> to vector<512x8xf32>
    %68 = arith.truncf %67 : vector<512x8xf32> to vector<512x8xbf16>
    %c8 = arith.constant 8 : index
    %c0_69 = arith.constant 0 : index
    %c0_70 = arith.constant 0 : index
    %69 = vector.load %arg1[%c8, %c0_69, %c0_70] : memref<9x8x8xbf16, #tpu.memory_space<vmem>>, vector<1x8x8xbf16>
    %70 = vector.shape_cast %69 : vector<1x8x8xbf16> to vector<8x8xbf16>
    %cst_71 = arith.constant dense<0.000000e+00> : vector<512x8xf32>
    %71 = tpu.matmul %68, %70, %cst_71 {dimension_numbers = #tpu.dot_dimension_numbers<[1], [0], [0], [1], [0, 0, 1, 1], [], []>} : vector<512x8xbf16>, vector<8x8xbf16>, vector<512x8xf32> -> vector<512x8xf32>
    %72 = arith.addf %64, %71 : vector<512x8xf32>
    %c0_72 = arith.constant 0 : index
    %c0_73 = arith.constant 0 : index
    %73 = vector.load %arg2[%c0_72, %c0_73] : memref<1x8xf32, #tpu.memory_space<vmem>>, vector<1x8xf32>
    %74 = vector.broadcast %73 : vector<1x8xf32> to vector<512x8xf32>
    %75 = arith.mulf %72, %74 : vector<512x8xf32>
    %c0_74 = arith.constant 0 : index
    %c0_75 = arith.constant 0 : index
    %76 = vector.load %arg3[%c0_74, %c0_75] : memref<1x8xf32, #tpu.memory_space<vmem>>, vector<1x8xf32>
    %77 = vector.broadcast %76 : vector<1x8xf32> to vector<512x8xf32>
    %78 = arith.addf %75, %77 : vector<512x8xf32>
    %cst_76 = arith.constant 0.000000e+00 : f32
    %79 = vector.broadcast %cst_76 : f32 to vector<512x8xf32>
    %80 = arith.maximumf %78, %79 : vector<512x8xf32>
    %c0_77 = arith.constant 0 : index
    %81 = memref.load %arg5[%c0_77] : memref<1xf32, #tpu.memory_space<smem>>
    %82 = vector.broadcast %81 : f32 to vector<512x8xf32>
    %83 = arith.mulf %80, %82 : vector<512x8xf32>
    %84 = math.exp %83 : vector<512x8xf32>
    %85 = arith.truncf %84 : vector<512x8xf32> to vector<512x8xbf16>
    %c0_78 = arith.constant 0 : index
    %c0_79 = arith.constant 0 : index
    %86 = vector.load %arg4[%c0_78, %c0_79] : memref<8x8xbf16, #tpu.memory_space<vmem>>, vector<8x8xbf16>
    %cst_80 = arith.constant dense<0.000000e+00> : vector<512x8xf32>
    %87 = tpu.matmul %85, %86, %cst_80 {dimension_numbers = #tpu.dot_dimension_numbers<[1], [0], [0], [1], [0, 0, 1, 1], [], []>} : vector<512x8xbf16>, vector<8x8xbf16>, vector<512x8xf32> -> vector<512x8xf32>
    %88 = vector.shape_cast %87 : vector<512x8xf32> to vector<2x16x16x8xf32>
    %c0_81 = arith.constant 0 : index
    %c0_82 = arith.constant 0 : index
    %c0_83 = arith.constant 0 : index
    %c0_84 = arith.constant 0 : index
    %89 = vector.load %arg7[%c0_81, %c0_82, %c0_83, %c0_84] : memref<2x16x16x8xf32, #tpu.memory_space<vmem>>, vector<2x16x16x8xf32>
    tpu.vector_store %arg7[%c0_81, %c0_82, %c0_83, %c0_84], %88 {strides = array<i32>} : memref<2x16x16x8xf32, #tpu.memory_space<vmem>>, vector<2x16x16x8xf32>,
    %90 = vector.shape_cast %80 : vector<512x8xf32> to vector<2x16x16x8xf32>
    %cst_85 = arith.constant 0.000000e+00 : f32
    %91 = vector.broadcast %cst_85 : f32 to vector<2x18x18x8xf32>
    %c0_86 = arith.constant 0 : index
    %c0_87 = arith.constant 0 : index
    %c0_88 = arith.constant 0 : index
    %c0_89 = arith.constant 0 : index
    %92 = vector.load %arg6[%c0_86, %c0_87, %c0_88, %c0_89] : memref<2x18x18x8xf32, #tpu.memory_space<vmem>>, vector<2x18x18x8xf32>
    tpu.vector_store %arg6[%c0_86, %c0_87, %c0_88, %c0_89], %91 {strides = array<i32>} : memref<2x18x18x8xf32, #tpu.memory_space<vmem>>, vector<2x18x18x8xf32>,
    %c0_90 = arith.constant 0 : index
    %c1_91 = arith.constant 1 : index
    %c1_92 = arith.constant 1 : index
    %c0_93 = arith.constant 0 : index
    %93 = vector.load %arg6[%c0_90, %c1_91, %c1_92, %c0_93] : memref<2x18x18x8xf32, #tpu.memory_space<vmem>>, vector<2x16x16x8xf32>
    tpu.vector_store %arg6[%c0_90, %c1_91, %c1_92, %c0_93], %90 {strides = array<i32>} : memref<2x18x18x8xf32, #tpu.memory_space<vmem>>, vector<2x16x16x8xf32>,
    return
  }
}

module attributes {stable_mosaic.version = 11 : i64} {
  func.func @_stem_kernel(%arg0: memref<1x2x18x18x3xf32, #tpu.memory_space<vmem>>, %arg1: memref<9x3x8xbf16, #tpu.memory_space<vmem>>, %arg2: memref<1x8xf32, #tpu.memory_space<vmem>>, %arg3: memref<1x8xf32, #tpu.memory_space<vmem>>, %arg4: memref<2x18x18x8xf32, #tpu.memory_space<vmem>>) attributes {dimension_semantics = [], scalar_prefetch = 0 : i64, scratch_operands = 0 : i64, tpu.core_type = #tpu.core_type<tc>} {
    %cst = arith.constant 0.000000e+00 : f32
    %0 = vector.broadcast %cst : f32 to vector<512x8xf32>
    %c0 = arith.constant 0 : index
    %c0_0 = arith.constant 0 : index
    %c0_1 = arith.constant 0 : index
    %c0_2 = arith.constant 0 : index
    %c0_3 = arith.constant 0 : index
    %1 = vector.load %arg0[%c0, %c0_0, %c0_1, %c0_2, %c0_3] : memref<1x2x18x18x3xf32, #tpu.memory_space<vmem>>, vector<1x2x16x16x3xf32>
    %2 = vector.shape_cast %1 : vector<1x2x16x16x3xf32> to vector<2x16x16x3xf32>
    %3 = vector.shape_cast %2 : vector<2x16x16x3xf32> to vector<512x3xf32>
    %4 = arith.truncf %3 : vector<512x3xf32> to vector<512x3xbf16>
    %c0_4 = arith.constant 0 : index
    %c0_5 = arith.constant 0 : index
    %c0_6 = arith.constant 0 : index
    %5 = vector.load %arg1[%c0_4, %c0_5, %c0_6] : memref<9x3x8xbf16, #tpu.memory_space<vmem>>, vector<1x3x8xbf16>
    %6 = vector.shape_cast %5 : vector<1x3x8xbf16> to vector<3x8xbf16>
    %cst_7 = arith.constant dense<0.000000e+00> : vector<512x8xf32>
    %7 = tpu.matmul %4, %6, %cst_7 {dimension_numbers = #tpu.dot_dimension_numbers<[1], [0], [0], [1], [0, 0, 1, 1], [], []>} : vector<512x3xbf16>, vector<3x8xbf16>, vector<512x8xf32> -> vector<512x8xf32>
    %8 = arith.addf %0, %7 : vector<512x8xf32>
    %c0_8 = arith.constant 0 : index
    %c0_9 = arith.constant 0 : index
    %c0_10 = arith.constant 0 : index
    %c1 = arith.constant 1 : index
    %c0_11 = arith.constant 0 : index
    %9 = vector.load %arg0[%c0_8, %c0_9, %c0_10, %c1, %c0_11] : memref<1x2x18x18x3xf32, #tpu.memory_space<vmem>>, vector<1x2x16x16x3xf32>
    %10 = vector.shape_cast %9 : vector<1x2x16x16x3xf32> to vector<2x16x16x3xf32>
    %11 = vector.shape_cast %10 : vector<2x16x16x3xf32> to vector<512x3xf32>
    %12 = arith.truncf %11 : vector<512x3xf32> to vector<512x3xbf16>
    %c1_12 = arith.constant 1 : index
    %c0_13 = arith.constant 0 : index
    %c0_14 = arith.constant 0 : index
    %13 = vector.load %arg1[%c1_12, %c0_13, %c0_14] : memref<9x3x8xbf16, #tpu.memory_space<vmem>>, vector<1x3x8xbf16>
    %14 = vector.shape_cast %13 : vector<1x3x8xbf16> to vector<3x8xbf16>
    %cst_15 = arith.constant dense<0.000000e+00> : vector<512x8xf32>
    %15 = tpu.matmul %12, %14, %cst_15 {dimension_numbers = #tpu.dot_dimension_numbers<[1], [0], [0], [1], [0, 0, 1, 1], [], []>} : vector<512x3xbf16>, vector<3x8xbf16>, vector<512x8xf32> -> vector<512x8xf32>
    %16 = arith.addf %8, %15 : vector<512x8xf32>
    %c0_16 = arith.constant 0 : index
    %c0_17 = arith.constant 0 : index
    %c0_18 = arith.constant 0 : index
    %c2 = arith.constant 2 : index
    %c0_19 = arith.constant 0 : index
    %17 = vector.load %arg0[%c0_16, %c0_17, %c0_18, %c2, %c0_19] : memref<1x2x18x18x3xf32, #tpu.memory_space<vmem>>, vector<1x2x16x16x3xf32>
    %18 = vector.shape_cast %17 : vector<1x2x16x16x3xf32> to vector<2x16x16x3xf32>
    %19 = vector.shape_cast %18 : vector<2x16x16x3xf32> to vector<512x3xf32>
    %20 = arith.truncf %19 : vector<512x3xf32> to vector<512x3xbf16>
    %c2_20 = arith.constant 2 : index
    %c0_21 = arith.constant 0 : index
    %c0_22 = arith.constant 0 : index
    %21 = vector.load %arg1[%c2_20, %c0_21, %c0_22] : memref<9x3x8xbf16, #tpu.memory_space<vmem>>, vector<1x3x8xbf16>
    %22 = vector.shape_cast %21 : vector<1x3x8xbf16> to vector<3x8xbf16>
    %cst_23 = arith.constant dense<0.000000e+00> : vector<512x8xf32>
    %23 = tpu.matmul %20, %22, %cst_23 {dimension_numbers = #tpu.dot_dimension_numbers<[1], [0], [0], [1], [0, 0, 1, 1], [], []>} : vector<512x3xbf16>, vector<3x8xbf16>, vector<512x8xf32> -> vector<512x8xf32>
    %24 = arith.addf %16, %23 : vector<512x8xf32>
    %c0_24 = arith.constant 0 : index
    %c0_25 = arith.constant 0 : index
    %c1_26 = arith.constant 1 : index
    %c0_27 = arith.constant 0 : index
    %c0_28 = arith.constant 0 : index
    %25 = vector.load %arg0[%c0_24, %c0_25, %c1_26, %c0_27, %c0_28] : memref<1x2x18x18x3xf32, #tpu.memory_space<vmem>>, vector<1x2x16x16x3xf32>
    %26 = vector.shape_cast %25 : vector<1x2x16x16x3xf32> to vector<2x16x16x3xf32>
    %27 = vector.shape_cast %26 : vector<2x16x16x3xf32> to vector<512x3xf32>
    %28 = arith.truncf %27 : vector<512x3xf32> to vector<512x3xbf16>
    %c3 = arith.constant 3 : index
    %c0_29 = arith.constant 0 : index
    %c0_30 = arith.constant 0 : index
    %29 = vector.load %arg1[%c3, %c0_29, %c0_30] : memref<9x3x8xbf16, #tpu.memory_space<vmem>>, vector<1x3x8xbf16>
    %30 = vector.shape_cast %29 : vector<1x3x8xbf16> to vector<3x8xbf16>
    %cst_31 = arith.constant dense<0.000000e+00> : vector<512x8xf32>
    %31 = tpu.matmul %28, %30, %cst_31 {dimension_numbers = #tpu.dot_dimension_numbers<[1], [0], [0], [1], [0, 0, 1, 1], [], []>} : vector<512x3xbf16>, vector<3x8xbf16>, vector<512x8xf32> -> vector<512x8xf32>
    %32 = arith.addf %24, %31 : vector<512x8xf32>
    %c0_32 = arith.constant 0 : index
    %c0_33 = arith.constant 0 : index
    %c1_34 = arith.constant 1 : index
    %c1_35 = arith.constant 1 : index
    %c0_36 = arith.constant 0 : index
    %33 = vector.load %arg0[%c0_32, %c0_33, %c1_34, %c1_35, %c0_36] : memref<1x2x18x18x3xf32, #tpu.memory_space<vmem>>, vector<1x2x16x16x3xf32>
    %34 = vector.shape_cast %33 : vector<1x2x16x16x3xf32> to vector<2x16x16x3xf32>
    %35 = vector.shape_cast %34 : vector<2x16x16x3xf32> to vector<512x3xf32>
    %36 = arith.truncf %35 : vector<512x3xf32> to vector<512x3xbf16>
    %c4 = arith.constant 4 : index
    %c0_37 = arith.constant 0 : index
    %c0_38 = arith.constant 0 : index
    %37 = vector.load %arg1[%c4, %c0_37, %c0_38] : memref<9x3x8xbf16, #tpu.memory_space<vmem>>, vector<1x3x8xbf16>
    %38 = vector.shape_cast %37 : vector<1x3x8xbf16> to vector<3x8xbf16>
    %cst_39 = arith.constant dense<0.000000e+00> : vector<512x8xf32>
    %39 = tpu.matmul %36, %38, %cst_39 {dimension_numbers = #tpu.dot_dimension_numbers<[1], [0], [0], [1], [0, 0, 1, 1], [], []>} : vector<512x3xbf16>, vector<3x8xbf16>, vector<512x8xf32> -> vector<512x8xf32>
    %40 = arith.addf %32, %39 : vector<512x8xf32>
    %c0_40 = arith.constant 0 : index
    %c0_41 = arith.constant 0 : index
    %c1_42 = arith.constant 1 : index
    %c2_43 = arith.constant 2 : index
    %c0_44 = arith.constant 0 : index
    %41 = vector.load %arg0[%c0_40, %c0_41, %c1_42, %c2_43, %c0_44] : memref<1x2x18x18x3xf32, #tpu.memory_space<vmem>>, vector<1x2x16x16x3xf32>
    %42 = vector.shape_cast %41 : vector<1x2x16x16x3xf32> to vector<2x16x16x3xf32>
    %43 = vector.shape_cast %42 : vector<2x16x16x3xf32> to vector<512x3xf32>
    %44 = arith.truncf %43 : vector<512x3xf32> to vector<512x3xbf16>
    %c5 = arith.constant 5 : index
    %c0_45 = arith.constant 0 : index
    %c0_46 = arith.constant 0 : index
    %45 = vector.load %arg1[%c5, %c0_45, %c0_46] : memref<9x3x8xbf16, #tpu.memory_space<vmem>>, vector<1x3x8xbf16>
    %46 = vector.shape_cast %45 : vector<1x3x8xbf16> to vector<3x8xbf16>
    %cst_47 = arith.constant dense<0.000000e+00> : vector<512x8xf32>
    %47 = tpu.matmul %44, %46, %cst_47 {dimension_numbers = #tpu.dot_dimension_numbers<[1], [0], [0], [1], [0, 0, 1, 1], [], []>} : vector<512x3xbf16>, vector<3x8xbf16>, vector<512x8xf32> -> vector<512x8xf32>
    %48 = arith.addf %40, %47 : vector<512x8xf32>
    %c0_48 = arith.constant 0 : index
    %c0_49 = arith.constant 0 : index
    %c2_50 = arith.constant 2 : index
    %c0_51 = arith.constant 0 : index
    %c0_52 = arith.constant 0 : index
    %49 = vector.load %arg0[%c0_48, %c0_49, %c2_50, %c0_51, %c0_52] : memref<1x2x18x18x3xf32, #tpu.memory_space<vmem>>, vector<1x2x16x16x3xf32>
    %50 = vector.shape_cast %49 : vector<1x2x16x16x3xf32> to vector<2x16x16x3xf32>
    %51 = vector.shape_cast %50 : vector<2x16x16x3xf32> to vector<512x3xf32>
    %52 = arith.truncf %51 : vector<512x3xf32> to vector<512x3xbf16>
    %c6 = arith.constant 6 : index
    %c0_53 = arith.constant 0 : index
    %c0_54 = arith.constant 0 : index
    %53 = vector.load %arg1[%c6, %c0_53, %c0_54] : memref<9x3x8xbf16, #tpu.memory_space<vmem>>, vector<1x3x8xbf16>
    %54 = vector.shape_cast %53 : vector<1x3x8xbf16> to vector<3x8xbf16>
    %cst_55 = arith.constant dense<0.000000e+00> : vector<512x8xf32>
    %55 = tpu.matmul %52, %54, %cst_55 {dimension_numbers = #tpu.dot_dimension_numbers<[1], [0], [0], [1], [0, 0, 1, 1], [], []>} : vector<512x3xbf16>, vector<3x8xbf16>, vector<512x8xf32> -> vector<512x8xf32>
    %56 = arith.addf %48, %55 : vector<512x8xf32>
    %c0_56 = arith.constant 0 : index
    %c0_57 = arith.constant 0 : index
    %c2_58 = arith.constant 2 : index
    %c1_59 = arith.constant 1 : index
    %c0_60 = arith.constant 0 : index
    %57 = vector.load %arg0[%c0_56, %c0_57, %c2_58, %c1_59, %c0_60] : memref<1x2x18x18x3xf32, #tpu.memory_space<vmem>>, vector<1x2x16x16x3xf32>
    %58 = vector.shape_cast %57 : vector<1x2x16x16x3xf32> to vector<2x16x16x3xf32>
    %59 = vector.shape_cast %58 : vector<2x16x16x3xf32> to vector<512x3xf32>
    %60 = arith.truncf %59 : vector<512x3xf32> to vector<512x3xbf16>
    %c7 = arith.constant 7 : index
    %c0_61 = arith.constant 0 : index
    %c0_62 = arith.constant 0 : index
    %61 = vector.load %arg1[%c7, %c0_61, %c0_62] : memref<9x3x8xbf16, #tpu.memory_space<vmem>>, vector<1x3x8xbf16>
    %62 = vector.shape_cast %61 : vector<1x3x8xbf16> to vector<3x8xbf16>
    %cst_63 = arith.constant dense<0.000000e+00> : vector<512x8xf32>
    %63 = tpu.matmul %60, %62, %cst_63 {dimension_numbers = #tpu.dot_dimension_numbers<[1], [0], [0], [1], [0, 0, 1, 1], [], []>} : vector<512x3xbf16>, vector<3x8xbf16>, vector<512x8xf32> -> vector<512x8xf32>
    %64 = arith.addf %56, %63 : vector<512x8xf32>
    %c0_64 = arith.constant 0 : index
    %c0_65 = arith.constant 0 : index
    %c2_66 = arith.constant 2 : index
    %c2_67 = arith.constant 2 : index
    %c0_68 = arith.constant 0 : index
    %65 = vector.load %arg0[%c0_64, %c0_65, %c2_66, %c2_67, %c0_68] : memref<1x2x18x18x3xf32, #tpu.memory_space<vmem>>, vector<1x2x16x16x3xf32>
    %66 = vector.shape_cast %65 : vector<1x2x16x16x3xf32> to vector<2x16x16x3xf32>
    %67 = vector.shape_cast %66 : vector<2x16x16x3xf32> to vector<512x3xf32>
    %68 = arith.truncf %67 : vector<512x3xf32> to vector<512x3xbf16>
    %c8 = arith.constant 8 : index
    %c0_69 = arith.constant 0 : index
    %c0_70 = arith.constant 0 : index
    %69 = vector.load %arg1[%c8, %c0_69, %c0_70] : memref<9x3x8xbf16, #tpu.memory_space<vmem>>, vector<1x3x8xbf16>
    %70 = vector.shape_cast %69 : vector<1x3x8xbf16> to vector<3x8xbf16>
    %cst_71 = arith.constant dense<0.000000e+00> : vector<512x8xf32>
    %71 = tpu.matmul %68, %70, %cst_71 {dimension_numbers = #tpu.dot_dimension_numbers<[1], [0], [0], [1], [0, 0, 1, 1], [], []>} : vector<512x3xbf16>, vector<3x8xbf16>, vector<512x8xf32> -> vector<512x8xf32>
    %72 = arith.addf %64, %71 : vector<512x8xf32>
    %c0_72 = arith.constant 0 : index
    %c0_73 = arith.constant 0 : index
    %73 = vector.load %arg2[%c0_72, %c0_73] : memref<1x8xf32, #tpu.memory_space<vmem>>, vector<1x8xf32>
    %74 = vector.broadcast %73 : vector<1x8xf32> to vector<512x8xf32>
    %75 = arith.mulf %72, %74 : vector<512x8xf32>
    %c0_74 = arith.constant 0 : index
    %c0_75 = arith.constant 0 : index
    %76 = vector.load %arg3[%c0_74, %c0_75] : memref<1x8xf32, #tpu.memory_space<vmem>>, vector<1x8xf32>
    %77 = vector.broadcast %76 : vector<1x8xf32> to vector<512x8xf32>
    %78 = arith.addf %75, %77 : vector<512x8xf32>
    %cst_76 = arith.constant 0.000000e+00 : f32
    %79 = vector.broadcast %cst_76 : f32 to vector<512x8xf32>
    %80 = arith.maximumf %78, %79 : vector<512x8xf32>
    %cst_77 = arith.constant 0.000000e+00 : f32
    %81 = vector.broadcast %cst_77 : f32 to vector<2x18x18x8xf32>
    %c0_78 = arith.constant 0 : index
    %c0_79 = arith.constant 0 : index
    %c0_80 = arith.constant 0 : index
    %c0_81 = arith.constant 0 : index
    %82 = vector.load %arg4[%c0_78, %c0_79, %c0_80, %c0_81] : memref<2x18x18x8xf32, #tpu.memory_space<vmem>>, vector<2x18x18x8xf32>
    tpu.vector_store %arg4[%c0_78, %c0_79, %c0_80, %c0_81], %81 {strides = array<i32>} : memref<2x18x18x8xf32, #tpu.memory_space<vmem>>, vector<2x18x18x8xf32>,
    %83 = vector.shape_cast %80 : vector<512x8xf32> to vector<2x16x16x8xf32>
    %c0_82 = arith.constant 0 : index
    %c1_83 = arith.constant 1 : index
    %c1_84 = arith.constant 1 : index
    %c0_85 = arith.constant 0 : index
    %84 = vector.load %arg4[%c0_82, %c1_83, %c1_84, %c0_85] : memref<2x18x18x8xf32, #tpu.memory_space<vmem>>, vector<2x16x16x8xf32>
    tpu.vector_store %arg4[%c0_82, %c1_83, %c1_84, %c0_85], %83 {strides = array<i32>} : memref<2x18x18x8xf32, #tpu.memory_space<vmem>>, vector<2x16x16x8xf32>,
    return
  }
}

module attributes {stable_mosaic.version = 11 : i64} {
  func.func @_cell_kernel(%arg0: memref<4x2x9x9x8xf32, #tpu.memory_space<vmem>>, %arg1: memref<9x8x16xbf16, #tpu.memory_space<vmem>>, %arg2: memref<1x16xf32, #tpu.memory_space<vmem>>, %arg3: memref<1x16xf32, #tpu.memory_space<vmem>>, %arg4: memref<16x16xbf16, #tpu.memory_space<vmem>>, %arg5: memref<1xf32, #tpu.memory_space<smem>>, %arg6: memref<2x8x8x16xf32, #tpu.memory_space<vmem>>, %arg7: memref<2x8x8x16xf32, #tpu.memory_space<vmem>>) attributes {dimension_semantics = [], scalar_prefetch = 0 : i64, scratch_operands = 0 : i64, tpu.core_type = #tpu.core_type<tc>} {
    %cst = arith.constant 0.000000e+00 : f32
    %0 = vector.broadcast %cst : f32 to vector<128x16xf32>
    %c0 = arith.constant 0 : index
    %c0_0 = arith.constant 0 : index
    %c0_1 = arith.constant 0 : index
    %c0_2 = arith.constant 0 : index
    %c0_3 = arith.constant 0 : index
    %1 = vector.load %arg0[%c0, %c0_0, %c0_1, %c0_2, %c0_3] : memref<4x2x9x9x8xf32, #tpu.memory_space<vmem>>, vector<1x2x8x8x8xf32>
    %2 = vector.shape_cast %1 : vector<1x2x8x8x8xf32> to vector<2x8x8x8xf32>
    %3 = vector.shape_cast %2 : vector<2x8x8x8xf32> to vector<128x8xf32>
    %4 = arith.truncf %3 : vector<128x8xf32> to vector<128x8xbf16>
    %c0_4 = arith.constant 0 : index
    %c0_5 = arith.constant 0 : index
    %c0_6 = arith.constant 0 : index
    %5 = vector.load %arg1[%c0_4, %c0_5, %c0_6] : memref<9x8x16xbf16, #tpu.memory_space<vmem>>, vector<1x8x16xbf16>
    %6 = vector.shape_cast %5 : vector<1x8x16xbf16> to vector<8x16xbf16>
    %cst_7 = arith.constant dense<0.000000e+00> : vector<128x16xf32>
    %7 = tpu.matmul %4, %6, %cst_7 {dimension_numbers = #tpu.dot_dimension_numbers<[1], [0], [0], [1], [0, 0, 1, 1], [], []>} : vector<128x8xbf16>, vector<8x16xbf16>, vector<128x16xf32> -> vector<128x16xf32>
    %8 = arith.addf %0, %7 : vector<128x16xf32>
    %c1 = arith.constant 1 : index
    %c0_8 = arith.constant 0 : index
    %c0_9 = arith.constant 0 : index
    %c0_10 = arith.constant 0 : index
    %c0_11 = arith.constant 0 : index
    %9 = vector.load %arg0[%c1, %c0_8, %c0_9, %c0_10, %c0_11] : memref<4x2x9x9x8xf32, #tpu.memory_space<vmem>>, vector<1x2x8x8x8xf32>
    %10 = vector.shape_cast %9 : vector<1x2x8x8x8xf32> to vector<2x8x8x8xf32>
    %11 = vector.shape_cast %10 : vector<2x8x8x8xf32> to vector<128x8xf32>
    %12 = arith.truncf %11 : vector<128x8xf32> to vector<128x8xbf16>
    %c1_12 = arith.constant 1 : index
    %c0_13 = arith.constant 0 : index
    %c0_14 = arith.constant 0 : index
    %13 = vector.load %arg1[%c1_12, %c0_13, %c0_14] : memref<9x8x16xbf16, #tpu.memory_space<vmem>>, vector<1x8x16xbf16>
    %14 = vector.shape_cast %13 : vector<1x8x16xbf16> to vector<8x16xbf16>
    %cst_15 = arith.constant dense<0.000000e+00> : vector<128x16xf32>
    %15 = tpu.matmul %12, %14, %cst_15 {dimension_numbers = #tpu.dot_dimension_numbers<[1], [0], [0], [1], [0, 0, 1, 1], [], []>} : vector<128x8xbf16>, vector<8x16xbf16>, vector<128x16xf32> -> vector<128x16xf32>
    %16 = arith.addf %8, %15 : vector<128x16xf32>
    %c0_16 = arith.constant 0 : index
    %c0_17 = arith.constant 0 : index
    %c0_18 = arith.constant 0 : index
    %c1_19 = arith.constant 1 : index
    %c0_20 = arith.constant 0 : index
    %17 = vector.load %arg0[%c0_16, %c0_17, %c0_18, %c1_19, %c0_20] : memref<4x2x9x9x8xf32, #tpu.memory_space<vmem>>, vector<1x2x8x8x8xf32>
    %18 = vector.shape_cast %17 : vector<1x2x8x8x8xf32> to vector<2x8x8x8xf32>
    %19 = vector.shape_cast %18 : vector<2x8x8x8xf32> to vector<128x8xf32>
    %20 = arith.truncf %19 : vector<128x8xf32> to vector<128x8xbf16>
    %c2 = arith.constant 2 : index
    %c0_21 = arith.constant 0 : index
    %c0_22 = arith.constant 0 : index
    %21 = vector.load %arg1[%c2, %c0_21, %c0_22] : memref<9x8x16xbf16, #tpu.memory_space<vmem>>, vector<1x8x16xbf16>
    %22 = vector.shape_cast %21 : vector<1x8x16xbf16> to vector<8x16xbf16>
    %cst_23 = arith.constant dense<0.000000e+00> : vector<128x16xf32>
    %23 = tpu.matmul %20, %22, %cst_23 {dimension_numbers = #tpu.dot_dimension_numbers<[1], [0], [0], [1], [0, 0, 1, 1], [], []>} : vector<128x8xbf16>, vector<8x16xbf16>, vector<128x16xf32> -> vector<128x16xf32>
    %24 = arith.addf %16, %23 : vector<128x16xf32>
    %c2_24 = arith.constant 2 : index
    %c0_25 = arith.constant 0 : index
    %c0_26 = arith.constant 0 : index
    %c0_27 = arith.constant 0 : index
    %c0_28 = arith.constant 0 : index
    %25 = vector.load %arg0[%c2_24, %c0_25, %c0_26, %c0_27, %c0_28] : memref<4x2x9x9x8xf32, #tpu.memory_space<vmem>>, vector<1x2x8x8x8xf32>
    %26 = vector.shape_cast %25 : vector<1x2x8x8x8xf32> to vector<2x8x8x8xf32>
    %27 = vector.shape_cast %26 : vector<2x8x8x8xf32> to vector<128x8xf32>
    %28 = arith.truncf %27 : vector<128x8xf32> to vector<128x8xbf16>
    %c3 = arith.constant 3 : index
    %c0_29 = arith.constant 0 : index
    %c0_30 = arith.constant 0 : index
    %29 = vector.load %arg1[%c3, %c0_29, %c0_30] : memref<9x8x16xbf16, #tpu.memory_space<vmem>>, vector<1x8x16xbf16>
    %30 = vector.shape_cast %29 : vector<1x8x16xbf16> to vector<8x16xbf16>
    %cst_31 = arith.constant dense<0.000000e+00> : vector<128x16xf32>
    %31 = tpu.matmul %28, %30, %cst_31 {dimension_numbers = #tpu.dot_dimension_numbers<[1], [0], [0], [1], [0, 0, 1, 1], [], []>} : vector<128x8xbf16>, vector<8x16xbf16>, vector<128x16xf32> -> vector<128x16xf32>
    %32 = arith.addf %24, %31 : vector<128x16xf32>
    %c3_32 = arith.constant 3 : index
    %c0_33 = arith.constant 0 : index
    %c0_34 = arith.constant 0 : index
    %c0_35 = arith.constant 0 : index
    %c0_36 = arith.constant 0 : index
    %33 = vector.load %arg0[%c3_32, %c0_33, %c0_34, %c0_35, %c0_36] : memref<4x2x9x9x8xf32, #tpu.memory_space<vmem>>, vector<1x2x8x8x8xf32>
    %34 = vector.shape_cast %33 : vector<1x2x8x8x8xf32> to vector<2x8x8x8xf32>
    %35 = vector.shape_cast %34 : vector<2x8x8x8xf32> to vector<128x8xf32>
    %36 = arith.truncf %35 : vector<128x8xf32> to vector<128x8xbf16>
    %c4 = arith.constant 4 : index
    %c0_37 = arith.constant 0 : index
    %c0_38 = arith.constant 0 : index
    %37 = vector.load %arg1[%c4, %c0_37, %c0_38] : memref<9x8x16xbf16, #tpu.memory_space<vmem>>, vector<1x8x16xbf16>
    %38 = vector.shape_cast %37 : vector<1x8x16xbf16> to vector<8x16xbf16>
    %cst_39 = arith.constant dense<0.000000e+00> : vector<128x16xf32>
    %39 = tpu.matmul %36, %38, %cst_39 {dimension_numbers = #tpu.dot_dimension_numbers<[1], [0], [0], [1], [0, 0, 1, 1], [], []>} : vector<128x8xbf16>, vector<8x16xbf16>, vector<128x16xf32> -> vector<128x16xf32>
    %40 = arith.addf %32, %39 : vector<128x16xf32>
    %c2_40 = arith.constant 2 : index
    %c0_41 = arith.constant 0 : index
    %c0_42 = arith.constant 0 : index
    %c1_43 = arith.constant 1 : index
    %c0_44 = arith.constant 0 : index
    %41 = vector.load %arg0[%c2_40, %c0_41, %c0_42, %c1_43, %c0_44] : memref<4x2x9x9x8xf32, #tpu.memory_space<vmem>>, vector<1x2x8x8x8xf32>
    %42 = vector.shape_cast %41 : vector<1x2x8x8x8xf32> to vector<2x8x8x8xf32>
    %43 = vector.shape_cast %42 : vector<2x8x8x8xf32> to vector<128x8xf32>
    %44 = arith.truncf %43 : vector<128x8xf32> to vector<128x8xbf16>
    %c5 = arith.constant 5 : index
    %c0_45 = arith.constant 0 : index
    %c0_46 = arith.constant 0 : index
    %45 = vector.load %arg1[%c5, %c0_45, %c0_46] : memref<9x8x16xbf16, #tpu.memory_space<vmem>>, vector<1x8x16xbf16>
    %46 = vector.shape_cast %45 : vector<1x8x16xbf16> to vector<8x16xbf16>
    %cst_47 = arith.constant dense<0.000000e+00> : vector<128x16xf32>
    %47 = tpu.matmul %44, %46, %cst_47 {dimension_numbers = #tpu.dot_dimension_numbers<[1], [0], [0], [1], [0, 0, 1, 1], [], []>} : vector<128x8xbf16>, vector<8x16xbf16>, vector<128x16xf32> -> vector<128x16xf32>
    %48 = arith.addf %40, %47 : vector<128x16xf32>
    %c0_48 = arith.constant 0 : index
    %c0_49 = arith.constant 0 : index
    %c1_50 = arith.constant 1 : index
    %c0_51 = arith.constant 0 : index
    %c0_52 = arith.constant 0 : index
    %49 = vector.load %arg0[%c0_48, %c0_49, %c1_50, %c0_51, %c0_52] : memref<4x2x9x9x8xf32, #tpu.memory_space<vmem>>, vector<1x2x8x8x8xf32>
    %50 = vector.shape_cast %49 : vector<1x2x8x8x8xf32> to vector<2x8x8x8xf32>
    %51 = vector.shape_cast %50 : vector<2x8x8x8xf32> to vector<128x8xf32>
    %52 = arith.truncf %51 : vector<128x8xf32> to vector<128x8xbf16>
    %c6 = arith.constant 6 : index
    %c0_53 = arith.constant 0 : index
    %c0_54 = arith.constant 0 : index
    %53 = vector.load %arg1[%c6, %c0_53, %c0_54] : memref<9x8x16xbf16, #tpu.memory_space<vmem>>, vector<1x8x16xbf16>
    %54 = vector.shape_cast %53 : vector<1x8x16xbf16> to vector<8x16xbf16>
    %cst_55 = arith.constant dense<0.000000e+00> : vector<128x16xf32>
    %55 = tpu.matmul %52, %54, %cst_55 {dimension_numbers = #tpu.dot_dimension_numbers<[1], [0], [0], [1], [0, 0, 1, 1], [], []>} : vector<128x8xbf16>, vector<8x16xbf16>, vector<128x16xf32> -> vector<128x16xf32>
    %56 = arith.addf %48, %55 : vector<128x16xf32>
    %c1_56 = arith.constant 1 : index
    %c0_57 = arith.constant 0 : index
    %c1_58 = arith.constant 1 : index
    %c0_59 = arith.constant 0 : index
    %c0_60 = arith.constant 0 : index
    %57 = vector.load %arg0[%c1_56, %c0_57, %c1_58, %c0_59, %c0_60] : memref<4x2x9x9x8xf32, #tpu.memory_space<vmem>>, vector<1x2x8x8x8xf32>
    %58 = vector.shape_cast %57 : vector<1x2x8x8x8xf32> to vector<2x8x8x8xf32>
    %59 = vector.shape_cast %58 : vector<2x8x8x8xf32> to vector<128x8xf32>
    %60 = arith.truncf %59 : vector<128x8xf32> to vector<128x8xbf16>
    %c7 = arith.constant 7 : index
    %c0_61 = arith.constant 0 : index
    %c0_62 = arith.constant 0 : index
    %61 = vector.load %arg1[%c7, %c0_61, %c0_62] : memref<9x8x16xbf16, #tpu.memory_space<vmem>>, vector<1x8x16xbf16>
    %62 = vector.shape_cast %61 : vector<1x8x16xbf16> to vector<8x16xbf16>
    %cst_63 = arith.constant dense<0.000000e+00> : vector<128x16xf32>
    %63 = tpu.matmul %60, %62, %cst_63 {dimension_numbers = #tpu.dot_dimension_numbers<[1], [0], [0], [1], [0, 0, 1, 1], [], []>} : vector<128x8xbf16>, vector<8x16xbf16>, vector<128x16xf32> -> vector<128x16xf32>
    %64 = arith.addf %56, %63 : vector<128x16xf32>
    %c0_64 = arith.constant 0 : index
    %c0_65 = arith.constant 0 : index
    %c1_66 = arith.constant 1 : index
    %c1_67 = arith.constant 1 : index
    %c0_68 = arith.constant 0 : index
    %65 = vector.load %arg0[%c0_64, %c0_65, %c1_66, %c1_67, %c0_68] : memref<4x2x9x9x8xf32, #tpu.memory_space<vmem>>, vector<1x2x8x8x8xf32>
    %66 = vector.shape_cast %65 : vector<1x2x8x8x8xf32> to vector<2x8x8x8xf32>
    %67 = vector.shape_cast %66 : vector<2x8x8x8xf32> to vector<128x8xf32>
    %68 = arith.truncf %67 : vector<128x8xf32> to vector<128x8xbf16>
    %c8 = arith.constant 8 : index
    %c0_69 = arith.constant 0 : index
    %c0_70 = arith.constant 0 : index
    %69 = vector.load %arg1[%c8, %c0_69, %c0_70] : memref<9x8x16xbf16, #tpu.memory_space<vmem>>, vector<1x8x16xbf16>
    %70 = vector.shape_cast %69 : vector<1x8x16xbf16> to vector<8x16xbf16>
    %cst_71 = arith.constant dense<0.000000e+00> : vector<128x16xf32>
    %71 = tpu.matmul %68, %70, %cst_71 {dimension_numbers = #tpu.dot_dimension_numbers<[1], [0], [0], [1], [0, 0, 1, 1], [], []>} : vector<128x8xbf16>, vector<8x16xbf16>, vector<128x16xf32> -> vector<128x16xf32>
    %72 = arith.addf %64, %71 : vector<128x16xf32>
    %c0_72 = arith.constant 0 : index
    %c0_73 = arith.constant 0 : index
    %73 = vector.load %arg2[%c0_72, %c0_73] : memref<1x16xf32, #tpu.memory_space<vmem>>, vector<1x16xf32>
    %74 = vector.broadcast %73 : vector<1x16xf32> to vector<128x16xf32>
    %75 = arith.mulf %72, %74 : vector<128x16xf32>
    %c0_74 = arith.constant 0 : index
    %c0_75 = arith.constant 0 : index
    %76 = vector.load %arg3[%c0_74, %c0_75] : memref<1x16xf32, #tpu.memory_space<vmem>>, vector<1x16xf32>
    %77 = vector.broadcast %76 : vector<1x16xf32> to vector<128x16xf32>
    %78 = arith.addf %75, %77 : vector<128x16xf32>
    %cst_76 = arith.constant 0.000000e+00 : f32
    %79 = vector.broadcast %cst_76 : f32 to vector<128x16xf32>
    %80 = arith.maximumf %78, %79 : vector<128x16xf32>
    %c0_77 = arith.constant 0 : index
    %81 = memref.load %arg5[%c0_77] : memref<1xf32, #tpu.memory_space<smem>>
    %82 = vector.broadcast %81 : f32 to vector<128x16xf32>
    %83 = arith.mulf %80, %82 : vector<128x16xf32>
    %84 = math.exp %83 : vector<128x16xf32>
    %85 = arith.truncf %84 : vector<128x16xf32> to vector<128x16xbf16>
    %c0_78 = arith.constant 0 : index
    %c0_79 = arith.constant 0 : index
    %86 = vector.load %arg4[%c0_78, %c0_79] : memref<16x16xbf16, #tpu.memory_space<vmem>>, vector<16x16xbf16>
    %cst_80 = arith.constant dense<0.000000e+00> : vector<128x16xf32>
    %87 = tpu.matmul %85, %86, %cst_80 {dimension_numbers = #tpu.dot_dimension_numbers<[1], [0], [0], [1], [0, 0, 1, 1], [], []>} : vector<128x16xbf16>, vector<16x16xbf16>, vector<128x16xf32> -> vector<128x16xf32>
    %88 = vector.shape_cast %87 : vector<128x16xf32> to vector<2x8x8x16xf32>
    %c0_81 = arith.constant 0 : index
    %c0_82 = arith.constant 0 : index
    %c0_83 = arith.constant 0 : index
    %c0_84 = arith.constant 0 : index
    %89 = vector.load %arg7[%c0_81, %c0_82, %c0_83, %c0_84] : memref<2x8x8x16xf32, #tpu.memory_space<vmem>>, vector<2x8x8x16xf32>
    tpu.vector_store %arg7[%c0_81, %c0_82, %c0_83, %c0_84], %88 {strides = array<i32>} : memref<2x8x8x16xf32, #tpu.memory_space<vmem>>, vector<2x8x8x16xf32>,
    %90 = vector.shape_cast %80 : vector<128x16xf32> to vector<2x8x8x16xf32>
    %c0_85 = arith.constant 0 : index
    %c0_86 = arith.constant 0 : index
    %c0_87 = arith.constant 0 : index
    %c0_88 = arith.constant 0 : index
    %91 = vector.load %arg6[%c0_85, %c0_86, %c0_87, %c0_88] : memref<2x8x8x16xf32, #tpu.memory_space<vmem>>, vector<2x8x8x16xf32>
    tpu.vector_store %arg6[%c0_85, %c0_86, %c0_87, %c0_88], %90 {strides = array<i32>} : memref<2x8x8x16xf32, #tpu.memory_space<vmem>>, vector<2x8x8x16xf32>,
    return
  }
}

module attributes {stable_mosaic.version = 11 : i64} {
  func.func @_head_kernel(%arg0: memref<2x8x8x16xf32, #tpu.memory_space<vmem>>, %arg1: memref<16x32xbf16, #tpu.memory_space<vmem>>, %arg2: memref<1x32xf32, #tpu.memory_space<vmem>>, %arg3: memref<1x32xf32, #tpu.memory_space<vmem>>, %arg4: memref<32x10xf32, #tpu.memory_space<vmem>>, %arg5: memref<1x10xf32, #tpu.memory_space<vmem>>, %arg6: memref<2x10xf32, #tpu.memory_space<vmem>>) attributes {dimension_semantics = [], scalar_prefetch = 0 : i64, scratch_operands = 0 : i64, tpu.core_type = #tpu.core_type<tc>} {
    %c0 = arith.constant 0 : index
    %c0_0 = arith.constant 0 : index
    %c0_1 = arith.constant 0 : index
    %c0_2 = arith.constant 0 : index
    %0 = vector.load %arg0[%c0, %c0_0, %c0_1, %c0_2] : memref<2x8x8x16xf32, #tpu.memory_space<vmem>>, vector<2x8x8x16xf32>
    %1 = vector.shape_cast %0 : vector<2x8x8x16xf32> to vector<128x16xf32>
    %2 = arith.truncf %1 : vector<128x16xf32> to vector<128x16xbf16>
    %c0_3 = arith.constant 0 : index
    %c0_4 = arith.constant 0 : index
    %3 = vector.load %arg1[%c0_3, %c0_4] : memref<16x32xbf16, #tpu.memory_space<vmem>>, vector<16x32xbf16>
    %cst = arith.constant dense<0.000000e+00> : vector<128x32xf32>
    %4 = tpu.matmul %2, %3, %cst {dimension_numbers = #tpu.dot_dimension_numbers<[1], [0], [0], [1], [0, 0, 1, 1], [], []>} : vector<128x16xbf16>, vector<16x32xbf16>, vector<128x32xf32> -> vector<128x32xf32>
    %c0_5 = arith.constant 0 : index
    %c0_6 = arith.constant 0 : index
    %5 = vector.load %arg2[%c0_5, %c0_6] : memref<1x32xf32, #tpu.memory_space<vmem>>, vector<1x32xf32>
    %6 = vector.broadcast %5 : vector<1x32xf32> to vector<128x32xf32>
    %7 = arith.mulf %4, %6 : vector<128x32xf32>
    %c0_7 = arith.constant 0 : index
    %c0_8 = arith.constant 0 : index
    %8 = vector.load %arg3[%c0_7, %c0_8] : memref<1x32xf32, #tpu.memory_space<vmem>>, vector<1x32xf32>
    %9 = vector.broadcast %8 : vector<1x32xf32> to vector<128x32xf32>
    %10 = arith.addf %7, %9 : vector<128x32xf32>
    %cst_9 = arith.constant 0.000000e+00 : f32
    %11 = vector.broadcast %cst_9 : f32 to vector<128x32xf32>
    %12 = arith.maximumf %10, %11 : vector<128x32xf32>
    %13 = vector.shape_cast %12 : vector<128x32xf32> to vector<2x64x32xf32>
    %cst_10 = arith.constant dense<0.000000e+00> : vector<2x32xf32>
    %14 = vector.multi_reduction <add>, %13, %cst_10 [1] : vector<2x64x32xf32> to vector<2x32xf32>
    %cst_11 = arith.constant 1.562500e-02 : f32
    %15 = vector.broadcast %cst_11 : f32 to vector<2x32xf32>
    %16 = arith.mulf %14, %15 : vector<2x32xf32>
    %c0_12 = arith.constant 0 : index
    %c0_13 = arith.constant 0 : index
    %17 = vector.load %arg4[%c0_12, %c0_13] : memref<32x10xf32, #tpu.memory_space<vmem>>, vector<32x10xf32>
    %cst_14 = arith.constant dense<0.000000e+00> : vector<2x10xf32>
    %18 = tpu.matmul %16, %17, %cst_14 {dimension_numbers = #tpu.dot_dimension_numbers<[1], [0], [0], [1], [0, 0, 1, 1], [], []>} : vector<2x32xf32>, vector<32x10xf32>, vector<2x10xf32> -> vector<2x10xf32>
    %c0_15 = arith.constant 0 : index
    %c0_16 = arith.constant 0 : index
    %19 = vector.load %arg5[%c0_15, %c0_16] : memref<1x10xf32, #tpu.memory_space<vmem>>, vector<1x10xf32>
    %20 = vector.broadcast %19 : vector<1x10xf32> to vector<2x10xf32>
    %21 = arith.addf %18, %20 : vector<2x10xf32>
    %c0_17 = arith.constant 0 : index
    %c0_18 = arith.constant 0 : index
    %22 = vector.load %arg6[%c0_17, %c0_18] : memref<2x10xf32, #tpu.memory_space<vmem>>, vector<2x10xf32>
    tpu.vector_store %arg6[%c0_17, %c0_18], %21 {strides = array<i32>} : memref<2x10xf32, #tpu.memory_space<vmem>>, vector<2x10xf32>,
    return
  }
}

</mosaic_0001>

<bundles_post_ra>
// kernel: _lambda_.7
= control target key start
LH: loop header
LB: loop body
LE: loop exit
PB: predicated region body
PF: predicated region fallthrough
CT: control target
= control target key end

     0   :  { %vm57_vm0 = vcmask 130048   ;;  %s647_s0 = inlined_call_operand.vmem [shape: f32[2,8,8,16], index: 0, kind: input, shape index: {}]   ;;  %s648_s1 = inlined_call_operand.vmem [shape: bf16[16,32], index: 1, kind: input, shape index: {}]   ;;  %s649_s2 = inlined_call_operand.vmem [shape: f32[1,32], index: 2, kind: input, shape index: {}]   ;;  %s650_s3 = inlined_call_operand.vmem [shape: f32[1,32], index: 3, kind: input, shape index: {}]   ;;  %s651_s4 = inlined_call_operand.vmem [shape: f32[32,10], index: 4, kind: input, shape index: {}]   ;;  %s652_s5 = inlined_call_operand.vmem [shape: f32[1,10], index: 5, kind: input, shape index: {}]   ;;  %s653_s6 = inlined_call_operand.hbm [shape: f32[2,10], index: 6, kind: output, shape index: {}]  }
   0x1   :  { %v450_v0 = vld [vmem:[%s648_s1] sm:$0xff]   ;;  %v26_v2 = vld [vmem:[%s647_s0 + $0x8] sm:$0xff]  ;;  %v27_v3 = vld [vmem:[%s647_s0 + $0x10] sm:$0xff] }
   0x2   :  { %v25_v1 = vld [vmem:[%s647_s0] sm:$0xff]  ;;  %416 = vmatprep.subr.bf16.mxu0 %v450_v0  ;;  %v28_v5 = vld [vmem:[%s647_s0 + $0x18] sm:$0xff]  ;;  %v30_v7 = vld [vmem:[%s647_s0 + $0x28] sm:$0xff]  ;;  %445 = vmatprep.subr.bf16.mxu1 %v450_v0 }
   0x3   :  { %v41_v4 = vpack.c.bf16 %v26_v2, %v25_v1  ;;  %v29_v6 = vld [vmem:[%s647_s0 + $0x20] sm:$0xff]  ;;  %417 = vmatpush3.bf16.msra.mxu0 %v450_v0  ;;  %v42_v8 = vpack.c.bf16 %v28_v5, %v27_v3  ;;  %446 = vmatpush3.bf16.msra.mxu1 %v450_v0  ;;  %v38_v11 = vld [vmem:[%s647_s0 + $0x68] sm:$0xff]  ;;  %v39_v12 = vld [vmem:[%s647_s0 + $0x70] sm:$0xff] }
   0x4   :  { %v43_v9 = vpack.c.bf16 %v30_v7, %v29_v6  ;;  %v37_v10 = vld [vmem:[%s647_s0 + $0x60] sm:$0xff]  ;;  %v40_v14 = vld [vmem:[%s647_s0 + $0x78] sm:$0xff] }
   0x5   :  { %418 = vmatprep.mubr.msk.bf16.mxu0 %vm57_vm0, %v41_v4  ;;  %v47_v13 = vpack.c.bf16 %v38_v11, %v37_v10 }
   0x6   :  { %419 = vmatmul.mubr.msk.bf16.vlgmr.msra.gmra.mxu0 %vm57_vm0, %v42_v8 }
   0x7   :  { %11 = vsyncpa [#allocation3], 0  ;;  %422 = vmatprep.mubr.msk.bf16.mxu0 %vm57_vm0, %v43_v9  ;;  %v31_v15 = vld [vmem:[%s647_s0 + $0x30] sm:$0xff]  ;;  %v32_v16 = vld [vmem:[%s647_s0 + $0x38] sm:$0xff]  ;;  %v48_v17 = vpack.c.bf16 %v40_v14, %v39_v12  ;;  %430 = vmatprep.mubr.msk.bf16.mxu1 %vm57_vm0, %v47_v13  ;;  %v473_v26 = vmov 0.0   ;;  %vm474_vm1 = vmmov 0  }
   0x8   :  { %v33_v18 = vld [vmem:[%s647_s0 + $0x40] sm:$0xff]  ;;  %v34_v19 = vld [vmem:[%s647_s0 + $0x48] sm:$0xff]  ;;  %v44_v20 = vpack.c.bf16 %v32_v16, %v31_v15  ;;  %v35_v22 = vld [vmem:[%s647_s0 + $0x50] sm:$0xff]  ;;  %434 = vmatprep.subr.mxu1 %v473_v26  ;;  %vm241_vm2 = vcmask 261120   ;;  %vm299_vm3 = vcmask 1041409   ;;  %vm373_vm4 = vcmask 74752  }
   0x9   :  { %431 = vmatmul.mubr.msk.bf16.vlgmr.msra.gmra.mxu1 %vm57_vm0, %v48_v17  ;;  %v45_v21 = vpack.c.bf16 %v34_v19, %v33_v18  ;;  %v36_v23 = vld [vmem:[%s647_s0 + $0x58] sm:$0xff]  ;;  %v288_v27 = vld [vmem:[%s651_s4 + $0x10] sm:$0xff]  ;;  %v287_v28 = vld [vmem:[%s651_s4 + $0x8] sm:$0xff] }
   0xa   :  { %v46_v24 = vpack.c.bf16 %v36_v23, %v35_v22  ;;  %v289_v25 = vld [vmem:[%s651_s4 + $0x18] sm:$0xff]  ;;  %442 = vmatprep.mubr.msk.f32.mxu1 %vm474_vm1, %v473_v26  ;;  %v286_v29 = vld [vmem:[%s651_s4] sm:$0xff]  ;;  %s475_s4 = smov [#allocation2]  }
   0xb   :  { %435 = vmatpush3.msra.mxu1 %v289_v25  ;;  %v585_v31 = vld [vmem:[%s649_s2] ss:$0 sm:$0xff]  ;;  %s381_s16 = sshll.u32 %s475_s4, 4  ;;  %s382_s16 = int_to_ptr.vmem [resolvable:$true] %s381_s16 }
   0xc   :  { %436 = vmatprep.subr.mxu1 %v473_v26  ;;  %v592_v35 = vld [vmem:[%s650_s3] ss:$0 sm:$0xff]  ;;  %s451_s17 = scalar_lea.vmem %s382_s16, 32  ;;  %p456_p1 = scmp.lt.s32.totalorder %s382_s16, %s382_s16 }
   0xd   :  { %437 = vmatpush3.msra.mxu1 %v288_v27  ;;  %p452_p0 = scmp.ne.s32.totalorder %s382_s16, %s451_s17  ;;  %p457_p2 = scmp.lt.s32.totalorder %s451_s17, %s451_s17 }
   0xe   :  { %423 = vmatmul.mubr.msk.bf16.gmra.mxu0 %vm57_vm0, %v44_v20  ;;  %438 = vmatprep.subr.mxu1 %v473_v26 }
   0xf   :  { %426 = vmatprep.mubr.msk.bf16.mxu0 %vm57_vm0, %v45_v21  ;;  %439 = vmatpush3.msra.mxu1 %v287_v28  ;;  %p458_p3 = por %p457_p2, %p456_p1 }
  0x10   :  { %440 = vmatprep.subr.mxu1 %v473_v26 }
  0x11   :  { %441 = vmatpush3.msra.mxu1 %v286_v29  ;;  %p459_p4 = pnand %p458_p3, %p452_p0 }
  0x16   :  { %427 = vmatmul.mubr.msk.bf16.gmra.mxu0 %vm57_vm0, %v46_v24 }
  0xc6   :  { %v420_v30 = vpop.f32.mrf.mxu0 }
  0xc7   :  { %v188_v33 = vmul.f32 %v420_v30, %v585_v31 }
  0xc8   :  { %v116_v32 = vpop.f32.mrf.mxu0 }
  0xc9   :  { %v186_v34 = vmul.f32 %v585_v31, %v116_v32  ;;  %v211_v40 = vadd.f32 %v592_v35, %v188_v33  ;;  %v432_v48 = vpop.f32.mrf.mxu1 }
  0xca   :  { %v421_v36 = vpop.f32.mrf.mxu0  ;;  %v200_v33 = vmul.f32 %v432_v48, %v585_v31 }
  0xcb   :  { %v209_v37 = vadd.f32 %v592_v35, %v186_v34  ;;  %v189_v38 = vmul.f32 %v421_v36, %v585_v31  ;;  %v227_v49 = vmax.f32 %v211_v40, 0.0  ;;  %v164_v61 = vpop.f32.mrf.mxu1 }
  0xcc   :  { %v119_v39 = vpop.f32.mrf.mxu0  ;;  %v198_v20 = vmul.f32 %v585_v31, %v164_v61 }
  0xcd   :  { %v187_v41 = vmul.f32 %v585_v31, %v119_v39  ;;  %v225_v43 = vmax.f32 %v209_v37, 0.0  ;;  %v212_v44 = vadd.f32 %v592_v35, %v189_v38  ;;  %v245_v62 = vsel %vm241_vm2, %v227_v49, 0.0  ;;  %v433_v9 = vpop.f32.mrf.mxu1 }
  0xce   :  { %v424_v42 = vpop.f32.mrf.mxu0  ;;  %v221_v37 = vadd.f32 %v592_v35, %v198_v20  ;;  %v201_v40 = vmul.f32 %v433_v9, %v585_v31 }
  0xcf   :  { %v210_v45 = vadd.f32 %v592_v35, %v187_v41  ;;  %v192_v46 = vmul.f32 %v424_v42, %v585_v31  ;;  %v242_v53 = vsel %vm241_vm2, %v225_v43, 0.0  ;;  %v228_v54 = vmax.f32 %v212_v44, 0.0  ;;  %v167_v22 = vpop.f32.mrf.mxu1 }
  0xd0   :  { %v132_v47 = vpop.f32.mrf.mxu0  ;;  %v199_v32 = vmul.f32 %v585_v31, %v167_v22  ;;  %v237_v48 = vmax.f32 %v221_v37, 0.0 }
  0xd1   :  { %v226_v50 = vmax.f32 %v210_v45, 0.0  ;;  %v190_v51 = vmul.f32 %v585_v31, %v132_v47  ;;  %v215_v58 = vadd.f32 %v592_v35, %v192_v46  ;;  %v247_v3 = vsel %vm241_vm2, %v228_v54, 0.0 }
  0xd2   :  { %v425_v52 = vpop.f32.mrf.mxu0  ;;  %v222_v44 = vadd.f32 %v592_v35, %v199_v32  ;;  %v223_v47 = vadd.f32 %v592_v35, %v200_v33 }
  0xd3   :  { %v243_v55 = vsel %vm241_vm2, %v226_v50, 0.0  ;;  %v213_v56 = vadd.f32 %v592_v35, %v190_v51  ;;  %v193_v59 = vmul.f32 %v425_v52, %v585_v31  ;;  %v231_v5 = vmax.f32 %v215_v58, 0.0 }
  0xd4   :  { %v244_v57 = vadd.f32 %v243_v55, %v242_v53  ;;  %v135_v60 = vpop.f32.mrf.mxu0  ;;  %v224_v52 = vadd.f32 %v592_v35, %v201_v40  ;;  %v239_v54 = vmax.f32 %v223_v47, 0.0  ;;  %v270_v55 = vsel %vm241_vm2, %v237_v48, 0.0 }
  0xd5   :  { %v229_v63 = vmax.f32 %v213_v56, 0.0  ;;  %v191_v0 = vmul.f32 %v585_v31, %v135_v60  ;;  %v216_v7 = vadd.f32 %v592_v35, %v193_v59  ;;  %v253_v23 = vsel %vm241_vm2, %v231_v5, 0.0 }
  0xd6   :  { %v246_v1 = vadd.f32 %v245_v62, %v244_v57  ;;  %v428_v2 = vpop.f32.mrf.mxu0  ;;  %v240_v58 = vmax.f32 %v224_v52, 0.0  ;;  %v274_v61 = vsel %vm241_vm2, %v239_v54, 0.0 }
  0xd7   :  { %v214_v4 = vadd.f32 %v592_v35, %v191_v0  ;;  %v249_v10 = vsel %vm241_vm2, %v229_v63, 0.0  ;;  %v196_v12 = vmul.f32 %v428_v2, %v585_v31  ;;  %v232_v24 = vmax.f32 %v216_v7, 0.0 }
  0xd8   :  { %v248_v6 = vadd.f32 %v247_v3, %v246_v1  ;;  %v148_v8 = vpop.f32.mrf.mxu0  ;;  %v276_v0 = vsel %vm241_vm2, %v240_v58, 0.0 }
  0xd9   :  { %v230_v11 = vmax.f32 %v214_v4, 0.0  ;;  %v194_v13 = vmul.f32 %v585_v31, %v148_v8  ;;  %v219_v25 = vadd.f32 %v592_v35, %v196_v12  ;;  %v255_v34 = vsel %vm241_vm2, %v232_v24, 0.0 }
  0xda   :  { %v250_v14 = vadd.f32 %v249_v10, %v248_v6  ;;  %v429_v15 = vpop.f32.mrf.mxu0 }
  0xdb   :  { %v251_v16 = vsel %vm241_vm2, %v230_v11, 0.0  ;;  %v217_v17 = vadd.f32 %v592_v35, %v194_v13  ;;  %v197_v18 = vmul.f32 %v429_v15, %v585_v31  ;;  %v235_v36 = vmax.f32 %v219_v25, 0.0  ;;  %v400_v13 = vld [vmem:[%s652_s5] ss:$0 sm:$0xff] }
  0xdc   :  { %v252_v19 = vadd.f32 %v251_v16, %v250_v14  ;;  %v151_v21 = vpop.f32.mrf.mxu0 }
  0xdd   :  { %v195_v26 = vmul.f32 %v585_v31, %v151_v21  ;;  %v233_v28 = vmax.f32 %v217_v17, 0.0  ;;  %v220_v29 = vadd.f32 %v592_v35, %v197_v18  ;;  %v266_v46 = vsel %vm241_vm2, %v235_v36, 0.0 }
  0xde   :  { %v254_v27 = vadd.f32 %v253_v23, %v252_v19  ;;  %v238_v31 = vmax.f32 %v222_v44, 0.0 }
  0xdf   :  { %v218_v30 = vadd.f32 %v592_v35, %v195_v26  ;;  %v263_v41 = vsel %vm241_vm2, %v233_v28, 0.0  ;;  %v236_v42 = vmax.f32 %v220_v29, 0.0 }
  0xe0   :  { %v256_v39 = vadd.f32 %v255_v34, %v254_v27  ;;  %v272_v59 = vsel %vm241_vm2, %v238_v31, 0.0 }
  0xe1   :  { %v234_v38 = vmax.f32 %v218_v30, 0.0  ;;  %v268_v51 = vsel %vm241_vm2, %v236_v42, 0.0 }
  0xe2   :  { %v257_v49 = vrot.slane %v256_v39, 4 }
  0xe3   :  { %v264_v43 = vsel %vm241_vm2, %v234_v38, 0.0 }
  0xe4   :  { %v265_v45 = vadd.f32 %v264_v43, %v263_v41  ;;  %v258_v56 = vadd.f32 %v257_v49, %v256_v39 }
  0xe6   :  { %v267_v50 = vadd.f32 %v266_v46, %v265_v45  ;;  %v259_v62 = vrot.slane %v258_v56, 2 }
  0xe8   :  { %v269_v53 = vadd.f32 %v268_v51, %v267_v50  ;;  %v260_v35 = vadd.f32 %v259_v62, %v258_v56 }
  0xea   :  { %v271_v57 = vadd.f32 %v270_v55, %v269_v53  ;;  %v261_v5 = vrot.slane %v260_v35, 1 }
  0xec   :  { %v273_v60 = vadd.f32 %v272_v59, %v271_v57  ;;  %v262_v7 = vadd.f32 %v261_v5, %v260_v35 }
  0xee   :  { %v275_v63 = vadd.f32 %v274_v61, %v273_v60  ;;  %v284_v10 = vmul.f32 0.015625, %v262_v7 }
  0xf0   :  { %v277_v1 = vadd.f32 %v276_v0, %v275_v63 }
  0xf2   :  { %v278_v2 = vrot.slane %v277_v1, 4 }
  0xf4   :  { %v279_v3 = vadd.f32 %v278_v2, %v277_v1 }
  0xf6   :  { %v280_v4 = vrot.slane %v279_v3, 2 }
  0xf8   :  { %v281_v6 = vadd.f32 %v280_v4, %v279_v3 }
  0xfa   :  { %v282_v8 = vrot.slane %v281_v6, 1 }
  0xfc   :  { %v283_v9 = vadd.f32 %v282_v8, %v281_v6 }
  0xfe   :  { %v285_v11 = vmul.f32 0.015625, %v283_v9 }
 0x100   :  { %v300_v12 = vsel %vm299_vm3, %v285_v11, %v284_v10 }
 0x101   :  { %443 = vmatmul.mubr.msk.f32.vlgmr.msra.gmra.mxu1 %vm241_vm2, %v300_v12 }
 0x1c1   :  { %v369_v14 = vpop.f32.mrf.mxu1 }
 0x1c2   :  { %v370_v15 = vadd.f32 %v400_v13, %v369_v14 }
 0x1c3   :  { %v444_v16 = vpop.f32.mrf.mxu1 }
 0x1c4   :  { %374 = vst.msk [vmem:[#allocation2] sm:$0x3] %vm373_vm4, %v370_v15 }
 0x1c5   :  { %462 = shalt.err (!%p459_p4)
}
 0x1c6   :  { %384 = dma.vmem_to_hbm [thread:$0]  %s382_s16, 32, %s653_s6, [#allocation3]  }
 0x1c7   :  { %471 = dma.done.wait [#allocation3], 32  }
 0x1c8   :  { %472 = vsyncadd [#allocation3], 4294967264 }
 0x1c9   :  { %388 = vsyncpa [#allocation3], 1 }

// kernel: _lambda_.6
= control target key start
LH: loop header
LB: loop body
LE: loop exit
PB: predicated region body
PF: predicated region fallthrough
CT: control target
= control target key end

     0   :  { %vm105_vm0 = vcmask 1043456   ;;  %vm80_vm1 = vcmask 64512   ;;  %s3438_s0 = inlined_call_operand.vmem [shape: f32[4,2,9,9,8], index: 0, kind: input, shape index: {}]   ;;  %s3439_s1 = inlined_call_operand.vmem [shape: bf16[9,8,16], index: 1, kind: input, shape index: {}]   ;;  %s3440_s2 = inlined_call_operand.vmem [shape: f32[1,16], index: 2, kind: input, shape index: {}]   ;;  %s3441_s3 = inlined_call_operand.vmem [shape: f32[1,16], index: 3, kind: input, shape index: {}]   ;;  %s3442_s4 = inlined_call_operand.vmem [shape: bf16[16,16], index: 4, kind: input, shape index: {}]   ;;  %s3443_s5 = inlined_call_operand.<no memory space> [shape: f32[1], index: 5, kind: input, shape index: {}]   ;;  %s3444_s6 = inlined_call_operand.vmem [shape: f32[2,8,8,16], index: 6, kind: output, shape index: {0}]   ;;  %s3445_s7 = inlined_call_operand.hbm [shape: f32[2,8,8,16], index: 7, kind: output, shape index: {1}]  }
   0x1   :  { %v1814_v0 = vld [vmem:[%s3439_s1 + $0x4] sm:$0xf]  ;;  %v52_v1 = vld [vmem:[%s3439_s1] sm:$0xf]  ;;  %v2397_v5 = vld [vmem:[%s3438_s0 + $0x130] sm:$0xff] }
   0x2   :  { %v1798_v2 = vld [vmem:[%s3438_s0 + $0x120] sm:$0xff]  ;;  %2271 = vmatprep.subr.msk.bf16.mxu0 %vm105_vm0, %v1814_v0  ;;  %2272 = vmatprep.subr.msk.bf16.mxu1 %vm105_vm0, %v52_v1  ;;  %v107_v3 = vsel %vm105_vm0, %v1814_v0, 0  ;;  %v231_v4 = vsel %vm105_vm0, %v52_v1, 0  ;;  %v2405_v7 = vld [vmem:[%s3438_s0 + $0x10] sm:$0xff]  ;;  %v1831_v15 = vld [vmem:[%s3439_s1 + $0x8] sm:$0xf] }
   0x3   :  { %v28_v6 = vld [vmem:[%s3438_s0] sm:$0xff]  ;;  %2092 = vmatpush3.bf16.msra.mxu0 %v107_v3  ;;  %2110 = vmatpush3.bf16.msra.mxu1 %v231_v4  ;;  %v70_v8 = vpack.c.bf16 %v2397_v5, %v1798_v2  ;;  %v2417_v11 = vld [vmem:[%s3438_s0 + $0x150] sm:$0xff]  ;;  %v381_v20 = vsel %vm105_vm0, %v1831_v15, 0  ;;  %v1856_v56 = vld [vmem:[%s3439_s1 + $0xc] sm:$0xf] }
   0x4   :  { %v44_v9 = vpack.c.bf16 %v2405_v7, %v28_v6  ;;  %v2412_v10 = vld [vmem:[%s3438_s0 + $0x140] sm:$0xff]  ;;  %v2429_v14 = vld [vmem:[%s3438_s0 + $0x30] sm:$0xff]  ;;  %2273 = vmatprep.subr.msk.bf16.mxu0 %vm105_vm0, %v1831_v15  ;;  %2274 = vmatprep.subr.msk.bf16.mxu1 %vm105_vm0, %v1856_v56  ;;  %v548_v59 = vsel %vm105_vm0, %v1856_v56, 0  ;;  %v1931_v57 = vld [vmem:[%s3439_s1 + $0x18] sm:$0xf] }
   0x5   :  { %v2422_v12 = vld [vmem:[%s3438_s0 + $0x20] sm:$0xff]  ;;  %v71_v13 = vpack.c.bf16 %v2417_v11, %v2412_v10  ;;  %v1180_v18 = vpack.c.bf16 %v2412_v10, %v2397_v5  ;;  %2093 = vmatprep.mubr.msk.bf16.mxu0 %vm80_vm1, %v70_v8  ;;  %v2451_v21 = vld [vmem:[%s3438_s0 + $0x170] sm:$0xff] }
   0x6   :  { %v2437_v16 = vld [vmem:[%s3438_s0 + $0x160] sm:$0xff]  ;;  %v1013_v17 = vpack.c.bf16 %v2422_v12, %v2405_v7  ;;  %2111 = vmatprep.mubr.msk.bf16.mxu1 %vm80_vm1, %v44_v9  ;;  %v45_v19 = vpack.c.bf16 %v2429_v14, %v2422_v12  ;;  %v2461_v23 = vld [vmem:[%s3438_s0 + $0x50] sm:$0xff] }
   0x7   :  { %v2456_v22 = vld [vmem:[%s3438_s0 + $0x40] sm:$0xff]  ;;  %v1181_v24 = vpack.c.bf16 %v2437_v16, %v2417_v11  ;;  %2094 = vmatmul.mubr.msk.bf16.vlgmr.msra.gmra.mxu0 %vm80_vm1, %v71_v13  ;;  %v72_v25 = vpack.c.bf16 %v2451_v21, %v2437_v16  ;;  %v2487_v30 = vld [vmem:[%s3438_s0 + $0x190] sm:$0xff] }
   0x8   :  { %v46_v26 = vpack.c.bf16 %v2461_v23, %v2456_v22  ;;  %v2474_v27 = vld [vmem:[%s3438_s0 + $0x180] sm:$0xff]  ;;  %v1014_v29 = vpack.c.bf16 %v2456_v22, %v2429_v14  ;;  %2112 = vmatmul.mubr.msk.bf16.vlgmr.msra.gmra.mxu1 %vm80_vm1, %v45_v19  ;;  %2128 = vmatpush3.bf16.msra.mxu0 %v381_v20  ;;  %v2492_v31 = vld [vmem:[%s3438_s0 + $0x70] sm:$0xff] }
   0x9   :  { %v2479_v28 = vld [vmem:[%s3438_s0 + $0x60] sm:$0xff]  ;;  %v1806_v32 = vld [vmem:[%s3438_s0 + $0x1b0] sm:$0xff]  ;;  %2097 = vmatprep.mubr.msk.bf16.mxu0 %vm80_vm1, %v72_v25  ;;  %v73_v42 = vpack.c.bf16 %v2487_v30, %v2474_v27  ;;  %2146 = vmatpush3.bf16.msra.mxu1 %v548_v59 }
   0xa   :  { %v1015_v33 = vpack.c.bf16 %v2479_v28, %v2461_v23  ;;  %2115 = vmatprep.mubr.msk.bf16.mxu1 %vm80_vm1, %v46_v26  ;;  %v2506_v35 = vld [vmem:[%s3438_s0 + $0x1c0] sm:$0xff]  ;;  %v36_v36 = vld [vmem:[%s3438_s0 + $0x90] sm:$0xff]  ;;  %v47_v47 = vpack.c.bf16 %v2492_v31, %v2479_v28 }
   0xb   :  { %v2514_v37 = vld [vmem:[%s3438_s0 + $0x1d0] sm:$0xff]  ;;  %v2519_v38 = vld [vmem:[%s3438_s0 + $0xa0] sm:$0xff]  ;;  %v74_v48 = vpack.c.bf16 %v2506_v35, %v1806_v32 }
   0xc   :  { %v2524_v39 = vld [vmem:[%s3438_s0 + $0x1e0] sm:$0xff]  ;;  %v2529_v40 = vld [vmem:[%s3438_s0 + $0xb0] sm:$0xff]  ;;  %v48_v53 = vpack.c.bf16 %v2519_v38, %v36_v36 }
   0xd   :  { %v2538_v43 = vld [vmem:[%s3438_s0 + $0xc0] sm:$0xff]  ;;  %v2543_v44 = vld [vmem:[%s3438_s0 + $0x1f0] sm:$0xff]  ;;  %v75_v8 = vpack.c.bf16 %v2524_v39, %v2514_v37 }
   0xe   :  { %v2548_v45 = vld [vmem:[%s3438_s0 + $0xd0] sm:$0xff]  ;;  %v2558_v49 = vld [vmem:[%s3438_s0 + $0x200] sm:$0xff]  ;;  %v49_v9 = vpack.c.bf16 %v2538_v43, %v2529_v40 }
   0xf   :  { %v2563_v50 = vld [vmem:[%s3438_s0 + $0x210] sm:$0xff]  ;;  %v2573_v54 = vld [vmem:[%s3438_s0 + $0xe0] sm:$0xff]  ;;  %2098 = vmatmul.mubr.msk.bf16.gmra.mxu0 %vm80_vm1, %v73_v42  ;;  %v76_v13 = vpack.c.bf16 %v2558_v49, %v2543_v44 }
  0x10   :  { %v2578_v55 = vld [vmem:[%s3438_s0 + $0xf0] sm:$0xff]  ;;  %v2595_v60 = vld [vmem:[%s3438_s0 + $0x21] sm:$0xff]  ;;  %2116 = vmatmul.mubr.msk.bf16.gmra.mxu1 %vm80_vm1, %v47_v47  ;;  %2101 = vmatprep.mubr.msk.bf16.mxu0 %vm80_vm1, %v74_v48  ;;  %v50_v20 = vpack.c.bf16 %v2573_v54, %v2548_v45 }
  0x11   :  { %v2589_v58 = vld [vmem:[%s3438_s0 + $0x11] sm:$0xff]  ;;  %2119 = vmatprep.mubr.msk.bf16.mxu1 %vm80_vm1, %v48_v53  ;;  %v2617_v1 = vld [vmem:[%s3438_s0 + $0x41] sm:$0xff] }
  0x12   :  { %v1881_v62 = vld [vmem:[%s3439_s1 + $0x10] sm:$0xf]  ;;  %v2627_v3 = vld [vmem:[%s3438_s0 + $0x61] sm:$0xff] }
  0x13   :  { %v2610_v0 = vld [vmem:[%s3438_s0 + $0x31] sm:$0xff]  ;;  %2275 = vmatprep.subr.msk.bf16.mxu0 %vm105_vm0, %v1881_v62  ;;  %v2642_v15 = vld [vmem:[%s3438_s0 + $0xa1] sm:$0xff] }
  0x14   :  { %v2622_v2 = vld [vmem:[%s3438_s0 + $0x51] sm:$0xff]  ;;  %v2656_v26 = vld [vmem:[%s3438_s0 + $0xc1] sm:$0xff] }
  0x15   :  { %v2647_v19 = vld [vmem:[%s3438_s0 + $0xb1] sm:$0xff]  ;;  %v2667_v36 = vld [vmem:[%s3438_s0 + $0xe1] sm:$0xff] }
  0x16   :  { %v2661_v32 = vld [vmem:[%s3438_s0 + $0xd1] sm:$0xff]  ;;  %v2681_v48 = vld [vmem:[%s3438_s0 + $0x220] sm:$0xff] }
  0x17   :  { %2102 = vmatmul.mubr.msk.bf16.gmra.mxu0 %vm80_vm1, %v75_v8  ;;  %v2672_v42 = vld [vmem:[%s3438_s0 + $0xf1] sm:$0xff]  ;;  %v2689_v56 = vld [vmem:[%s3438_s0 + $0x100] sm:$0xff] }
  0x18   :  { %2120 = vmatmul.mubr.msk.bf16.gmra.mxu1 %vm80_vm1, %v49_v9  ;;  %2105 = vmatprep.mubr.msk.bf16.mxu0 %vm80_vm1, %v76_v13  ;;  %v330_v59 = vld [vmem:[%s3438_s0 + $0x1] sm:$0xff]  ;;  %v1906_v8 = vld [vmem:[%s3439_s1 + $0x14] sm:$0xf]  ;;  %v51_v53 = vpack.c.bf16 %v2689_v56, %v2578_v55 }
  0x19   :  { %2123 = vmatprep.mubr.msk.bf16.mxu1 %vm80_vm1, %v50_v20  ;;  %v1840_v9 = vld [vmem:[%s3438_s0 + $0x240] sm:$0xff]  ;;  %v1841_v13 = vld [vmem:[%s3438_s0 + $0x250] sm:$0xff]  ;;  %2276 = vmatprep.subr.msk.bf16.mxu1 %vm105_vm0, %v1906_v8  ;;  %v77_v20 = vpack.c.bf16 %v2681_v48, %v2563_v50  ;;  %v346_v47 = vpack.c.bf16 %v2589_v58, %v330_v59  ;;  %v881_v63 = vsel %vm105_vm0, %v1906_v8, 0 }
  0x1a   :  { %v513_v25 = vpack.c.bf16 %v1841_v13, %v1840_v9  ;;  %v1842_v6 = vld [vmem:[%s3438_s0 + $0x260] sm:$0xff]  ;;  %v1843_v4 = vld [vmem:[%s3438_s0 + $0x270] sm:$0xff]  ;;  %v715_v9 = vsel %vm105_vm0, %v1881_v62, 0  ;;  %v348_v13 = vpack.c.bf16 %v2622_v2, %v2617_v1 }
  0x1b   :  { %v1844_v59 = vld [vmem:[%s3438_s0 + $0x280] sm:$0xff] }
  0x1f   :  { %2106 = vmatmul.mubr.msk.bf16.gmra.mxu0 %vm80_vm1, %v77_v20 }
  0x20   :  { %2124 = vmatmul.mubr.msk.bf16.gmra.mxu1 %vm80_vm1, %v51_v53  ;;  %2129 = vmatprep.mubr.msk.bf16.mxu0 %vm80_vm1, %v346_v47  ;;  %v1845_v53 = vld [vmem:[%s3438_s0 + $0x290] sm:$0xff]  ;;  %v347_v47 = vpack.c.bf16 %v2610_v0, %v2595_v60 }
  0x21   :  { %2147 = vmatprep.mubr.msk.bf16.mxu1 %vm80_vm1, %v513_v25  ;;  %v514_v25 = vpack.c.bf16 %v1843_v4, %v1842_v6  ;;  %v515_v20 = vpack.c.bf16 %v1845_v53, %v1844_v59 }
  0x27   :  { %2130 = vmatmul.mubr.msk.bf16.vlgmr.msra.gmra.mxu0 %vm80_vm1, %v347_v47 }
  0x28   :  { %14 = vsyncpa [#allocation4], 0  ;;  %2164 = vmatpush3.bf16.msra.mxu0 %v715_v9  ;;  %2148 = vmatmul.mubr.msk.bf16.vlgmr.msra.gmra.mxu1 %vm80_vm1, %v514_v25  ;;  %v2739_v62 = vld [vmem:[%s3438_s0 + $0x71] sm:$0xff]  ;;  %v1956_v4 = vld [vmem:[%s3439_s1 + $0x1c] sm:$0xf]  ;;  %v3446_v5 = vpack.c.bf16 %v2474_v27, %v2451_v21  ;;  %v3447_v14 = vpack.c.bf16 %v2529_v40, %v2519_v38  ;;  %v3448_v16 = vpack.c.bf16 %v2514_v37, %v2506_v35  ;;  %vm1624_vm2 = vcmask 130048  }
  0x29   :  { %2133 = vmatprep.mubr.msk.bf16.mxu0 %vm80_vm1, %v348_v13  ;;  %2151 = vmatprep.mubr.msk.bf16.mxu1 %vm80_vm1, %v515_v20  ;;  %v1846_v6 = vld [vmem:[%s3438_s0 + $0x2a0] sm:$0xff]  ;;  %v1847_v8 = vld [vmem:[%s3438_s0 + $0x2b0] sm:$0xff]  ;;  %v349_v25 = vpack.c.bf16 %v2739_v62, %v2627_v3  ;;  %v1215_v46 = vsel %vm105_vm0, %v1956_v4, 0  ;;  %v3451_v21 = vpack.c.bf16 %v2578_v55, %v2573_v54  ;;  %v3452_v23 = vpack.c.bf16 %v2563_v50, %v2558_v49 }
  0x2a   :  { %v338_v59 = vld [vmem:[%s3438_s0 + $0x91] sm:$0xff]  ;;  %v1849_v47 = vld [vmem:[%s3438_s0 + $0x2e0] sm:$0xff]  ;;  %2182 = vmatpush3.bf16.msra.mxu1 %v881_v63  ;;  %2277 = vmatprep.subr.msk.bf16.mxu0 %vm105_vm0, %v1931_v57  ;;  %v516_v9 = vpack.c.bf16 %v1847_v8, %v1846_v6  ;;  %v3456_v35 = vpack.c.bf16 %v2647_v19, %v2642_v15  ;;  %v3457_v37 = vpack.c.bf16 %v2661_v32, %v2656_v26 }
  0x2b   :  { %v1848_v53 = vld [vmem:[%s3438_s0 + $0x2d0] sm:$0xff]  ;;  %2278 = vmatprep.subr.msk.bf16.mxu1 %vm105_vm0, %v1956_v4  ;;  %v350_v13 = vpack.c.bf16 %v2642_v15, %v338_v59  ;;  %v1851_v61 = vld [vmem:[%s3438_s0 + $0x300] sm:$0xff]  ;;  %v351_v59 = vpack.c.bf16 %v2656_v26, %v2647_v19  ;;  %v3458_v38 = vpack.c.bf16 %v2672_v42, %v2667_v36 }
  0x2c   :  { %v517_v20 = vpack.c.bf16 %v1849_v47, %v1848_v53  ;;  %v1850_v63 = vld [vmem:[%s3438_s0 + $0x2f0] sm:$0xff]  ;;  %v1853_v8 = vld [vmem:[%s3438_s0 + $0x320] sm:$0xff]  ;;  %v352_v47 = vpack.c.bf16 %v2667_v36, %v2661_v32 }
  0x2d   :  { %v1852_v6 = vld [vmem:[%s3438_s0 + $0x310] sm:$0xff]  ;;  %v518_v53 = vpack.c.bf16 %v1851_v61, %v1850_v63  ;;  %v1855_v61 = vld [vmem:[%s3438_s0 + $0x340] sm:$0xff] }
  0x2e   :  { %v1866_v63 = vld [vmem:[%s3438_s0 + $0x370] sm:$0xff]  ;;  %v1867_v52 = vld [vmem:[%s3438_s0 + $0x380] sm:$0xff] }
  0x2f   :  { %2134 = vmatmul.mubr.msk.bf16.gmra.mxu0 %vm80_vm1, %v349_v25  ;;  %v519_v25 = vpack.c.bf16 %v1853_v8, %v1852_v6  ;;  %v1890_v6 = vld [vmem:[%s3438_s0 + $0x241] sm:$0xff]  ;;  %v1891_v8 = vld [vmem:[%s3438_s0 + $0x251] sm:$0xff] }
  0x30   :  { %2152 = vmatmul.mubr.msk.bf16.gmra.mxu1 %vm80_vm1, %v516_v9  ;;  %2137 = vmatprep.mubr.msk.bf16.mxu0 %vm80_vm1, %v350_v13  ;;  %v2792_v9 = vld [vmem:[%s3438_s0 + $0x101] sm:$0xff]  ;;  %v1854_v13 = vld [vmem:[%s3438_s0 + $0x330] sm:$0xff] }
  0x31   :  { %2155 = vmatprep.mubr.msk.bf16.mxu1 %vm80_vm1, %v517_v20  ;;  %v1865_v20 = vld [vmem:[%s3438_s0 + $0x360] sm:$0xff]  ;;  %v1868_v51 = vld [vmem:[%s3438_s0 + $0x390] sm:$0xff] }
  0x32   :  { %v1981_v34 = vld [vmem:[%s3439_s1 + $0x20] sm:$0xf]  ;;  %v1897_v4 = vld [vmem:[%s3438_s0 + $0x2b1] sm:$0xff] }
  0x33   :  { %v1922_v7 = vld [vmem:[%s3438_s0 + $0x80] sm:$0xff]  ;;  %v1930_v22 = vld [vmem:[%s3438_s0 + $0x110] sm:$0xff] }
  0x34   :  { %v1947_v10 = vld [vmem:[%s3438_s0 + $0x1a0] sm:$0xff]  ;;  %v1016_v11 = vpack.c.bf16 %v1922_v7, %v2492_v31  ;;  %v1020_v27 = vpack.c.bf16 %v1930_v22, %v2689_v56  ;;  %v3455_v31 = vpack.c.bf16 %v2627_v3, %v2622_v2 }
  0x35   :  { %v1183_v12 = vpack.c.bf16 %v1947_v10, %v2487_v30  ;;  %v3454_v30 = vpack.c.bf16 %v2617_v1, %v2610_v0 }
  0x37   :  { %2138 = vmatmul.mubr.msk.bf16.gmra.mxu0 %vm80_vm1, %v351_v59  ;;  %v353_v59 = vpack.c.bf16 %v2792_v9, %v2672_v42 }
  0x38   :  { %2156 = vmatmul.mubr.msk.bf16.gmra.mxu1 %vm80_vm1, %v518_v53  ;;  %2141 = vmatprep.mubr.msk.bf16.mxu0 %vm80_vm1, %v352_v47  ;;  %v520_v53 = vpack.c.bf16 %v1855_v61, %v1854_v13  ;;  %v680_v47 = vpack.c.bf16 %v1866_v63, %v1865_v20  ;;  %v1892_v13 = vld [vmem:[%s3438_s0 + $0x261] sm:$0xff]  ;;  %v1893_v61 = vld [vmem:[%s3438_s0 + $0x271] sm:$0xff] }
  0x39   :  { %2159 = vmatprep.mubr.msk.bf16.mxu1 %vm80_vm1, %v519_v25  ;;  %v846_v25 = vpack.c.bf16 %v1891_v8, %v1890_v6  ;;  %v1869_v20 = vld [vmem:[%s3438_s0 + $0x3a0] sm:$0xff]  ;;  %v1870_v63 = vld [vmem:[%s3438_s0 + $0x3b0] sm:$0xff] }
  0x3a   :  { %v1894_v6 = vld [vmem:[%s3438_s0 + $0x281] sm:$0xff]  ;;  %v1895_v8 = vld [vmem:[%s3438_s0 + $0x291] sm:$0xff] }
  0x3b   :  { %v848_v41 = vpack.c.bf16 %v1895_v8, %v1894_v6 }
  0x3f   :  { %2142 = vmatmul.mubr.msk.bf16.gmra.mxu0 %vm80_vm1, %v353_v59  ;;  %v681_v59 = vpack.c.bf16 %v1868_v51, %v1867_v52  ;;  %v1871_v51 = vld [vmem:[%s3438_s0 + $0x3c0] sm:$0xff]  ;;  %v1872_v52 = vld [vmem:[%s3438_s0 + $0x3d0] sm:$0xff] }
  0x40   :  { %2160 = vmatmul.mubr.msk.bf16.gmra.mxu1 %vm80_vm1, %v520_v53  ;;  %2165 = vmatprep.mubr.msk.bf16.mxu0 %vm80_vm1, %v680_v47  ;;  %v847_v53 = vpack.c.bf16 %v1893_v61, %v1892_v13  ;;  %v1048_v47 = vsel %vm105_vm0, %v1931_v57, 0  ;;  %v1896_v57 = vld [vmem:[%s3438_s0 + $0x2a1] sm:$0xff]  ;;  %v1873_v13 = vld [vmem:[%s3438_s0 + $0x3f0] sm:$0xff] }
  0x41   :  { %2183 = vmatprep.mubr.msk.bf16.mxu1 %vm80_vm1, %v846_v25  ;;  %v682_v25 = vpack.c.bf16 %v1870_v63, %v1869_v20  ;;  %v1874_v61 = vld [vmem:[%s3438_s0 + $0x400] sm:$0xff]  ;;  %v1898_v20 = vld [vmem:[%s3438_s0 + $0x2d1] sm:$0xff]  ;;  %v683_v63 = vpack.c.bf16 %v1872_v52, %v1871_v51  ;;  %v849_v6 = vpack.c.bf16 %v1897_v4, %v1896_v57 }
  0x42   :  { %v684_v8 = vpack.c.bf16 %v1874_v61, %v1873_v13  ;;  %v1877_v51 = vld [vmem:[%s3438_s0 + $0x430] sm:$0xff]  ;;  %v1878_v52 = vld [vmem:[%s3438_s0 + $0x440] sm:$0xff] }
  0x43   :  { %v1902_v57 = vld [vmem:[%s3438_s0 + $0x311] sm:$0xff]  ;;  %v1903_v4 = vld [vmem:[%s3438_s0 + $0x321] sm:$0xff] }
  0x47   :  { %2166 = vmatmul.mubr.msk.bf16.vlgmr.msra.gmra.mxu0 %vm80_vm1, %v681_v59 }
  0x48   :  { %2200 = vmatpush3.bf16.msra.mxu0 %v1048_v47  ;;  %2184 = vmatmul.mubr.msk.bf16.vlgmr.msra.gmra.mxu1 %vm80_vm1, %v847_v53  ;;  %v1875_v53 = vld [vmem:[%s3438_s0 + $0x410] sm:$0xff] }
  0x49   :  { %2169 = vmatprep.mubr.msk.bf16.mxu0 %vm80_vm1, %v682_v25  ;;  %2187 = vmatprep.mubr.msk.bf16.mxu1 %vm80_vm1, %v848_v41  ;;  %v1899_v41 = vld [vmem:[%s3438_s0 + $0x2e1] sm:$0xff]  ;;  %v1900_v47 = vld [vmem:[%s3438_s0 + $0x2f1] sm:$0xff] }
  0x4a   :  { %2218 = vmatpush3.bf16.msra.mxu1 %v1215_v46  ;;  %2279 = vmatprep.subr.msk.bf16.mxu0 %vm105_vm0, %v1981_v34  ;;  %v850_v59 = vpack.c.bf16 %v1899_v41, %v1898_v20  ;;  %v1876_v46 = vld [vmem:[%s3438_s0 + $0x420] sm:$0xff]  ;;  %v686_v20 = vpack.c.bf16 %v1878_v52, %v1877_v51  ;;  %v852_v41 = vpack.c.bf16 %v1903_v4, %v1902_v57 }
  0x4b   :  { %v1901_v25 = vld [vmem:[%s3438_s0 + $0x301] sm:$0xff]  ;;  %v685_v13 = vpack.c.bf16 %v1876_v46, %v1875_v53 }
  0x4c   :  { %v851_v61 = vpack.c.bf16 %v1901_v25, %v1900_v47  ;;  %v1381_v47 = vsel %vm105_vm0, %v1981_v34, 0  ;;  %v2283_v57 = vld [vmem:[%s3442_s4] sm:$0xff]  }
  0x4d   :  { %2253 = vmatprep.subr.bf16.mxu1 %v2283_v57 }
  0x4f   :  { %2170 = vmatmul.mubr.msk.bf16.gmra.mxu0 %vm80_vm1, %v683_v63  ;;  %v1879_v63 = vld [vmem:[%s3438_s0 + $0x450] sm:$0xff] }
  0x50   :  { %2188 = vmatmul.mubr.msk.bf16.gmra.mxu1 %vm80_vm1, %v849_v6  ;;  %2173 = vmatprep.mubr.msk.bf16.mxu0 %vm80_vm1, %v684_v8  ;;  %v1880_v6 = vld [vmem:[%s3438_s0 + $0x460] sm:$0xff]  ;;  %v1904_v8 = vld [vmem:[%s3438_s0 + $0x331] sm:$0xff] }
  0x51   :  { %2191 = vmatprep.mubr.msk.bf16.mxu1 %vm80_vm1, %v850_v59  ;;  %v1905_v59 = vld [vmem:[%s3438_s0 + $0x341] sm:$0xff]  ;;  %v687_v53 = vpack.c.bf16 %v1880_v6, %v1879_v63 }
  0x52   :  { %v853_v46 = vpack.c.bf16 %v1905_v59, %v1904_v8 }
  0x57   :  { %2174 = vmatmul.mubr.msk.bf16.gmra.mxu0 %vm80_vm1, %v685_v13 }
  0x58   :  { %2192 = vmatmul.mubr.msk.bf16.gmra.mxu1 %vm80_vm1, %v851_v61  ;;  %2177 = vmatprep.mubr.msk.bf16.mxu0 %vm80_vm1, %v686_v20 }
  0x59   :  { %2195 = vmatprep.mubr.msk.bf16.mxu1 %vm80_vm1, %v852_v41 }
  0x5f   :  { %2178 = vmatmul.mubr.msk.bf16.gmra.mxu0 %vm80_vm1, %v687_v53 }
  0x60   :  { %2196 = vmatmul.mubr.msk.bf16.gmra.mxu1 %vm80_vm1, %v853_v46  ;;  %2201 = vmatprep.mubr.msk.bf16.mxu0 %vm80_vm1, %v1013_v17  ;;  %v3449_v17 = vpack.c.bf16 %v2548_v45, %v2538_v43 }
  0x61   :  { %2219 = vmatprep.mubr.msk.bf16.mxu1 %vm80_vm1, %v1180_v18  ;;  %v3450_v18 = vpack.c.bf16 %v2543_v44, %v2524_v39  ;;  %v1980_v39 = vld [vmem:[%s3438_s0 + $0x111] sm:$0xff] }
  0x62   :  { %v1353_v40 = vpack.c.bf16 %v1980_v39, %v2792_v9 }
  0x67   :  { %2202 = vmatmul.mubr.msk.bf16.vlgmr.msra.gmra.mxu0 %vm80_vm1, %v1014_v29  ;;  %v3453_v29 = vpack.c.bf16 %v2595_v60, %v2589_v58 }
  0x68   :  { %2236 = vmatpush3.bf16.msra.mxu0 %v1381_v47  ;;  %2220 = vmatmul.mubr.msk.bf16.vlgmr.msra.gmra.mxu1 %vm80_vm1, %v1181_v24  ;;  %v1955_v24 = vld [vmem:[%s3438_s0 + $0x230] sm:$0xff] }
  0x69   :  { %2205 = vmatprep.mubr.msk.bf16.mxu0 %vm80_vm1, %v1015_v33  ;;  %2223 = vmatprep.mubr.msk.bf16.mxu1 %vm80_vm1, %v3446_v5  ;;  %v1187_v28 = vpack.c.bf16 %v1955_v24, %v2681_v48  ;;  %v1972_v33 = vld [vmem:[%s3438_s0 + $0x81] sm:$0xff] }
  0x6a   :  { %v1349_v34 = vpack.c.bf16 %v1972_v33, %v2739_v62  ;;  %2254 = vmatpush3.bf16.msra.mxu1 %v2283_v57 }
  0x6f   :  { %2206 = vmatmul.mubr.msk.bf16.gmra.mxu0 %vm80_vm1, %v1016_v11 }
  0x70   :  { %2224 = vmatmul.mubr.msk.bf16.gmra.mxu1 %vm80_vm1, %v1183_v12  ;;  %2209 = vmatprep.mubr.msk.bf16.mxu0 %vm80_vm1, %v3447_v14 }
  0x71   :  { %2227 = vmatprep.mubr.msk.bf16.mxu1 %vm80_vm1, %v3448_v16 }
  0x77   :  { %2210 = vmatmul.mubr.msk.bf16.gmra.mxu0 %vm80_vm1, %v3449_v17 }
  0x78   :  { %2228 = vmatmul.mubr.msk.bf16.gmra.mxu1 %vm80_vm1, %v3450_v18  ;;  %2213 = vmatprep.mubr.msk.bf16.mxu0 %vm80_vm1, %v3451_v21 }
  0x79   :  { %2231 = vmatprep.mubr.msk.bf16.mxu1 %vm80_vm1, %v3452_v23 }
  0x7f   :  { %2214 = vmatmul.mubr.msk.bf16.gmra.mxu0 %vm80_vm1, %v1020_v27 }
  0x80   :  { %2232 = vmatmul.mubr.msk.bf16.gmra.mxu1 %vm80_vm1, %v1187_v28  ;;  %2237 = vmatprep.mubr.msk.bf16.mxu0 %vm80_vm1, %v3453_v29 }
  0x87   :  { %2238 = vmatmul.mubr.msk.bf16.vlgmr.msra.gmra.mxu0 %vm80_vm1, %v3454_v30 }
  0x88   :  { %2241 = vmatprep.mubr.msk.bf16.mxu0 %vm80_vm1, %v3455_v31 }
  0x8f   :  { %2242 = vmatmul.mubr.msk.bf16.gmra.mxu0 %vm80_vm1, %v1349_v34 }
  0x90   :  { %2245 = vmatprep.mubr.msk.bf16.mxu0 %vm80_vm1, %v3456_v35 }
  0x97   :  { %2246 = vmatmul.mubr.msk.bf16.gmra.mxu0 %vm80_vm1, %v3457_v37 }
  0x98   :  { %2249 = vmatprep.mubr.msk.bf16.mxu0 %vm80_vm1, %v3458_v38 }
  0x9f   :  { %2250 = vmatmul.mubr.msk.bf16.gmra.mxu0 %vm80_vm1, %v1353_v40 }
  0xc7   :  { %v2095_v43 = vpop.f32.mrf.mxu0 }
  0xc8   :  { %v2113_v44 = vpop.f32.mrf.mxu1 }
  0xc9   :  { %v276_v45 = vadd.f32 %v2113_v44, %v2095_v43  ;;  %v143_v49 = vpop.f32.mrf.mxu0 }
  0xca   :  { %v267_v50 = vpop.f32.mrf.mxu1 }
  0xcb   :  { %v268_v54 = vadd.f32 %v267_v50, %v143_v49  ;;  %v2096_v55 = vpop.f32.mrf.mxu0 }
  0xcc   :  { %v2114_v58 = vpop.f32.mrf.mxu1 }
  0xcd   :  { %v279_v60 = vadd.f32 %v2114_v58, %v2096_v55  ;;  %v146_v0 = vpop.f32.mrf.mxu0 }
  0xce   :  { %v270_v1 = vpop.f32.mrf.mxu1 }
  0xcf   :  { %v271_v2 = vadd.f32 %v270_v1, %v146_v0  ;;  %v2099_v3 = vpop.f32.mrf.mxu0 }
  0xd0   :  { %v2117_v15 = vpop.f32.mrf.mxu1 }
  0xd1   :  { %v292_v19 = vadd.f32 %v2117_v15, %v2099_v3  ;;  %v159_v26 = vpop.f32.mrf.mxu0 }
  0xd2   :  { %v283_v32 = vpop.f32.mrf.mxu1 }
  0xd3   :  { %v284_v36 = vadd.f32 %v283_v32, %v159_v26  ;;  %v2100_v42 = vpop.f32.mrf.mxu0 }
  0xd4   :  { %v2118_v48 = vpop.f32.mrf.mxu1 }
  0xd5   :  { %v295_v56 = vadd.f32 %v2118_v48, %v2100_v42  ;;  %v162_v62 = vpop.f32.mrf.mxu0 }
  0xd6   :  { %v286_v9 = vpop.f32.mrf.mxu1 }
  0xd7   :  { %v287_v25 = vadd.f32 %v286_v9, %v162_v62  ;;  %v2103_v51 = vpop.f32.mrf.mxu0 }
  0xd8   :  { %v2121_v52 = vpop.f32.mrf.mxu1 }
  0xd9   :  { %v308_v4 = vadd.f32 %v2121_v52, %v2103_v51  ;;  %v175_v13 = vpop.f32.mrf.mxu0 }
  0xda   :  { %v299_v61 = vpop.f32.mrf.mxu1 }
  0xdb   :  { %v300_v20 = vadd.f32 %v299_v61, %v175_v13  ;;  %v2104_v41 = vpop.f32.mrf.mxu0 }
  0xdc   :  { %v2122_v63 = vpop.f32.mrf.mxu1 }
  0xdd   :  { %v311_v6 = vadd.f32 %v2122_v63, %v2104_v41  ;;  %v178_v8 = vpop.f32.mrf.mxu0 }
  0xde   :  { %v302_v59 = vpop.f32.mrf.mxu1 }
  0xdf   :  { %v303_v53 = vadd.f32 %v302_v59, %v178_v8  ;;  %v2107_v46 = vpop.f32.mrf.mxu0 }
  0xe0   :  { %v2125_v47 = vpop.f32.mrf.mxu1 }
  0xe1   :  { %v324_v7 = vadd.f32 %v2125_v47, %v2107_v46  ;;  %v191_v5 = vpop.f32.mrf.mxu0 }
  0xe2   :  { %v315_v10 = vpop.f32.mrf.mxu1 }
  0xe3   :  { %v316_v11 = vadd.f32 %v315_v10, %v191_v5  ;;  %v2108_v12 = vpop.f32.mrf.mxu0 }
  0xe4   :  { %v2126_v14 = vpop.f32.mrf.mxu1 }
  0xe5   :  { %v327_v16 = vadd.f32 %v2126_v14, %v2108_v12  ;;  %v194_v17 = vpop.f32.mrf.mxu0 }
  0xe6   :  { %v318_v18 = vpop.f32.mrf.mxu1 }
  0xe7   :  { %v319_v21 = vadd.f32 %v318_v18, %v194_v17  ;;  %v2131_v22 = vpop.f32.mrf.mxu0 }
  0xe8   :  { %v3029_v23 = vadd.f32 %v2131_v22, %v276_v45  ;;  %v3031_v24 = vpop.f32.mrf.mxu1 }
  0xe9   :  { %v417_v27 = vpop.f32.mrf.mxu0 }
  0xea   :  { %v3033_v28 = vadd.f32 %v417_v27, %v268_v54  ;;  %v3035_v29 = vpop.f32.mrf.mxu1 }
  0xeb   :  { %v2132_v30 = vpop.f32.mrf.mxu0 }
  0xec   :  { %v3037_v31 = vadd.f32 %v2132_v30, %v279_v60  ;;  %v3039_v33 = vpop.f32.mrf.mxu1 }
  0xed   :  { %v420_v34 = vpop.f32.mrf.mxu0 }
  0xee   :  { %v3041_v35 = vadd.f32 %v420_v34, %v271_v2  ;;  %v3043_v37 = vpop.f32.mrf.mxu1 }
  0xef   :  { %v2135_v38 = vpop.f32.mrf.mxu0 }
  0xf0   :  { %v3045_v39 = vadd.f32 %v2135_v38, %v292_v19  ;;  %v3047_v40 = vpop.f32.mrf.mxu1 }
  0xf1   :  { %v433_v43 = vpop.f32.mrf.mxu0 }
  0xf2   :  { %v3049_v44 = vadd.f32 %v433_v43, %v284_v36  ;;  %v3051_v45 = vpop.f32.mrf.mxu1 }
  0xf3   :  { %v2136_v49 = vpop.f32.mrf.mxu0 }
  0xf4   :  { %v3053_v50 = vadd.f32 %v2136_v49, %v295_v56  ;;  %v3055_v54 = vpop.f32.mrf.mxu1 }
  0xf5   :  { %v436_v55 = vpop.f32.mrf.mxu0 }
  0xf6   :  { %v3057_v58 = vadd.f32 %v436_v55, %v287_v25  ;;  %v3059_v60 = vpop.f32.mrf.mxu1 }
  0xf7   :  { %v2139_v0 = vpop.f32.mrf.mxu0 }
  0xf8   :  { %v3061_v1 = vadd.f32 %v2139_v0, %v308_v4  ;;  %v3063_v2 = vpop.f32.mrf.mxu1 }
  0xf9   :  { %v449_v3 = vpop.f32.mrf.mxu0 }
  0xfa   :  { %v3065_v15 = vadd.f32 %v449_v3, %v300_v20  ;;  %v3067_v19 = vpop.f32.mrf.mxu1 }
  0xfb   :  { %v2140_v26 = vpop.f32.mrf.mxu0 }
  0xfc   :  { %v3069_v32 = vadd.f32 %v2140_v26, %v311_v6  ;;  %v3071_v36 = vpop.f32.mrf.mxu1 }
  0xfd   :  { %v452_v42 = vpop.f32.mrf.mxu0 }
  0xfe   :  { %v3073_v48 = vadd.f32 %v452_v42, %v303_v53  ;;  %v3075_v56 = vpop.f32.mrf.mxu1 }
  0xff   :  { %v2143_v62 = vpop.f32.mrf.mxu0 }
 0x100   :  { %v3077_v9 = vadd.f32 %v2143_v62, %v324_v7  ;;  %v3079_v25 = vpop.f32.mrf.mxu1 }
 0x101   :  { %v465_v51 = vpop.f32.mrf.mxu0 }
 0x102   :  { %v3081_v52 = vadd.f32 %v465_v51, %v316_v11  ;;  %v3083_v57 = vpop.f32.mrf.mxu1 }
 0x103   :  { %v2144_v4 = vpop.f32.mrf.mxu0 }
 0x104   :  { %v3085_v13 = vadd.f32 %v2144_v4, %v327_v16  ;;  %v3087_v61 = vpop.f32.mrf.mxu1 }
 0x105   :  { %v468_v20 = vpop.f32.mrf.mxu0 }
 0x106   :  { %v3089_v41 = vadd.f32 %v468_v20, %v319_v21  ;;  %v3091_v63 = vpop.f32.mrf.mxu1 }
 0x107   :  { %v2167_v6 = vpop.f32.mrf.mxu0 }
 0x108   :  { %v3093_v8 = vpop.f32.mrf.mxu1 }
 0x109   :  { %v751_v59 = vpop.f32.mrf.mxu0 }
 0x10a   :  { %v3095_v53 = vpop.f32.mrf.mxu1 }
 0x10b   :  { %v2168_v46 = vpop.f32.mrf.mxu0 }
 0x10c   :  { %v3097_v47 = vpop.f32.mrf.mxu1 }
 0x10d   :  { %v3099_v7 = vpop.f32.mrf.mxu0 }
 0x10e   :  { %v3101_v5 = vpop.f32.mrf.mxu1 }
 0x10f   :  { %v2171_v10 = vpop.f32.mrf.mxu0 }
 0x110   :  { %v3103_v11 = vpop.f32.mrf.mxu1 }
 0x111   :  { %v3105_v12 = vpop.f32.mrf.mxu0 }
 0x112   :  { %v3107_v14 = vpop.f32.mrf.mxu1 }
 0x113   :  { %v3109_v16 = vpop.f32.mrf.mxu0 }
 0x114   :  { %v3111_v17 = vpop.f32.mrf.mxu1 }
 0x115   :  { %3459 = vst [vmem:[#allocation6_spill] sm:$0xff] %v3111_v17  ;;  %v3113_v18 = vpop.f32.mrf.mxu0 }
 0x116   :  { %v3115_v21 = vpop.f32.mrf.mxu1 }
 0x117   :  { %3460 = vst [vmem:[#allocation7_spill] sm:$0xff] %v3115_v21  ;;  %v3117_v22 = vpop.f32.mrf.mxu0 }
 0x118   :  { %v3119_v27 = vpop.f32.mrf.mxu1 }
 0x119   :  { %3461 = vst [vmem:[#allocation8_spill] sm:$0xff] %v3119_v27  ;;  %v3121_v30 = vpop.f32.mrf.mxu0 }
 0x11a   :  { %v3123_v34 = vpop.f32.mrf.mxu1 }
 0x11b   :  { %3462 = vst [vmem:[#allocation9_spill] sm:$0xff] %v3123_v34  ;;  %v3125_v38 = vpop.f32.mrf.mxu0 }
 0x11c   :  { %v3127_v43 = vpop.f32.mrf.mxu1 }
 0x11d   :  { %3463 = vst [vmem:[#allocation10_spill] sm:$0xff] %v3127_v43  ;;  %v3129_v49 = vpop.f32.mrf.mxu0 }
 0x11e   :  { %v3131_v55 = vpop.f32.mrf.mxu1 }
 0x11f   :  { %3464 = vst [vmem:[#allocation11_spill] sm:$0xff] %v3131_v55  ;;  %v3133_v0 = vpop.f32.mrf.mxu0 }
 0x120   :  { %v3135_v3 = vpop.f32.mrf.mxu1 }
 0x121   :  { %3465 = vst [vmem:[#allocation12_spill] sm:$0xff] %v3135_v3  ;;  %v3137_v26 = vpop.f32.mrf.mxu0 }
 0x122   :  { %3466 = vst [vmem:[#allocation13_spill] sm:$0xff] %v3137_v26  ;;  %v3139_v42 = vpop.f32.mrf.mxu1 }
 0x123   :  { %3467 = vst [vmem:[#allocation14_spill] sm:$0xff] %v3139_v42  ;;  %v3141_v62 = vpop.f32.mrf.mxu0 }
 0x124   :  { %3468 = vst [vmem:[#allocation15_spill] sm:$0xff] %v3141_v62  ;;  %v3143_v51 = vpop.f32.mrf.mxu1 }
 0x125   :  { %3469 = vst [vmem:[#allocation16_spill] sm:$0xff] %v3143_v51  ;;  %v3145_v4 = vpop.f32.mrf.mxu0 }
 0x126   :  { %3470 = vst [vmem:[#allocation17_spill] sm:$0xff] %v3145_v4  ;;  %v3147_v20 = vpop.f32.mrf.mxu1 }
 0x127   :  { %3471 = vst [vmem:[#allocation18_spill] sm:$0xff] %v3147_v20  ;;  %v2203_v43 = vpop.f32.mrf.mxu0 }
 0x128   :  { %v3149_v34 = vpop.f32.mrf.mxu1 }
 0x129   :  { %3472 = vst [vmem:[#allocation19_spill] sm:$0xff] %v3149_v34  ;;  %v1084_v55 = vpop.f32.mrf.mxu0 }
 0x12a   :  { %v3151_v27 = vpop.f32.mrf.mxu1 }
 0x12b   :  { %3473 = vst [vmem:[#allocation20_spill] sm:$0xff] %v3151_v27  ;;  %v3153_v21 = vpop.f32.mrf.mxu0 }
 0x12c   :  { %3474 = vst [vmem:[#allocation21_spill] sm:$0xff] %v3153_v21  ;;  %v3155_v3 = vpop.f32.mrf.mxu1 }
 0x12d   :  { %3475 = vst [vmem:[#allocation22_spill] sm:$0xff] %v3155_v3  ;;  %v3157_v26 = vpop.f32.mrf.mxu0  ;;  %v649_v3 = vadd.f32 %v3031_v24, %v3029_v23  ;;  %v3194_v23 = vstv %s3443_s5  ;;  %v653_v24 = vadd.f32 %v3047_v40, %v3045_v39  ;;  %v658_v40 = vadd.f32 %v3071_v36, %v3069_v32 }
 0x12e   :  { %v3161_v62 = vpop.f32.mrf.mxu1 }
 0x12f   :  { %v3159_v42 = vpop.f32.mrf.mxu0  ;;  %3477 = vst [vmem:[#allocation24_spill] sm:$0xff] %v3161_v62 }
 0x130   :  { %3476 = vst [vmem:[#allocation23_spill] sm:$0xff] %v3159_v42  ;;  %v3165_v4 = vpop.f32.mrf.mxu1 }
 0x131   :  { %v3163_v51 = vpop.f32.mrf.mxu0  ;;  %3479 = vst [vmem:[#allocation26_spill] sm:$0xff] %v3165_v4  ;;  %v647_v4 = vadd.f32 %v3035_v29, %v3033_v28  ;;  %v651_v28 = vadd.f32 %v3051_v45, %v3049_v44  ;;  %v654_v29 = vadd.f32 %v3055_v54, %v3053_v50  ;;  %v820_v50 = vadd.f32 %v2171_v10, %v653_v24  ;;  %v3491_v24 = vld [vmem:[#allocation9_spill] sm:$0xff] }
 0x132   :  { %3478 = vst [vmem:[#allocation25_spill] sm:$0xff] %v3163_v51  ;;  %v3171_v17 = vpop.f32.mrf.mxu1  ;;  %v816_v51 = vadd.f32 %v2167_v6, %v649_v3  ;;  %v656_v54 = vadd.f32 %v3075_v56, %v3073_v48  ;;  %v660_v48 = vadd.f32 %v3091_v63, %v3089_v41  ;;  %v825_v41 = vadd.f32 %v3125_v38, %v658_v40  ;;  %v3489_v38 = vld [vmem:[#allocation15_spill] sm:$0xff] }
 0x133   :  { %v3167_v20 = vpop.f32.mrf.mxu0  ;;  %3481 = vst [vmem:[#allocation28_spill] sm:$0xff] %v3171_v17  ;;  %v648_v17 = vadd.f32 %v3043_v37, %v3041_v35  ;;  %v657_v35 = vadd.f32 %v3063_v2, %v3061_v1  ;;  %v655_v37 = vadd.f32 %v3067_v19, %v3065_v15  ;;  %v818_v1 = vadd.f32 %v3105_v12, %v651_v28  ;;  %v3484_v12 = vld [vmem:[#allocation13_spill] sm:$0xff]  ;;  %v3494_v40 = vld [vmem:[#allocation11_spill] sm:$0xff] }
 0x134   :  { %v3179_v42 = vpop.f32.mrf.mxu1  ;;  %v982_v44 = vadd.f32 %v3093_v8, %v816_v51  ;;  %v662_v15 = vadd.f32 %v3087_v61, %v3085_v13  ;;  %v821_v32 = vadd.f32 %v3109_v16, %v654_v29  ;;  %v986_v61 = vadd.f32 %v3103_v11, %v820_v50  ;;  %v3485_v16 = vld [vmem:[#allocation19_spill] sm:$0xff]  ;;  %v3492_v29 = vld [vmem:[#allocation20_spill] sm:$0xff] }
 0x135   :  { %v3169_v34 = vpop.f32.mrf.mxu0  ;;  %v815_v45 = vadd.f32 %v3099_v7, %v648_v17  ;;  %v822_v8 = vadd.f32 %v3121_v30, %v655_v37  ;;  %v823_v63 = vadd.f32 %v3129_v49, %v656_v54  ;;  %v3483_v7 = vld [vmem:[#allocation6_spill] sm:$0xff]  ;;  %v3486_v17 = vld [vmem:[#allocation21_spill] sm:$0xff] }
 0x136   :  { %3480 = vst [vmem:[#allocation27_spill] sm:$0xff] %v3169_v34  ;;  %v650_v34 = vadd.f32 %v3039_v33, %v3037_v31  ;;  %v814_v31 = vadd.f32 %v751_v59, %v647_v4  ;;  %v652_v33 = vadd.f32 %v3059_v60, %v3057_v58  ;;  %v3208_v3 = vpop.f32.mrf.mxu1  ;;  %v661_v58 = vadd.f32 %v3079_v25, %v3077_v9  ;;  %v3490_v49 = vld [vmem:[#allocation17_spill] sm:$0xff]  ;;  %v3258_v4 = vld [vmem:[%s3440_s2] ss:$0 sm:$0xff] }
 0x137   :  { %v3173_v27 = vpop.f32.mrf.mxu0  ;;  %v659_v60 = vadd.f32 %v3083_v57, %v3081_v52  ;;  %v1149_v36 = vadd.f32 %v2203_v43, %v982_v44  ;;  %v824_v25 = vadd.f32 %v3117_v22, %v657_v35  ;;  %v981_v13 = vadd.f32 %v3101_v5, %v815_v45  ;;  %v3487_v22 = vld [vmem:[#allocation7_spill] sm:$0xff]  ;;  %v3493_v37 = vld [vmem:[#allocation10_spill] sm:$0xff]  ;;  %v3495_v45 = vld [vmem:[#allocation12_spill] sm:$0xff] }
 0x138   :  { %3482 = vst [vmem:[#allocation29_spill] sm:$0xff] %v3173_v27  ;;  %v817_v6 = vadd.f32 %v2168_v46, %v650_v34  ;;  %v980_v19 = vadd.f32 %v3095_v53, %v814_v31  ;;  %v819_v9 = vadd.f32 %v3113_v18, %v652_v33  ;;  %v3234_v52 = vpop.f32.mrf.mxu1  ;;  %v984_v53 = vadd.f32 %v3107_v14, %v818_v1  ;;  %v3488_v14 = vld [vmem:[#allocation8_spill] sm:$0xff]  ;;  %v3496_v54 = vld [vmem:[#allocation23_spill] sm:$0xff] }
 0x139   :  { %v3175_v21 = vpop.f32.mrf.mxu0  ;;  %v828_v46 = vadd.f32 %v3133_v0, %v661_v58  ;;  %v987_v10 = vadd.f32 %v3483_v7, %v821_v32  ;;  %v826_v5 = vadd.f32 %v3484_v12, %v659_v60  ;;  %v1316_v11 = vadd.f32 %v3485_v16, %v1149_v36  ;;  %v3270_v60 = vld [vmem:[%s3441_s3] ss:$0 sm:$0xff] }
 0x13a   :  { %v983_v56 = vadd.f32 %v3097_v47, %v817_v6  ;;  %v1147_v59 = vadd.f32 %v1084_v55, %v980_v19  ;;  %v985_v30 = vadd.f32 %v3487_v22, %v819_v9  ;;  %v990_v34 = vadd.f32 %v3488_v14, %v824_v25  ;;  %v1283_v0 = vpop.f32.mrf.mxu1  ;;  %v3498_v32 = vld [vmem:[#allocation22_spill] sm:$0xff] }
 0x13b   :  { %v3181_v62 = vpop.f32.mrf.mxu0  ;;  %v829_v43 = vadd.f32 %v3489_v38, %v662_v15  ;;  %v827_v55 = vadd.f32 %v3490_v49, %v660_v48  ;;  %v988_v28 = vadd.f32 %v3491_v24, %v822_v8  ;;  %v1148_v33 = vadd.f32 %v3157_v26, %v981_v13  ;;  %v3497_v15 = vld [vmem:[#allocation14_spill] sm:$0xff] }
 0x13c   :  { %v1150_v18 = vadd.f32 %v3486_v17, %v983_v56  ;;  %v1314_v31 = vadd.f32 %v3492_v29, %v1147_v59  ;;  %v991_v6 = vadd.f32 %v3493_v37, %v825_v41  ;;  %v989_v44 = vadd.f32 %v3494_v40, %v823_v63  ;;  %v3499_v56 = vld [vmem:[#allocation16_spill] sm:$0xff]  ;;  %v3500_v25 = vld [vmem:[#allocation18_spill] sm:$0xff]  ;;  %v2230_v41 = vpop.f32.mrf.mxu1 }
 0x13d   :  { %v3189_v27 = vpop.f32.mrf.mxu0  ;;  %v994_v50 = vadd.f32 %v3495_v45, %v828_v46  ;;  %v1153_v58 = vadd.f32 %v3496_v54, %v986_v61  ;;  %v992_v19 = vadd.f32 %v3497_v15, %v826_v5  ;;  %v3276_v9 = vadd.f32 %v3499_v56, %v829_v43  ;;  %v3501_v61 = vld [vmem:[#allocation25_spill] sm:$0xff]  ;;  %v3502_v46 = vld [vmem:[#allocation24_spill] sm:$0xff] }
 0x13e   :  { %v1317_v36 = vadd.f32 %v3498_v32, %v1150_v18  ;;  %v3279_v13 = vadd.f32 %v3500_v25, %v827_v55  ;;  %v1151_v8 = vadd.f32 %v3501_v61, %v984_v53  ;;  %v1154_v59 = vadd.f32 %v3167_v20, %v987_v10  ;;  %v3504_v18 = vld [vmem:[#allocation27_spill] sm:$0xff] }
 0x13f   :  { %v3210_v39 = vpop.f32.mrf.mxu0  ;;  %v1315_v7 = vadd.f32 %v3502_v46, %v1148_v33  ;;  %v1152_v22 = vadd.f32 %v3504_v18, %v985_v30  ;;  %v3505_v14 = vld [vmem:[#allocation29_spill] sm:$0xff]  ;;  %v1155_v43 = vadd.f32 %v3175_v21, %v988_v28  ;;  %v1156_v33 = vadd.f32 %v3189_v27, %v989_v44  ;;  %v1286_v30 = vpop.f32.mrf.mxu1 }
 0x140   :  { %v1157_v38 = vadd.f32 %v3505_v14, %v990_v34  ;;  %v1321_v29 = vadd.f32 %v3179_v42, %v1154_v59  ;;  %v1161_v44 = vadd.f32 %v3210_v39, %v994_v50 }
 0x141   :  { %v3223_v2 = vpop.f32.mrf.mxu0  ;;  %v1319_v42 = vadd.f32 %v3208_v3, %v1152_v22  ;;  %v2233_v15 = vpop.f32.mrf.mxu1 }
 0x142   :  { %v1159_v39 = vadd.f32 %v3223_v2, %v992_v19  ;;  %v1328_v59 = vadd.f32 %v2233_v15, %v1161_v44 }
 0x143   :  { %v3236_v57 = vpop.f32.mrf.mxu0 }
 0x145   :  { %v3245_v47 = vpop.f32.mrf.mxu0 }
 0x147   :  { %v2239_v51 = vpop.f32.mrf.mxu0 }
 0x148   :  { %v1482_v35 = vadd.f32 %v2239_v51, %v1316_v11  ;;  %v3503_v11 = vld [vmem:[#allocation26_spill] sm:$0xff]  ;;  %v3506_v51 = vld [vmem:[#allocation28_spill] sm:$0xff] }
 0x149   :  { %v1417_v1 = vpop.f32.mrf.mxu0  ;;  %v1320_v17 = vadd.f32 %v3503_v11, %v1153_v58  ;;  %v1318_v24 = vadd.f32 %v3506_v51, %v1151_v8 }
 0x14a   :  { %v1505_v26 = vmul.f32 %v3258_v4, %v1482_v35  ;;  %v1480_v48 = vadd.f32 %v1417_v1, %v1314_v31  ;;  %v1158_v31 = vadd.f32 %v3181_v62, %v991_v6  ;;  %v1324_v62 = vadd.f32 %v3234_v52, %v1157_v38 }
 0x14b   :  { %v2240_v63 = vpop.f32.mrf.mxu0  ;;  %v1322_v6 = vadd.f32 %v1283_v0, %v1155_v43 }
 0x14c   :  { %v1528_v12 = vadd.f32 %v3270_v60, %v1505_v26  ;;  %v1503_v5 = vmul.f32 %v3258_v4, %v1480_v48  ;;  %v1483_v16 = vadd.f32 %v2240_v63, %v1317_v36  ;;  %v1325_v1 = vadd.f32 %v2230_v41, %v1158_v31 }
 0x14d   :  { %v1420_v53 = vpop.f32.mrf.mxu0  ;;  %v1323_v36 = vadd.f32 %v1286_v30, %v1156_v33 }
 0x14e   :  { %v1544_v49 = vmax.f32 %v1528_v12, 0.0  ;;  %v1526_v20 = vadd.f32 %v3270_v60, %v1503_v5  ;;  %v1506_v10 = vmul.f32 %v3258_v4, %v1483_v16  ;;  %v1481_v55 = vadd.f32 %v1420_v53, %v1315_v7 }
 0x14f   :  { %v2243_v35 = vpop.f32.mrf.mxu0 }
 0x150   :  { %v1562_v34 = vmul.f32 %v3194_v23, %v1544_v49  ;;  %1764 = vst.msk [vmem:[%s3444_s6 + $0x10] sm:$0xff] %vm1624_vm2, %v1544_v49  ;;  %v1542_v21 = vmax.f32 %v1526_v20, 0.0  ;;  %v1529_v28 = vadd.f32 %v3270_v60, %v1506_v10  ;;  %v1504_v37 = vmul.f32 %v3258_v4, %v1481_v55 }
 0x151   :  { %v1486_v27 = vadd.f32 %v2243_v35, %v1320_v17  ;;  %v1433_v40 = vpop.f32.mrf.mxu0  ;;  %v1299_v17 = vpop.f32.mrf.mxu1  ;;  %v1162_v20 = vadd.f32 %v3236_v57, %v3276_v9 }
 0x152   :  { %v1560_v45 = vmul.f32 %v3194_v23, %v1542_v21  ;;  %1762 = vst.msk [vmem:[%s3444_s6] sm:$0xff] %vm1624_vm2, %v1542_v21  ;;  %v1545_v54 = vmax.f32 %v1529_v28, 0.0  ;;  %v1527_v58 = vadd.f32 %v3270_v60, %v1504_v37  ;;  %v1580_v3 = vmul.f32 1.442695, %v1562_v34 }
 0x153   :  { %v1509_v52 = vmul.f32 %v3258_v4, %v1486_v27  ;;  %v1484_v0 = vadd.f32 %v1433_v40, %v1318_v24  ;;  %v2244_v32 = vpop.f32.mrf.mxu0  ;;  %v1326_v35 = vadd.f32 %v1299_v17, %v1159_v39  ;;  %v2234_v34 = vpop.f32.mrf.mxu1 }
 0x154   :  { %v1563_v50 = vmul.f32 %v3194_v23, %v1545_v54  ;;  %1765 = vst.msk [vmem:[%s3444_s6 + $0x18] sm:$0xff] %vm1624_vm2, %v1545_v54  ;;  %v1543_v26 = vmax.f32 %v1527_v58, 0.0  ;;  %v1576_v48 = vmul.f32 1.442695, %v1560_v45  ;;  %v1487_v61 = vadd.f32 %v2244_v32, %v1321_v29 }
 0x155   :  { %v1532_v56 = vadd.f32 %v3270_v60, %v1509_v52  ;;  %v1507_v25 = vmul.f32 %v3258_v4, %v1484_v0  ;;  %v1436_v8 = vpop.f32.mrf.mxu0  ;;  %2284 = vpow2.f32 %v1580_v3  ;;  %v1329_v15 = vadd.f32 %v2234_v34, %v1162_v20  ;;  %v1302_v3 = vpop.f32.mrf.mxu1 }
 0x156   :  { %v1582_v41 = vmul.f32 1.442695, %v1563_v50  ;;  %v1561_v63 = vmul.f32 %v3194_v23, %v1543_v26  ;;  %1763 = vst.msk [vmem:[%s3444_s6 + $0x8] sm:$0xff] %vm1624_vm2, %v1543_v26  ;;  %v1485_v2 = vadd.f32 %v1436_v8, %v1319_v42  ;;  %v1510_v7 = vmul.f32 %v3258_v4, %v1487_v61 }
 0x157   :  { %v1548_v19 = vmax.f32 %v1532_v56, 0.0  ;;  %v1530_v46 = vadd.f32 %v3270_v60, %v1507_v25  ;;  %v2247_v12 = vpop.f32.mrf.mxu0 }
 0x158   :  { %2286 = vpow2.f32 %v1582_v41  ;;  %v1578_v5 = vmul.f32 1.442695, %v1561_v63  ;;  %v1508_v16 = vmul.f32 %v3258_v4, %v1485_v2  ;;  %v1490_v11 = vadd.f32 %v2247_v12, %v1324_v62 }
 0x159   :  { %2288 = vpow2.f32 %v1576_v48  ;;  %v1566_v18 = vmul.f32 %v3194_v23, %v1548_v19  ;;  %1768 = vst.msk [vmem:[%s3444_s6 + $0x30] sm:$0xff] %vm1624_vm2, %v1548_v19  ;;  %v1546_v22 = vmax.f32 %v1530_v46, 0.0  ;;  %v1533_v14 = vadd.f32 %v3270_v60, %v1510_v7  ;;  %v1449_v38 = vpop.f32.mrf.mxu0 }
 0x15a   :  { %2290 = vpow2.f32 %v1578_v5  ;;  %v1531_v43 = vadd.f32 %v3270_v60, %v1508_v16  ;;  %v1513_v53 = vmul.f32 %v3258_v4, %v1490_v11  ;;  %v1488_v49 = vadd.f32 %v1449_v38, %v1322_v6 }
 0x15b   :  { %v1588_v10 = vmul.f32 1.442695, %v1566_v18  ;;  %v1564_v55 = vmul.f32 %v3194_v23, %v1546_v22  ;;  %1766 = vst.msk [vmem:[%s3444_s6 + $0x20] sm:$0xff] %vm1624_vm2, %v1546_v22  ;;  %v1549_v51 = vmax.f32 %v1533_v14, 0.0  ;;  %v2248_v24 = vpop.f32.mrf.mxu0  ;;  %v1160_v6 = vadd.f32 %v3245_v47, %v3279_v13 }
 0x15c   :  { %v1547_v29 = vmax.f32 %v1531_v43, 0.0  ;;  %v1536_v31 = vadd.f32 %v3270_v60, %v1513_v53  ;;  %v1511_v33 = vmul.f32 %v3258_v4, %v1488_v49  ;;  %v1491_v30 = vadd.f32 %v2248_v24, %v1325_v1 }
 0x15d   :  { %2292 = vpow2.f32 %v1588_v10  ;;  %v1584_v57 = vmul.f32 1.442695, %v1564_v55  ;;  %v1567_v9 = vmul.f32 %v3194_v23, %v1549_v51  ;;  %1769 = vst.msk [vmem:[%s3444_s6 + $0x38] sm:$0xff] %vm1624_vm2, %v1549_v51  ;;  %v1452_v21 = vpop.f32.mrf.mxu0  ;;  %v1327_v25 = vadd.f32 %v1302_v3, %v1160_v6 }
 0x15e   :  { %v1565_v28 = vmul.f32 %v3194_v23, %v1547_v29  ;;  %1767 = vst.msk [vmem:[%s3444_s6 + $0x28] sm:$0xff] %vm1624_vm2, %v1547_v29  ;;  %v1552_v37 = vmax.f32 %v1536_v31, 0.0  ;;  %v1534_v42 = vadd.f32 %v3270_v60, %v1511_v33  ;;  %v1514_v62 = vmul.f32 %v3258_v4, %v1491_v30 }
 0x15f   :  { %2294 = vpow2.f32 %v1584_v57  ;;  %v1590_v27 = vmul.f32 1.442695, %v1567_v9  ;;  %v1489_v40 = vadd.f32 %v1452_v21, %v1323_v36  ;;  %v2251_v44 = vpop.f32.mrf.mxu0 }
 0x160   :  { %v1586_v45 = vmul.f32 1.442695, %v1565_v28  ;;  %v1570_v54 = vmul.f32 %v3194_v23, %v1552_v37  ;;  %1772 = vst.msk [vmem:[%s3444_s6 + $0x50] sm:$0xff] %vm1624_vm2, %v1552_v37  ;;  %v1550_v58 = vmax.f32 %v1534_v42, 0.0  ;;  %v1537_v1 = vadd.f32 %v3270_v60, %v1514_v62 }
 0x161   :  { %2296 = vpow2.f32 %v1590_v27  ;;  %v1512_v47 = vmul.f32 %v3258_v4, %v1489_v40  ;;  %v1494_v13 = vadd.f32 %v2251_v44, %v1328_v59  ;;  %v1465_v52 = vpop.f32.mrf.mxu0 }
 0x162   :  { %2298 = vpow2.f32 %v1586_v45  ;;  %v1596_v0 = vmul.f32 1.442695, %v1570_v54  ;;  %v1568_v32 = vmul.f32 %v3194_v23, %v1550_v58  ;;  %1770 = vst.msk [vmem:[%s3444_s6 + $0x40] sm:$0xff] %vm1624_vm2, %v1550_v58  ;;  %v1553_v36 = vmax.f32 %v1537_v1, 0.0  ;;  %v2285_v56 = vpop.eup %2284 }
 0x163   :  { %v1535_v39 = vadd.f32 %v3270_v60, %v1512_v47  ;;  %v1517_v50 = vmul.f32 %v3258_v4, %v1494_v13  ;;  %v1492_v26 = vadd.f32 %v1465_v52, %v1326_v35  ;;  %v2252_v48 = vpop.f32.mrf.mxu0 }
 0x164   :  { %v1571_v61 = vmul.f32 %v3194_v23, %v1553_v36  ;;  %1773 = vst.msk [vmem:[%s3444_s6 + $0x58] sm:$0xff] %vm1624_vm2, %v1553_v36  ;;  %v1495_v8 = vadd.f32 %v2252_v48, %v1329_v15  ;;  %2300 = vpow2.f32 %v1596_v0  ;;  %v1592_v7 = vmul.f32 1.442695, %v1568_v32 }
 0x165   :  { %v2287_v59 = vpop.eup %2286  ;;  %v1551_v41 = vmax.f32 %v1535_v39, 0.0  ;;  %v1540_v63 = vadd.f32 %v3270_v60, %v1517_v50  ;;  %v1515_v2 = vmul.f32 %v3258_v4, %v1492_v26  ;;  %v1468_v19 = vpop.f32.mrf.mxu0 }
 0x166   :  { %v2289_v46 = vpop.eup %2288  ;;  %v1598_v12 = vmul.f32 1.442695, %v1571_v61  ;;  %v1518_v5 = vmul.f32 %v3258_v4, %v1495_v8  ;;  %v1493_v16 = vadd.f32 %v1468_v19, %v1327_v25  ;;  %v1609_v14 = vpack.c.bf16 %v2287_v59, %v2285_v56 }
 0x167   :  { %v2291_v11 = vpop.eup %2290  ;;  %v1569_v17 = vmul.f32 %v3194_v23, %v1551_v41  ;;  %1771 = vst.msk [vmem:[%s3444_s6 + $0x48] sm:$0xff] %vm1624_vm2, %v1551_v41  ;;  %v1556_v18 = vmax.f32 %v1540_v63, 0.0  ;;  %v1538_v22 = vadd.f32 %v3270_v60, %v1515_v2 }
 0x168   :  { %2302 = vpow2.f32 %v1598_v12  ;;  %v1541_v38 = vadd.f32 %v3270_v60, %v1518_v5  ;;  %v1516_v43 = vmul.f32 %v3258_v4, %v1493_v16  ;;  %v1608_v53 = vpack.c.bf16 %v2291_v11, %v2289_v46 }
 0x169   :  { %v1594_v49 = vmul.f32 1.442695, %v1569_v17  ;;  %v1574_v20 = vmul.f32 %v3194_v23, %v1556_v18  ;;  %1776 = vst.msk [vmem:[%s3444_s6 + $0x70] sm:$0xff] %vm1624_vm2, %v1556_v18  ;;  %v1554_v10 = vmax.f32 %v1538_v22, 0.0  ;;  %2304 = vpow2.f32 %v1592_v7 }
 0x16a   :  { %v2293_v55 = vpop.eup %2292  ;;  %v1557_v51 = vmax.f32 %v1541_v38, 0.0  ;;  %v1539_v24 = vadd.f32 %v3270_v60, %v1516_v43  ;;  %2255 = vmatprep.mubr.msk.bf16.mxu1 %vm1624_vm2, %v1608_v53 }
 0x16b   :  { %2306 = vpow2.f32 %v1594_v49  ;;  %v1604_v29 = vmul.f32 1.442695, %v1574_v20  ;;  %v1572_v4 = vmul.f32 %v3194_v23, %v1554_v10  ;;  %1774 = vst.msk [vmem:[%s3444_s6 + $0x60] sm:$0xff] %vm1624_vm2, %v1554_v10  ;;  %2256 = vmatmul.mubr.msk.bf16.vlgmr.msra.gmra.mxu1 %vm1624_vm2, %v1609_v14 }
 0x16c   :  { %v2295_v31 = vpop.eup %2294  ;;  %v1575_v33 = vmul.f32 %v3194_v23, %v1557_v51  ;;  %1777 = vst.msk [vmem:[%s3444_s6 + $0x78] sm:$0xff] %vm1624_vm2, %v1557_v51  ;;  %v1555_v60 = vmax.f32 %v1539_v24, 0.0 }
 0x16d   :  { %v1600_v30 = vmul.f32 1.442695, %v1572_v4  ;;  %2308 = vpow2.f32 %v1604_v29 }
 0x16e   :  { %v2297_v35 = vpop.eup %2296  ;;  %v1606_v34 = vmul.f32 1.442695, %v1575_v33  ;;  %v1573_v57 = vmul.f32 %v3194_v23, %v1555_v60  ;;  %1775 = vst.msk [vmem:[%s3444_s6 + $0x68] sm:$0xff] %vm1624_vm2, %v1555_v60  ;;  %s2338_s6 = smov [#allocation3]  }
 0x16f   :  { %v2299_v9 = vpop.eup %2298  ;;  %v1611_v21 = vpack.c.bf16 %v2297_v35, %v2293_v55  ;;  %s1785_s19 = sshll.u32 %s2338_s6, 4  ;;  %s1786_s19 = int_to_ptr.vmem [resolvable:$true] %s1785_s19 }
 0x170   :  { %2310 = vpow2.f32 %v1606_v34  ;;  %v1602_v28 = vmul.f32 1.442695, %v1573_v57  ;;  %v1610_v37 = vpack.c.bf16 %v2299_v9, %v2295_v31  ;;  %s2316_s20 = scalar_lea.vmem %s1786_s19, 2048  ;;  %p2321_p1 = scmp.lt.s32.totalorder %s1786_s19, %s1786_s19 }
 0x171   :  { %2312 = vpow2.f32 %v1600_v30  ;;  %v2301_v42 = vpop.eup %2300  ;;  %p2317_p0 = scmp.ne.s32.totalorder %s1786_s19, %s2316_s20  ;;  %p2322_p2 = scmp.lt.s32.totalorder %s2316_s20, %s2316_s20 }
 0x172   :  { %2314 = vpow2.f32 %v1602_v28  ;;  %2259 = vmatprep.mubr.msk.bf16.mxu1 %vm1624_vm2, %v1610_v37 }
 0x173   :  { %2260 = vmatmul.mubr.msk.bf16.gmra.mxu1 %vm1624_vm2, %v1611_v21  ;;  %p2323_p3 = por %p2322_p2, %p2321_p1 }
 0x175   :  { %v2303_v62 = vpop.eup %2302  ;;  %p2324_p4 = pnand %p2323_p3, %p2317_p0 }
 0x176   :  { %v1613_v23 = vpack.c.bf16 %v2303_v62, %v2301_v42  ;;  %v2305_v6 = vpop.eup %2304 }
 0x178   :  { %v2307_v27 = vpop.eup %2306 }
 0x179   :  { %v1612_v40 = vpack.c.bf16 %v2307_v27, %v2305_v6 }
 0x17a   :  { %v2309_v44 = vpop.eup %2308 }
 0x17b   :  { %2263 = vmatprep.mubr.msk.bf16.mxu1 %vm1624_vm2, %v1612_v40 }
 0x17c   :  { %2264 = vmatmul.mubr.msk.bf16.gmra.mxu1 %vm1624_vm2, %v1613_v23 }
 0x17d   :  { %v2311_v45 = vpop.eup %2310 }
 0x17e   :  { %v2313_v54 = vpop.eup %2312  ;;  %v1615_v58 = vpack.c.bf16 %v2311_v45, %v2309_v44 }
 0x17f   :  { %v2315_v1 = vpop.eup %2314 }
 0x180   :  { %v1614_v15 = vpack.c.bf16 %v2315_v1, %v2313_v54 }
 0x182   :  { %2267 = vmatprep.mubr.msk.bf16.mxu1 %vm1624_vm2, %v1614_v15 }
 0x184   :  { %2268 = vmatmul.mubr.msk.bf16.gmra.mxu1 %vm1624_vm2, %v1615_v58 }
 0x22b   :  { %v2257_v3 = vpop.f32.mrf.mxu1 }
 0x22c   :  { %1748 = vst.msk [vmem:[#allocation3 + $0x10] sm:$0xff] %vm1624_vm2, %v2257_v3 }
 0x22d   :  { %v1683_v47 = vpop.f32.mrf.mxu1 }
 0x22e   :  { %1746 = vst.msk [vmem:[#allocation3] sm:$0xff] %vm1624_vm2, %v1683_v47 }
 0x22f   :  { %v2258_v13 = vpop.f32.mrf.mxu1 }
 0x230   :  { %1749 = vst.msk [vmem:[#allocation3 + $0x18] sm:$0xff] %vm1624_vm2, %v2258_v13 }
 0x231   :  { %v1686_v52 = vpop.f32.mrf.mxu1 }
 0x232   :  { %1747 = vst.msk [vmem:[#allocation3 + $0x8] sm:$0xff] %vm1624_vm2, %v1686_v52 }
 0x233   :  { %v2261_v0 = vpop.f32.mrf.mxu1 }
 0x234   :  { %1752 = vst.msk [vmem:[#allocation3 + $0x30] sm:$0xff] %vm1624_vm2, %v2261_v0 }
 0x235   :  { %v1699_v32 = vpop.f32.mrf.mxu1 }
 0x236   :  { %1750 = vst.msk [vmem:[#allocation3 + $0x20] sm:$0xff] %vm1624_vm2, %v1699_v32 }
 0x237   :  { %v2262_v36 = vpop.f32.mrf.mxu1 }
 0x238   :  { %1753 = vst.msk [vmem:[#allocation3 + $0x38] sm:$0xff] %vm1624_vm2, %v2262_v36 }
 0x239   :  { %v1702_v39 = vpop.f32.mrf.mxu1 }
 0x23a   :  { %1751 = vst.msk [vmem:[#allocation3 + $0x28] sm:$0xff] %vm1624_vm2, %v1702_v39 }
 0x23c   :  { %v2265_v50 = vpop.f32.mrf.mxu1 }
 0x23d   :  { %1756 = vst.msk [vmem:[#allocation3 + $0x50] sm:$0xff] %vm1624_vm2, %v2265_v50 }
 0x23e   :  { %v1715_v26 = vpop.f32.mrf.mxu1 }
 0x23f   :  { %1754 = vst.msk [vmem:[#allocation3 + $0x40] sm:$0xff] %vm1624_vm2, %v1715_v26 }
 0x240   :  { %v2266_v48 = vpop.f32.mrf.mxu1 }
 0x241   :  { %1757 = vst.msk [vmem:[#allocation3 + $0x58] sm:$0xff] %vm1624_vm2, %v2266_v48 }
 0x242   :  { %v1718_v56 = vpop.f32.mrf.mxu1 }
 0x243   :  { %1755 = vst.msk [vmem:[#allocation3 + $0x48] sm:$0xff] %vm1624_vm2, %v1718_v56 }
 0x244   :  { %v2269_v25 = vpop.f32.mrf.mxu1 }
 0x245   :  { %1760 = vst.msk [vmem:[#allocation3 + $0x70] sm:$0xff] %vm1624_vm2, %v2269_v25 }
 0x246   :  { %v1731_v61 = vpop.f32.mrf.mxu1 }
 0x247   :  { %1758 = vst.msk [vmem:[#allocation3 + $0x60] sm:$0xff] %vm1624_vm2, %v1731_v61 }
 0x248   :  { %v2270_v8 = vpop.f32.mrf.mxu1 }
 0x249   :  { %1761 = vst.msk [vmem:[#allocation3 + $0x78] sm:$0xff] %vm1624_vm2, %v2270_v8 }
 0x24a   :  { %v1734_v59 = vpop.f32.mrf.mxu1 }
 0x24b   :  { %1759 = vst.msk [vmem:[#allocation3 + $0x68] sm:$0xff] %vm1624_vm2, %v1734_v59 }
 0x24c   :  { %2327 = shalt.err (!%p2324_p4)
}
 0x24d   :  { %s2339_s21 = smov 128   ;;  %s2340_s22 = smov 8  }
 0x24e   :  { %1791 = dma.vmem_to_hbm [thread:$0]  %s1786_s19, 2048, %s3445_s7, [#allocation4], %s2339_s21, %s2339_s21, %s2340_s22  }
 0x24f   :  { %2336 = dma.done.wait [#allocation4], 2048  }
 0x250   :  { %2337 = vsyncadd [#allocation4], 4294965248 }
 0x251   :  { %1797 = vsyncpa [#allocation4], 1 }

// kernel: _lambda_.4
= control target key start
LH: loop header
LB: loop body
LE: loop exit
PB: predicated region body
PF: predicated region fallthrough
CT: control target
= control target key end

     0   :  { %vm310_vm0 = vcmask 1040384   ;;  %vm311_vm1 = vcmask 1041408   ;;  %v6872_v1 = vmov 65535   ;;  %vm213_vm2 = vcmask 23552   ;;  %s10549_s1 = inlined_call_operand.vmem [shape: bf16[9,3,8], index: 1, kind: input, shape index: {}]   ;;  %s10550_s0 = inlined_call_operand.vmem [shape: f32[1,2,18,18,3], index: 0, kind: input, shape index: {}]   ;;  %s10551_s4 = inlined_call_operand.vmem [shape: f32[2,18,18,8], index: 4, kind: output, shape index: {}]   ;;  %s10552_s2 = inlined_call_operand.vmem [shape: f32[1,8], index: 2, kind: input, shape index: {}]   ;;  %s10553_s3 = inlined_call_operand.vmem [shape: f32[1,8], index: 3, kind: input, shape index: {}]  }
   0x1   :  { %v5231_v0 = vld [vmem:[%s10549_s1 + $0x2] sm:$0x3]  ;;  %v312_v2 = vsel %vm310_vm0, 4294967295, %v6872_v1  ;;  %v116_v4 = vld [vmem:[%s10550_s0 + $0x9] sm:$0xff]  ;;  %v147_v7 = vld [vmem:[%s10550_s0 + $0x1b1] sm:$0xff]  ;;  %vm5052_vm3 = vcmask 64512  }
   0x2   :  { %v115_v3 = vld [vmem:[%s10550_s0 + $0x1] sm:$0xff]  ;;  %v6908_v5 = vsel %vm311_vm1, %v312_v2, 0  ;;  %v148_v8 = vld [vmem:[%s10550_s0 + $0x1b9] sm:$0xff]  ;;  %v149_v13 = vld [vmem:[%s10550_s0 + $0x1c9] sm:$0xff]  ;;  %vm5055_vm4 = vcmask 58368  }
   0x3   :  { %v179_v6 = vpack.c.bf16 %v116_v4, %v115_v3  ;;  %v117_v9 = vld [vmem:[%s10550_s0 + $0x19] sm:$0xff]  ;;  %v315_v10 = vand.u32 %v5231_v0, %v6908_v5  ;;  %v195_v11 = vpack.c.bf16 %v148_v8, %v147_v7  ;;  %v118_v12 = vld [vmem:[%s10550_s0 + $0x21] sm:$0xff]  ;;  %v150_v14 = vld [vmem:[%s10550_s0 + $0x1d1] sm:$0xff] }
   0x4   :  { %v6930_v15 = vpack.c.bf16 %v118_v12, %v117_v9  ;;  %v114_v16 = vld [vmem:[%s10549_s1] sm:$0x3]  ;;  %v5296_v17 = vld [vmem:[%s10549_s1 + $0x4] sm:$0x3]  ;;  %v119_v18 = vld [vmem:[%s10550_s0 + $0x31] sm:$0xff]  ;;  %v196_v19 = vpack.c.bf16 %v150_v14, %v149_v13 }
   0x5   :  { %6276 = vmatprep.mubr.msk.bf16.mxu0 %vm213_vm2, %v179_v6  ;;  %6274 = vmatprep.subr.bf16.mxu0 %v315_v10  ;;  %v703_v20 = vand.u32 %v6908_v5, %v114_v16  ;;  %v1189_v21 = vand.u32 %v5296_v17, %v6908_v5  ;;  %v120_v22 = vld [vmem:[%s10550_s0 + $0x39] sm:$0xff]  ;;  %v151_v23 = vld [vmem:[%s10550_s0 + $0x1e1] sm:$0xff]  ;;  %v152_v24 = vld [vmem:[%s10550_s0 + $0x1e9] sm:$0xff] }
   0x6   :  { %6868 = vmatprep.subr.bf16.mxu1 %v315_v10  ;;  %6275 = vmatpush3.bf16.msra.mxu0 %v315_v10  ;;  %v6953_v25 = vpack.c.bf16 %v120_v22, %v119_v18  ;;  %v197_v26 = vpack.c.bf16 %v152_v24, %v151_v23  ;;  %v121_v27 = vld [vmem:[%s10550_s0 + $0x49] sm:$0xff]  ;;  %v122_v28 = vld [vmem:[%s10550_s0 + $0x51] sm:$0xff]  ;;  %v153_v29 = vld [vmem:[%s10550_s0 + $0x1f9] sm:$0xff] }
   0x7   :  { %6869 = vmatpush3.bf16.msra.mxu1 %v315_v10  ;;  %6308 = vmatprep.mubr.msk.bf16.mxu1 %vm213_vm2, %v195_v11  ;;  %v154_v30 = vld [vmem:[%s10550_s0 + $0x201] sm:$0xff]  ;;  %v124_v32 = vld [vmem:[%s10550_s0 + $0x69] sm:$0xff]  ;;  %v155_v33 = vld [vmem:[%s10550_s0 + $0x211] sm:$0xff]  ;;  %v6985_v35 = vpack.c.bf16 %v122_v28, %v121_v27 }
   0x8   :  { %6340 = vmatprep.subr.bf16.mxu1 %v703_v20  ;;  %6406 = vmatprep.subr.bf16.mxu0 %v1189_v21  ;;  %v123_v31 = vld [vmem:[%s10550_s0 + $0x61] sm:$0xff]  ;;  %v156_v34 = vld [vmem:[%s10550_s0 + $0x219] sm:$0xff]  ;;  %v198_v36 = vpack.c.bf16 %v154_v30, %v153_v29  ;;  %v157_v41 = vld [vmem:[%s10550_s0 + $0x229] sm:$0xff] }
   0x9   :  { %6277 = vmatmul.mubr.msk.bf16.vlgmr.msra.gmra.mxu0 %vm213_vm2, %v6930_v15  ;;  %v6987_v37 = vpack.c.bf16 %v124_v32, %v123_v31  ;;  %v199_v38 = vpack.c.bf16 %v156_v34, %v155_v33  ;;  %v125_v39 = vld [vmem:[%s10550_s0 + $0x79] sm:$0xff]  ;;  %v126_v40 = vld [vmem:[%s10550_s0 + $0x81] sm:$0xff]  ;;  %v158_v42 = vld [vmem:[%s10550_s0 + $0x231] sm:$0xff] }
   0xa   :  { %6309 = vmatmul.mubr.msk.bf16.vlgmr.msra.gmra.mxu1 %vm213_vm2, %v196_v19  ;;  %6407 = vmatpush3.bf16.msra.mxu0 %v1189_v21  ;;  %v127_v43 = vld [vmem:[%s10550_s0 + $0x91] sm:$0xff]  ;;  %v128_v44 = vld [vmem:[%s10550_s0 + $0x99] sm:$0xff]  ;;  %v159_v45 = vld [vmem:[%s10550_s0 + $0x241] sm:$0xff]  ;;  %v7019_v47 = vpack.c.bf16 %v126_v40, %v125_v39  ;;  %v200_v48 = vpack.c.bf16 %v158_v42, %v157_v41 }
   0xb   :  { %6341 = vmatpush3.bf16.msra.mxu1 %v703_v20  ;;  %6280 = vmatprep.mubr.msk.bf16.mxu0 %vm213_vm2, %v6953_v25  ;;  %v160_v46 = vld [vmem:[%s10550_s0 + $0x249] sm:$0xff]  ;;  %v7021_v49 = vpack.c.bf16 %v128_v44, %v127_v43  ;;  %v130_v52 = vld [vmem:[%s10550_s0 + $0xb1] sm:$0xff]  ;;  %v161_v53 = vld [vmem:[%s10550_s0 + $0x259] sm:$0xff] }
   0xc   :  { %6312 = vmatprep.mubr.msk.bf16.mxu1 %vm213_vm2, %v197_v26  ;;  %v201_v50 = vpack.c.bf16 %v160_v46, %v159_v45  ;;  %v129_v51 = vld [vmem:[%s10550_s0 + $0xa9] sm:$0xff]  ;;  %v162_v54 = vld [vmem:[%s10550_s0 + $0x261] sm:$0xff]  ;;  %v163_v59 = vld [vmem:[%s10550_s0 + $0x271] sm:$0xff] }
   0xd   :  { %v131_v55 = vld [vmem:[%s10550_s0 + $0xc1] sm:$0xff]  ;;  %v132_v58 = vld [vmem:[%s10550_s0 + $0xc9] sm:$0xff]  ;;  %v164_v60 = vld [vmem:[%s10550_s0 + $0x279] sm:$0xff]  ;;  %v7065_v63 = vpack.c.bf16 %v130_v52, %v129_v51  ;;  %v202_v0 = vpack.c.bf16 %v162_v54, %v161_v53 }
   0xe   :  { %v5393_v56 = vld [vmem:[%s10549_s1 + $0x6] sm:$0x3]  ;;  %v5490_v57 = vld [vmem:[%s10549_s1 + $0x8] sm:$0x3]  ;;  %v7069_v1 = vpack.c.bf16 %v132_v58, %v131_v55  ;;  %v203_v2 = vpack.c.bf16 %v164_v60, %v163_v59  ;;  %v133_v3 = vld [vmem:[%s10550_s0 + $0xd9] sm:$0xff] }
   0xf   :  { %v7060_v61 = vand.u32 %v5393_v56, %v6908_v5  ;;  %v7063_v62 = vand.u32 %v5490_v57, %v6908_v5  ;;  %v134_v4 = vld [vmem:[%s10550_s0 + $0xe1] sm:$0xff]  ;;  %v165_v6 = vld [vmem:[%s10550_s0 + $0x289] sm:$0xff]  ;;  %v166_v7 = vld [vmem:[%s10550_s0 + $0x291] sm:$0xff] }
  0x10   :  { %v135_v8 = vld [vmem:[%s10550_s0 + $0xf1] sm:$0xff]  ;;  %v136_v9 = vld [vmem:[%s10550_s0 + $0xf9] sm:$0xff]  ;;  %v167_v10 = vld [vmem:[%s10550_s0 + $0x2a1] sm:$0xff]  ;;  %v7101_v12 = vpack.c.bf16 %v134_v4, %v133_v3  ;;  %v204_v13 = vpack.c.bf16 %v166_v7, %v165_v6 }
  0x11   :  { %6281 = vmatmul.mubr.msk.bf16.gmra.mxu0 %vm213_vm2, %v6985_v35  ;;  %6472 = vmatprep.subr.bf16.mxu1 %v7060_v61  ;;  %v168_v11 = vld [vmem:[%s10550_s0 + $0x2a9] sm:$0xff]  ;;  %v7103_v14 = vpack.c.bf16 %v136_v9, %v135_v8  ;;  %v138_v18 = vld [vmem:[%s10550_s0 + $0x111] sm:$0xff]  ;;  %v169_v19 = vld [vmem:[%s10550_s0 + $0x2b9] sm:$0xff] }
  0x12   :  { %6313 = vmatmul.mubr.msk.bf16.gmra.mxu1 %vm213_vm2, %v198_v36  ;;  %6284 = vmatprep.mubr.msk.bf16.mxu0 %vm213_vm2, %v6987_v37  ;;  %v205_v16 = vpack.c.bf16 %v168_v11, %v167_v10  ;;  %v137_v17 = vld [vmem:[%s10550_s0 + $0x109] sm:$0xff]  ;;  %v170_v20 = vld [vmem:[%s10550_s0 + $0x2c1] sm:$0xff]  ;;  %v171_v23 = vld [vmem:[%s10550_s0 + $0x2d1] sm:$0xff] }
  0x13   :  { %6316 = vmatprep.mubr.msk.bf16.mxu1 %vm213_vm2, %v199_v38  ;;  %6538 = vmatprep.subr.bf16.mxu0 %v7063_v62  ;;  %v139_v21 = vld [vmem:[%s10550_s0 + $0x121] sm:$0xff]  ;;  %v140_v22 = vld [vmem:[%s10550_s0 + $0x129] sm:$0xff]  ;;  %v172_v24 = vld [vmem:[%s10550_s0 + $0x2d9] sm:$0xff]  ;;  %v7135_v26 = vpack.c.bf16 %v138_v18, %v137_v17  ;;  %v206_v27 = vpack.c.bf16 %v170_v20, %v169_v19 }
  0x14   :  { %v7137_v28 = vpack.c.bf16 %v140_v22, %v139_v21  ;;  %v207_v29 = vpack.c.bf16 %v172_v24, %v171_v23  ;;  %v141_v30 = vld [vmem:[%s10550_s0 + $0x139] sm:$0xff]  ;;  %v142_v31 = vld [vmem:[%s10550_s0 + $0x141] sm:$0xff]  ;;  %v173_v32 = vld [vmem:[%s10550_s0 + $0x2e9] sm:$0xff] }
  0x15   :  { %v174_v33 = vld [vmem:[%s10550_s0 + $0x2f1] sm:$0xff]  ;;  %v144_v36 = vld [vmem:[%s10550_s0 + $0x159] sm:$0xff]  ;;  %v175_v38 = vld [vmem:[%s10550_s0 + $0x301] sm:$0xff]  ;;  %v7169_v40 = vpack.c.bf16 %v142_v31, %v141_v30 }
  0x16   :  { %v143_v34 = vld [vmem:[%s10550_s0 + $0x151] sm:$0xff]  ;;  %v176_v39 = vld [vmem:[%s10550_s0 + $0x309] sm:$0xff]  ;;  %v208_v41 = vpack.c.bf16 %v174_v33, %v173_v32  ;;  %v177_v46 = vld [vmem:[%s10550_s0 + $0x319] sm:$0xff] }
  0x17   :  { %v7171_v42 = vpack.c.bf16 %v144_v36, %v143_v34  ;;  %v209_v43 = vpack.c.bf16 %v176_v39, %v175_v38  ;;  %v145_v44 = vld [vmem:[%s10550_s0 + $0x169] sm:$0xff]  ;;  %v146_v45 = vld [vmem:[%s10550_s0 + $0x171] sm:$0xff]  ;;  %v21_v59 = vld [vmem:[%s10550_s0 + $0x20] sm:$0xff] }
  0x18   :  { %v19_v51 = vld [vmem:[%s10550_s0 + $0x8] sm:$0xff]  ;;  %v7203_v54 = vpack.c.bf16 %v146_v45, %v145_v44  ;;  %v20_v58 = vld [vmem:[%s10550_s0 + $0x18] sm:$0xff]  ;;  %v26_v19 = vld [vmem:[%s10550_s0 + $0x60] sm:$0xff] }
  0x19   :  { %6285 = vmatmul.mubr.msk.bf16.gmra.mxu0 %vm213_vm2, %v7019_v47  ;;  %v994_v52 = vld [vmem:[%s10550_s0 + $0x2] sm:$0xff]  ;;  %v995_v53 = vld [vmem:[%s10550_s0 + $0xa] sm:$0xff]  ;;  %v996_v60 = vld [vmem:[%s10550_s0 + $0x1a] sm:$0xff]  ;;  %v7234_v7 = vpack.c.bf16 %v21_v59, %v20_v58 }
  0x1a   :  { %6317 = vmatmul.mubr.msk.bf16.gmra.mxu1 %vm213_vm2, %v200_v48  ;;  %6288 = vmatprep.mubr.msk.bf16.mxu0 %vm213_vm2, %v7021_v49  ;;  %v178_v48 = vld [vmem:[%s10550_s0 + $0x321] sm:$0xff]  ;;  %v1058_v57 = vpack.c.bf16 %v995_v53, %v994_v52  ;;  %v23_v3 = vld [vmem:[%s10550_s0 + $0x38] sm:$0xff]  ;;  %v5587_v17 = vld [vmem:[%s10549_s1 + $0xa] sm:$0x3] }
  0x1b   :  { %6320 = vmatprep.mubr.msk.bf16.mxu1 %vm213_vm2, %v201_v50  ;;  %v18_v50 = vld [vmem:[%s10550_s0] sm:$0xff]  ;;  %v210_v55 = vpack.c.bf16 %v178_v48, %v177_v46  ;;  %v998_v4 = vld [vmem:[%s10550_s0 + $0x32] sm:$0xff]  ;;  %v24_v11 = vld [vmem:[%s10550_s0 + $0x48] sm:$0xff]  ;;  %v7265_v21 = vand.u32 %v5587_v17, %v6908_v5 }
  0x1c   :  { %v82_v56 = vpack.c.bf16 %v19_v51, %v18_v50  ;;  %v999_v6 = vld [vmem:[%s10550_s0 + $0x3a] sm:$0xff]  ;;  %v1001_v18 = vld [vmem:[%s10550_s0 + $0x52] sm:$0xff]  ;;  %v27_v20 = vld [vmem:[%s10550_s0 + $0x68] sm:$0xff] }
  0x1d   :  { %v1060_v10 = vpack.c.bf16 %v999_v6, %v998_v4  ;;  %v5684_v22 = vld [vmem:[%s10549_s1 + $0xc] sm:$0x3]  ;;  %v28_v31 = vld [vmem:[%s10550_s0 + $0x78] sm:$0xff]  ;;  %v29_v32 = vld [vmem:[%s10550_s0 + $0x80] sm:$0xff] }
  0x1e   :  { %v7281_v23 = vand.u32 %v5684_v22, %v6908_v5  ;;  %v1004_v33 = vld [vmem:[%s10550_s0 + $0x7a] sm:$0xff]  ;;  %v1005_v34 = vld [vmem:[%s10550_s0 + $0x82] sm:$0xff]  ;;  %v30_v36 = vld [vmem:[%s10550_s0 + $0x90] sm:$0xff] }
  0x1f   :  { %v31_v38 = vld [vmem:[%s10550_s0 + $0x98] sm:$0xff]  ;;  %v1063_v44 = vpack.c.bf16 %v1005_v34, %v1004_v33  ;;  %v32_v48 = vld [vmem:[%s10550_s0 + $0xa8] sm:$0xff]  ;;  %v33_v50 = vld [vmem:[%s10550_s0 + $0xb0] sm:$0xff] }
  0x20   :  { %v1006_v39 = vld [vmem:[%s10550_s0 + $0x92] sm:$0xff]  ;;  %v7320_v45 = vpack.c.bf16 %v31_v38, %v30_v36  ;;  %v1008_v51 = vld [vmem:[%s10550_s0 + $0xaa] sm:$0xff]  ;;  %v34_v53 = vld [vmem:[%s10550_s0 + $0xc0] sm:$0xff]  ;;  %v7352_v58 = vpack.c.bf16 %v33_v50, %v32_v48 }
  0x21   :  { %6289 = vmatmul.mubr.msk.bf16.gmra.mxu0 %vm213_vm2, %v7065_v63  ;;  %v1009_v52 = vld [vmem:[%s10550_s0 + $0xb2] sm:$0xff]  ;;  %v1012_v4 = vld [vmem:[%s10550_s0 + $0xda] sm:$0xff]  ;;  %v1013_v6 = vld [vmem:[%s10550_s0 + $0xe2] sm:$0xff] }
  0x22   :  { %6321 = vmatmul.mubr.msk.bf16.gmra.mxu1 %vm213_vm2, %v202_v0  ;;  %6292 = vmatprep.mubr.msk.bf16.mxu0 %vm213_vm2, %v7069_v1  ;;  %v997_v0 = vld [vmem:[%s10550_s0 + $0x22] sm:$0xff]  ;;  %v1065_v59 = vpack.c.bf16 %v1009_v52, %v1008_v51  ;;  %v1067_v17 = vpack.c.bf16 %v1013_v6, %v1012_v4  ;;  %v1017_v22 = vld [vmem:[%s10550_s0 + $0x112] sm:$0xff]  ;;  %v1023_v52 = vld [vmem:[%s10550_s0 + $0x15a] sm:$0xff] }
  0x23   :  { %6324 = vmatprep.mubr.msk.bf16.mxu1 %vm213_vm2, %v203_v2  ;;  %v22_v2 = vld [vmem:[%s10550_s0 + $0x30] sm:$0xff]  ;;  %v1059_v8 = vpack.c.bf16 %v997_v0, %v996_v60  ;;  %v47_v50 = vld [vmem:[%s10550_s0 + $0x158] sm:$0xff] }
  0x24   :  { %v7236_v9 = vpack.c.bf16 %v23_v3, %v22_v2  ;;  %v36_v2 = vld [vmem:[%s10550_s0 + $0xd8] sm:$0xff]  ;;  %v37_v3 = vld [vmem:[%s10550_s0 + $0xe0] sm:$0xff]  ;;  %v46_v48 = vld [vmem:[%s10550_s0 + $0x150] sm:$0xff] }
  0x25   :  { %v1022_v51 = vld [vmem:[%s10550_s0 + $0x152] sm:$0xff] }
  0x26   :  { %v50_v4 = vld [vmem:[%s10550_s0 + $0x1b0] sm:$0xff]  ;;  %v51_v6 = vld [vmem:[%s10550_s0 + $0x1b8] sm:$0xff] }
  0x29   :  { %6293 = vmatmul.mubr.msk.bf16.gmra.mxu0 %vm213_vm2, %v7101_v12 }
  0x2a   :  { %6325 = vmatmul.mubr.msk.bf16.gmra.mxu1 %vm213_vm2, %v204_v13  ;;  %6296 = vmatprep.mubr.msk.bf16.mxu0 %vm213_vm2, %v7103_v14  ;;  %v25_v13 = vld [vmem:[%s10550_s0 + $0x50] sm:$0xff] }
  0x2b   :  { %6328 = vmatprep.mubr.msk.bf16.mxu1 %vm213_vm2, %v205_v16  ;;  %v1000_v16 = vld [vmem:[%s10550_s0 + $0x4a] sm:$0xff]  ;;  %v7283_v24 = vpack.c.bf16 %v25_v13, %v24_v11  ;;  %v1014_v11 = vld [vmem:[%s10550_s0 + $0xf2] sm:$0xff]  ;;  %v1015_v13 = vld [vmem:[%s10550_s0 + $0xfa] sm:$0xff] }
  0x31   :  { %6297 = vmatmul.mubr.msk.bf16.gmra.mxu0 %vm213_vm2, %v7135_v26 }
  0x32   :  { %6329 = vmatmul.mubr.msk.bf16.gmra.mxu1 %vm213_vm2, %v206_v27  ;;  %6300 = vmatprep.mubr.msk.bf16.mxu0 %vm213_vm2, %v7137_v28  ;;  %v1061_v27 = vpack.c.bf16 %v1001_v18, %v1000_v16  ;;  %v7386_v16 = vpack.c.bf16 %v37_v3, %v36_v2  ;;  %v1024_v2 = vld [vmem:[%s10550_s0 + $0x16a] sm:$0xff]  ;;  %v1025_v3 = vld [vmem:[%s10550_s0 + $0x172] sm:$0xff] }
  0x33   :  { %6332 = vmatprep.mubr.msk.bf16.mxu1 %vm213_vm2, %v207_v29  ;;  %v7285_v29 = vpack.c.bf16 %v27_v20, %v26_v19  ;;  %v1068_v19 = vpack.c.bf16 %v1015_v13, %v1014_v11  ;;  %v40_v20 = vld [vmem:[%s10550_s0 + $0x108] sm:$0xff]  ;;  %v1073_v13 = vpack.c.bf16 %v1025_v3, %v1024_v2 }
  0x39   :  { %6301 = vmatmul.mubr.msk.bf16.gmra.mxu0 %vm213_vm2, %v7169_v40 }
  0x3a   :  { %6333 = vmatmul.mubr.msk.bf16.gmra.mxu1 %vm213_vm2, %v208_v41  ;;  %6304 = vmatprep.mubr.msk.bf16.mxu0 %vm213_vm2, %v7171_v42  ;;  %v1007_v41 = vld [vmem:[%s10550_s0 + $0x9a] sm:$0xff] }
  0x3b   :  { %6336 = vmatprep.mubr.msk.bf16.mxu1 %vm213_vm2, %v209_v43  ;;  %v7318_v43 = vpack.c.bf16 %v29_v32, %v28_v31  ;;  %v1064_v46 = vpack.c.bf16 %v1007_v41, %v1006_v39  ;;  %v1018_v31 = vld [vmem:[%s10550_s0 + $0x122] sm:$0xff]  ;;  %v1019_v32 = vld [vmem:[%s10550_s0 + $0x12a] sm:$0xff]  ;;  %v44_v39 = vld [vmem:[%s10550_s0 + $0x138] sm:$0xff] }
  0x3c   :  { %v1070_v38 = vpack.c.bf16 %v1019_v32, %v1018_v31  ;;  %v45_v41 = vld [vmem:[%s10550_s0 + $0x140] sm:$0xff]  ;;  %v1031_v32 = vld [vmem:[%s10550_s0 + $0x1ea] sm:$0xff] }
  0x3d   :  { %v1030_v31 = vld [vmem:[%s10550_s0 + $0x1e2] sm:$0xff] }
  0x41   :  { %6305 = vmatmul.mubr.msk.bf16.gmra.mxu0 %vm213_vm2, %v7203_v54 }
  0x42   :  { %6337 = vmatmul.mubr.msk.bf16.gmra.mxu1 %vm213_vm2, %v210_v55  ;;  %6408 = vmatprep.mubr.msk.bf16.mxu0 %vm213_vm2, %v1058_v57  ;;  %v35_v55 = vld [vmem:[%s10550_s0 + $0xc8] sm:$0xff] }
  0x43   :  { %6342 = vmatprep.mubr.msk.bf16.mxu1 %vm213_vm2, %v82_v56  ;;  %v1010_v56 = vld [vmem:[%s10550_s0 + $0xc2] sm:$0xff]  ;;  %v1011_v57 = vld [vmem:[%s10550_s0 + $0xca] sm:$0xff]  ;;  %v7354_v60 = vpack.c.bf16 %v35_v55, %v34_v53  ;;  %v7454_v53 = vpack.c.bf16 %v45_v41, %v44_v39  ;;  %v1076_v41 = vpack.c.bf16 %v1031_v32, %v1030_v31  ;;  %v1040_v32 = vld [vmem:[%s10550_s0 + $0x25a] sm:$0xff] }
  0x44   :  { %v1066_v0 = vpack.c.bf16 %v1011_v57, %v1010_v56  ;;  %v7456_v56 = vpack.c.bf16 %v47_v50, %v46_v48  ;;  %v1072_v57 = vpack.c.bf16 %v1023_v52, %v1022_v51  ;;  %v1032_v48 = vld [vmem:[%s10550_s0 + $0x1fa] sm:$0xff]  ;;  %v1033_v50 = vld [vmem:[%s10550_s0 + $0x202] sm:$0xff]  ;;  %v58_v51 = vld [vmem:[%s10550_s0 + $0x210] sm:$0xff] }
  0x45   :  { %v59_v52 = vld [vmem:[%s10550_s0 + $0x218] sm:$0xff]  ;;  %v65_v31 = vld [vmem:[%s10550_s0 + $0x260] sm:$0xff] }
  0x46   :  { %v7555_v2 = vpack.c.bf16 %v59_v52, %v58_v51 }
  0x49   :  { %6409 = vmatmul.mubr.msk.bf16.vlgmr.msra.gmra.mxu0 %vm213_vm2, %v1059_v8  ;;  %v38_v8 = vld [vmem:[%s10550_s0 + $0xf0] sm:$0xff] }
  0x4a   :  { %6343 = vmatmul.mubr.msk.bf16.vlgmr.msra.gmra.mxu1 %vm213_vm2, %v7234_v7  ;;  %6539 = vmatpush3.bf16.msra.mxu0 %v7063_v62  ;;  %v1003_v62 = vld [vmem:[%s10550_s0 + $0x6a] sm:$0xff] }
  0x4b   :  { %6473 = vmatpush3.bf16.msra.mxu1 %v7060_v61  ;;  %6346 = vmatprep.mubr.msk.bf16.mxu1 %vm213_vm2, %v7236_v9  ;;  %v1002_v61 = vld [vmem:[%s10550_s0 + $0x62] sm:$0xff] }
  0x4c   :  { %6412 = vmatprep.mubr.msk.bf16.mxu0 %vm213_vm2, %v1060_v10  ;;  %6604 = vmatprep.subr.bf16.mxu1 %v7265_v21  ;;  %v1062_v30 = vpack.c.bf16 %v1003_v62, %v1002_v61  ;;  %v39_v10 = vld [vmem:[%s10550_s0 + $0xf8] sm:$0xff]  ;;  %v41_v61 = vld [vmem:[%s10550_s0 + $0x110] sm:$0xff] }
  0x4d   :  { %6670 = vmatprep.subr.bf16.mxu0 %v7281_v23  ;;  %v7388_v18 = vpack.c.bf16 %v39_v10, %v38_v8  ;;  %v1016_v62 = vld [vmem:[%s10550_s0 + $0x10a] sm:$0xff]  ;;  %v7420_v33 = vpack.c.bf16 %v41_v61, %v40_v20  ;;  %v1026_v8 = vld [vmem:[%s10550_s0 + $0x1b2] sm:$0xff]  ;;  %v1027_v10 = vld [vmem:[%s10550_s0 + $0x1ba] sm:$0xff] }
  0x4e   :  { %v1069_v34 = vpack.c.bf16 %v1017_v22, %v1016_v62  ;;  %v52_v20 = vld [vmem:[%s10550_s0 + $0x1c8] sm:$0xff]  ;;  %v53_v61 = vld [vmem:[%s10550_s0 + $0x1d0] sm:$0xff] }
  0x4f   :  { %v1028_v62 = vld [vmem:[%s10550_s0 + $0x1ca] sm:$0xff]  ;;  %v1029_v22 = vld [vmem:[%s10550_s0 + $0x1d2] sm:$0xff] }
  0x51   :  { %6413 = vmatmul.mubr.msk.bf16.gmra.mxu0 %vm213_vm2, %v1061_v27  ;;  %v42_v27 = vld [vmem:[%s10550_s0 + $0x120] sm:$0xff] }
  0x52   :  { %6347 = vmatmul.mubr.msk.bf16.gmra.mxu1 %vm213_vm2, %v7283_v24  ;;  %6416 = vmatprep.mubr.msk.bf16.mxu0 %vm213_vm2, %v1062_v30  ;;  %v43_v30 = vld [vmem:[%s10550_s0 + $0x128] sm:$0xff] }
  0x53   :  { %6350 = vmatprep.mubr.msk.bf16.mxu1 %vm213_vm2, %v7285_v29  ;;  %v7422_v36 = vpack.c.bf16 %v43_v30, %v42_v27  ;;  %v54_v27 = vld [vmem:[%s10550_s0 + $0x1e0] sm:$0xff]  ;;  %v55_v30 = vld [vmem:[%s10550_s0 + $0x1e8] sm:$0xff] }
  0x54   :  { %v7521_v39 = vpack.c.bf16 %v55_v30, %v54_v27  ;;  %v64_v30 = vld [vmem:[%s10550_s0 + $0x258] sm:$0xff] }
  0x59   :  { %6417 = vmatmul.mubr.msk.bf16.gmra.mxu0 %vm213_vm2, %v1063_v44  ;;  %v1020_v44 = vld [vmem:[%s10550_s0 + $0x13a] sm:$0xff] }
  0x5a   :  { %6351 = vmatmul.mubr.msk.bf16.gmra.mxu1 %vm213_vm2, %v7318_v43  ;;  %6420 = vmatprep.mubr.msk.bf16.mxu0 %vm213_vm2, %v1064_v46  ;;  %v1021_v46 = vld [vmem:[%s10550_s0 + $0x142] sm:$0xff] }
  0x5b   :  { %6354 = vmatprep.mubr.msk.bf16.mxu1 %vm213_vm2, %v7320_v45  ;;  %v1071_v55 = vpack.c.bf16 %v1021_v46, %v1020_v44  ;;  %v56_v44 = vld [vmem:[%s10550_s0 + $0x1f8] sm:$0xff]  ;;  %v57_v46 = vld [vmem:[%s10550_s0 + $0x200] sm:$0xff] }
  0x61   :  { %6421 = vmatmul.mubr.msk.bf16.gmra.mxu0 %vm213_vm2, %v1065_v59  ;;  %v48_v59 = vld [vmem:[%s10550_s0 + $0x168] sm:$0xff] }
  0x62   :  { %6355 = vmatmul.mubr.msk.bf16.gmra.mxu1 %vm213_vm2, %v7352_v58  ;;  %6424 = vmatprep.mubr.msk.bf16.mxu0 %vm213_vm2, %v1066_v0  ;;  %v49_v0 = vld [vmem:[%s10550_s0 + $0x170] sm:$0xff] }
  0x63   :  { %6358 = vmatprep.mubr.msk.bf16.mxu1 %vm213_vm2, %v7354_v60  ;;  %v7488_v11 = vpack.c.bf16 %v49_v0, %v48_v59  ;;  %v7553_v59 = vpack.c.bf16 %v57_v46, %v56_v44  ;;  %v1077_v0 = vpack.c.bf16 %v1033_v50, %v1032_v48  ;;  %v67_v44 = vld [vmem:[%s10550_s0 + $0x278] sm:$0xff]  ;;  %v7621_v50 = vpack.c.bf16 %v65_v31, %v64_v30  ;;  %v73_v30 = vld [vmem:[%s10550_s0 + $0x2c0] sm:$0xff] }
  0x64   :  { %v1042_v46 = vld [vmem:[%s10550_s0 + $0x272] sm:$0xff]  ;;  %v1043_v48 = vld [vmem:[%s10550_s0 + $0x27a] sm:$0xff] }
  0x65   :  { %v1048_v31 = vld [vmem:[%s10550_s0 + $0x2ba] sm:$0xff] }
  0x69   :  { %6425 = vmatmul.mubr.msk.bf16.gmra.mxu0 %vm213_vm2, %v1067_v17  ;;  %v98_v17 = vpack.c.bf16 %v51_v6, %v50_v4  ;;  %v60_v4 = vld [vmem:[%s10550_s0 + $0x228] sm:$0xff]  ;;  %v61_v6 = vld [vmem:[%s10550_s0 + $0x230] sm:$0xff] }
  0x6a   :  { %6359 = vmatmul.mubr.msk.bf16.gmra.mxu1 %vm213_vm2, %v7386_v16  ;;  %6428 = vmatprep.mubr.msk.bf16.mxu0 %vm213_vm2, %v1068_v19  ;;  %v1074_v19 = vpack.c.bf16 %v1027_v10, %v1026_v8  ;;  %v1036_v8 = vld [vmem:[%s10550_s0 + $0x22a] sm:$0xff]  ;;  %v1037_v10 = vld [vmem:[%s10550_s0 + $0x232] sm:$0xff] }
  0x6b   :  { %6362 = vmatprep.mubr.msk.bf16.mxu1 %vm213_vm2, %v7388_v18 }
  0x71   :  { %6429 = vmatmul.mubr.msk.bf16.gmra.mxu0 %vm213_vm2, %v1069_v34  ;;  %v7519_v34 = vpack.c.bf16 %v53_v61, %v52_v20  ;;  %v1039_v20 = vld [vmem:[%s10550_s0 + $0x24a] sm:$0xff]  ;;  %v7587_v61 = vpack.c.bf16 %v61_v6, %v60_v4  ;;  %v1045_v4 = vld [vmem:[%s10550_s0 + $0x292] sm:$0xff]  ;;  %v70_v6 = vld [vmem:[%s10550_s0 + $0x2a0] sm:$0xff] }
  0x72   :  { %6363 = vmatmul.mubr.msk.bf16.gmra.mxu1 %vm213_vm2, %v7420_v33  ;;  %6432 = vmatprep.mubr.msk.bf16.mxu0 %vm213_vm2, %v1070_v38  ;;  %v1075_v38 = vpack.c.bf16 %v1029_v22, %v1028_v62  ;;  %v1079_v62 = vpack.c.bf16 %v1037_v10, %v1036_v8  ;;  %v71_v8 = vld [vmem:[%s10550_s0 + $0x2a8] sm:$0xff] }
  0x73   :  { %6366 = vmatprep.mubr.msk.bf16.mxu1 %vm213_vm2, %v7422_v36  ;;  %v1046_v10 = vld [vmem:[%s10550_s0 + $0x2a2] sm:$0xff] }
  0x79   :  { %6433 = vmatmul.mubr.msk.bf16.gmra.mxu0 %vm213_vm2, %v1071_v55  ;;  %v1034_v55 = vld [vmem:[%s10550_s0 + $0x212] sm:$0xff] }
  0x7a   :  { %6367 = vmatmul.mubr.msk.bf16.gmra.mxu1 %vm213_vm2, %v7454_v53  ;;  %6436 = vmatprep.mubr.msk.bf16.mxu0 %vm213_vm2, %v1072_v57  ;;  %v1035_v57 = vld [vmem:[%s10550_s0 + $0x21a] sm:$0xff] }
  0x7b   :  { %6370 = vmatprep.mubr.msk.bf16.mxu1 %vm213_vm2, %v7456_v56  ;;  %v1078_v3 = vpack.c.bf16 %v1035_v57, %v1034_v55  ;;  %v1082_v55 = vpack.c.bf16 %v1043_v48, %v1042_v46  ;;  %v68_v57 = vld [vmem:[%s10550_s0 + $0x288] sm:$0xff]  ;;  %v1051_v46 = vld [vmem:[%s10550_s0 + $0x2da] sm:$0xff] }
  0x81   :  { %6437 = vmatmul.mubr.msk.bf16.gmra.mxu0 %vm213_vm2, %v1073_v13  ;;  %v62_v13 = vld [vmem:[%s10550_s0 + $0x240] sm:$0xff] }
  0x82   :  { %6371 = vmatmul.mubr.msk.bf16.gmra.mxu1 %vm213_vm2, %v7488_v11  ;;  %6440 = vmatprep.mubr.msk.bf16.mxu0 %vm213_vm2, %v1074_v19  ;;  %v1038_v19 = vld [vmem:[%s10550_s0 + $0x242] sm:$0xff] }
  0x83   :  { %6374 = vmatprep.mubr.msk.bf16.mxu1 %vm213_vm2, %v98_v17  ;;  %v63_v17 = vld [vmem:[%s10550_s0 + $0x248] sm:$0xff]  ;;  %v1080_v27 = vpack.c.bf16 %v1039_v20, %v1038_v19  ;;  %v7657_v20 = vpack.c.bf16 %v71_v8, %v70_v6  ;;  %v1053_v6 = vld [vmem:[%s10550_s0 + $0x2f2] sm:$0xff]  ;;  %v78_v8 = vld [vmem:[%s10550_s0 + $0x300] sm:$0xff] }
  0x84   :  { %v7589_v22 = vpack.c.bf16 %v63_v17, %v62_v13  ;;  %v1047_v13 = vld [vmem:[%s10550_s0 + $0x2aa] sm:$0xff] }
  0x89   :  { %6441 = vmatmul.mubr.msk.bf16.gmra.mxu0 %vm213_vm2, %v1075_v38  ;;  %v1041_v38 = vld [vmem:[%s10550_s0 + $0x262] sm:$0xff] }
  0x8a   :  { %6375 = vmatmul.mubr.msk.bf16.gmra.mxu1 %vm213_vm2, %v7519_v34  ;;  %6444 = vmatprep.mubr.msk.bf16.mxu0 %vm213_vm2, %v1076_v41  ;;  %v66_v41 = vld [vmem:[%s10550_s0 + $0x270] sm:$0xff]  ;;  %v1081_v51 = vpack.c.bf16 %v1041_v38, %v1040_v32  ;;  %v1049_v32 = vld [vmem:[%s10550_s0 + $0x2c2] sm:$0xff] }
  0x8b   :  { %6378 = vmatprep.mubr.msk.bf16.mxu1 %vm213_vm2, %v7521_v39  ;;  %v7623_v52 = vpack.c.bf16 %v67_v44, %v66_v41  ;;  %v74_v38 = vld [vmem:[%s10550_s0 + $0x2d0] sm:$0xff]  ;;  %v75_v41 = vld [vmem:[%s10550_s0 + $0x2d8] sm:$0xff] }
  0x8c   :  { %v1050_v44 = vld [vmem:[%s10550_s0 + $0x2d2] sm:$0xff] }
  0x91   :  { %6445 = vmatmul.mubr.msk.bf16.gmra.mxu0 %vm213_vm2, %v1077_v0  ;;  %v69_v0 = vld [vmem:[%s10550_s0 + $0x290] sm:$0xff] }
  0x92   :  { %6379 = vmatmul.mubr.msk.bf16.gmra.mxu1 %vm213_vm2, %v7553_v59  ;;  %6448 = vmatprep.mubr.msk.bf16.mxu0 %vm213_vm2, %v1078_v3  ;;  %v1044_v3 = vld [vmem:[%s10550_s0 + $0x28a] sm:$0xff]  ;;  %v7655_v17 = vpack.c.bf16 %v69_v0, %v68_v57  ;;  %v1086_v57 = vpack.c.bf16 %v1051_v46, %v1050_v44  ;;  %v1057_v44 = vld [vmem:[%s10550_s0 + $0x322] sm:$0xff] }
  0x93   :  { %6382 = vmatprep.mubr.msk.bf16.mxu1 %vm213_vm2, %v7555_v2  ;;  %v1083_v19 = vpack.c.bf16 %v1045_v4, %v1044_v3  ;;  %v76_v0 = vld [vmem:[%s10550_s0 + $0x2e8] sm:$0xff]  ;;  %v77_v3 = vld [vmem:[%s10550_s0 + $0x2f0] sm:$0xff] }
  0x94   :  { %v1052_v4 = vld [vmem:[%s10550_s0 + $0x2ea] sm:$0xff] }
  0x99   :  { %6449 = vmatmul.mubr.msk.bf16.gmra.mxu0 %vm213_vm2, %v1079_v62  ;;  %v1084_v62 = vpack.c.bf16 %v1047_v13, %v1046_v10  ;;  %v79_v10 = vld [vmem:[%s10550_s0 + $0x308] sm:$0xff] }
  0x9a   :  { %6383 = vmatmul.mubr.msk.bf16.gmra.mxu1 %vm213_vm2, %v7587_v61  ;;  %6452 = vmatprep.mubr.msk.bf16.mxu0 %vm213_vm2, %v1080_v27  ;;  %v72_v27 = vld [vmem:[%s10550_s0 + $0x2b8] sm:$0xff]  ;;  %v1054_v13 = vld [vmem:[%s10550_s0 + $0x302] sm:$0xff] }
  0x9b   :  { %6386 = vmatprep.mubr.msk.bf16.mxu1 %vm213_vm2, %v7589_v22  ;;  %v7689_v48 = vpack.c.bf16 %v73_v30, %v72_v27  ;;  %v1087_v27 = vpack.c.bf16 %v1053_v6, %v1052_v4  ;;  %v7725_v30 = vpack.c.bf16 %v79_v10, %v78_v8 }
  0xa1   :  { %6453 = vmatmul.mubr.msk.bf16.gmra.mxu0 %vm213_vm2, %v1081_v51  ;;  %v1085_v51 = vpack.c.bf16 %v1049_v32, %v1048_v31  ;;  %v80_v32 = vld [vmem:[%s10550_s0 + $0x318] sm:$0xff] }
  0xa2   :  { %6387 = vmatmul.mubr.msk.bf16.gmra.mxu1 %vm213_vm2, %v7621_v50  ;;  %6456 = vmatprep.mubr.msk.bf16.mxu0 %vm213_vm2, %v1082_v55  ;;  %v7691_v55 = vpack.c.bf16 %v75_v41, %v74_v38  ;;  %v81_v38 = vld [vmem:[%s10550_s0 + $0x320] sm:$0xff] }
  0xa3   :  { %6390 = vmatprep.mubr.msk.bf16.mxu1 %vm213_vm2, %v7623_v52  ;;  %v1056_v41 = vld [vmem:[%s10550_s0 + $0x31a] sm:$0xff]  ;;  %v7745_v46 = vpack.c.bf16 %v81_v38, %v80_v32 }
  0xa9   :  { %6457 = vmatmul.mubr.msk.bf16.gmra.mxu0 %vm213_vm2, %v1083_v19  ;;  %v1055_v19 = vld [vmem:[%s10550_s0 + $0x30a] sm:$0xff] }
  0xaa   :  { %6391 = vmatmul.mubr.msk.bf16.gmra.mxu1 %vm213_vm2, %v7655_v17  ;;  %6460 = vmatprep.mubr.msk.bf16.mxu0 %vm213_vm2, %v1084_v62  ;;  %v7723_v62 = vpack.c.bf16 %v77_v3, %v76_v0  ;;  %v1088_v31 = vpack.c.bf16 %v1055_v19, %v1054_v13 }
  0xab   :  { %6394 = vmatprep.mubr.msk.bf16.mxu1 %vm213_vm2, %v7657_v20 }
  0xb1   :  { %6461 = vmatmul.mubr.msk.bf16.gmra.mxu0 %vm213_vm2, %v1085_v51  ;;  %v1089_v51 = vpack.c.bf16 %v1057_v44, %v1056_v41 }
  0xb2   :  { %6395 = vmatmul.mubr.msk.bf16.gmra.mxu1 %vm213_vm2, %v7689_v48  ;;  %6464 = vmatprep.mubr.msk.bf16.mxu0 %vm213_vm2, %v1086_v57 }
  0xb3   :  { %6398 = vmatprep.mubr.msk.bf16.mxu1 %vm213_vm2, %v7691_v55 }
  0xb9   :  { %6465 = vmatmul.mubr.msk.bf16.gmra.mxu0 %vm213_vm2, %v1087_v27 }
  0xba   :  { %6399 = vmatmul.mubr.msk.bf16.gmra.mxu1 %vm213_vm2, %v7723_v62  ;;  %6468 = vmatprep.mubr.msk.bf16.mxu0 %vm213_vm2, %v1088_v31 }
  0xbb   :  { %6402 = vmatprep.mubr.msk.bf16.mxu1 %vm213_vm2, %v7725_v30 }
  0xc1   :  { %6469 = vmatmul.mubr.msk.bf16.gmra.mxu0 %vm213_vm2, %v1089_v51 }
  0xc2   :  { %6403 = vmatmul.mubr.msk.bf16.gmra.mxu1 %vm213_vm2, %v7745_v46  ;;  %6540 = vmatprep.mubr.msk.bf16.mxu0 %vm213_vm2, %v6930_v15  ;;  %v5781_v15 = vld [vmem:[%s10549_s1 + $0xe] sm:$0x3] }
  0xc3   :  { %6474 = vmatprep.mubr.msk.bf16.mxu1 %vm213_vm2, %v7234_v7 }
  0xc9   :  { %v7754_v57 = vpop.f32.mrf.mxu0  ;;  %6541 = vmatmul.mubr.msk.bf16.vlgmr.msra.gmra.mxu0 %vm213_vm2, %v6953_v25 }
  0xca   :  { %v7756_v0 = vpop.f32.mrf.mxu1  ;;  %6475 = vmatmul.mubr.msk.bf16.vlgmr.msra.gmra.mxu1 %vm213_vm2, %v7236_v9  ;;  %6671 = vmatpush3.bf16.msra.mxu0 %v7281_v23  ;;  %v5878_v23 = vld [vmem:[%s10549_s1 + $0x10] sm:$0x3] }
  0xcb   :  { %10575 = vst [vmem:[#allocation2_spill] sm:$0xff] %v7756_v0  ;;  %6605 = vmatpush3.bf16.msra.mxu1 %v7265_v21  ;;  %v7764_v3 = vpop.f32.mrf.mxu0  ;;  %6478 = vmatprep.mubr.msk.bf16.mxu1 %vm213_vm2, %v7283_v24  ;;  %v7780_v21 = vand.u32 %v5781_v15, %v6908_v5 }
  0xcc   :  { %v7766_v7 = vpop.f32.mrf.mxu1  ;;  %6544 = vmatprep.mubr.msk.bf16.mxu0 %vm213_vm2, %v6985_v35  ;;  %v7791_v35 = vand.u32 %v5878_v23, %v6908_v5 }
  0xcd   :  { %10576 = vst [vmem:[#allocation3_spill] sm:$0xff] %v7766_v7  ;;  %v7775_v9 = vpop.f32.mrf.mxu0  ;;  %10578 = vst [vmem:[#allocation5_spill] sm:$0xff] %v7780_v21  ;;  %6736 = vmatprep.subr.bf16.mxu1 %v7780_v21 }
  0xce   :  { %v7777_v25 = vpop.f32.mrf.mxu1  ;;  %10580 = vst [vmem:[#allocation7_spill] sm:$0xff] %v7791_v35  ;;  %6802 = vmatprep.subr.bf16.mxu0 %v7791_v35 }
  0xcf   :  { %10577 = vst [vmem:[#allocation4_spill] sm:$0xff] %v7777_v25  ;;  %v7785_v4 = vpop.f32.mrf.mxu0 }
  0xd0   :  { %v7787_v24 = vpop.f32.mrf.mxu1 }
  0xd1   :  { %10579 = vst [vmem:[#allocation6_spill] sm:$0xff] %v7787_v24  ;;  %v7793_v6 = vpop.f32.mrf.mxu0  ;;  %6545 = vmatmul.mubr.msk.bf16.gmra.mxu0 %vm213_vm2, %v6987_v37 }
  0xd2   :  { %v7795_v8 = vpop.f32.mrf.mxu1  ;;  %6479 = vmatmul.mubr.msk.bf16.gmra.mxu1 %vm213_vm2, %v7285_v29  ;;  %6548 = vmatprep.mubr.msk.bf16.mxu0 %vm213_vm2, %v7019_v47 }
  0xd3   :  { %10581 = vst [vmem:[#allocation8_spill] sm:$0xff] %v7795_v8  ;;  %6482 = vmatprep.mubr.msk.bf16.mxu1 %vm213_vm2, %v7318_v43  ;;  %v7805_v10 = vpop.f32.mrf.mxu0 }
  0xd4   :  { %v7807_v5 = vpop.f32.mrf.mxu1 }
  0xd5   :  { %10582 = vst [vmem:[#allocation9_spill] sm:$0xff] %v7807_v5  ;;  %v7810_v13 = vpop.f32.mrf.mxu0 }
  0xd6   :  { %v7812_v19 = vpop.f32.mrf.mxu1 }
  0xd7   :  { %10583 = vst [vmem:[#allocation10_spill] sm:$0xff] %v7812_v19  ;;  %v7814_v29 = vpop.f32.mrf.mxu0 }
  0xd8   :  { %v7816_v27 = vpop.f32.mrf.mxu1 }
  0xd9   :  { %10584 = vst [vmem:[#allocation11_spill] sm:$0xff] %v7816_v27  ;;  %v7818_v37 = vpop.f32.mrf.mxu0  ;;  %6549 = vmatmul.mubr.msk.bf16.gmra.mxu0 %vm213_vm2, %v7021_v49 }
  0xda   :  { %v7820_v43 = vpop.f32.mrf.mxu1  ;;  %6483 = vmatmul.mubr.msk.bf16.gmra.mxu1 %vm213_vm2, %v7320_v45  ;;  %6552 = vmatprep.mubr.msk.bf16.mxu0 %vm213_vm2, %v7065_v63 }
  0xdb   :  { %10585 = vst [vmem:[#allocation12_spill] sm:$0xff] %v7820_v43  ;;  %6486 = vmatprep.mubr.msk.bf16.mxu1 %vm213_vm2, %v7352_v58  ;;  %v7830_v47 = vpop.f32.mrf.mxu0 }
  0xdc   :  { %v7832_v31 = vpop.f32.mrf.mxu1 }
  0xdd   :  { %10586 = vst [vmem:[#allocation13_spill] sm:$0xff] %v7832_v31  ;;  %v7834_v32 = vpop.f32.mrf.mxu0 }
  0xde   :  { %v7836_v38 = vpop.f32.mrf.mxu1 }
  0xdf   :  { %10587 = vst [vmem:[#allocation14_spill] sm:$0xff] %v7836_v38  ;;  %v7838_v41 = vpop.f32.mrf.mxu0 }
  0xe0   :  { %v7840_v45 = vpop.f32.mrf.mxu1 }
  0xe1   :  { %10588 = vst [vmem:[#allocation15_spill] sm:$0xff] %v7840_v45  ;;  %v7842_v44 = vpop.f32.mrf.mxu0  ;;  %6553 = vmatmul.mubr.msk.bf16.gmra.mxu0 %vm213_vm2, %v7069_v1 }
  0xe2   :  { %v7844_v49 = vpop.f32.mrf.mxu1  ;;  %6487 = vmatmul.mubr.msk.bf16.gmra.mxu1 %vm213_vm2, %v7354_v60  ;;  %6556 = vmatprep.mubr.msk.bf16.mxu0 %vm213_vm2, %v7101_v12 }
  0xe3   :  { %10589 = vst [vmem:[#allocation16_spill] sm:$0xff] %v7844_v49  ;;  %6490 = vmatprep.mubr.msk.bf16.mxu1 %vm213_vm2, %v7386_v16  ;;  %v7854_v63 = vpop.f32.mrf.mxu0 }
  0xe4   :  { %v7856_v58 = vpop.f32.mrf.mxu1 }
  0xe5   :  { %10590 = vst [vmem:[#allocation17_spill] sm:$0xff] %v7856_v58  ;;  %v7858_v51 = vpop.f32.mrf.mxu0 }
  0xe6   :  { %v7860_v15 = vpop.f32.mrf.mxu1 }
  0xe7   :  { %10591 = vst [vmem:[#allocation18_spill] sm:$0xff] %v7860_v15  ;;  %v7862_v23 = vpop.f32.mrf.mxu0 }
  0xe8   :  { %v7864_v60 = vpop.f32.mrf.mxu1 }
  0xe9   :  { %10592 = vst [vmem:[#allocation19_spill] sm:$0xff] %v7864_v60  ;;  %v7866_v49 = vpop.f32.mrf.mxu0  ;;  %6557 = vmatmul.mubr.msk.bf16.gmra.mxu0 %vm213_vm2, %v7103_v14 }
  0xea   :  { %v7868_v1 = vpop.f32.mrf.mxu1  ;;  %6491 = vmatmul.mubr.msk.bf16.gmra.mxu1 %vm213_vm2, %v7388_v18  ;;  %6560 = vmatprep.mubr.msk.bf16.mxu0 %vm213_vm2, %v7135_v26 }
  0xeb   :  { %10593 = vst [vmem:[#allocation20_spill] sm:$0xff] %v7868_v1  ;;  %6494 = vmatprep.mubr.msk.bf16.mxu1 %vm213_vm2, %v7420_v33  ;;  %v7878_v12 = vpop.f32.mrf.mxu0 }
  0xec   :  { %v7880_v16 = vpop.f32.mrf.mxu1 }
  0xed   :  { %10594 = vst [vmem:[#allocation21_spill] sm:$0xff] %v7880_v16  ;;  %v7882_v60 = vpop.f32.mrf.mxu0 }
  0xee   :  { %v7884_v15 = vpop.f32.mrf.mxu1 }
  0xef   :  { %10595 = vst [vmem:[#allocation22_spill] sm:$0xff] %v7884_v15  ;;  %v7886_v1 = vpop.f32.mrf.mxu0 }
  0xf0   :  { %v7888_v18 = vpop.f32.mrf.mxu1 }
  0xf1   :  { %10596 = vst [vmem:[#allocation23_spill] sm:$0xff] %v7888_v18  ;;  %v7890_v58 = vpop.f32.mrf.mxu0  ;;  %6561 = vmatmul.mubr.msk.bf16.gmra.mxu0 %vm213_vm2, %v7137_v28 }
  0xf2   :  { %v7892_v14 = vpop.f32.mrf.mxu1  ;;  %6495 = vmatmul.mubr.msk.bf16.gmra.mxu1 %vm213_vm2, %v7422_v36  ;;  %6564 = vmatprep.mubr.msk.bf16.mxu0 %vm213_vm2, %v7169_v40  ;;  %v5359_v40 = vld [vmem:[%s10550_s0 + $0x180] sm:$0xff] }
  0xf3   :  { %10597 = vst [vmem:[#allocation24_spill] sm:$0xff] %v7892_v14  ;;  %6498 = vmatprep.mubr.msk.bf16.mxu1 %vm213_vm2, %v7454_v53  ;;  %v7902_v26 = vpop.f32.mrf.mxu0  ;;  %v5360_v53 = vld [vmem:[%s10550_s0 + $0x188] sm:$0xff] }
  0xf4   :  { %v7904_v33 = vpop.f32.mrf.mxu1  ;;  %v7952_v45 = vpack.c.bf16 %v5360_v53, %v5359_v40  ;;  %v5460_v40 = vld [vmem:[%s10550_s0 + $0x1e1] sm:$0xff]  ;;  %v5461_v53 = vld [vmem:[%s10550_s0 + $0x1e9] sm:$0xff] }
  0xf5   :  { %10598 = vst [vmem:[#allocation25_spill] sm:$0xff] %v7904_v33  ;;  %v7906_v18 = vpop.f32.mrf.mxu0 }
  0xf6   :  { %v7908_v15 = vpop.f32.mrf.mxu1  ;;  %10604 = vst [vmem:[#allocation31_spill] sm:$0xff] %v7952_v45 }
  0xf7   :  { %10599 = vst [vmem:[#allocation26_spill] sm:$0xff] %v7908_v15  ;;  %v7910_v14 = vpop.f32.mrf.mxu0 }
  0xf8   :  { %v7912_v36 = vpop.f32.mrf.mxu1 }
  0xf9   :  { %10600 = vst [vmem:[#allocation27_spill] sm:$0xff] %v7912_v36  ;;  %v7914_v16 = vpop.f32.mrf.mxu0  ;;  %6565 = vmatmul.mubr.msk.bf16.gmra.mxu0 %vm213_vm2, %v7171_v42  ;;  %v5457_v42 = vld [vmem:[%s10550_s0 + $0x189] sm:$0xff] }
  0xfa   :  { %v7916_v28 = vpop.f32.mrf.mxu1  ;;  %6499 = vmatmul.mubr.msk.bf16.gmra.mxu1 %vm213_vm2, %v7456_v56  ;;  %6568 = vmatprep.mubr.msk.bf16.mxu0 %vm213_vm2, %v7203_v54  ;;  %v5456_v56 = vld [vmem:[%s10550_s0 + $0x181] sm:$0xff]  ;;  %v5458_v54 = vld [vmem:[%s10550_s0 + $0x1c9] sm:$0xff] }
  0xfb   :  { %10601 = vst [vmem:[#allocation28_spill] sm:$0xff] %v7916_v28  ;;  %6502 = vmatprep.mubr.msk.bf16.mxu1 %vm213_vm2, %v7488_v11  ;;  %v7938_v28 = vpop.f32.mrf.mxu0  ;;  %v5459_v11 = vld [vmem:[%s10550_s0 + $0x1d1] sm:$0xff]  ;;  %v2174_v38 = vpack.c.bf16 %v5457_v42, %v5456_v56 }
  0xfc   :  { %v7940_v36 = vpop.f32.mrf.mxu1  ;;  %v2175_v31 = vpack.c.bf16 %v5459_v11, %v5458_v54  ;;  %v2176_v11 = vpack.c.bf16 %v5461_v53, %v5460_v40  ;;  %v5464_v40 = vld [vmem:[%s10550_s0 + $0x211] sm:$0xff]  ;;  %v5465_v53 = vld [vmem:[%s10550_s0 + $0x219] sm:$0xff] }
  0xfd   :  { %10602 = vst [vmem:[#allocation29_spill] sm:$0xff] %v7940_v36  ;;  %v7948_v15 = vpop.f32.mrf.mxu0 }
  0xfe   :  { %v7950_v33 = vpop.f32.mrf.mxu1 }
  0xff   :  { %10603 = vst [vmem:[#allocation30_spill] sm:$0xff] %v7950_v33  ;;  %v7954_v43 = vpop.f32.mrf.mxu0 }
 0x100   :  { %v7956_v27 = vpop.f32.mrf.mxu1 }
 0x101   :  { %10605 = vst [vmem:[#allocation32_spill] sm:$0xff] %v7956_v27  ;;  %v7958_v36 = vpop.f32.mrf.mxu0  ;;  %6569 = vmatmul.mubr.msk.bf16.gmra.mxu0 %vm213_vm2, %v2174_v38  ;;  %v5462_v38 = vld [vmem:[%s10550_s0 + $0x1f9] sm:$0xff] }
 0x102   :  { %v7960_v19 = vpop.f32.mrf.mxu1  ;;  %6503 = vmatmul.mubr.msk.bf16.gmra.mxu1 %vm213_vm2, %v7952_v45  ;;  %6572 = vmatprep.mubr.msk.bf16.mxu0 %vm213_vm2, %v2175_v31 }
 0x103   :  { %10606 = vst [vmem:[#allocation33_spill] sm:$0xff] %v7960_v19  ;;  %6506 = vmatprep.mubr.msk.bf16.mxu1 %vm213_vm2, %v7519_v34  ;;  %v7974_v56 = vpop.f32.mrf.mxu0  ;;  %v5463_v34 = vld [vmem:[%s10550_s0 + $0x201] sm:$0xff] }
 0x104   :  { %v7976_v42 = vpop.f32.mrf.mxu1  ;;  %v2177_v19 = vpack.c.bf16 %v5463_v34, %v5462_v38 }
 0x105   :  { %10607 = vst [vmem:[#allocation34_spill] sm:$0xff] %v7976_v42  ;;  %v7984_v31 = vpop.f32.mrf.mxu0 }
 0x106   :  { %v7986_v54 = vpop.f32.mrf.mxu1 }
 0x107   :  { %10608 = vst [vmem:[#allocation35_spill] sm:$0xff] %v7986_v54  ;;  %v7988_v27 = vpop.f32.mrf.mxu0 }
 0x108   :  { %10609 = vst [vmem:[#allocation36_spill] sm:$0xff] %v7988_v27  ;;  %v7990_v33 = vpop.f32.mrf.mxu1 }
 0x109   :  { %10610 = vst [vmem:[#allocation37_spill] sm:$0xff] %v7990_v33  ;;  %v6410_v42 = vpop.f32.mrf.mxu0  ;;  %6573 = vmatmul.mubr.msk.bf16.gmra.mxu0 %vm213_vm2, %v2176_v11  ;;  %v2178_v33 = vpack.c.bf16 %v5465_v53, %v5464_v40 }
 0x10a   :  { %v6344_v45 = vpop.f32.mrf.mxu1  ;;  %6507 = vmatmul.mubr.msk.bf16.gmra.mxu1 %vm213_vm2, %v7521_v39  ;;  %6576 = vmatprep.mubr.msk.bf16.mxu0 %vm213_vm2, %v2177_v19  ;;  %v5466_v39 = vld [vmem:[%s10550_s0 + $0x229] sm:$0xff] }
 0x10b   :  { %v748_v5 = vadd.f32 %v6344_v45, %v7754_v57  ;;  %6510 = vmatprep.mubr.msk.bf16.mxu1 %vm213_vm2, %v7553_v59  ;;  %v1225_v34 = vpop.f32.mrf.mxu0  ;;  %v5467_v59 = vld [vmem:[%s10550_s0 + $0x231] sm:$0xff] }
 0x10c   :  { %v739_v38 = vpop.f32.mrf.mxu1  ;;  %v2179_v24 = vpack.c.bf16 %v5467_v59, %v5466_v39 }
 0x10d   :  { %v8011_v57 = vadd.f32 %v6410_v42, %v748_v5  ;;  %v740_v19 = vadd.f32 %v739_v38, %v7764_v3  ;;  %v6411_v11 = vpop.f32.mrf.mxu0 }
 0x10e   :  { %v6345_v45 = vpop.f32.mrf.mxu1 }
 0x10f   :  { %v8014_v54 = vadd.f32 %v1225_v34, %v740_v19  ;;  %v751_v8 = vadd.f32 %v6345_v45, %v7775_v9  ;;  %v1228_v7 = vpop.f32.mrf.mxu0  ;;  %v5468_v9 = vld [vmem:[%s10550_s0 + $0x241] sm:$0xff] }
 0x110   :  { %v742_v25 = vpop.f32.mrf.mxu1 }
 0x111   :  { %v8017_v35 = vadd.f32 %v6411_v11, %v751_v8  ;;  %v743_v21 = vadd.f32 %v742_v25, %v7785_v4  ;;  %v6414_v27 = vpop.f32.mrf.mxu0  ;;  %6577 = vmatmul.mubr.msk.bf16.gmra.mxu0 %vm213_vm2, %v2178_v33  ;;  %v5469_v25 = vld [vmem:[%s10550_s0 + $0x249] sm:$0xff] }
 0x112   :  { %v6348_v0 = vpop.f32.mrf.mxu1  ;;  %6511 = vmatmul.mubr.msk.bf16.gmra.mxu1 %vm213_vm2, %v7555_v2  ;;  %6580 = vmatprep.mubr.msk.bf16.mxu0 %vm213_vm2, %v2179_v24  ;;  %v2180_v8 = vpack.c.bf16 %v5469_v25, %v5468_v9  ;;  %v5474_v11 = vld [vmem:[%s10550_s0 + $0x289] sm:$0xff] }
 0x113   :  { %v8023_v3 = vadd.f32 %v1228_v7, %v743_v21  ;;  %v764_v5 = vadd.f32 %v6348_v0, %v7793_v6  ;;  %6514 = vmatprep.mubr.msk.bf16.mxu1 %vm213_vm2, %v7587_v61  ;;  %v1241_v4 = vpop.f32.mrf.mxu0  ;;  %v5470_v7 = vld [vmem:[%s10550_s0 + $0x259] sm:$0xff]  ;;  %v5471_v61 = vld [vmem:[%s10550_s0 + $0x261] sm:$0xff] }
 0x114   :  { %v755_v2 = vpop.f32.mrf.mxu1  ;;  %v2181_v40 = vpack.c.bf16 %v5471_v61, %v5470_v7 }
 0x115   :  { %v8041_v0 = vadd.f32 %v6414_v27, %v764_v5  ;;  %v756_v21 = vadd.f32 %v755_v2, %v7805_v10  ;;  %v6415_v6 = vpop.f32.mrf.mxu0 }
 0x116   :  { %v6349_v24 = vpop.f32.mrf.mxu1 }
 0x117   :  { %v8044_v33 = vadd.f32 %v1241_v4, %v756_v21  ;;  %v767_v42 = vadd.f32 %v6349_v24, %v7810_v13  ;;  %v1244_v38 = vpop.f32.mrf.mxu0  ;;  %v5472_v13 = vld [vmem:[%s10550_s0 + $0x271] sm:$0xff] }
 0x118   :  { %v758_v53 = vpop.f32.mrf.mxu1 }
 0x119   :  { %v8047_v34 = vadd.f32 %v6415_v6, %v767_v42  ;;  %v759_v39 = vadd.f32 %v758_v53, %v7814_v29  ;;  %v6418_v19 = vpop.f32.mrf.mxu0  ;;  %6581 = vmatmul.mubr.msk.bf16.gmra.mxu0 %vm213_vm2, %v2180_v8  ;;  %v5473_v29 = vld [vmem:[%s10550_s0 + $0x279] sm:$0xff] }
 0x11a   :  { %v6352_v59 = vpop.f32.mrf.mxu1  ;;  %6515 = vmatmul.mubr.msk.bf16.gmra.mxu1 %vm213_vm2, %v7589_v22  ;;  %6584 = vmatprep.mubr.msk.bf16.mxu0 %vm213_vm2, %v2181_v40  ;;  %v2182_v2 = vpack.c.bf16 %v5473_v29, %v5472_v13 }
 0x11b   :  { %v8053_v10 = vadd.f32 %v1244_v38, %v759_v39  ;;  %v780_v27 = vadd.f32 %v6352_v59, %v7818_v37  ;;  %6518 = vmatprep.mubr.msk.bf16.mxu1 %vm213_vm2, %v7621_v50  ;;  %v1257_v45 = vpop.f32.mrf.mxu0  ;;  %v5475_v50 = vld [vmem:[%s10550_s0 + $0x291] sm:$0xff]  ;;  %v5478_v39 = vld [vmem:[%s10550_s0 + $0x2b9] sm:$0xff] }
 0x11c   :  { %v771_v22 = vpop.f32.mrf.mxu1  ;;  %v2183_v61 = vpack.c.bf16 %v5475_v50, %v5474_v11 }
 0x11d   :  { %v8071_v37 = vadd.f32 %v6418_v19, %v780_v27  ;;  %v772_v5 = vadd.f32 %v771_v22, %v7830_v47  ;;  %v6419_v25 = vpop.f32.mrf.mxu0 }
 0x11e   :  { %v6353_v9 = vpop.f32.mrf.mxu1 }
 0x11f   :  { %v8074_v4 = vadd.f32 %v1257_v45, %v772_v5  ;;  %v783_v7 = vadd.f32 %v6353_v9, %v7834_v32  ;;  %v1260_v24 = vpop.f32.mrf.mxu0  ;;  %v5476_v32 = vld [vmem:[%s10550_s0 + $0x2a1] sm:$0xff] }
 0x120   :  { %v774_v21 = vpop.f32.mrf.mxu1 }
 0x121   :  { %v8077_v6 = vadd.f32 %v6419_v25, %v783_v7  ;;  %v775_v8 = vadd.f32 %v774_v21, %v7838_v41  ;;  %v6422_v40 = vpop.f32.mrf.mxu0  ;;  %6585 = vmatmul.mubr.msk.bf16.gmra.mxu0 %vm213_vm2, %v2182_v2  ;;  %v5477_v41 = vld [vmem:[%s10550_s0 + $0x2a9] sm:$0xff] }
 0x122   :  { %v6356_v42 = vpop.f32.mrf.mxu1  ;;  %6519 = vmatmul.mubr.msk.bf16.gmra.mxu1 %vm213_vm2, %v7623_v52  ;;  %6588 = vmatprep.mubr.msk.bf16.mxu0 %vm213_vm2, %v2183_v61  ;;  %v2184_v13 = vpack.c.bf16 %v5477_v41, %v5476_v32  ;;  %v5482_v21 = vld [vmem:[%s10550_s0 + $0x2e9] sm:$0xff] }
 0x123   :  { %v8083_v47 = vadd.f32 %v1260_v24, %v775_v8  ;;  %v796_v53 = vadd.f32 %v6356_v42, %v7842_v44  ;;  %6522 = vmatprep.mubr.msk.bf16.mxu1 %vm213_vm2, %v7655_v17  ;;  %v1273_v38 = vpop.f32.mrf.mxu0  ;;  %v5479_v17 = vld [vmem:[%s10550_s0 + $0x2c1] sm:$0xff] }
 0x124   :  { %v787_v52 = vpop.f32.mrf.mxu1  ;;  %v2185_v45 = vpack.c.bf16 %v5479_v17, %v5478_v39 }
 0x125   :  { %v8101_v44 = vadd.f32 %v6422_v40, %v796_v53  ;;  %v788_v59 = vadd.f32 %v787_v52, %v7854_v63  ;;  %v6423_v27 = vpop.f32.mrf.mxu0 }
 0x126   :  { %v6357_v19 = vpop.f32.mrf.mxu1 }
 0x127   :  { %v8104_v29 = vadd.f32 %v1273_v38, %v788_v59  ;;  %v799_v22 = vadd.f32 %v6357_v19, %v7858_v51  ;;  %v1276_v50 = vpop.f32.mrf.mxu0  ;;  %v5480_v51 = vld [vmem:[%s10550_s0 + $0x2d1] sm:$0xff] }
 0x128   :  { %v790_v11 = vpop.f32.mrf.mxu1 }
 0x129   :  { %v8107_v5 = vadd.f32 %v6423_v27, %v799_v22  ;;  %v791_v9 = vadd.f32 %v790_v11, %v7862_v23  ;;  %v6426_v2 = vpop.f32.mrf.mxu0  ;;  %6589 = vmatmul.mubr.msk.bf16.gmra.mxu0 %vm213_vm2, %v2184_v13  ;;  %v5481_v23 = vld [vmem:[%s10550_s0 + $0x2d9] sm:$0xff] }
 0x12a   :  { %v6360_v25 = vpop.f32.mrf.mxu1  ;;  %6523 = vmatmul.mubr.msk.bf16.gmra.mxu1 %vm213_vm2, %v7657_v20  ;;  %6592 = vmatprep.mubr.msk.bf16.mxu0 %vm213_vm2, %v2185_v45  ;;  %v2186_v40 = vpack.c.bf16 %v5481_v23, %v5480_v51  ;;  %v5486_v22 = vld [vmem:[%s10550_s0 + $0x319] sm:$0xff] }
 0x12b   :  { %v8113_v63 = vadd.f32 %v1276_v50, %v791_v9  ;;  %v812_v7 = vadd.f32 %v6360_v25, %v7866_v49  ;;  %6526 = vmatprep.mubr.msk.bf16.mxu1 %vm213_vm2, %v7689_v48  ;;  %v1289_v61 = vpop.f32.mrf.mxu0  ;;  %v5483_v48 = vld [vmem:[%s10550_s0 + $0x2f1] sm:$0xff] }
 0x12c   :  { %v803_v20 = vpop.f32.mrf.mxu1  ;;  %v2187_v41 = vpack.c.bf16 %v5483_v48, %v5482_v21 }
 0x12d   :  { %v8131_v49 = vadd.f32 %v6426_v2, %v812_v7  ;;  %v804_v24 = vadd.f32 %v803_v20, %v7878_v12  ;;  %v6427_v42 = vpop.f32.mrf.mxu0 }
 0x12e   :  { %v6361_v8 = vpop.f32.mrf.mxu1 }
 0x12f   :  { %v8134_v53 = vadd.f32 %v1289_v61, %v804_v24  ;;  %v815_v32 = vadd.f32 %v6361_v8, %v7882_v60  ;;  %v1292_v38 = vpop.f32.mrf.mxu0  ;;  %v5484_v60 = vld [vmem:[%s10550_s0 + $0x301] sm:$0xff] }
 0x130   :  { %v806_v52 = vpop.f32.mrf.mxu1 }
 0x131   :  { %v8137_v39 = vadd.f32 %v6427_v42, %v815_v32  ;;  %v807_v17 = vadd.f32 %v806_v52, %v7886_v1  ;;  %v6430_v19 = vpop.f32.mrf.mxu0  ;;  %6593 = vmatmul.mubr.msk.bf16.gmra.mxu0 %vm213_vm2, %v2186_v40  ;;  %v5485_v1 = vld [vmem:[%s10550_s0 + $0x309] sm:$0xff]  ;;  %v5523_v42 = vld [vmem:[%s10550_s0 + $0x1a] sm:$0xff] }
 0x132   :  { %v6364_v59 = vpop.f32.mrf.mxu1  ;;  %6527 = vmatmul.mubr.msk.bf16.gmra.mxu1 %vm213_vm2, %v7691_v55  ;;  %6596 = vmatprep.mubr.msk.bf16.mxu0 %vm213_vm2, %v2187_v41  ;;  %v2188_v9 = vpack.c.bf16 %v5485_v1, %v5484_v60  ;;  %v5621_v41 = vld [vmem:[%s10550_s0 + $0x38] sm:$0xff] }
 0x133   :  { %v8143_v12 = vadd.f32 %v1292_v38, %v807_v17  ;;  %v828_v27 = vadd.f32 %v6364_v59, %v7890_v58  ;;  %6530 = vmatprep.mubr.msk.bf16.mxu1 %vm213_vm2, %v7723_v62  ;;  %v1305_v13 = vpop.f32.mrf.mxu0  ;;  %v5487_v62 = vld [vmem:[%s10550_s0 + $0x321] sm:$0xff] }
 0x134   :  { %v819_v55 = vpop.f32.mrf.mxu1  ;;  %v2189_v7 = vpack.c.bf16 %v5487_v62, %v5486_v22 }
 0x135   :  { %v8161_v58 = vadd.f32 %v6430_v19, %v828_v27  ;;  %v820_v45 = vadd.f32 %v819_v55, %v7902_v26  ;;  %v6431_v50 = vpop.f32.mrf.mxu0  ;;  %v5391_v26 = vld [vmem:[%s10550_s0 + $0x330] sm:$0xff] }
 0x136   :  { %v6365_v11 = vpop.f32.mrf.mxu1 }
 0x137   :  { %v8164_v25 = vadd.f32 %v1305_v13, %v820_v45  ;;  %v831_v2 = vadd.f32 %v6365_v11, %v7906_v18  ;;  %v1308_v23 = vpop.f32.mrf.mxu0  ;;  %v5392_v18 = vld [vmem:[%s10550_s0 + $0x338] sm:$0xff] }
 0x138   :  { %v822_v51 = vpop.f32.mrf.mxu1  ;;  %v8206_v19 = vpack.c.bf16 %v5392_v18, %v5391_v26  ;;  %v5528_v26 = vld [vmem:[%s10550_s0 + $0x52] sm:$0xff]  ;;  %v5624_v18 = vld [vmem:[%s10550_s0 + $0x60] sm:$0xff] }
 0x139   :  { %v8167_v20 = vadd.f32 %v6431_v50, %v831_v2  ;;  %v823_v61 = vadd.f32 %v822_v51, %v7910_v14  ;;  %v6434_v48 = vpop.f32.mrf.mxu0  ;;  %6597 = vmatmul.mubr.msk.bf16.gmra.mxu0 %vm213_vm2, %v2188_v9  ;;  %v5489_v14 = vld [vmem:[%s10550_s0 + $0x339] sm:$0xff]  ;;  %v5623_v51 = vld [vmem:[%s10550_s0 + $0x50] sm:$0xff] }
 0x13a   :  { %v6368_v21 = vpop.f32.mrf.mxu1  ;;  %6531 = vmatmul.mubr.msk.bf16.gmra.mxu1 %vm213_vm2, %v7725_v30  ;;  %6600 = vmatprep.mubr.msk.bf16.mxu0 %vm213_vm2, %v2189_v7  ;;  %v5488_v30 = vld [vmem:[%s10550_s0 + $0x331] sm:$0xff]  ;;  %v5622_v7 = vld [vmem:[%s10550_s0 + $0x48] sm:$0xff] }
 0x13b   :  { %v8179_v24 = vadd.f32 %v1308_v23, %v823_v61  ;;  %v844_v8 = vadd.f32 %v6368_v21, %v7914_v16  ;;  %6534 = vmatprep.mubr.msk.bf16.mxu1 %vm213_vm2, %v7745_v46  ;;  %v1321_v32 = vpop.f32.mrf.mxu0  ;;  %v5524_v46 = vld [vmem:[%s10550_s0 + $0x22] sm:$0xff]  ;;  %v5620_v16 = vld [vmem:[%s10550_s0 + $0x30] sm:$0xff]  ;;  %v2190_v27 = vpack.c.bf16 %v5489_v14, %v5488_v30 }
 0x13c   :  { %v835_v40 = vpop.f32.mrf.mxu1  ;;  %v2709_v55 = vpack.c.bf16 %v5524_v46, %v5523_v42  ;;  %v3260_v13 = vpack.c.bf16 %v5621_v41, %v5620_v16 }
 0x13d   :  { %v8203_v52 = vadd.f32 %v6434_v48, %v844_v8  ;;  %v836_v38 = vadd.f32 %v835_v40, %v7938_v28  ;;  %v6435_v59 = vpop.f32.mrf.mxu0  ;;  %v5525_v28 = vld [vmem:[%s10550_s0 + $0x32] sm:$0xff]  ;;  %v5625_v8 = vld [vmem:[%s10550_s0 + $0x68] sm:$0xff]  ;;  %v3261_v40 = vpack.c.bf16 %v5623_v51, %v5622_v7 }
 0x13e   :  { %v6369_v17 = vpop.f32.mrf.mxu1 }
 0x13f   :  { %v8208_v60 = vadd.f32 %v1321_v32, %v836_v38  ;;  %v847_v1 = vadd.f32 %v6369_v17, %v7948_v15  ;;  %v1324_v62 = vpop.f32.mrf.mxu0  ;;  %v3262_v38 = vpack.c.bf16 %v5625_v8, %v5624_v18 }
 0x140   :  { %v838_v22 = vpop.f32.mrf.mxu1 }
 0x141   :  { %v8211_v45 = vadd.f32 %v6435_v59, %v847_v1  ;;  %v839_v11 = vadd.f32 %v838_v22, %v7954_v43  ;;  %v6438_v9 = vpop.f32.mrf.mxu0  ;;  %6601 = vmatmul.mubr.msk.bf16.gmra.mxu0 %vm213_vm2, %v2190_v27  ;;  %v5526_v43 = vld [vmem:[%s10550_s0 + $0x3a] sm:$0xff]  ;;  %v10611_v59 = vld [vmem:[#allocation36_spill] sm:$0xff] }
 0x142   :  { %v6372_v50 = vpop.f32.mrf.mxu1  ;;  %6535 = vmatmul.mubr.msk.bf16.gmra.mxu1 %vm213_vm2, %v8206_v19  ;;  %6672 = vmatprep.mubr.msk.bf16.mxu0 %vm213_vm2, %v3260_v13  ;;  %v8249_v42 = vpack.c.bf16 %v5526_v43, %v5525_v28  ;;  %v5530_v13 = vld [vmem:[%s10550_s0 + $0x6a] sm:$0xff]  ;;  %v5626_v28 = vld [vmem:[%s10550_s0 + $0x78] sm:$0xff] }
 0x143   :  { %v8220_v15 = vadd.f32 %v1324_v62, %v839_v11  ;;  %v860_v2 = vadd.f32 %v6372_v50, %v7958_v36  ;;  %6606 = vmatprep.mubr.msk.bf16.mxu1 %vm213_vm2, %v2709_v55  ;;  %v1337_v61 = vpop.f32.mrf.mxu0  ;;  %v5527_v36 = vld [vmem:[%s10550_s0 + $0x4a] sm:$0xff]  ;;  %v10612_v62 = vld [vmem:[#allocation2_spill] sm:$0xff]  ;;  %v10613_v50 = vld [vmem:[#allocation5_spill] sm:$0xff] }
 0x144   :  { %v851_v23 = vpop.f32.mrf.mxu1  ;;  %v8254_v41 = vpack.c.bf16 %v5528_v26, %v5527_v36  ;;  %v5531_v43 = vld [vmem:[%s10550_s0 + $0x7a] sm:$0xff]  ;;  %v10615_v26 = vld [vmem:[#allocation3_spill] sm:$0xff] }
 0x145   :  { %v8237_v21 = vadd.f32 %v6438_v9, %v860_v2  ;;  %v852_v48 = vadd.f32 %v851_v23, %v7974_v56  ;;  %v6439_v14 = vpop.f32.mrf.mxu0  ;;  %v10614_v9 = vld [vmem:[#allocation7_spill] sm:$0xff]  ;;  %v5627_v2 = vld [vmem:[%s10550_s0 + $0x80] sm:$0xff]  ;;  %v5629_v36 = vld [vmem:[%s10550_s0 + $0x98] sm:$0xff] }
 0x146   :  { %v6373_v30 = vpop.f32.mrf.mxu1  ;;  %v5532_v23 = vld [vmem:[%s10550_s0 + $0x82] sm:$0xff] }
 0x147   :  { %v8251_v32 = vadd.f32 %v1337_v61, %v852_v48  ;;  %v863_v56 = vadd.f32 %v6373_v30, %v7984_v31  ;;  %v1340_v16 = vpop.f32.mrf.mxu0  ;;  %v5529_v31 = vld [vmem:[%s10550_s0 + $0x62] sm:$0xff]  ;;  %v5628_v61 = vld [vmem:[%s10550_s0 + $0x90] sm:$0xff] }
 0x148   :  { %v854_v46 = vpop.f32.mrf.mxu1 }
 0x149   :  { %v8256_v17 = vadd.f32 %v6439_v14, %v863_v56  ;;  %v855_v27 = vadd.f32 %v854_v46, %v10611_v59  ;;  %v6442_v55 = vpop.f32.mrf.mxu0  ;;  %6673 = vmatmul.mubr.msk.bf16.vlgmr.msra.gmra.mxu0 %vm213_vm2, %v3261_v40  ;;  %v8297_v14 = vpack.c.bf16 %v5530_v13, %v5529_v31  ;;  %v3263_v40 = vpack.c.bf16 %v5627_v2, %v5626_v28  ;;  %v10618_v46 = vld [vmem:[#allocation4_spill] sm:$0xff]  ;;  %v5534_v13 = vld [vmem:[%s10550_s0 + $0x9a] sm:$0xff] }
 0x14a   :  { %v6376_v1 = vpop.f32.mrf.mxu1  ;;  %6607 = vmatmul.mubr.msk.bf16.vlgmr.msra.gmra.mxu1 %vm213_vm2, %v8249_v42  ;;  %6803 = vmatpush3.bf16.msra.mxu0 %v10614_v9  ;;  %v3264_v59 = vpack.c.bf16 %v5629_v36, %v5628_v61  ;;  %v5533_v31 = vld [vmem:[%s10550_s0 + $0x92] sm:$0xff] }
 0x14b   :  { %v8268_v22 = vadd.f32 %v1340_v16, %v855_v27  ;;  %v876_v11 = vadd.f32 %v6376_v1, %v10612_v62  ;;  %6737 = vmatpush3.bf16.msra.mxu1 %v10613_v50  ;;  %v1353_v51 = vpop.f32.mrf.mxu0  ;;  %6610 = vmatprep.mubr.msk.bf16.mxu1 %vm213_vm2, %v8254_v41  ;;  %10616 = vst [vmem:[#allocation36_spill] sm:$0xff] %v8297_v14  ;;  %v10623_v2 = vld [vmem:[#allocation8_spill] sm:$0xff] }
 0x14c   :  { %v867_v7 = vpop.f32.mrf.mxu1  ;;  %6676 = vmatprep.mubr.msk.bf16.mxu0 %vm213_vm2, %v3262_v38  ;;  %v8302_v38 = vpack.c.bf16 %v5532_v23, %v5531_v43  ;;  %v5535_v23 = vld [vmem:[%s10550_s0 + $0xaa] sm:$0xff] }
 0x14d   :  { %v8294_v48 = vadd.f32 %v6442_v55, %v876_v11  ;;  %v868_v18 = vadd.f32 %v867_v7, %v10615_v26  ;;  %v6443_v30 = vpop.f32.mrf.mxu0  ;;  %v10621_v55 = vld [vmem:[#allocation6_spill] sm:$0xff]  ;;  %v5630_v7 = vld [vmem:[%s10550_s0 + $0xa8] sm:$0xff]  ;;  %v5536_v26 = vld [vmem:[%s10550_s0 + $0xb2] sm:$0xff] }
 0x14e   :  { %v6377_v8 = vpop.f32.mrf.mxu1  ;;  %10619 = vst [vmem:[#allocation5_spill] sm:$0xff] %v8302_v38 }
 0x14f   :  { %v8299_v56 = vadd.f32 %v1353_v51, %v868_v18  ;;  %v879_v16 = vadd.f32 %v6377_v8, %v10618_v46  ;;  %v1356_v1 = vpop.f32.mrf.mxu0  ;;  %v5631_v51 = vld [vmem:[%s10550_s0 + $0xb0] sm:$0xff]  ;;  %v5632_v18 = vld [vmem:[%s10550_s0 + $0xc0] sm:$0xff]  ;;  %v5633_v8 = vld [vmem:[%s10550_s0 + $0xc8] sm:$0xff] }
 0x150   :  { %v870_v27 = vpop.f32.mrf.mxu1 }
 0x151   :  { %10617 = vst [vmem:[#allocation2_spill] sm:$0xff] %v8299_v56  ;;  %v8304_v62 = vadd.f32 %v6443_v30, %v879_v16  ;;  %v871_v11 = vadd.f32 %v870_v27, %v10621_v55  ;;  %v6446_v9 = vpop.f32.mrf.mxu0  ;;  %6677 = vmatmul.mubr.msk.bf16.gmra.mxu0 %vm213_vm2, %v3263_v40  ;;  %v10625_v40 = vld [vmem:[#allocation9_spill] sm:$0xff]  ;;  %v8343_v27 = vpack.c.bf16 %v5534_v13, %v5533_v31  ;;  %v5537_v31 = vld [vmem:[%s10550_s0 + $0xc2] sm:$0xff]  ;;  %v5538_v13 = vld [vmem:[%s10550_s0 + $0xca] sm:$0xff] }
 0x152   :  { %v6380_v50 = vpop.f32.mrf.mxu1  ;;  %6611 = vmatmul.mubr.msk.bf16.gmra.mxu1 %vm213_vm2, %v8297_v14  ;;  %6680 = vmatprep.mubr.msk.bf16.mxu0 %vm213_vm2, %v3264_v59  ;;  %v10680_v14 = vld [vmem:[#allocation32_spill] sm:$0xff] }
 0x153   :  { %10620 = vst [vmem:[#allocation7_spill] sm:$0xff] %v8304_v62  ;;  %v8316_v28 = vadd.f32 %v1356_v1, %v871_v11  ;;  %v892_v43 = vadd.f32 %v6380_v50, %v10623_v2  ;;  %6614 = vmatprep.mubr.msk.bf16.mxu1 %vm213_vm2, %v8302_v38  ;;  %v1369_v36 = vpop.f32.mrf.mxu0  ;;  %10626 = vst [vmem:[#allocation6_spill] sm:$0xff] %v8343_v27  ;;  %v3265_v1 = vpack.c.bf16 %v5631_v51, %v5630_v7  ;;  %v10628_v11 = vld [vmem:[#allocation10_spill] sm:$0xff]  ;;  %v10633_v51 = vld [vmem:[#allocation12_spill] sm:$0xff] }
 0x154   :  { %v883_v61 = vpop.f32.mrf.mxu1  ;;  %v8348_v2 = vpack.c.bf16 %v5536_v26, %v5535_v23  ;;  %v3266_v38 = vpack.c.bf16 %v5633_v8, %v5632_v18  ;;  %v5540_v8 = vld [vmem:[%s10550_s0 + $0xe2] sm:$0xff] }
 0x155   :  { %10622 = vst [vmem:[#allocation3_spill] sm:$0xff] %v8316_v28  ;;  %v8340_v30 = vadd.f32 %v6446_v9, %v892_v43  ;;  %v884_v46 = vadd.f32 %v883_v61, %v10625_v40  ;;  %v6447_v59 = vpop.f32.mrf.mxu0  ;;  %v10631_v9 = vld [vmem:[#allocation11_spill] sm:$0xff] }
 0x156   :  { %v6381_v16 = vpop.f32.mrf.mxu1  ;;  %10629 = vst [vmem:[#allocation9_spill] sm:$0xff] %v8348_v2 }
 0x157   :  { %10624 = vst [vmem:[#allocation4_spill] sm:$0xff] %v8340_v30  ;;  %v8345_v55 = vadd.f32 %v1369_v36, %v884_v46  ;;  %v895_v50 = vadd.f32 %v6381_v16, %v10628_v11  ;;  %v1372_v62 = vpop.f32.mrf.mxu0  ;;  %v5635_v36 = vld [vmem:[%s10550_s0 + $0xe0] sm:$0xff]  ;;  %v10635_v46 = vld [vmem:[#allocation13_spill] sm:$0xff]  ;;  %v8389_v11 = vpack.c.bf16 %v5538_v13, %v5537_v31 }
 0x158   :  { %v886_v28 = vpop.f32.mrf.mxu1  ;;  %v5541_v31 = vld [vmem:[%s10550_s0 + $0xf2] sm:$0xff]  ;;  %v5542_v13 = vld [vmem:[%s10550_s0 + $0xfa] sm:$0xff] }
 0x159   :  { %10627 = vst [vmem:[#allocation8_spill] sm:$0xff] %v8345_v55  ;;  %v8350_v56 = vadd.f32 %v6447_v59, %v895_v50  ;;  %v887_v43 = vadd.f32 %v886_v28, %v10631_v9  ;;  %v6450_v61 = vpop.f32.mrf.mxu0  ;;  %6681 = vmatmul.mubr.msk.bf16.gmra.mxu0 %vm213_vm2, %v3265_v1  ;;  %v5634_v28 = vld [vmem:[%s10550_s0 + $0xd8] sm:$0xff]  ;;  %10636 = vst [vmem:[#allocation13_spill] sm:$0xff] %v8389_v11 }
 0x15a   :  { %v6384_v30 = vpop.f32.mrf.mxu1  ;;  %6615 = vmatmul.mubr.msk.bf16.gmra.mxu1 %vm213_vm2, %v8343_v27  ;;  %6684 = vmatprep.mubr.msk.bf16.mxu0 %vm213_vm2, %v3266_v38  ;;  %v5636_v38 = vld [vmem:[%s10550_s0 + $0xf0] sm:$0xff]  ;;  %v3267_v50 = vpack.c.bf16 %v5635_v36, %v5634_v28 }
 0x15b   :  { %10630 = vst [vmem:[#allocation10_spill] sm:$0xff] %v8350_v56  ;;  %v8362_v7 = vadd.f32 %v1372_v62, %v887_v43  ;;  %v908_v23 = vadd.f32 %v6384_v30, %v10633_v51  ;;  %6618 = vmatprep.mubr.msk.bf16.mxu1 %vm213_vm2, %v8348_v2  ;;  %v5539_v62 = vld [vmem:[%s10550_s0 + $0xda] sm:$0xff]  ;;  %v1385_v18 = vpop.f32.mrf.mxu0  ;;  %v10643_v36 = vld [vmem:[#allocation16_spill] sm:$0xff] }
 0x15c   :  { %v899_v26 = vpop.f32.mrf.mxu1  ;;  %v5637_v30 = vld [vmem:[%s10550_s0 + $0xf8] sm:$0xff]  ;;  %v10638_v43 = vld [vmem:[#allocation14_spill] sm:$0xff]  ;;  %v8394_v2 = vpack.c.bf16 %v5540_v8, %v5539_v62 }
 0x15d   :  { %10632 = vst [vmem:[#allocation11_spill] sm:$0xff] %v8362_v7  ;;  %v8386_v40 = vadd.f32 %v6450_v61, %v908_v23  ;;  %v900_v16 = vadd.f32 %v899_v26, %v10635_v46  ;;  %v6451_v1 = vpop.f32.mrf.mxu0  ;;  %v3268_v7 = vpack.c.bf16 %v5637_v30, %v5636_v38  ;;  %v10641_v61 = vld [vmem:[#allocation15_spill] sm:$0xff]  ;;  %v5544_v30 = vld [vmem:[%s10550_s0 + $0x112] sm:$0xff] }
 0x15e   :  { %v6385_v59 = vpop.f32.mrf.mxu1  ;;  %10639 = vst [vmem:[#allocation14_spill] sm:$0xff] %v8394_v2 }
 0x15f   :  { %10634 = vst [vmem:[#allocation12_spill] sm:$0xff] %v8386_v40  ;;  %v8391_v9 = vadd.f32 %v1385_v18, %v900_v16  ;;  %v911_v51 = vadd.f32 %v6385_v59, %v10638_v43  ;;  %v1388_v55 = vpop.f32.mrf.mxu0  ;;  %v5639_v18 = vld [vmem:[%s10550_s0 + $0x110] sm:$0xff]  ;;  %v10645_v16 = vld [vmem:[#allocation17_spill] sm:$0xff]  ;;  %v8435_v43 = vpack.c.bf16 %v5542_v13, %v5541_v31  ;;  %v5545_v31 = vld [vmem:[%s10550_s0 + $0x122] sm:$0xff] }
 0x160   :  { %v902_v56 = vpop.f32.mrf.mxu1  ;;  %v5546_v13 = vld [vmem:[%s10550_s0 + $0x12a] sm:$0xff] }
 0x161   :  { %10637 = vst [vmem:[#allocation38_spill] sm:$0xff] %v8391_v9  ;;  %v8396_v27 = vadd.f32 %v6451_v1, %v911_v51  ;;  %v903_v23 = vadd.f32 %v902_v56, %v10641_v61  ;;  %v6454_v26 = vpop.f32.mrf.mxu0  ;;  %6685 = vmatmul.mubr.msk.bf16.gmra.mxu0 %vm213_vm2, %v3267_v50  ;;  %v5638_v56 = vld [vmem:[%s10550_s0 + $0x108] sm:$0xff]  ;;  %10646 = vst [vmem:[#allocation17_spill] sm:$0xff] %v8435_v43 }
 0x162   :  { %v6388_v40 = vpop.f32.mrf.mxu1  ;;  %6619 = vmatmul.mubr.msk.bf16.gmra.mxu1 %vm213_vm2, %v8389_v11  ;;  %6688 = vmatprep.mubr.msk.bf16.mxu0 %vm213_vm2, %v3268_v7  ;;  %v5640_v7 = vld [vmem:[%s10550_s0 + $0x120] sm:$0xff]  ;;  %v3269_v51 = vpack.c.bf16 %v5639_v18, %v5638_v56  ;;  %v10653_v18 = vld [vmem:[#allocation20_spill] sm:$0xff] }
 0x163   :  { %10640 = vst [vmem:[#allocation39_spill] sm:$0xff] %v8396_v27  ;;  %v8408_v28 = vadd.f32 %v1388_v55, %v903_v23  ;;  %v924_v62 = vadd.f32 %v6388_v40, %v10643_v36  ;;  %6622 = vmatprep.mubr.msk.bf16.mxu1 %vm213_vm2, %v8394_v2  ;;  %v5543_v55 = vld [vmem:[%s10550_s0 + $0x10a] sm:$0xff]  ;;  %v1401_v38 = vpop.f32.mrf.mxu0  ;;  %v10648_v23 = vld [vmem:[#allocation18_spill] sm:$0xff] }
 0x164   :  { %v915_v8 = vpop.f32.mrf.mxu1  ;;  %v5641_v40 = vld [vmem:[%s10550_s0 + $0x128] sm:$0xff]  ;;  %v8440_v2 = vpack.c.bf16 %v5544_v30, %v5543_v55 }
 0x165   :  { %10642 = vst [vmem:[#allocation15_spill] sm:$0xff] %v8408_v28  ;;  %v8432_v46 = vadd.f32 %v6454_v26, %v924_v62  ;;  %v916_v59 = vadd.f32 %v915_v8, %v10645_v16  ;;  %v6455_v50 = vpop.f32.mrf.mxu0  ;;  %v3270_v28 = vpack.c.bf16 %v5641_v40, %v5640_v7  ;;  %v10651_v26 = vld [vmem:[#allocation19_spill] sm:$0xff] }
 0x166   :  { %v6389_v1 = vpop.f32.mrf.mxu1  ;;  %10649 = vst [vmem:[#allocation18_spill] sm:$0xff] %v8440_v2  ;;  %v5548_v40 = vld [vmem:[%s10550_s0 + $0x142] sm:$0xff] }
 0x167   :  { %10644 = vst [vmem:[#allocation16_spill] sm:$0xff] %v8432_v46  ;;  %v8437_v61 = vadd.f32 %v1401_v38, %v916_v59  ;;  %v927_v36 = vadd.f32 %v6389_v1, %v10648_v23  ;;  %v1404_v9 = vpop.f32.mrf.mxu0  ;;  %v5643_v38 = vld [vmem:[%s10550_s0 + $0x140] sm:$0xff]  ;;  %v10655_v59 = vld [vmem:[#allocation21_spill] sm:$0xff]  ;;  %v8481_v23 = vpack.c.bf16 %v5546_v13, %v5545_v31 }
 0x168   :  { %v918_v27 = vpop.f32.mrf.mxu1  ;;  %v5549_v31 = vld [vmem:[%s10550_s0 + $0x152] sm:$0xff] }
 0x169   :  { %10647 = vst [vmem:[#allocation40_spill] sm:$0xff] %v8437_v61  ;;  %v8442_v11 = vadd.f32 %v6455_v50, %v927_v36  ;;  %v919_v62 = vadd.f32 %v918_v27, %v10651_v26  ;;  %v6458_v8 = vpop.f32.mrf.mxu0  ;;  %6689 = vmatmul.mubr.msk.bf16.gmra.mxu0 %vm213_vm2, %v3269_v51  ;;  %v5642_v27 = vld [vmem:[%s10550_s0 + $0x138] sm:$0xff]  ;;  %10656 = vst [vmem:[#allocation21_spill] sm:$0xff] %v8481_v23 }
 0x16a   :  { %v6392_v46 = vpop.f32.mrf.mxu1  ;;  %6623 = vmatmul.mubr.msk.bf16.gmra.mxu1 %vm213_vm2, %v8435_v43  ;;  %6692 = vmatprep.mubr.msk.bf16.mxu0 %vm213_vm2, %v3270_v28  ;;  %v5644_v28 = vld [vmem:[%s10550_s0 + $0x150] sm:$0xff]  ;;  %v3271_v36 = vpack.c.bf16 %v5643_v38, %v5642_v27 }
 0x16b   :  { %10650 = vst [vmem:[#allocation41_spill] sm:$0xff] %v8442_v11  ;;  %v8454_v56 = vadd.f32 %v1404_v9, %v919_v62  ;;  %v940_v55 = vadd.f32 %v6392_v46, %v10653_v18  ;;  %6626 = vmatprep.mubr.msk.bf16.mxu1 %vm213_vm2, %v8440_v2  ;;  %v5547_v9 = vld [vmem:[%s10550_s0 + $0x13a] sm:$0xff]  ;;  %v1417_v7 = vpop.f32.mrf.mxu0  ;;  %v10663_v27 = vld [vmem:[#allocation24_spill] sm:$0xff] }
 0x16c   :  { %v931_v30 = vpop.f32.mrf.mxu1  ;;  %v5645_v46 = vld [vmem:[%s10550_s0 + $0x158] sm:$0xff]  ;;  %v10658_v62 = vld [vmem:[#allocation22_spill] sm:$0xff]  ;;  %v8486_v2 = vpack.c.bf16 %v5548_v40, %v5547_v9  ;;  %v5646_v9 = vld [vmem:[%s10550_s0 + $0x168] sm:$0xff] }
 0x16d   :  { %10652 = vst [vmem:[#allocation19_spill] sm:$0xff] %v8454_v56  ;;  %v8478_v16 = vadd.f32 %v6458_v8, %v940_v55  ;;  %v932_v1 = vadd.f32 %v931_v30, %v10655_v59  ;;  %v6459_v51 = vpop.f32.mrf.mxu0  ;;  %v3272_v56 = vpack.c.bf16 %v5645_v46, %v5644_v28  ;;  %v10661_v8 = vld [vmem:[#allocation23_spill] sm:$0xff] }
 0x16e   :  { %v6393_v50 = vpop.f32.mrf.mxu1  ;;  %10659 = vst [vmem:[#allocation22_spill] sm:$0xff] %v8486_v2  ;;  %v5551_v28 = vld [vmem:[%s10550_s0 + $0x16a] sm:$0xff] }
 0x16f   :  { %10654 = vst [vmem:[#allocation20_spill] sm:$0xff] %v8478_v16  ;;  %v8483_v26 = vadd.f32 %v1417_v7, %v932_v1  ;;  %v943_v18 = vadd.f32 %v6393_v50, %v10658_v62  ;;  %v1420_v61 = vpop.f32.mrf.mxu0 }
 0x170   :  { %v934_v11 = vpop.f32.mrf.mxu1 }
 0x171   :  { %10657 = vst [vmem:[#allocation42_spill] sm:$0xff] %v8483_v26  ;;  %v8488_v43 = vadd.f32 %v6459_v51, %v943_v18  ;;  %v935_v55 = vadd.f32 %v934_v11, %v10661_v8  ;;  %v6462_v30 = vpop.f32.mrf.mxu0  ;;  %6693 = vmatmul.mubr.msk.bf16.gmra.mxu0 %vm213_vm2, %v3271_v36  ;;  %v5550_v11 = vld [vmem:[%s10550_s0 + $0x15a] sm:$0xff] }
 0x172   :  { %v6396_v16 = vpop.f32.mrf.mxu1  ;;  %6627 = vmatmul.mubr.msk.bf16.gmra.mxu1 %vm213_vm2, %v8481_v23  ;;  %6696 = vmatprep.mubr.msk.bf16.mxu0 %vm213_vm2, %v3272_v56  ;;  %v5552_v56 = vld [vmem:[%s10550_s0 + $0x172] sm:$0xff]  ;;  %v8521_v51 = vpack.c.bf16 %v5550_v11, %v5549_v31  ;;  %v10668_v18 = vld [vmem:[#allocation26_spill] sm:$0xff]  ;;  %v5554_v11 = vld [vmem:[%s10550_s0 + $0x18a] sm:$0xff] }
 0x173   :  { %10660 = vst [vmem:[#allocation43_spill] sm:$0xff] %v8488_v43  ;;  %v8497_v13 = vadd.f32 %v1420_v61, %v935_v55  ;;  %v956_v38 = vadd.f32 %v6396_v16, %v10663_v27  ;;  %6630 = vmatprep.mubr.msk.bf16.mxu1 %vm213_vm2, %v8486_v2  ;;  %v5647_v61 = vld [vmem:[%s10550_s0 + $0x170] sm:$0xff]  ;;  %v1433_v40 = vpop.f32.mrf.mxu0  ;;  %v10665_v16 = vld [vmem:[#allocation25_spill] sm:$0xff]  ;;  %v8526_v55 = vpack.c.bf16 %v5552_v56, %v5551_v28  ;;  %v10671_v43 = vld [vmem:[#allocation27_spill] sm:$0xff] }
 0x174   :  { %v947_v7 = vpop.f32.mrf.mxu1  ;;  %10666 = vst [vmem:[#allocation25_spill] sm:$0xff] %v8521_v51  ;;  %v3273_v36 = vpack.c.bf16 %v5647_v61, %v5646_v9  ;;  %v5553_v31 = vld [vmem:[%s10550_s0 + $0x182] sm:$0xff]  ;;  %v10673_v61 = vld [vmem:[#allocation28_spill] sm:$0xff] }
 0x175   :  { %10662 = vst [vmem:[#allocation23_spill] sm:$0xff] %v8497_v13  ;;  %v8518_v46 = vadd.f32 %v6462_v30, %v956_v38  ;;  %v948_v59 = vadd.f32 %v947_v7, %v10665_v16  ;;  %v6463_v50 = vpop.f32.mrf.mxu0  ;;  %10669 = vst [vmem:[#allocation26_spill] sm:$0xff] %v8526_v55  ;;  %v5651_v28 = vld [vmem:[%s10550_s0 + $0x1a0] sm:$0xff] }
 0x176   :  { %v6397_v1 = vpop.f32.mrf.mxu1 }
 0x177   :  { %10664 = vst [vmem:[#allocation24_spill] sm:$0xff] %v8518_v46  ;;  %v8523_v62 = vadd.f32 %v1433_v40, %v948_v59  ;;  %v959_v8 = vadd.f32 %v6397_v1, %v10668_v18  ;;  %v1436_v2 = vpop.f32.mrf.mxu0  ;;  %v5650_v40 = vld [vmem:[%s10550_s0 + $0x198] sm:$0xff]  ;;  %v5652_v1 = vld [vmem:[%s10550_s0 + $0x1e0] sm:$0xff] }
 0x178   :  { %v950_v27 = vpop.f32.mrf.mxu1  ;;  %v5556_v59 = vld [vmem:[%s10550_s0 + $0x1d2] sm:$0xff] }
 0x179   :  { %10667 = vst [vmem:[#allocation44_spill] sm:$0xff] %v8523_v62  ;;  %v8528_v13 = vadd.f32 %v6463_v50, %v959_v8  ;;  %v951_v30 = vadd.f32 %v950_v27, %v10671_v43  ;;  %v6466_v46 = vpop.f32.mrf.mxu0  ;;  %6697 = vmatmul.mubr.msk.bf16.gmra.mxu0 %vm213_vm2, %v3273_v36  ;;  %v10674_v43 = vld [vmem:[#allocation31_spill] sm:$0xff]  ;;  %v10676_v18 = vld [vmem:[#allocation29_spill] sm:$0xff] }
 0x17a   :  { %v6400_v38 = vpop.f32.mrf.mxu1  ;;  %6631 = vmatmul.mubr.msk.bf16.gmra.mxu1 %vm213_vm2, %v8521_v51  ;;  %6700 = vmatprep.mubr.msk.bf16.mxu0 %vm213_vm2, %v10674_v43  ;;  %v5653_v50 = vld [vmem:[%s10550_s0 + $0x1e8] sm:$0xff] }
 0x17b   :  { %10670 = vst [vmem:[#allocation45_spill] sm:$0xff] %v8528_v13  ;;  %v8540_v9 = vadd.f32 %v1436_v2, %v951_v30  ;;  %v972_v7 = vadd.f32 %v6400_v38, %v10673_v61  ;;  %6634 = vmatprep.mubr.msk.bf16.mxu1 %vm213_vm2, %v8526_v55  ;;  %v5555_v2 = vld [vmem:[%s10550_s0 + $0x1ca] sm:$0xff]  ;;  %v1449_v16 = vpop.f32.mrf.mxu0  ;;  %v8568_v38 = vpack.c.bf16 %v5554_v11, %v5553_v31  ;;  %v10678_v55 = vld [vmem:[#allocation30_spill] sm:$0xff] }
 0x17c   :  { %v963_v56 = vpop.f32.mrf.mxu1  ;;  %v3275_v61 = vpack.c.bf16 %v5651_v28, %v5650_v40  ;;  %v2725_v13 = vpack.c.bf16 %v5556_v59, %v5555_v2  ;;  %v3276_v62 = vpack.c.bf16 %v5653_v50, %v5652_v1  ;;  %v5557_v31 = vld [vmem:[%s10550_s0 + $0x1e2] sm:$0xff]  ;;  %v5559_v28 = vld [vmem:[%s10550_s0 + $0x1fa] sm:$0xff] }
 0x17d   :  { %10672 = vst [vmem:[#allocation27_spill] sm:$0xff] %v8540_v9  ;;  %v8565_v36 = vadd.f32 %v6466_v46, %v972_v7  ;;  %v964_v8 = vadd.f32 %v963_v56, %v10676_v18  ;;  %v6467_v30 = vpop.f32.mrf.mxu0  ;;  %v5657_v56 = vld [vmem:[%s10550_s0 + $0x218] sm:$0xff]  ;;  %v10684_v59 = vld [vmem:[#allocation34_spill] sm:$0xff] }
 0x17e   :  { %v6401_v27 = vpop.f32.mrf.mxu1 }
 0x17f   :  { %10675 = vst [vmem:[#allocation28_spill] sm:$0xff] %v8565_v36  ;;  %v8570_v43 = vadd.f32 %v1449_v16, %v964_v8  ;;  %v975_v9 = vadd.f32 %v6401_v27, %v10678_v55  ;;  %v1452_v26 = vpop.f32.mrf.mxu0  ;;  %v5558_v55 = vld [vmem:[%s10550_s0 + $0x1ea] sm:$0xff] }
 0x180   :  { %v966_v51 = vpop.f32.mrf.mxu1  ;;  %v8611_v8 = vpack.c.bf16 %v5558_v55, %v5557_v31  ;;  %v5561_v31 = vld [vmem:[%s10550_s0 + $0x212] sm:$0xff]  ;;  %v5562_v55 = vld [vmem:[%s10550_s0 + $0x21a] sm:$0xff] }
 0x181   :  { %10677 = vst [vmem:[#allocation31_spill] sm:$0xff] %v8570_v43  ;;  %v8573_v23 = vadd.f32 %v6467_v30, %v975_v9  ;;  %v967_v46 = vadd.f32 %v966_v51, %v10680_v14  ;;  %v6470_v36 = vpop.f32.mrf.mxu0  ;;  %6701 = vmatmul.mubr.msk.bf16.gmra.mxu0 %vm213_vm2, %v3275_v61  ;;  %v10682_v9 = vld [vmem:[#allocation33_spill] sm:$0xff]  ;;  %v5655_v51 = vld [vmem:[%s10550_s0 + $0x200] sm:$0xff]  ;;  %v10685_v61 = vld [vmem:[#allocation35_spill] sm:$0xff] }
 0x182   :  { %v6404_v7 = vpop.f32.mrf.mxu1  ;;  %6635 = vmatmul.mubr.msk.bf16.gmra.mxu1 %vm213_vm2, %v8568_v38  ;;  %6704 = vmatprep.mubr.msk.bf16.mxu0 %vm213_vm2, %v3276_v62  ;;  %v5654_v14 = vld [vmem:[%s10550_s0 + $0x1f8] sm:$0xff]  ;;  %v5656_v62 = vld [vmem:[%s10550_s0 + $0x210] sm:$0xff] }
 0x183   :  { %10679 = vst [vmem:[#allocation29_spill] sm:$0xff] %v8573_v23  ;;  %v8585_v11 = vadd.f32 %v1452_v26, %v967_v46  ;;  %v988_v40 = vadd.f32 %v6404_v7, %v10682_v9  ;;  %6638 = vmatprep.mubr.msk.bf16.mxu1 %vm213_vm2, %v2725_v13  ;;  %v1465_v2 = vpop.f32.mrf.mxu0  ;;  %v5560_v13 = vld [vmem:[%s10550_s0 + $0x202] sm:$0xff]  ;;  %v3277_v27 = vpack.c.bf16 %v5655_v51, %v5654_v14 }
 0x184   :  { %v979_v26 = vpop.f32.mrf.mxu1  ;;  %v8616_v7 = vpack.c.bf16 %v5560_v13, %v5559_v28  ;;  %v3278_v9 = vpack.c.bf16 %v5657_v56, %v5656_v62  ;;  %v5659_v28 = vld [vmem:[%s10550_s0 + $0x230] sm:$0xff]  ;;  %v5660_v62 = vld [vmem:[%s10550_s0 + $0x240] sm:$0xff]  ;;  %v5661_v56 = vld [vmem:[%s10550_s0 + $0x248] sm:$0xff] }
 0x185   :  { %10681 = vst [vmem:[#allocation30_spill] sm:$0xff] %v8585_v11  ;;  %v8608_v16 = vadd.f32 %v6470_v36, %v988_v40  ;;  %v980_v1 = vadd.f32 %v979_v26, %v10684_v59  ;;  %v6471_v18 = vpop.f32.mrf.mxu0  ;;  %v10687_v36 = vld [vmem:[#allocation37_spill] sm:$0xff] }
 0x186   :  { %v6405_v50 = vpop.f32.mrf.mxu1  ;;  %10686 = vst [vmem:[#allocation33_spill] sm:$0xff] %v8616_v7 }
 0x187   :  { %10683 = vst [vmem:[#allocation32_spill] sm:$0xff] %v8608_v16  ;;  %v8613_v30 = vadd.f32 %v1465_v2, %v980_v1  ;;  %v991_v46 = vadd.f32 %v6405_v50, %v10685_v61  ;;  %v1468_v23 = vpop.f32.mrf.mxu0 }
 0x188   :  { %v982_v11 = vpop.f32.mrf.mxu1 }
 0x189   :  { %v8618_v43 = vadd.f32 %v6471_v18, %v991_v46  ;;  %v983_v40 = vadd.f32 %v982_v11, %v10687_v36  ;;  %v6542_v26 = vpop.f32.mrf.mxu0  ;;  %6705 = vmatmul.mubr.msk.bf16.gmra.mxu0 %vm213_vm2, %v3277_v27  ;;  %v5658_v11 = vld [vmem:[%s10550_s0 + $0x228] sm:$0xff]  ;;  %v8657_v18 = vpack.c.bf16 %v5562_v55, %v5561_v31  ;;  %v3280_v36 = vpack.c.bf16 %v5661_v56, %v5660_v62 }
 0x18a   :  { %v6476_v16 = vpop.f32.mrf.mxu1  ;;  %6639 = vmatmul.mubr.msk.bf16.gmra.mxu1 %vm213_vm2, %v8611_v8  ;;  %6708 = vmatprep.mubr.msk.bf16.mxu0 %vm213_vm2, %v3278_v9  ;;  %v3279_v27 = vpack.c.bf16 %v5659_v28, %v5658_v11  ;;  %v5566_v31 = vld [vmem:[%s10550_s0 + $0x24a] sm:$0xff]  ;;  %v5663_v28 = vld [vmem:[%s10550_s0 + $0x260] sm:$0xff] }
 0x18b   :  { %v8630_v14 = vadd.f32 %v1468_v23, %v983_v40  ;;  %v2033_v51 = vadd.f32 %v6476_v16, %v8011_v57  ;;  %6642 = vmatprep.mubr.msk.bf16.mxu1 %vm213_vm2, %v8616_v7  ;;  %v5563_v23 = vld [vmem:[%s10550_s0 + $0x22a] sm:$0xff]  ;;  %v2326_v13 = vpop.f32.mrf.mxu0  ;;  %v5564_v57 = vld [vmem:[%s10550_s0 + $0x232] sm:$0xff] }
 0x18c   :  { %v1776_v2 = vpop.f32.mrf.mxu1  ;;  %v8662_v9 = vpack.c.bf16 %v5564_v57, %v5563_v23  ;;  %v5665_v57 = vld [vmem:[%s10550_s0 + $0x278] sm:$0xff] }
 0x18d   :  { %10688 = vst [vmem:[#allocation34_spill] sm:$0xff] %v8630_v14  ;;  %v8654_v16 = vadd.f32 %v6542_v26, %v2033_v51  ;;  %v2031_v59 = vadd.f32 %v1776_v2, %v8014_v54  ;;  %v6543_v50 = vpop.f32.mrf.mxu0 }
 0x18e   :  { %v6477_v1 = vpop.f32.mrf.mxu1  ;;  %10689 = vst [vmem:[#allocation35_spill] sm:$0xff] %v8662_v9 }
 0x18f   :  { %v8659_v61 = vadd.f32 %v2326_v13, %v2031_v59  ;;  %v2034_v46 = vadd.f32 %v6477_v1, %v8017_v35  ;;  %v2329_v7 = vpop.f32.mrf.mxu0  ;;  %v5565_v35 = vld [vmem:[%s10550_s0 + $0x242] sm:$0xff]  ;;  %v5664_v13 = vld [vmem:[%s10550_s0 + $0x270] sm:$0xff] }
 0x190   :  { %v1779_v40 = vpop.f32.mrf.mxu1 }
 0x191   :  { %v8664_v14 = vadd.f32 %v6543_v50, %v2034_v46  ;;  %v2032_v26 = vadd.f32 %v1779_v40, %v8023_v3  ;;  %v6546_v54 = vpop.f32.mrf.mxu0  ;;  %6709 = vmatmul.mubr.msk.bf16.gmra.mxu0 %vm213_vm2, %v3279_v27  ;;  %v5662_v3 = vld [vmem:[%s10550_s0 + $0x258] sm:$0xff]  ;;  %v8703_v50 = vpack.c.bf16 %v5566_v31, %v5565_v35 }
 0x192   :  { %v6480_v51 = vpop.f32.mrf.mxu1  ;;  %6643 = vmatmul.mubr.msk.bf16.gmra.mxu1 %vm213_vm2, %v8657_v18  ;;  %6712 = vmatprep.mubr.msk.bf16.mxu0 %vm213_vm2, %v3280_v36  ;;  %v3281_v27 = vpack.c.bf16 %v5663_v28, %v5662_v3  ;;  %v5570_v35 = vld [vmem:[%s10550_s0 + $0x27a] sm:$0xff]  ;;  %v5667_v28 = vld [vmem:[%s10550_s0 + $0x290] sm:$0xff] }
 0x193   :  { %v8676_v55 = vadd.f32 %v2329_v7, %v2032_v26  ;;  %v2037_v11 = vadd.f32 %v6480_v51, %v8041_v0  ;;  %6646 = vmatprep.mubr.msk.bf16.mxu1 %vm213_vm2, %v8662_v9  ;;  %v5567_v7 = vld [vmem:[%s10550_s0 + $0x25a] sm:$0xff]  ;;  %v2342_v2 = vpop.f32.mrf.mxu0  ;;  %v5568_v0 = vld [vmem:[%s10550_s0 + $0x262] sm:$0xff]  ;;  %v3282_v26 = vpack.c.bf16 %v5665_v57, %v5664_v13 }
 0x194   :  { %v1792_v23 = vpop.f32.mrf.mxu1  ;;  %v8708_v40 = vpack.c.bf16 %v5568_v0, %v5567_v7  ;;  %v5669_v0 = vld [vmem:[%s10550_s0 + $0x2a8] sm:$0xff] }
 0x195   :  { %10690 = vst [vmem:[#allocation37_spill] sm:$0xff] %v8676_v55  ;;  %v8700_v62 = vadd.f32 %v6546_v54, %v2037_v11  ;;  %v2035_v56 = vadd.f32 %v1792_v23, %v8044_v33  ;;  %v6547_v1 = vpop.f32.mrf.mxu0 }
 0x196   :  { %v6481_v59 = vpop.f32.mrf.mxu1  ;;  %10691 = vst [vmem:[#allocation46_spill] sm:$0xff] %v8708_v40 }
 0x197   :  { %v8705_v46 = vadd.f32 %v2342_v2, %v2035_v56  ;;  %v2038_v36 = vadd.f32 %v6481_v59, %v8047_v34  ;;  %v2345_v9 = vpop.f32.mrf.mxu0  ;;  %v5569_v34 = vld [vmem:[%s10550_s0 + $0x272] sm:$0xff]  ;;  %v5668_v2 = vld [vmem:[%s10550_s0 + $0x2a0] sm:$0xff] }
 0x198   :  { %v1795_v51 = vpop.f32.mrf.mxu1 }
 0x199   :  { %v8710_v55 = vadd.f32 %v6547_v1, %v2038_v36  ;;  %v2036_v54 = vadd.f32 %v1795_v51, %v8053_v10  ;;  %v6550_v33 = vpop.f32.mrf.mxu0  ;;  %6713 = vmatmul.mubr.msk.bf16.gmra.mxu0 %vm213_vm2, %v3281_v27  ;;  %v5666_v10 = vld [vmem:[%s10550_s0 + $0x288] sm:$0xff]  ;;  %v8749_v1 = vpack.c.bf16 %v5570_v35, %v5569_v34 }
 0x19a   :  { %v6484_v11 = vpop.f32.mrf.mxu1  ;;  %6647 = vmatmul.mubr.msk.bf16.gmra.mxu1 %vm213_vm2, %v8703_v50  ;;  %6716 = vmatprep.mubr.msk.bf16.mxu0 %vm213_vm2, %v3282_v26  ;;  %v3283_v27 = vpack.c.bf16 %v5667_v28, %v5666_v10  ;;  %v5574_v34 = vld [vmem:[%s10550_s0 + $0x2aa] sm:$0xff]  ;;  %v5671_v28 = vld [vmem:[%s10550_s0 + $0x2c0] sm:$0xff] }
 0x19b   :  { %v8722_v31 = vadd.f32 %v2345_v9, %v2036_v54  ;;  %v2041_v3 = vadd.f32 %v6484_v11, %v8071_v37  ;;  %6650 = vmatprep.mubr.msk.bf16.mxu1 %vm213_vm2, %v8708_v40  ;;  %v5571_v9 = vld [vmem:[%s10550_s0 + $0x28a] sm:$0xff]  ;;  %v2358_v23 = vpop.f32.mrf.mxu0  ;;  %v5572_v37 = vld [vmem:[%s10550_s0 + $0x292] sm:$0xff]  ;;  %v3284_v54 = vpack.c.bf16 %v5669_v0, %v5668_v2 }
 0x19c   :  { %v1808_v7 = vpop.f32.mrf.mxu1  ;;  %v8754_v51 = vpack.c.bf16 %v5572_v37, %v5571_v9  ;;  %v5673_v37 = vld [vmem:[%s10550_s0 + $0x2d8] sm:$0xff] }
 0x19d   :  { %10692 = vst [vmem:[#allocation47_spill] sm:$0xff] %v8722_v31  ;;  %v8746_v13 = vadd.f32 %v6550_v33, %v2041_v3  ;;  %v2039_v57 = vadd.f32 %v1808_v7, %v8074_v4  ;;  %v6551_v59 = vpop.f32.mrf.mxu0 }
 0x19e   :  { %v6485_v56 = vpop.f32.mrf.mxu1  ;;  %10693 = vst [vmem:[#allocation48_spill] sm:$0xff] %v8754_v51 }
 0x19f   :  { %v8751_v36 = vadd.f32 %v2358_v23, %v2039_v57  ;;  %v2042_v26 = vadd.f32 %v6485_v56, %v8077_v6  ;;  %v2361_v40 = vpop.f32.mrf.mxu0  ;;  %v5573_v6 = vld [vmem:[%s10550_s0 + $0x2a2] sm:$0xff]  ;;  %v5672_v23 = vld [vmem:[%s10550_s0 + $0x2d0] sm:$0xff] }
 0x1a0   :  { %v1811_v11 = vpop.f32.mrf.mxu1 }
 0x1a1   :  { %v8756_v31 = vadd.f32 %v6551_v59, %v2042_v26  ;;  %v2040_v33 = vadd.f32 %v1811_v11, %v8083_v47  ;;  %v6554_v4 = vpop.f32.mrf.mxu0  ;;  %6717 = vmatmul.mubr.msk.bf16.gmra.mxu0 %vm213_vm2, %v3283_v27  ;;  %v5670_v47 = vld [vmem:[%s10550_s0 + $0x2b8] sm:$0xff]  ;;  %v8795_v59 = vpack.c.bf16 %v5574_v34, %v5573_v6 }
 0x1a2   :  { %v6488_v3 = vpop.f32.mrf.mxu1  ;;  %6651 = vmatmul.mubr.msk.bf16.gmra.mxu1 %vm213_vm2, %v8749_v1  ;;  %6720 = vmatprep.mubr.msk.bf16.mxu0 %vm213_vm2, %v3284_v54  ;;  %v3285_v27 = vpack.c.bf16 %v5671_v28, %v5670_v47  ;;  %v5578_v6 = vld [vmem:[%s10550_s0 + $0x2da] sm:$0xff]  ;;  %v5675_v28 = vld [vmem:[%s10550_s0 + $0x2f0] sm:$0xff] }
 0x1a3   :  { %v8768_v35 = vadd.f32 %v2361_v40, %v2040_v33  ;;  %v2045_v10 = vadd.f32 %v6488_v3, %v8101_v44  ;;  %6654 = vmatprep.mubr.msk.bf16.mxu1 %vm213_vm2, %v8754_v51  ;;  %v5575_v40 = vld [vmem:[%s10550_s0 + $0x2ba] sm:$0xff]  ;;  %v2374_v7 = vpop.f32.mrf.mxu0  ;;  %v5576_v44 = vld [vmem:[%s10550_s0 + $0x2c2] sm:$0xff]  ;;  %v3286_v33 = vpack.c.bf16 %v5673_v37, %v5672_v23 }
 0x1a4   :  { %v1824_v9 = vpop.f32.mrf.mxu1  ;;  %v8800_v11 = vpack.c.bf16 %v5576_v44, %v5575_v40  ;;  %v5677_v44 = vld [vmem:[%s10550_s0 + $0x308] sm:$0xff] }
 0x1a5   :  { %10694 = vst [vmem:[#allocation49_spill] sm:$0xff] %v8768_v35  ;;  %v8792_v2 = vadd.f32 %v6554_v4, %v2045_v10  ;;  %v2043_v0 = vadd.f32 %v1824_v9, %v8104_v29  ;;  %v6555_v56 = vpop.f32.mrf.mxu0 }
 0x1a6   :  { %v6489_v57 = vpop.f32.mrf.mxu1  ;;  %10695 = vst [vmem:[#allocation50_spill] sm:$0xff] %v8800_v11 }
 0x1a7   :  { %v8797_v26 = vadd.f32 %v2374_v7, %v2043_v0  ;;  %v2046_v54 = vadd.f32 %v6489_v57, %v8107_v5  ;;  %v2377_v51 = vpop.f32.mrf.mxu0  ;;  %v5577_v5 = vld [vmem:[%s10550_s0 + $0x2d2] sm:$0xff]  ;;  %v5676_v7 = vld [vmem:[%s10550_s0 + $0x300] sm:$0xff] }
 0x1a8   :  { %v1827_v3 = vpop.f32.mrf.mxu1 }
 0x1a9   :  { %v8802_v35 = vadd.f32 %v6555_v56, %v2046_v54  ;;  %v2044_v4 = vadd.f32 %v1827_v3, %v8113_v63  ;;  %v6558_v29 = vpop.f32.mrf.mxu0  ;;  %6721 = vmatmul.mubr.msk.bf16.gmra.mxu0 %vm213_vm2, %v3285_v27  ;;  %v5674_v63 = vld [vmem:[%s10550_s0 + $0x2e8] sm:$0xff]  ;;  %v8841_v56 = vpack.c.bf16 %v5578_v6, %v5577_v5 }
 0x1aa   :  { %v6492_v10 = vpop.f32.mrf.mxu1  ;;  %6655 = vmatmul.mubr.msk.bf16.gmra.mxu1 %vm213_vm2, %v8795_v59  ;;  %6724 = vmatprep.mubr.msk.bf16.mxu0 %vm213_vm2, %v3286_v33  ;;  %v3287_v27 = vpack.c.bf16 %v5675_v28, %v5674_v63  ;;  %v5678_v63 = vld [vmem:[%s10550_s0 + $0x318] sm:$0xff] }
 0x1ab   :  { %v8814_v34 = vadd.f32 %v2377_v51, %v2044_v4  ;;  %v2049_v47 = vadd.f32 %v6492_v10, %v8131_v49  ;;  %6658 = vmatprep.mubr.msk.bf16.mxu1 %vm213_vm2, %v8800_v11  ;;  %v5579_v51 = vld [vmem:[%s10550_s0 + $0x2ea] sm:$0xff]  ;;  %v2390_v9 = vpop.f32.mrf.mxu0  ;;  %v5580_v49 = vld [vmem:[%s10550_s0 + $0x2f2] sm:$0xff]  ;;  %v3288_v4 = vpack.c.bf16 %v5677_v44, %v5676_v7 }
 0x1ac   :  { %v1840_v40 = vpop.f32.mrf.mxu1  ;;  %v8846_v3 = vpack.c.bf16 %v5580_v49, %v5579_v51 }
 0x1ad   :  { %10696 = vst [vmem:[#allocation51_spill] sm:$0xff] %v8814_v34  ;;  %v8838_v23 = vadd.f32 %v6558_v29, %v2049_v47  ;;  %v2047_v37 = vadd.f32 %v1840_v40, %v8134_v53  ;;  %v6559_v57 = vpop.f32.mrf.mxu0  ;;  %v5584_v40 = vld [vmem:[%s10550_s0 + $0x322] sm:$0xff] }
 0x1ae   :  { %v6493_v0 = vpop.f32.mrf.mxu1 }
 0x1af   :  { %v8843_v54 = vadd.f32 %v2390_v9, %v2047_v37  ;;  %v2050_v33 = vadd.f32 %v6493_v0, %v8137_v39  ;;  %v2393_v11 = vpop.f32.mrf.mxu0  ;;  %v5581_v39 = vld [vmem:[%s10550_s0 + $0x302] sm:$0xff] }
 0x1b0   :  { %v1843_v10 = vpop.f32.mrf.mxu1 }
 0x1b1   :  { %v8848_v34 = vadd.f32 %v6559_v57, %v2050_v33  ;;  %v2048_v29 = vadd.f32 %v1843_v10, %v8143_v12  ;;  %v6562_v53 = vpop.f32.mrf.mxu0  ;;  %6725 = vmatmul.mubr.msk.bf16.gmra.mxu0 %vm213_vm2, %v3287_v27  ;;  %v5582_v12 = vld [vmem:[%s10550_s0 + $0x30a] sm:$0xff] }
 0x1b2   :  { %v6496_v47 = vpop.f32.mrf.mxu1  ;;  %6659 = vmatmul.mubr.msk.bf16.gmra.mxu1 %vm213_vm2, %v8841_v56  ;;  %6728 = vmatprep.mubr.msk.bf16.mxu0 %vm213_vm2, %v3288_v4  ;;  %v8881_v37 = vpack.c.bf16 %v5582_v12, %v5581_v39  ;;  %v5682_v12 = vld [vmem:[%s10550_s0 + $0x348] sm:$0xff] }
 0x1b3   :  { %v8857_v5 = vadd.f32 %v2393_v11, %v2048_v29  ;;  %v2053_v6 = vadd.f32 %v6496_v47, %v8161_v58  ;;  %6662 = vmatprep.mubr.msk.bf16.mxu1 %vm213_vm2, %v8846_v3  ;;  %v5679_v11 = vld [vmem:[%s10550_s0 + $0x320] sm:$0xff]  ;;  %v2406_v51 = vpop.f32.mrf.mxu0 }
 0x1b4   :  { %v1856_v28 = vpop.f32.mrf.mxu1  ;;  %v5583_v58 = vld [vmem:[%s10550_s0 + $0x31a] sm:$0xff]  ;;  %v3289_v0 = vpack.c.bf16 %v5679_v11, %v5678_v63  ;;  %v5683_v63 = vld [vmem:[%s10550_s0 + $0x350] sm:$0xff] }
 0x1b5   :  { %v8878_v9 = vadd.f32 %v6562_v53, %v2053_v6  ;;  %v2051_v49 = vadd.f32 %v1856_v28, %v8164_v25  ;;  %v6563_v44 = vpop.f32.mrf.mxu0  ;;  %v8886_v33 = vpack.c.bf16 %v5584_v40, %v5583_v58  ;;  %v5585_v25 = vld [vmem:[%s10550_s0 + $0x332] sm:$0xff] }
 0x1b6   :  { %v6497_v7 = vpop.f32.mrf.mxu1  ;;  %v5717_v28 = vld [vmem:[%s10550_s0 + $0x31] sm:$0xff] }
 0x1b7   :  { %v8883_v57 = vadd.f32 %v2406_v51, %v2051_v49  ;;  %v2054_v27 = vadd.f32 %v6497_v7, %v8167_v20  ;;  %10697 = vst [vmem:[#allocation52_spill] sm:$0xff] %v8886_v33  ;;  %v2409_v10 = vpop.f32.mrf.mxu0 }
 0x1b8   :  { %v1859_v4 = vpop.f32.mrf.mxu1 }
 0x1b9   :  { %v8888_v29 = vadd.f32 %v6563_v44, %v2054_v27  ;;  %v2052_v47 = vadd.f32 %v1859_v4, %v8179_v24  ;;  %v6566_v6 = vpop.f32.mrf.mxu0  ;;  %6729 = vmatmul.mubr.msk.bf16.gmra.mxu0 %vm213_vm2, %v3289_v0  ;;  %v5586_v24 = vld [vmem:[%s10550_s0 + $0x33a] sm:$0xff]  ;;  %v3291_v44 = vpack.c.bf16 %v5683_v63, %v5682_v12 }
 0x1ba   :  { %v6500_v53 = vpop.f32.mrf.mxu1  ;;  %6663 = vmatmul.mubr.msk.bf16.gmra.mxu1 %vm213_vm2, %v8881_v37  ;;  %6732 = vmatprep.mubr.msk.bf16.mxu0 %vm213_vm2, %v8206_v19  ;;  %v5718_v19 = vld [vmem:[%s10550_s0 + $0x39] sm:$0xff]  ;;  %v8922_v7 = vpack.c.bf16 %v5586_v24, %v5585_v25 }
 0x1bb   :  { %v8897_v20 = vadd.f32 %v2409_v10, %v2052_v47  ;;  %v2057_v39 = vadd.f32 %v6500_v53, %v8203_v52  ;;  %6666 = vmatprep.mubr.msk.bf16.mxu1 %vm213_vm2, %v8886_v33  ;;  %v2422_v52 = vpop.f32.mrf.mxu0  ;;  %v3810_v4 = vpack.c.bf16 %v5718_v19, %v5717_v28 }
 0x1bc   :  { %v1872_v11 = vpop.f32.mrf.mxu1 }
 0x1bd   :  { %v8919_v51 = vadd.f32 %v6566_v6, %v2057_v39  ;;  %v2055_v58 = vadd.f32 %v1872_v11, %v8208_v60  ;;  %v6567_v49 = vpop.f32.mrf.mxu0 }
 0x1be   :  { %v6501_v40 = vpop.f32.mrf.mxu1 }
 0x1bf   :  { %v8924_v0 = vadd.f32 %v2422_v52, %v2055_v58  ;;  %v2058_v27 = vadd.f32 %v6501_v40, %v8211_v45  ;;  %v2425_v47 = vpop.f32.mrf.mxu0  ;;  %v5719_v45 = vld [vmem:[%s10550_s0 + $0x49] sm:$0xff] }
 0x1c0   :  { %v1875_v10 = vpop.f32.mrf.mxu1 }
 0x1c1   :  { %v8927_v53 = vadd.f32 %v6567_v49, %v2058_v27  ;;  %v2056_v33 = vadd.f32 %v1875_v10, %v8220_v15  ;;  %v6570_v39 = vpop.f32.mrf.mxu0  ;;  %6733 = vmatmul.mubr.msk.bf16.gmra.mxu0 %vm213_vm2, %v3291_v44  ;;  %v5720_v15 = vld [vmem:[%s10550_s0 + $0x51] sm:$0xff] }
 0x1c2   :  { %v6504_v6 = vpop.f32.mrf.mxu1  ;;  %6667 = vmatmul.mubr.msk.bf16.gmra.mxu1 %vm213_vm2, %v8922_v7  ;;  %6804 = vmatprep.mubr.msk.bf16.mxu0 %vm213_vm2, %v8249_v42  ;;  %v3811_v28 = vpack.c.bf16 %v5720_v15, %v5719_v45 }
 0x1c3   :  { %v8933_v60 = vadd.f32 %v2425_v47, %v2056_v33  ;;  %v2061_v25 = vadd.f32 %v6504_v6, %v8237_v21  ;;  %6738 = vmatprep.mubr.msk.bf16.mxu1 %vm213_vm2, %v3810_v4  ;;  %v2438_v12 = vpop.f32.mrf.mxu0  ;;  %v5721_v33 = vld [vmem:[%s10550_s0 + $0x61] sm:$0xff]  ;;  %v5722_v21 = vld [vmem:[%s10550_s0 + $0x69] sm:$0xff] }
 0x1c4   :  { %v1888_v24 = vpop.f32.mrf.mxu1  ;;  %v3812_v40 = vpack.c.bf16 %v5722_v21, %v5721_v33 }
 0x1c5   :  { %v8951_v63 = vadd.f32 %v6570_v39, %v2061_v25  ;;  %v2059_v42 = vadd.f32 %v1888_v24, %v8251_v32  ;;  %v6571_v52 = vpop.f32.mrf.mxu0  ;;  %v5724_v39 = vld [vmem:[%s10550_s0 + $0x81] sm:$0xff] }
 0x1c6   :  { %v6505_v11 = vpop.f32.mrf.mxu1  ;;  %v10702_v24 = vld [vmem:[#allocation2_spill] sm:$0xff] }
 0x1c7   :  { %v8954_v19 = vadd.f32 %v2438_v12, %v2059_v42  ;;  %v2062_v58 = vadd.f32 %v6505_v11, %v8256_v17  ;;  %v2441_v44 = vpop.f32.mrf.mxu0  ;;  %v10700_v17 = vld [vmem:[#allocation36_spill] sm:$0xff] }
 0x1c8   :  { %v1891_v49 = vpop.f32.mrf.mxu1 }
 0x1c9   :  { %v8957_v27 = vadd.f32 %v6571_v52, %v2062_v58  ;;  %v2060_v4 = vadd.f32 %v1891_v49, %v8268_v22  ;;  %v6574_v47 = vpop.f32.mrf.mxu0  ;;  %6805 = vmatmul.mubr.msk.bf16.vlgmr.msra.gmra.mxu0 %vm213_vm2, %v8254_v41  ;;  %v5723_v22 = vld [vmem:[%s10550_s0 + $0x79] sm:$0xff]  ;;  %v5725_v41 = vld [vmem:[%s10550_s0 + $0x91] sm:$0xff]  ;;  %v10704_v52 = vld [vmem:[#allocation7_spill] sm:$0xff] }
 0x1ca   :  { %v6508_v10 = vpop.f32.mrf.mxu1  ;;  %6739 = vmatmul.mubr.msk.bf16.vlgmr.msra.gmra.mxu1 %vm213_vm2, %v3811_v28  ;;  %6808 = vmatprep.mubr.msk.bf16.mxu0 %vm213_vm2, %v10700_v17  ;;  %v3813_v42 = vpack.c.bf16 %v5724_v39, %v5723_v22  ;;  %v10709_v22 = vld [vmem:[#allocation4_spill] sm:$0xff] }
 0x1cb   :  { %10698 = vst [vmem:[#allocation53_spill] sm:$0xff] %v8957_v27  ;;  %v8963_v32 = vadd.f32 %v2441_v44, %v2060_v4  ;;  %v2065_v6 = vadd.f32 %v6508_v10, %v8294_v48  ;;  %6742 = vmatprep.mubr.msk.bf16.mxu1 %vm213_vm2, %v3812_v40  ;;  %v2454_v45 = vpop.f32.mrf.mxu0  ;;  %v5726_v48 = vld [vmem:[%s10550_s0 + $0x99] sm:$0xff]  ;;  %v10706_v4 = vld [vmem:[#allocation3_spill] sm:$0xff] }
 0x1cc   :  { %v1904_v25 = vpop.f32.mrf.mxu1  ;;  %v3814_v58 = vpack.c.bf16 %v5726_v48, %v5725_v41  ;;  %v5728_v41 = vld [vmem:[%s10550_s0 + $0xb1] sm:$0xff] }
 0x1cd   :  { %10699 = vst [vmem:[#allocation54_spill] sm:$0xff] %v8963_v32  ;;  %v8981_v15 = vadd.f32 %v6574_v47, %v2065_v6  ;;  %v2063_v12 = vadd.f32 %v1904_v25, %v10702_v24  ;;  %v6575_v21 = vpop.f32.mrf.mxu0  ;;  %v10707_v47 = vld [vmem:[#allocation5_spill] sm:$0xff]  ;;  %v10710_v25 = vld [vmem:[#allocation6_spill] sm:$0xff] }
 0x1ce   :  { %v6509_v33 = vpop.f32.mrf.mxu1 }
 0x1cf   :  { %10701 = vst [vmem:[#allocation36_spill] sm:$0xff] %v8981_v15  ;;  %v8984_v11 = vadd.f32 %v2454_v45, %v2063_v12  ;;  %v2066_v28 = vadd.f32 %v6509_v33, %v10704_v52  ;;  %v2457_v49 = vpop.f32.mrf.mxu0  ;;  %v5727_v45 = vld [vmem:[%s10550_s0 + $0xa9] sm:$0xff]  ;;  %v5729_v12 = vld [vmem:[%s10550_s0 + $0xc1] sm:$0xff] }
 0x1d0   :  { %v1907_v40 = vpop.f32.mrf.mxu1  ;;  %v5730_v33 = vld [vmem:[%s10550_s0 + $0xc9] sm:$0xff] }
 0x1d1   :  { %10703 = vst [vmem:[#allocation2_spill] sm:$0xff] %v8984_v11  ;;  %v8987_v44 = vadd.f32 %v6575_v21, %v2066_v28  ;;  %v2064_v10 = vadd.f32 %v1907_v40, %v10706_v4  ;;  %v6578_v32 = vpop.f32.mrf.mxu0  ;;  %6809 = vmatmul.mubr.msk.bf16.gmra.mxu0 %vm213_vm2, %v10707_v47  ;;  %v3815_v40 = vpack.c.bf16 %v5728_v41, %v5727_v45  ;;  %v10714_v4 = vld [vmem:[#allocation10_spill] sm:$0xff]  ;;  %v10719_v45 = vld [vmem:[#allocation12_spill] sm:$0xff] }
 0x1d2   :  { %v6512_v17 = vpop.f32.mrf.mxu1  ;;  %6743 = vmatmul.mubr.msk.bf16.gmra.mxu1 %vm213_vm2, %v3813_v42  ;;  %6812 = vmatprep.mubr.msk.bf16.mxu0 %vm213_vm2, %v10710_v25  ;;  %v10712_v42 = vld [vmem:[#allocation8_spill] sm:$0xff] }
 0x1d3   :  { %10705 = vst [vmem:[#allocation7_spill] sm:$0xff] %v8987_v44  ;;  %v8993_v6 = vadd.f32 %v2457_v49, %v2064_v10  ;;  %v2069_v39 = vadd.f32 %v6512_v17, %v10709_v22  ;;  %6746 = vmatprep.mubr.msk.bf16.mxu1 %vm213_vm2, %v3814_v58  ;;  %v2470_v24 = vpop.f32.mrf.mxu0  ;;  %v3816_v17 = vpack.c.bf16 %v5730_v33, %v5729_v12 }
 0x1d4   :  { %v1920_v48 = vpop.f32.mrf.mxu1 }
 0x1d5   :  { %10708 = vst [vmem:[#allocation3_spill] sm:$0xff] %v8993_v6  ;;  %v9011_v21 = vadd.f32 %v6578_v32, %v2069_v39  ;;  %v2067_v52 = vadd.f32 %v1920_v48, %v10712_v42  ;;  %v6579_v58 = vpop.f32.mrf.mxu0  ;;  %v10716_v6 = vld [vmem:[#allocation11_spill] sm:$0xff]  ;;  %v10717_v32 = vld [vmem:[#allocation9_spill] sm:$0xff] }
 0x1d6   :  { %v6513_v28 = vpop.f32.mrf.mxu1  ;;  %v10720_v48 = vld [vmem:[#allocation13_spill] sm:$0xff] }
 0x1d7   :  { %10711 = vst [vmem:[#allocation5_spill] sm:$0xff] %v9011_v21  ;;  %v9014_v49 = vadd.f32 %v2470_v24, %v2067_v52  ;;  %v2070_v10 = vadd.f32 %v6513_v28, %v10714_v4  ;;  %v2473_v22 = vpop.f32.mrf.mxu0  ;;  %v5732_v24 = vld [vmem:[%s10550_s0 + $0xe1] sm:$0xff] }
 0x1d8   :  { %v1923_v47 = vpop.f32.mrf.mxu1  ;;  %v10722_v52 = vld [vmem:[#allocation38_spill] sm:$0xff] }
 0x1d9   :  { %10713 = vst [vmem:[#allocation4_spill] sm:$0xff] %v9014_v49  ;;  %v9017_v25 = vadd.f32 %v6579_v58, %v2070_v10  ;;  %v2068_v44 = vadd.f32 %v1923_v47, %v10716_v6  ;;  %v6582_v15 = vpop.f32.mrf.mxu0  ;;  %6813 = vmatmul.mubr.msk.bf16.gmra.mxu0 %vm213_vm2, %v10717_v32  ;;  %v5731_v6 = vld [vmem:[%s10550_s0 + $0xd9] sm:$0xff] }
 0x1da   :  { %v6516_v11 = vpop.f32.mrf.mxu1  ;;  %6747 = vmatmul.mubr.msk.bf16.gmra.mxu1 %vm213_vm2, %v3815_v40  ;;  %6816 = vmatprep.mubr.msk.bf16.mxu0 %vm213_vm2, %v10720_v48  ;;  %v3817_v4 = vpack.c.bf16 %v5732_v24, %v5731_v6  ;;  %v10729_v6 = vld [vmem:[#allocation16_spill] sm:$0xff] }
 0x1db   :  { %10715 = vst [vmem:[#allocation6_spill] sm:$0xff] %v9017_v25  ;;  %v9023_v39 = vadd.f32 %v2473_v22, %v2068_v44  ;;  %v2073_v41 = vadd.f32 %v6516_v11, %v10719_v45  ;;  %6750 = vmatprep.mubr.msk.bf16.mxu1 %vm213_vm2, %v3816_v17  ;;  %v2486_v33 = vpop.f32.mrf.mxu0  ;;  %v5733_v44 = vld [vmem:[%s10550_s0 + $0xf1] sm:$0xff]  ;;  %v5734_v11 = vld [vmem:[%s10550_s0 + $0xf9] sm:$0xff]  ;;  %v10724_v17 = vld [vmem:[#allocation39_spill] sm:$0xff] }
 0x1dc   :  { %v1936_v12 = vpop.f32.mrf.mxu1  ;;  %v3818_v22 = vpack.c.bf16 %v5734_v11, %v5733_v44 }
 0x1dd   :  { %10718 = vst [vmem:[#allocation8_spill] sm:$0xff] %v9023_v39  ;;  %v9041_v42 = vadd.f32 %v6582_v15, %v2073_v41  ;;  %v2071_v28 = vadd.f32 %v1936_v12, %v10722_v52  ;;  %v6583_v40 = vpop.f32.mrf.mxu0  ;;  %v10726_v39 = vld [vmem:[#allocation15_spill] sm:$0xff]  ;;  %v10727_v15 = vld [vmem:[#allocation14_spill] sm:$0xff]  ;;  %v10730_v12 = vld [vmem:[#allocation17_spill] sm:$0xff] }
 0x1de   :  { %v6517_v58 = vpop.f32.mrf.mxu1 }
 0x1df   :  { %10721 = vst [vmem:[#allocation10_spill] sm:$0xff] %v9041_v42  ;;  %v9044_v10 = vadd.f32 %v2486_v33, %v2071_v28  ;;  %v2074_v47 = vadd.f32 %v6517_v58, %v10724_v17  ;;  %v2489_v45 = vpop.f32.mrf.mxu0  ;;  %v5736_v33 = vld [vmem:[%s10550_s0 + $0x111] sm:$0xff] }
 0x1e0   :  { %v1939_v32 = vpop.f32.mrf.mxu1  ;;  %v10732_v28 = vld [vmem:[#allocation40_spill] sm:$0xff] }
 0x1e1   :  { %10723 = vst [vmem:[#allocation11_spill] sm:$0xff] %v9044_v10  ;;  %v9047_v48 = vadd.f32 %v6583_v40, %v2074_v47  ;;  %v2072_v25 = vadd.f32 %v1939_v32, %v10726_v39  ;;  %v6586_v21 = vpop.f32.mrf.mxu0  ;;  %6817 = vmatmul.mubr.msk.bf16.gmra.mxu0 %vm213_vm2, %v10727_v15  ;;  %v5735_v39 = vld [vmem:[%s10550_s0 + $0x109] sm:$0xff] }
 0x1e2   :  { %v6520_v49 = vpop.f32.mrf.mxu1  ;;  %6751 = vmatmul.mubr.msk.bf16.gmra.mxu1 %vm213_vm2, %v3817_v4  ;;  %6820 = vmatprep.mubr.msk.bf16.mxu0 %vm213_vm2, %v10730_v12  ;;  %v3819_v17 = vpack.c.bf16 %v5736_v33, %v5735_v39  ;;  %v10739_v39 = vld [vmem:[#allocation20_spill] sm:$0xff] }
 0x1e3   :  { %10725 = vst [vmem:[#allocation9_spill] sm:$0xff] %v9047_v48  ;;  %v9053_v41 = vadd.f32 %v2489_v45, %v2072_v25  ;;  %v2077_v24 = vadd.f32 %v6520_v49, %v10729_v6  ;;  %6754 = vmatprep.mubr.msk.bf16.mxu1 %vm213_vm2, %v3818_v22  ;;  %v2502_v11 = vpop.f32.mrf.mxu0  ;;  %v5737_v25 = vld [vmem:[%s10550_s0 + $0x121] sm:$0xff]  ;;  %v5738_v49 = vld [vmem:[%s10550_s0 + $0x129] sm:$0xff]  ;;  %v10734_v22 = vld [vmem:[#allocation41_spill] sm:$0xff] }
 0x1e4   :  { %v1952_v44 = vpop.f32.mrf.mxu1  ;;  %v3820_v45 = vpack.c.bf16 %v5738_v49, %v5737_v25 }
 0x1e5   :  { %10728 = vst [vmem:[#allocation12_spill] sm:$0xff] %v9053_v41  ;;  %v9071_v52 = vadd.f32 %v6586_v21, %v2077_v24  ;;  %v2075_v58 = vadd.f32 %v1952_v44, %v10732_v28  ;;  %v6587_v4 = vpop.f32.mrf.mxu0  ;;  %v10736_v41 = vld [vmem:[#allocation19_spill] sm:$0xff]  ;;  %v10737_v21 = vld [vmem:[#allocation18_spill] sm:$0xff]  ;;  %v10740_v44 = vld [vmem:[#allocation21_spill] sm:$0xff] }
 0x1e6   :  { %v6521_v40 = vpop.f32.mrf.mxu1 }
 0x1e7   :  { %10731 = vst [vmem:[#allocation13_spill] sm:$0xff] %v9071_v52  ;;  %v9074_v47 = vadd.f32 %v2502_v11, %v2075_v58  ;;  %v2078_v32 = vadd.f32 %v6521_v40, %v10734_v22  ;;  %v2505_v6 = vpop.f32.mrf.mxu0  ;;  %v5740_v11 = vld [vmem:[%s10550_s0 + $0x141] sm:$0xff] }
 0x1e8   :  { %v1955_v15 = vpop.f32.mrf.mxu1  ;;  %v10742_v58 = vld [vmem:[#allocation42_spill] sm:$0xff] }
 0x1e9   :  { %10733 = vst [vmem:[#allocation38_spill] sm:$0xff] %v9074_v47  ;;  %v9077_v12 = vadd.f32 %v6587_v4, %v2078_v32  ;;  %v2076_v48 = vadd.f32 %v1955_v15, %v10736_v41  ;;  %v6590_v42 = vpop.f32.mrf.mxu0  ;;  %6821 = vmatmul.mubr.msk.bf16.gmra.mxu0 %vm213_vm2, %v10737_v21  ;;  %v5739_v41 = vld [vmem:[%s10550_s0 + $0x139] sm:$0xff] }
 0x1ea   :  { %v6524_v10 = vpop.f32.mrf.mxu1  ;;  %6755 = vmatmul.mubr.msk.bf16.gmra.mxu1 %vm213_vm2, %v3819_v17  ;;  %6824 = vmatprep.mubr.msk.bf16.mxu0 %vm213_vm2, %v10740_v44  ;;  %v3821_v22 = vpack.c.bf16 %v5740_v11, %v5739_v41  ;;  %v10749_v41 = vld [vmem:[#allocation24_spill] sm:$0xff] }
 0x1eb   :  { %10735 = vst [vmem:[#allocation39_spill] sm:$0xff] %v9077_v12  ;;  %v9083_v24 = vadd.f32 %v2505_v6, %v2076_v48  ;;  %v2081_v33 = vadd.f32 %v6524_v10, %v10739_v39  ;;  %6758 = vmatprep.mubr.msk.bf16.mxu1 %vm213_vm2, %v3820_v45  ;;  %v2518_v49 = vpop.f32.mrf.mxu0  ;;  %v5741_v48 = vld [vmem:[%s10550_s0 + $0x151] sm:$0xff]  ;;  %v5742_v10 = vld [vmem:[%s10550_s0 + $0x159] sm:$0xff]  ;;  %v10744_v45 = vld [vmem:[#allocation43_spill] sm:$0xff] }
 0x1ec   :  { %v1968_v25 = vpop.f32.mrf.mxu1  ;;  %v3822_v6 = vpack.c.bf16 %v5742_v10, %v5741_v48 }
 0x1ed   :  { %10738 = vst [vmem:[#allocation15_spill] sm:$0xff] %v9083_v24  ;;  %v9101_v28 = vadd.f32 %v6590_v42, %v2081_v33  ;;  %v2079_v40 = vadd.f32 %v1968_v25, %v10742_v58  ;;  %v6591_v17 = vpop.f32.mrf.mxu0  ;;  %v10746_v24 = vld [vmem:[#allocation23_spill] sm:$0xff]  ;;  %v10747_v42 = vld [vmem:[#allocation22_spill] sm:$0xff]  ;;  %v10750_v25 = vld [vmem:[#allocation25_spill] sm:$0xff] }
 0x1ee   :  { %v6525_v4 = vpop.f32.mrf.mxu1 }
 0x1ef   :  { %10741 = vst [vmem:[#allocation14_spill] sm:$0xff] %v9101_v28  ;;  %v9104_v32 = vadd.f32 %v2518_v49, %v2079_v40  ;;  %v2082_v15 = vadd.f32 %v6525_v4, %v10744_v45  ;;  %v2521_v39 = vpop.f32.mrf.mxu0  ;;  %v5744_v49 = vld [vmem:[%s10550_s0 + $0x171] sm:$0xff] }
 0x1f0   :  { %v1971_v21 = vpop.f32.mrf.mxu1  ;;  %v10752_v40 = vld [vmem:[#allocation44_spill] sm:$0xff] }
 0x1f1   :  { %10743 = vst [vmem:[#allocation16_spill] sm:$0xff] %v9104_v32  ;;  %v9107_v44 = vadd.f32 %v6591_v17, %v2082_v15  ;;  %v2080_v12 = vadd.f32 %v1971_v21, %v10746_v24  ;;  %v6594_v52 = vpop.f32.mrf.mxu0  ;;  %6825 = vmatmul.mubr.msk.bf16.gmra.mxu0 %vm213_vm2, %v10747_v42  ;;  %v5743_v24 = vld [vmem:[%s10550_s0 + $0x169] sm:$0xff] }
 0x1f2   :  { %v6528_v47 = vpop.f32.mrf.mxu1  ;;  %6759 = vmatmul.mubr.msk.bf16.gmra.mxu1 %vm213_vm2, %v3821_v22  ;;  %6828 = vmatprep.mubr.msk.bf16.mxu0 %vm213_vm2, %v10750_v25  ;;  %v3823_v45 = vpack.c.bf16 %v5744_v49, %v5743_v24  ;;  %v10759_v49 = vld [vmem:[#allocation28_spill] sm:$0xff] }
 0x1f3   :  { %10745 = vst [vmem:[#allocation17_spill] sm:$0xff] %v9107_v44  ;;  %v9113_v33 = vadd.f32 %v2521_v39, %v2080_v12  ;;  %v2085_v11 = vadd.f32 %v6528_v47, %v10749_v41  ;;  %6762 = vmatprep.mubr.msk.bf16.mxu1 %vm213_vm2, %v3822_v6  ;;  %v2534_v10 = vpop.f32.mrf.mxu0  ;;  %v5745_v12 = vld [vmem:[%s10550_s0 + $0x181] sm:$0xff]  ;;  %v5746_v47 = vld [vmem:[%s10550_s0 + $0x189] sm:$0xff]  ;;  %v10754_v6 = vld [vmem:[#allocation45_spill] sm:$0xff] }
 0x1f4   :  { %v1984_v48 = vpop.f32.mrf.mxu1  ;;  %v3824_v39 = vpack.c.bf16 %v5746_v47, %v5745_v12 }
 0x1f5   :  { %10748 = vst [vmem:[#allocation40_spill] sm:$0xff] %v9113_v33  ;;  %v9131_v58 = vadd.f32 %v6594_v52, %v2085_v11  ;;  %v2083_v4 = vadd.f32 %v1984_v48, %v10752_v40  ;;  %v6595_v22 = vpop.f32.mrf.mxu0  ;;  %v10756_v33 = vld [vmem:[#allocation27_spill] sm:$0xff]  ;;  %v10757_v52 = vld [vmem:[#allocation26_spill] sm:$0xff] }
 0x1f6   :  { %v6529_v17 = vpop.f32.mrf.mxu1  ;;  %v5747_v11 = vld [vmem:[%s10550_s0 + $0x199] sm:$0xff] }
 0x1f7   :  { %10751 = vst [vmem:[#allocation41_spill] sm:$0xff] %v9131_v58  ;;  %v9134_v15 = vadd.f32 %v2534_v10, %v2083_v4  ;;  %v2086_v21 = vadd.f32 %v6529_v17, %v10754_v6  ;;  %v2537_v41 = vpop.f32.mrf.mxu0  ;;  %v5844_v10 = vld [vmem:[%s10550_s0 + $0x19a] sm:$0xff]  ;;  %v10760_v4 = vld [vmem:[#allocation31_spill] sm:$0xff] }
 0x1f8   :  { %v1987_v42 = vpop.f32.mrf.mxu1 }
 0x1f9   :  { %10753 = vst [vmem:[#allocation19_spill] sm:$0xff] %v9134_v15  ;;  %v9137_v25 = vadd.f32 %v6595_v22, %v2086_v21  ;;  %v2084_v44 = vadd.f32 %v1987_v42, %v10756_v33  ;;  %v6598_v28 = vpop.f32.mrf.mxu0  ;;  %6829 = vmatmul.mubr.msk.bf16.gmra.mxu0 %vm213_vm2, %v10757_v52  ;;  %v5748_v33 = vld [vmem:[%s10550_s0 + $0x1a1] sm:$0xff]  ;;  %v10761_v42 = vld [vmem:[#allocation29_spill] sm:$0xff] }
 0x1fa   :  { %v6532_v32 = vpop.f32.mrf.mxu1  ;;  %6763 = vmatmul.mubr.msk.bf16.gmra.mxu1 %vm213_vm2, %v3823_v45  ;;  %6832 = vmatprep.mubr.msk.bf16.mxu0 %vm213_vm2, %v8568_v38  ;;  %v5750_v38 = vld [vmem:[%s10550_s0 + $0x1e9] sm:$0xff]  ;;  %v3825_v6 = vpack.c.bf16 %v5748_v33, %v5747_v11  ;;  %v10762_v15 = vld [vmem:[#allocation30_spill] sm:$0xff] }
 0x1fb   :  { %10755 = vst [vmem:[#allocation18_spill] sm:$0xff] %v9137_v25  ;;  %v9146_v24 = vadd.f32 %v2537_v41, %v2084_v44  ;;  %v2089_v48 = vadd.f32 %v6532_v32, %v10759_v49  ;;  %6766 = vmatprep.mubr.msk.bf16.mxu1 %vm213_vm2, %v3824_v39  ;;  %v5845_v44 = vld [vmem:[%s10550_s0 + $0x1a2] sm:$0xff]  ;;  %v2550_v47 = vpop.f32.mrf.mxu0  ;;  %v10763_v11 = vld [vmem:[#allocation32_spill] sm:$0xff] }
 0x1fc   :  { %v2000_v12 = vpop.f32.mrf.mxu1  ;;  %v5749_v32 = vld [vmem:[%s10550_s0 + $0x1e1] sm:$0xff]  ;;  %v4375_v21 = vpack.c.bf16 %v5845_v44, %v5844_v10  ;;  %v5751_v10 = vld [vmem:[%s10550_s0 + $0x1f9] sm:$0xff] }
 0x1fd   :  { %10758 = vst [vmem:[#allocation20_spill] sm:$0xff] %v9146_v24  ;;  %v9167_v40 = vadd.f32 %v6598_v28, %v2089_v48  ;;  %v2087_v17 = vadd.f32 %v2000_v12, %v10760_v4  ;;  %v6599_v45 = vpop.f32.mrf.mxu0  ;;  %v3826_v52 = vpack.c.bf16 %v5750_v38, %v5749_v32 }
 0x1fe   :  { %v6533_v22 = vpop.f32.mrf.mxu1 }
 0x1ff   :  { %v9170_v39 = vadd.f32 %v2550_v47, %v2087_v17  ;;  %v2090_v41 = vadd.f32 %v6533_v22, %v10761_v42  ;;  %v2553_v24 = vpop.f32.mrf.mxu0  ;;  %v10764_v42 = vld [vmem:[#allocation34_spill] sm:$0xff] }
 0x200   :  { %v2003_v49 = vpop.f32.mrf.mxu1 }
 0x201   :  { %v9173_v25 = vadd.f32 %v6599_v45, %v2090_v41  ;;  %v2088_v58 = vadd.f32 %v2003_v49, %v10762_v15  ;;  %v6602_v28 = vpop.f32.mrf.mxu0  ;;  %6833 = vmatmul.mubr.msk.bf16.gmra.mxu0 %vm213_vm2, %v4375_v21  ;;  %v5752_v15 = vld [vmem:[%s10550_s0 + $0x201] sm:$0xff] }
 0x202   :  { %v6536_v27 = vpop.f32.mrf.mxu1  ;;  %6767 = vmatmul.mubr.msk.bf16.gmra.mxu1 %vm213_vm2, %v3825_v6  ;;  %6836 = vmatprep.mubr.msk.bf16.mxu0 %vm213_vm2, %v8611_v8  ;;  %v3827_v38 = vpack.c.bf16 %v5752_v15, %v5751_v10 }
 0x203   :  { %v9178_v48 = vadd.f32 %v2553_v24, %v2088_v58  ;;  %v2093_v33 = vadd.f32 %v6536_v27, %v10763_v11  ;;  %6770 = vmatprep.mubr.msk.bf16.mxu1 %vm213_vm2, %v3826_v52  ;;  %v2566_v12 = vpop.f32.mrf.mxu0  ;;  %v5753_v58 = vld [vmem:[%s10550_s0 + $0x211] sm:$0xff]  ;;  %v5754_v27 = vld [vmem:[%s10550_s0 + $0x219] sm:$0xff] }
 0x204   :  { %v2016_v44 = vpop.f32.mrf.mxu1  ;;  %v3828_v22 = vpack.c.bf16 %v5754_v27, %v5753_v58 }
 0x205   :  { %v9196_v24 = vadd.f32 %v6602_v28, %v2093_v33  ;;  %v2091_v8 = vadd.f32 %v2016_v44, %v8613_v30  ;;  %v6603_v32 = vpop.f32.mrf.mxu0  ;;  %v10765_v28 = vld [vmem:[#allocation33_spill] sm:$0xff]  ;;  %v5757_v44 = vld [vmem:[%s10550_s0 + $0x241] sm:$0xff] }
 0x206   :  { %v6537_v47 = vpop.f32.mrf.mxu1  ;;  %v5756_v33 = vld [vmem:[%s10550_s0 + $0x231] sm:$0xff] }
 0x207   :  { %v9199_v4 = vadd.f32 %v2566_v12, %v2091_v8  ;;  %v2094_v17 = vadd.f32 %v6537_v47, %v8618_v43  ;;  %v2569_v6 = vpop.f32.mrf.mxu0  ;;  %v5755_v43 = vld [vmem:[%s10550_s0 + $0x229] sm:$0xff] }
 0x208   :  { %v2019_v45 = vpop.f32.mrf.mxu1  ;;  %v3829_v8 = vpack.c.bf16 %v5756_v33, %v5755_v43  ;;  %v9265_v33 = vld [vmem:[%s10550_s0 + $0x271] sm:$0xff] }
 0x209   :  { %v9202_v21 = vadd.f32 %v6603_v32, %v2094_v17  ;;  %v2092_v41 = vadd.f32 %v2019_v45, %v10764_v42  ;;  %v6674_v49 = vpop.f32.mrf.mxu0  ;;  %6837 = vmatmul.mubr.msk.bf16.gmra.mxu0 %vm213_vm2, %v10765_v28 }
 0x20a   :  { %v6608_v52 = vpop.f32.mrf.mxu1  ;;  %6771 = vmatmul.mubr.msk.bf16.gmra.mxu1 %vm213_vm2, %v3827_v38  ;;  %6840 = vmatprep.mubr.msk.bf16.mxu0 %vm213_vm2, %v8657_v18 }
 0x20b   :  { %v9208_v30 = vadd.f32 %v2569_v6, %v2092_v41  ;;  %v3133_v11 = vadd.f32 %v6608_v52, %v8654_v16  ;;  %6774 = vmatprep.mubr.msk.bf16.mxu1 %vm213_vm2, %v3828_v22  ;;  %v3427_v15 = vpop.f32.mrf.mxu0  ;;  %v5758_v16 = vld [vmem:[%s10550_s0 + $0x249] sm:$0xff]  ;;  %v10766_v6 = vld [vmem:[#allocation37_spill] sm:$0xff] }
 0x20c   :  { %v2876_v10 = vpop.f32.mrf.mxu1  ;;  %v3830_v38 = vpack.c.bf16 %v5758_v16, %v5757_v44 }
 0x20d   :  { %v9226_v12 = vadd.f32 %v6674_v49, %v3133_v11  ;;  %v3131_v18 = vadd.f32 %v2876_v10, %v8659_v61  ;;  %v6675_v27 = vpop.f32.mrf.mxu0  ;;  %v10767_v61 = vld [vmem:[#allocation35_spill] sm:$0xff]  ;;  %v6873_v10 = vmov 0.0  }
 0x20e   :  { %v6609_v58 = vpop.f32.mrf.mxu1  ;;  %v9256_v11 = vld [vmem:[%s10550_s0 + $0x261] sm:$0xff]  ;;  %5060 = vst.msk [vmem:[%s10551_s4 + $0x30] sm:$0xff] %vm5052_vm3, %v6873_v10  ;;  %5061 = vst.msk [vmem:[%s10551_s4 + $0x38] sm:$0xff] %vm5052_vm3, %v6873_v10 }
 0x20f   :  { %v9229_v47 = vadd.f32 %v3427_v15, %v3131_v18  ;;  %v3134_v32 = vadd.f32 %v6609_v58, %v8664_v14  ;;  %v3430_v22 = vpop.f32.mrf.mxu0  ;;  %v9251_v14 = vld [vmem:[%s10550_s0 + $0x259] sm:$0xff]  ;;  %5053 = vst.msk [vmem:[%s10551_s4] sm:$0xff] %vm5052_vm3, %v6873_v10  ;;  %5054 = vst.msk [vmem:[%s10551_s4 + $0x8] sm:$0xff] %vm5052_vm3, %v6873_v10 }
 0x210   :  { %v2879_v17 = vpop.f32.mrf.mxu1  ;;  %5057 = vst.msk [vmem:[%s10551_s4 + $0x18] sm:$0xff] %vm5052_vm3, %v6873_v10  ;;  %5058 = vst.msk [vmem:[%s10551_s4 + $0x20] sm:$0xff] %vm5052_vm3, %v6873_v10  ;;  %v3831_v58 = vpack.c.bf16 %v9256_v11, %v9251_v14  ;;  %v5764_v14 = vld [vmem:[%s10550_s0 + $0x291] sm:$0xff] }
 0x211   :  { %v9232_v45 = vadd.f32 %v6675_v27, %v3134_v32  ;;  %v3132_v42 = vadd.f32 %v2879_v17, %v10766_v6  ;;  %v9235_v52 = vpop.f32.mrf.mxu0  ;;  %6841 = vmatmul.mubr.msk.bf16.gmra.mxu0 %vm213_vm2, %v10767_v61  ;;  %5063 = vst.msk [vmem:[%s10551_s4 + $0x48] sm:$0xff] %vm5052_vm3, %v6873_v10  ;;  %5064 = vst.msk [vmem:[%s10551_s4 + $0x50] sm:$0xff] %vm5052_vm3, %v6873_v10 }
 0x212   :  { %v6612_v41 = vpop.f32.mrf.mxu1  ;;  %6775 = vmatmul.mubr.msk.bf16.gmra.mxu1 %vm213_vm2, %v3829_v8  ;;  %6844 = vmatprep.mubr.msk.bf16.mxu0 %vm213_vm2, %v8703_v50  ;;  %v9270_v50 = vld [vmem:[%s10550_s0 + $0x279] sm:$0xff]  ;;  %5066 = vst.msk [vmem:[%s10551_s4 + $0x60] sm:$0xff] %vm5052_vm3, %v6873_v10  ;;  %5067 = vst.msk [vmem:[%s10551_s4 + $0x68] sm:$0xff] %vm5052_vm3, %v6873_v10 }
 0x213   :  { %v9240_v49 = vadd.f32 %v3430_v22, %v3132_v42  ;;  %v9243_v28 = vadd.f32 %v6612_v41, %v8700_v62  ;;  %6778 = vmatprep.mubr.msk.bf16.mxu1 %vm213_vm2, %v3830_v38  ;;  %v9260_v62 = vpop.f32.mrf.mxu0  ;;  %5069 = vst.msk [vmem:[%s10551_s4 + $0x78] sm:$0xff] %vm5052_vm3, %v6873_v10  ;;  %5070 = vst.msk [vmem:[%s10551_s4 + $0x80] sm:$0xff] %vm5052_vm3, %v6873_v10  ;;  %v3832_v32 = vpack.c.bf16 %v9270_v50, %v9265_v33  ;;  %v10769_v41 = vld [vmem:[#allocation46_spill] sm:$0xff] }
 0x214   :  { %v9258_v43 = vpop.f32.mrf.mxu1  ;;  %5072 = vst.msk [vmem:[%s10551_s4 + $0x90] sm:$0xff] %vm5052_vm3, %v6873_v10  ;;  %5073 = vst.msk [vmem:[%s10551_s4 + $0x98] sm:$0xff] %vm5052_vm3, %v6873_v10 }
 0x215   :  { %5075 = vst.msk [vmem:[%s10551_s4 + $0xa8] sm:$0xff] %vm5052_vm3, %v6873_v10  ;;  %5076 = vst.msk [vmem:[%s10551_s4 + $0xb0] sm:$0xff] %vm5052_vm3, %v6873_v10  ;;  %v9634_v15 = vadd.f32 %v9235_v52, %v9243_v28  ;;  %v3135_v44 = vadd.f32 %v9258_v43, %v8705_v46  ;;  %v6679_v18 = vpop.f32.mrf.mxu0  ;;  %v10768_v46 = vld [vmem:[#allocation47_spill] sm:$0xff] }
 0x216   :  { %5078 = vst.msk [vmem:[%s10551_s4 + $0xc0] sm:$0xff] %vm5052_vm3, %v6873_v10  ;;  %5079 = vst.msk [vmem:[%s10551_s4 + $0xc8] sm:$0xff] %vm5052_vm3, %v6873_v10  ;;  %v6613_v16 = vpop.f32.mrf.mxu1  ;;  %v5763_v28 = vld [vmem:[%s10550_s0 + $0x289] sm:$0xff] }
 0x217   :  { %5081 = vst.msk [vmem:[%s10551_s4 + $0xd8] sm:$0xff] %vm5052_vm3, %v6873_v10  ;;  %5082 = vst.msk [vmem:[%s10551_s4 + $0xe0] sm:$0xff] %vm5052_vm3, %v6873_v10  ;;  %v9641_v27 = vadd.f32 %v9260_v62, %v3135_v44  ;;  %v3138_v8 = vadd.f32 %v6613_v16, %v8710_v55  ;;  %v3446_v17 = vpop.f32.mrf.mxu0  ;;  %v5765_v62 = vld [vmem:[%s10550_s0 + $0x2a1] sm:$0xff]  ;;  %v3833_v44 = vpack.c.bf16 %v5764_v14, %v5763_v28 }
 0x218   :  { %5084 = vst.msk [vmem:[%s10551_s4 + $0xf0] sm:$0xff] %vm5052_vm3, %v6873_v10  ;;  %5085 = vst.msk [vmem:[%s10551_s4 + $0xf8] sm:$0xff] %vm5052_vm3, %v6873_v10  ;;  %v2895_v38 = vpop.f32.mrf.mxu1 }
 0x219   :  { %5087 = vst.msk [vmem:[%s10551_s4 + $0x108] sm:$0xff] %vm5052_vm3, %v6873_v10  ;;  %5088 = vst.msk [vmem:[%s10551_s4 + $0x110] sm:$0xff] %vm5052_vm3, %v6873_v10  ;;  %v9826_v55 = vadd.f32 %v6679_v18, %v3138_v8  ;;  %v3136_v22 = vadd.f32 %v2895_v38, %v10768_v46  ;;  %v6682_v42 = vpop.f32.mrf.mxu0  ;;  %6845 = vmatmul.mubr.msk.bf16.gmra.mxu0 %vm213_vm2, %v10769_v41 }
 0x21a   :  { %5090 = vst.msk [vmem:[%s10551_s4 + $0x120] sm:$0xff] %vm5052_vm3, %v6873_v10  ;;  %5091 = vst.msk [vmem:[%s10551_s4 + $0x128] sm:$0xff] %vm5052_vm3, %v6873_v10  ;;  %v6616_v6 = vpop.f32.mrf.mxu1  ;;  %6779 = vmatmul.mubr.msk.bf16.gmra.mxu1 %vm213_vm2, %v3831_v58  ;;  %6848 = vmatprep.mubr.msk.bf16.mxu0 %vm213_vm2, %v8749_v1 }
 0x21b   :  { %5093 = vst.msk [vmem:[%s10551_s4 + $0x138] sm:$0xff] %vm5052_vm3, %v6873_v10  ;;  %5094 = vst.msk [vmem:[%s10551_s4 + $0x140] sm:$0xff] %vm5052_vm3, %v6873_v10  ;;  %v9832_v52 = vadd.f32 %v3446_v17, %v3136_v22  ;;  %v3141_v61 = vadd.f32 %v6616_v6, %v8746_v13  ;;  %6782 = vmatprep.mubr.msk.bf16.mxu1 %vm213_vm2, %v3832_v32  ;;  %v3459_v43 = vpop.f32.mrf.mxu0  ;;  %v5766_v13 = vld [vmem:[%s10550_s0 + $0x2a9] sm:$0xff]  ;;  %v10770_v17 = vld [vmem:[#allocation49_spill] sm:$0xff] }
 0x21c   :  { %5096 = vst.msk [vmem:[%s10551_s4 + $0x150] sm:$0xff] %vm5052_vm3, %v6873_v10  ;;  %5097 = vst.msk [vmem:[%s10551_s4 + $0x158] sm:$0xff] %vm5052_vm3, %v6873_v10  ;;  %v2908_v11 = vpop.f32.mrf.mxu1  ;;  %v3834_v58 = vpack.c.bf16 %v5766_v13, %v5765_v62 }
 0x21d   :  { %5099 = vst.msk [vmem:[%s10551_s4 + $0x168] sm:$0xff] %vm5052_vm3, %v6873_v10  ;;  %5100 = vst.msk [vmem:[%s10551_s4 + $0x170] sm:$0xff] %vm5052_vm3, %v6873_v10  ;;  %v9850_v33 = vadd.f32 %v6682_v42, %v3141_v61  ;;  %v3139_v1 = vadd.f32 %v2908_v11, %v8751_v36  ;;  %v10771_v42 = vld [vmem:[#allocation48_spill] sm:$0xff]  ;;  %v5768_v61 = vld [vmem:[%s10550_s0 + $0x2c1] sm:$0xff] }
 0x21e   :  { %5102 = vst.msk [vmem:[%s10551_s4 + $0x180] sm:$0xff] %vm5052_vm3, %v6873_v10  ;;  %5103 = vst.msk [vmem:[%s10551_s4 + $0x188] sm:$0xff] %vm5052_vm3, %v6873_v10  ;;  %v6617_v50 = vpop.f32.mrf.mxu1  ;;  %v5769_v11 = vld [vmem:[%s10550_s0 + $0x2d1] sm:$0xff] }
 0x21f   :  { %5105 = vst.msk [vmem:[%s10551_s4 + $0x198] sm:$0xff] %vm5052_vm3, %v6873_v10  ;;  %5106 = vst.msk [vmem:[%s10551_s4 + $0x1a0] sm:$0xff] %vm5052_vm3, %v6873_v10  ;;  %v9853_v16 = vadd.f32 %v3459_v43, %v3139_v1  ;;  %v3142_v18 = vadd.f32 %v6617_v50, %v8756_v31  ;;  %v5767_v31 = vld [vmem:[%s10550_s0 + $0x2b9] sm:$0xff] }
 0x220   :  { %5108 = vst.msk [vmem:[%s10551_s4 + $0x1b0] sm:$0xff] %vm5052_vm3, %v6873_v10  ;;  %5109 = vst.msk [vmem:[%s10551_s4 + $0x1b8] sm:$0xff] %vm5052_vm3, %v6873_v10  ;;  %v2911_v8 = vpop.f32.mrf.mxu1  ;;  %v3835_v1 = vpack.c.bf16 %v5768_v61, %v5767_v31 }
 0x221   :  { %5111 = vst.msk [vmem:[%s10551_s4 + $0x1c8] sm:$0xff] %vm5052_vm3, %v6873_v10  ;;  %5112 = vst.msk [vmem:[%s10551_s4 + $0x1d0] sm:$0xff] %vm5052_vm3, %v6873_v10  ;;  %v3140_v46 = vadd.f32 %v2911_v8, %v10770_v17  ;;  %6849 = vmatmul.mubr.msk.bf16.gmra.mxu0 %vm213_vm2, %v10771_v42 }
 0x222   :  { %5114 = vst.msk [vmem:[%s10551_s4 + $0x1e0] sm:$0xff] %vm5052_vm3, %v6873_v10  ;;  %5115 = vst.msk [vmem:[%s10551_s4 + $0x1e8] sm:$0xff] %vm5052_vm3, %v6873_v10  ;;  %v6620_v22 = vpop.f32.mrf.mxu1  ;;  %6783 = vmatmul.mubr.msk.bf16.gmra.mxu1 %vm213_vm2, %v3833_v44  ;;  %6852 = vmatprep.mubr.msk.bf16.mxu0 %vm213_vm2, %v8795_v59 }
 0x223   :  { %5117 = vst.msk [vmem:[%s10551_s4 + $0x1f8] sm:$0xff] %vm5052_vm3, %v6873_v10  ;;  %5118 = vst.msk [vmem:[%s10551_s4 + $0x200] sm:$0xff] %vm5052_vm3, %v6873_v10  ;;  %v3145_v41 = vadd.f32 %v6620_v22, %v8792_v2  ;;  %6786 = vmatprep.mubr.msk.bf16.mxu1 %vm213_vm2, %v3834_v58  ;;  %v5770_v2 = vld [vmem:[%s10550_s0 + $0x2d9] sm:$0xff] }
 0x224   :  { %5120 = vst.msk [vmem:[%s10551_s4 + $0x210] sm:$0xff] %vm5052_vm3, %v6873_v10  ;;  %5121 = vst.msk [vmem:[%s10551_s4 + $0x218] sm:$0xff] %vm5052_vm3, %v6873_v10  ;;  %v2924_v28 = vpop.f32.mrf.mxu1  ;;  %v3836_v44 = vpack.c.bf16 %v5770_v2, %v5769_v11 }
 0x225   :  { %5123 = vst.msk [vmem:[%s10551_s4 + $0x228] sm:$0xff] %vm5052_vm3, %v6873_v10  ;;  %5124 = vst.msk [vmem:[%s10551_s4 + $0x230] sm:$0xff] %vm5052_vm3, %v6873_v10  ;;  %v3143_v59 = vadd.f32 %v2924_v28, %v8797_v26  ;;  %v5773_v28 = vld [vmem:[%s10550_s0 + $0x301] sm:$0xff] }
 0x226   :  { %5126 = vst.msk [vmem:[%s10551_s4 + $0x240] sm:$0xff] %vm5052_vm3, %v6873_v10  ;;  %5127 = vst.msk [vmem:[%s10551_s4 + $0x248] sm:$0xff] %vm5052_vm3, %v6873_v10  ;;  %v6621_v62 = vpop.f32.mrf.mxu1 }
 0x227   :  { %5129 = vst.msk [vmem:[%s10551_s4 + $0x258] sm:$0xff] %vm5052_vm3, %v6873_v10  ;;  %5130 = vst.msk [vmem:[%s10551_s4 + $0x260] sm:$0xff] %vm5052_vm3, %v6873_v10 }
 0x228   :  { %5132 = vst.msk [vmem:[%s10551_s4 + $0x270] sm:$0xff] %vm5052_vm3, %v6873_v10  ;;  %5133 = vst.msk [vmem:[%s10551_s4 + $0x278] sm:$0xff] %vm5052_vm3, %v6873_v10 }
 0x229   :  { %5135 = vst.msk [vmem:[%s10551_s4 + $0x288] sm:$0xff] %vm5052_vm3, %v6873_v10  ;;  %5136 = vst.msk [vmem:[%s10551_s4 + $0x290] sm:$0xff] %vm5052_vm3, %v6873_v10 }
 0x22a   :  { %5138 = vst.msk [vmem:[%s10551_s4 + $0x2a0] sm:$0xff] %vm5052_vm3, %v6873_v10  ;;  %5139 = vst.msk [vmem:[%s10551_s4 + $0x2a8] sm:$0xff] %vm5052_vm3, %v6873_v10  ;;  %6787 = vmatmul.mubr.msk.bf16.gmra.mxu1 %vm213_vm2, %v3835_v1 }
 0x22b   :  { %5141 = vst.msk [vmem:[%s10551_s4 + $0x2b8] sm:$0xff] %vm5052_vm3, %v6873_v10  ;;  %5142 = vst.msk [vmem:[%s10551_s4 + $0x2c0] sm:$0xff] %vm5052_vm3, %v6873_v10  ;;  %6790 = vmatprep.mubr.msk.bf16.mxu1 %vm213_vm2, %v3836_v44 }
 0x22c   :  { %5144 = vst.msk [vmem:[%s10551_s4 + $0x2d0] sm:$0xff] %vm5052_vm3, %v6873_v10  ;;  %5145 = vst.msk [vmem:[%s10551_s4 + $0x2d8] sm:$0xff] %vm5052_vm3, %v6873_v10 }
 0x22d   :  { %5147 = vst.msk [vmem:[%s10551_s4 + $0x2e8] sm:$0xff] %vm5052_vm3, %v6873_v10  ;;  %5148 = vst.msk [vmem:[%s10551_s4 + $0x2f0] sm:$0xff] %vm5052_vm3, %v6873_v10 }
 0x22e   :  { %5150 = vst.msk [vmem:[%s10551_s4 + $0x300] sm:$0xff] %vm5052_vm3, %v6873_v10  ;;  %5151 = vst.msk [vmem:[%s10551_s4 + $0x308] sm:$0xff] %vm5052_vm3, %v6873_v10 }
 0x22f   :  { %5153 = vst.msk [vmem:[%s10551_s4 + $0x318] sm:$0xff] %vm5052_vm3, %v6873_v10  ;;  %5154 = vst.msk [vmem:[%s10551_s4 + $0x320] sm:$0xff] %vm5052_vm3, %v6873_v10 }
 0x230   :  { %5156 = vst.msk [vmem:[%s10551_s4 + $0x330] sm:$0xff] %vm5052_vm3, %v6873_v10  ;;  %5157 = vst.msk [vmem:[%s10551_s4 + $0x338] sm:$0xff] %vm5052_vm3, %v6873_v10 }
 0x231   :  { %5159 = vst.msk [vmem:[%s10551_s4 + $0x348] sm:$0xff] %vm5052_vm3, %v6873_v10  ;;  %5160 = vst.msk [vmem:[%s10551_s4 + $0x350] sm:$0xff] %vm5052_vm3, %v6873_v10 }
 0x232   :  { %5062 = vst.msk [vmem:[%s10551_s4 + $0x40] sm:$0x3] %vm5055_vm4, %v6873_v10  ;;  %5056 = vst.msk [vmem:[%s10551_s4 + $0x10] sm:$0x3] %vm5055_vm4, %v6873_v10 }
 0x233   :  { %5059 = vst.msk [vmem:[%s10551_s4 + $0x28] sm:$0x3] %vm5055_vm4, %v6873_v10  ;;  %5065 = vst.msk [vmem:[%s10551_s4 + $0x58] sm:$0x3] %vm5055_vm4, %v6873_v10 }
 0x234   :  { %5068 = vst.msk [vmem:[%s10551_s4 + $0x70] sm:$0x3] %vm5055_vm4, %v6873_v10  ;;  %5071 = vst.msk [vmem:[%s10551_s4 + $0x88] sm:$0x3] %vm5055_vm4, %v6873_v10 }
 0x235   :  { %5074 = vst.msk [vmem:[%s10551_s4 + $0xa0] sm:$0x3] %vm5055_vm4, %v6873_v10  ;;  %5077 = vst.msk [vmem:[%s10551_s4 + $0xb8] sm:$0x3] %vm5055_vm4, %v6873_v10 }
 0x236   :  { %5080 = vst.msk [vmem:[%s10551_s4 + $0xd0] sm:$0x3] %vm5055_vm4, %v6873_v10  ;;  %5083 = vst.msk [vmem:[%s10551_s4 + $0xe8] sm:$0x3] %vm5055_vm4, %v6873_v10 }
 0x237   :  { %5086 = vst.msk [vmem:[%s10551_s4 + $0x100] sm:$0x3] %vm5055_vm4, %v6873_v10  ;;  %5089 = vst.msk [vmem:[%s10551_s4 + $0x118] sm:$0x3] %vm5055_vm4, %v6873_v10 }
 0x238   :  { %5092 = vst.msk [vmem:[%s10551_s4 + $0x130] sm:$0x3] %vm5055_vm4, %v6873_v10  ;;  %5095 = vst.msk [vmem:[%s10551_s4 + $0x148] sm:$0x3] %vm5055_vm4, %v6873_v10 }
 0x239   :  { %5098 = vst.msk [vmem:[%s10551_s4 + $0x160] sm:$0x3] %vm5055_vm4, %v6873_v10  ;;  %5101 = vst.msk [vmem:[%s10551_s4 + $0x178] sm:$0x3] %vm5055_vm4, %v6873_v10 }
 0x23a   :  { %5104 = vst.msk [vmem:[%s10551_s4 + $0x190] sm:$0x3] %vm5055_vm4, %v6873_v10  ;;  %5107 = vst.msk [vmem:[%s10551_s4 + $0x1a8] sm:$0x3] %vm5055_vm4, %v6873_v10 }
 0x23b   :  { %5110 = vst.msk [vmem:[%s10551_s4 + $0x1c0] sm:$0x3] %vm5055_vm4, %v6873_v10  ;;  %5113 = vst.msk [vmem:[%s10551_s4 + $0x1d8] sm:$0x3] %vm5055_vm4, %v6873_v10 }
 0x23c   :  { %5116 = vst.msk [vmem:[%s10551_s4 + $0x1f0] sm:$0x3] %vm5055_vm4, %v6873_v10  ;;  %5119 = vst.msk [vmem:[%s10551_s4 + $0x208] sm:$0x3] %vm5055_vm4, %v6873_v10 }
 0x23d   :  { %5122 = vst.msk [vmem:[%s10551_s4 + $0x220] sm:$0x3] %vm5055_vm4, %v6873_v10  ;;  %5125 = vst.msk [vmem:[%s10551_s4 + $0x238] sm:$0x3] %vm5055_vm4, %v6873_v10 }
 0x23e   :  { %5128 = vst.msk [vmem:[%s10551_s4 + $0x250] sm:$0x3] %vm5055_vm4, %v6873_v10  ;;  %5131 = vst.msk [vmem:[%s10551_s4 + $0x268] sm:$0x3] %vm5055_vm4, %v6873_v10 }
 0x23f   :  { %5134 = vst.msk [vmem:[%s10551_s4 + $0x280] sm:$0x3] %vm5055_vm4, %v6873_v10  ;;  %5137 = vst.msk [vmem:[%s10551_s4 + $0x298] sm:$0x3] %vm5055_vm4, %v6873_v10 }
 0x240   :  { %5140 = vst.msk [vmem:[%s10551_s4 + $0x2b0] sm:$0x3] %vm5055_vm4, %v6873_v10  ;;  %5143 = vst.msk [vmem:[%s10551_s4 + $0x2c8] sm:$0x3] %vm5055_vm4, %v6873_v10 }
 0x241   :  { %5146 = vst.msk [vmem:[%s10551_s4 + $0x2e0] sm:$0x3] %vm5055_vm4, %v6873_v10  ;;  %5149 = vst.msk [vmem:[%s10551_s4 + $0x2f8] sm:$0x3] %vm5055_vm4, %v6873_v10 }
 0x242   :  { %5152 = vst.msk [vmem:[%s10551_s4 + $0x310] sm:$0x3] %vm5055_vm4, %v6873_v10  ;;  %5155 = vst.msk [vmem:[%s10551_s4 + $0x328] sm:$0x3] %vm5055_vm4, %v6873_v10 }
 0x243   :  { %5158 = vst.msk [vmem:[%s10551_s4 + $0x340] sm:$0x3] %vm5055_vm4, %v6873_v10  ;;  %5161 = vst.msk [vmem:[%s10551_s4 + $0x358] sm:$0x3] %vm5055_vm4, %v6873_v10  ;;  %v6683_v10 = vpop.f32.mrf.mxu0 }
 0x244   :  { %v9856_v38 = vadd.f32 %v6683_v10, %v3142_v18  ;;  %v3146_v10 = vadd.f32 %v6621_v62, %v8802_v35  ;;  %v2927_v18 = vpop.f32.mrf.mxu1  ;;  %v5771_v35 = vld [vmem:[%s10550_s0 + $0x2e9] sm:$0xff] }
 0x245   :  { %v3462_v32 = vpop.f32.mrf.mxu0 }
 0x246   :  { %v9862_v36 = vadd.f32 %v3462_v32, %v3140_v46  ;;  %v10772_v32 = vld [vmem:[#allocation51_spill] sm:$0xff]  ;;  %v6624_v46 = vpop.f32.mrf.mxu1 }
 0x247   :  { %v6686_v6 = vpop.f32.mrf.mxu0  ;;  %v3144_v17 = vadd.f32 %v2927_v18, %v10772_v32  ;;  %v3149_v42 = vadd.f32 %v6624_v46, %v8838_v23  ;;  %v5774_v23 = vld [vmem:[%s10550_s0 + $0x309] sm:$0xff] }
 0x248   :  { %v9880_v43 = vadd.f32 %v6686_v6, %v3145_v41  ;;  %v10773_v6 = vld [vmem:[#allocation50_spill] sm:$0xff]  ;;  %v5772_v41 = vld [vmem:[%s10550_s0 + $0x2f1] sm:$0xff]  ;;  %v2940_v31 = vpop.f32.mrf.mxu1  ;;  %v3838_v1 = vpack.c.bf16 %v5774_v23, %v5773_v28 }
 0x249   :  { %v3475_v14 = vpop.f32.mrf.mxu0  ;;  %6853 = vmatmul.mubr.msk.bf16.gmra.mxu0 %vm213_vm2, %v10773_v6 }
 0x24a   :  { %v9883_v50 = vadd.f32 %v3475_v14, %v3143_v59  ;;  %6856 = vmatprep.mubr.msk.bf16.mxu0 %vm213_vm2, %v8841_v56  ;;  %v3147_v56 = vadd.f32 %v2940_v31, %v8843_v54  ;;  %v6625_v11 = vpop.f32.mrf.mxu1  ;;  %v3837_v59 = vpack.c.bf16 %v5772_v41, %v5771_v35 }
 0x24b   :  { %v6687_v13 = vpop.f32.mrf.mxu0 }
 0x24c   :  { %v9886_v8 = vadd.f32 %v6687_v13, %v3146_v10  ;;  %v3150_v13 = vadd.f32 %v6625_v11, %v8848_v34  ;;  %v2943_v10 = vpop.f32.mrf.mxu1  ;;  %6791 = vmatmul.mubr.msk.bf16.gmra.mxu1 %vm213_vm2, %v3837_v59  ;;  %v5775_v34 = vld [vmem:[%s10550_s0 + $0x319] sm:$0xff] }
 0x24d   :  { %v3478_v58 = vpop.f32.mrf.mxu0  ;;  %6794 = vmatprep.mubr.msk.bf16.mxu1 %vm213_vm2, %v3838_v1 }
 0x24e   :  { %v9892_v26 = vadd.f32 %v3478_v58, %v3144_v17  ;;  %v3148_v58 = vadd.f32 %v2943_v10, %v8857_v5  ;;  %v6628_v32 = vpop.f32.mrf.mxu1  ;;  %v5776_v5 = vld [vmem:[%s10550_s0 + $0x321] sm:$0xff]  ;;  %v10774_v10 = vld [vmem:[#allocation52_spill] sm:$0xff] }
 0x24f   :  { %v6690_v22 = vpop.f32.mrf.mxu0  ;;  %v3153_v46 = vadd.f32 %v6628_v32, %v8878_v9  ;;  %v5778_v9 = vld [vmem:[%s10550_s0 + $0x339] sm:$0xff]  ;;  %v3839_v31 = vpack.c.bf16 %v5776_v5, %v5775_v34 }
 0x250   :  { %v9910_v14 = vadd.f32 %v6690_v22, %v3149_v42  ;;  %v2956_v22 = vpop.f32.mrf.mxu1  ;;  %v5877_v32 = vld [vmem:[%s10550_s0 + $0x352] sm:$0xff] }
 0x251   :  { %v3491_v61 = vpop.f32.mrf.mxu0  ;;  %6857 = vmatmul.mubr.msk.bf16.gmra.mxu0 %vm213_vm2, %v8846_v3  ;;  %v5777_v3 = vld [vmem:[%s10550_s0 + $0x331] sm:$0xff] }
 0x252   :  { %v9913_v62 = vadd.f32 %v3491_v61, %v3147_v56  ;;  %6860 = vmatprep.mubr.msk.bf16.mxu0 %vm213_vm2, %v8881_v37  ;;  %v3151_v37 = vadd.f32 %v2956_v22, %v8883_v57  ;;  %v6629_v35 = vpop.f32.mrf.mxu1  ;;  %v3840_v23 = vpack.c.bf16 %v5778_v9, %v5777_v3  ;;  %v5779_v57 = vld [vmem:[%s10550_s0 + $0x349] sm:$0xff] }
 0x253   :  { %v6691_v2 = vpop.f32.mrf.mxu0  ;;  %v3154_v28 = vadd.f32 %v6629_v35, %v8888_v29 }
 0x254   :  { %v9916_v18 = vadd.f32 %v6691_v2, %v3150_v13  ;;  %v2959_v56 = vpop.f32.mrf.mxu1  ;;  %6795 = vmatmul.mubr.msk.bf16.gmra.mxu1 %vm213_vm2, %v3839_v31 }
 0x255   :  { %v3494_v44 = vpop.f32.mrf.mxu0  ;;  %v3152_v59 = vadd.f32 %v2959_v56, %v8897_v20  ;;  %6798 = vmatprep.mubr.msk.bf16.mxu1 %vm213_vm2, %v3840_v23  ;;  %v5780_v20 = vld [vmem:[%s10550_s0 + $0x351] sm:$0xff] }
 0x256   :  { %v9922_v54 = vadd.f32 %v3494_v44, %v3148_v58  ;;  %v6632_v13 = vpop.f32.mrf.mxu1  ;;  %v5876_v58 = vld [vmem:[%s10550_s0 + $0x34a] sm:$0xff]  ;;  %v3841_v22 = vpack.c.bf16 %v5780_v20, %v5779_v57 }
 0x257   :  { %v6694_v17 = vpop.f32.mrf.mxu0  ;;  %v3157_v29 = vadd.f32 %v6632_v13, %v8919_v51 }
 0x258   :  { %v9940_v42 = vadd.f32 %v6694_v17, %v3153_v46  ;;  %v2972_v17 = vpop.f32.mrf.mxu1 }
 0x259   :  { %v3507_v6 = vpop.f32.mrf.mxu0  ;;  %6861 = vmatmul.mubr.msk.bf16.gmra.mxu0 %vm213_vm2, %v10774_v10  ;;  %v3155_v34 = vadd.f32 %v2972_v17, %v8924_v0  ;;  %v10776_v17 = vld [vmem:[#allocation54_spill] sm:$0xff] }
 0x25a   :  { %v9943_v61 = vadd.f32 %v3507_v6, %v3151_v37  ;;  %6864 = vmatprep.mubr.msk.bf16.mxu0 %vm213_vm2, %v8922_v7  ;;  %v6633_v5 = vpop.f32.mrf.mxu1  ;;  %v4391_v6 = vpack.c.bf16 %v5877_v32, %v5876_v58 }
 0x25b   :  { %v6695_v41 = vpop.f32.mrf.mxu0  ;;  %v3158_v9 = vadd.f32 %v6633_v5, %v8927_v53 }
 0x25c   :  { %v9946_v2 = vadd.f32 %v6695_v41, %v3154_v28  ;;  %v2975_v37 = vpop.f32.mrf.mxu1  ;;  %6799 = vmatmul.mubr.msk.bf16.gmra.mxu1 %vm213_vm2, %v3841_v22 }
 0x25d   :  { %v3510_v11 = vpop.f32.mrf.mxu0  ;;  %v3156_v31 = vadd.f32 %v2975_v37, %v8933_v60  ;;  %v10775_v60 = vld [vmem:[#allocation53_spill] sm:$0xff]  ;;  %v10778_v37 = vld [vmem:[#allocation2_spill] sm:$0xff] }
 0x25e   :  { %v9955_v44 = vadd.f32 %v3510_v11, %v3152_v59  ;;  %v6636_v28 = vpop.f32.mrf.mxu1 }
 0x25f   :  { %v6698_v1 = vpop.f32.mrf.mxu0  ;;  %v3161_v56 = vadd.f32 %v6636_v28, %v8951_v63 }
 0x260   :  { %v9970_v51 = vadd.f32 %v6698_v1, %v3157_v29  ;;  %v2988_v11 = vpop.f32.mrf.mxu1 }
 0x261   :  { %v3523_v46 = vpop.f32.mrf.mxu0  ;;  %6865 = vmatmul.mubr.msk.bf16.gmra.mxu0 %vm213_vm2, %v4391_v6  ;;  %v3159_v53 = vadd.f32 %v2988_v11, %v8954_v19 }
 0x262   :  { %v9973_v3 = vadd.f32 %v3523_v46, %v3155_v34  ;;  %v6637_v1 = vpop.f32.mrf.mxu1 }
 0x263   :  { %v6699_v7 = vpop.f32.mrf.mxu0  ;;  %v3162_v29 = vadd.f32 %v6637_v1, %v10775_v60 }
 0x264   :  { %v9976_v41 = vadd.f32 %v6699_v7, %v3158_v9  ;;  %v2991_v20 = vpop.f32.mrf.mxu1  ;;  %v10777_v7 = vld [vmem:[#allocation36_spill] sm:$0xff] }
 0x265   :  { %v3526_v35 = vpop.f32.mrf.mxu0  ;;  %v3160_v46 = vadd.f32 %v2991_v20, %v10776_v17  ;;  %v10781_v17 = vld [vmem:[#allocation5_spill] sm:$0xff] }
 0x266   :  { %v9981_v0 = vadd.f32 %v3526_v35, %v3156_v31  ;;  %v6640_v34 = vpop.f32.mrf.mxu1 }
 0x267   :  { %v6702_v23 = vpop.f32.mrf.mxu0  ;;  %v3165_v22 = vadd.f32 %v6640_v34, %v10777_v7 }
 0x268   :  { %v9984_v13 = vadd.f32 %v6702_v23, %v3161_v56  ;;  %v3004_v6 = vpop.f32.mrf.mxu1  ;;  %v10779_v56 = vld [vmem:[#allocation7_spill] sm:$0xff] }
 0x269   :  { %v3539_v59 = vpop.f32.mrf.mxu0  ;;  %v3163_v35 = vadd.f32 %v3004_v6, %v10778_v37 }
 0x26a   :  { %v9987_v57 = vadd.f32 %v3539_v59, %v3159_v53  ;;  %v6641_v31 = vpop.f32.mrf.mxu1 }
 0x26b   :  { %v6703_v10 = vpop.f32.mrf.mxu0  ;;  %v3166_v11 = vadd.f32 %v6641_v31, %v10779_v56  ;;  %v10785_v31 = vld [vmem:[#allocation6_spill] sm:$0xff] }
 0x26c   :  { %v9990_v32 = vadd.f32 %v6703_v10, %v3162_v29  ;;  %v3007_v59 = vpop.f32.mrf.mxu1  ;;  %v10780_v10 = vld [vmem:[#allocation3_spill] sm:$0xff] }
 0x26d   :  { %v3542_v58 = vpop.f32.mrf.mxu0  ;;  %v3164_v60 = vadd.f32 %v3007_v59, %v10780_v10 }
 0x26e   :  { %v9993_v5 = vadd.f32 %v3542_v58, %v3160_v46  ;;  %v6644_v29 = vpop.f32.mrf.mxu1 }
 0x26f   :  { %v6706_v63 = vpop.f32.mrf.mxu0  ;;  %v3169_v46 = vadd.f32 %v6644_v29, %v10781_v17 }
 0x270   :  { %v9996_v9 = vadd.f32 %v6706_v63, %v3165_v22  ;;  %v3020_v34 = vpop.f32.mrf.mxu1  ;;  %v10783_v22 = vld [vmem:[#allocation4_spill] sm:$0xff] }
 0x271   :  { %v3555_v19 = vpop.f32.mrf.mxu0  ;;  %v3167_v6 = vadd.f32 %v3020_v34, %v10783_v22 }
 0x272   :  { %v9999_v23 = vadd.f32 %v3555_v19, %v3163_v35  ;;  %v6645_v19 = vpop.f32.mrf.mxu1 }
 0x273   :  { %v6707_v28 = vpop.f32.mrf.mxu0 }
 0x274   :  { %v10002_v1 = vadd.f32 %v6707_v28, %v3166_v11  ;;  %v3170_v28 = vadd.f32 %v6645_v19, %v10785_v31  ;;  %v3023_v56 = vpop.f32.mrf.mxu1 }
 0x275   :  { %v3558_v53 = vpop.f32.mrf.mxu0 }
 0x276   :  { %v10005_v58 = vadd.f32 %v3558_v53, %v3164_v60  ;;  %v10787_v53 = vld [vmem:[#allocation8_spill] sm:$0xff]  ;;  %v6648_v60 = vpop.f32.mrf.mxu1 }
 0x277   :  { %v6710_v20 = vpop.f32.mrf.mxu0  ;;  %v3168_v10 = vadd.f32 %v3023_v56, %v10787_v53 }
 0x278   :  { %v10008_v7 = vadd.f32 %v6710_v20, %v3169_v46  ;;  %v10789_v20 = vld [vmem:[#allocation10_spill] sm:$0xff] }
 0x279   :  { %v3571_v63 = vpop.f32.mrf.mxu0  ;;  %v3173_v46 = vadd.f32 %v6648_v60, %v10789_v20 }
 0x27a   :  { %10782 = vst [vmem:[#allocation21_spill] sm:$0xff] %v10008_v7  ;;  %v10011_v35 = vadd.f32 %v3571_v63, %v3167_v6  ;;  %v3036_v7 = vpop.f32.mrf.mxu1  ;;  %v10791_v63 = vld [vmem:[#allocation11_spill] sm:$0xff] }
 0x27b   :  { %v6711_v37 = vpop.f32.mrf.mxu0  ;;  %v3171_v6 = vadd.f32 %v3036_v7, %v10791_v63 }
 0x27c   :  { %10784 = vst [vmem:[#allocation42_spill] sm:$0xff] %v10011_v35  ;;  %v10014_v59 = vadd.f32 %v6711_v37, %v3170_v28  ;;  %v6649_v35 = vpop.f32.mrf.mxu1  ;;  %v10793_v37 = vld [vmem:[#allocation9_spill] sm:$0xff] }
 0x27d   :  { %v3574_v11 = vpop.f32.mrf.mxu0  ;;  %v3174_v28 = vadd.f32 %v6649_v35, %v10793_v37 }
 0x27e   :  { %10786 = vst [vmem:[#allocation43_spill] sm:$0xff] %v10014_v59  ;;  %v10017_v17 = vadd.f32 %v3574_v11, %v3168_v10  ;;  %v3039_v59 = vpop.f32.mrf.mxu1  ;;  %v10795_v11 = vld [vmem:[#allocation12_spill] sm:$0xff] }
 0x27f   :  { %v6714_v29 = vpop.f32.mrf.mxu0  ;;  %v3172_v10 = vadd.f32 %v3039_v59, %v10795_v11 }
 0x280   :  { %10788 = vst [vmem:[#allocation23_spill] sm:$0xff] %v10017_v17  ;;  %v10020_v22 = vadd.f32 %v6714_v29, %v3173_v46  ;;  %v6652_v17 = vpop.f32.mrf.mxu1  ;;  %v10797_v29 = vld [vmem:[#allocation13_spill] sm:$0xff] }
 0x281   :  { %v3587_v34 = vpop.f32.mrf.mxu0  ;;  %v3177_v46 = vadd.f32 %v6652_v17, %v10797_v29 }
 0x282   :  { %10790 = vst [vmem:[#allocation22_spill] sm:$0xff] %v10020_v22  ;;  %v10023_v31 = vadd.f32 %v3587_v34, %v3171_v6  ;;  %v3052_v22 = vpop.f32.mrf.mxu1  ;;  %v10799_v34 = vld [vmem:[#allocation38_spill] sm:$0xff] }
 0x283   :  { %v6715_v19 = vpop.f32.mrf.mxu0  ;;  %v3175_v6 = vadd.f32 %v3052_v22, %v10799_v34 }
 0x284   :  { %10792 = vst [vmem:[#allocation24_spill] sm:$0xff] %v10023_v31  ;;  %v10026_v53 = vadd.f32 %v6715_v19, %v3174_v28  ;;  %v6653_v31 = vpop.f32.mrf.mxu1  ;;  %v10801_v19 = vld [vmem:[#allocation39_spill] sm:$0xff] }
 0x285   :  { %v3590_v56 = vpop.f32.mrf.mxu0  ;;  %v3178_v28 = vadd.f32 %v6653_v31, %v10801_v19 }
 0x286   :  { %10794 = vst [vmem:[#allocation25_spill] sm:$0xff] %v10026_v53  ;;  %v10029_v20 = vadd.f32 %v3590_v56, %v3172_v10  ;;  %v3055_v53 = vpop.f32.mrf.mxu1  ;;  %v10803_v56 = vld [vmem:[#allocation15_spill] sm:$0xff] }
 0x287   :  { %v6718_v60 = vpop.f32.mrf.mxu0  ;;  %v3176_v10 = vadd.f32 %v3055_v53, %v10803_v56 }
 0x288   :  { %10796 = vst [vmem:[#allocation44_spill] sm:$0xff] %v10029_v20  ;;  %v10032_v63 = vadd.f32 %v6718_v60, %v3177_v46  ;;  %v6656_v20 = vpop.f32.mrf.mxu1  ;;  %v10805_v60 = vld [vmem:[#allocation14_spill] sm:$0xff] }
 0x289   :  { %v3603_v7 = vpop.f32.mrf.mxu0  ;;  %v3181_v46 = vadd.f32 %v6656_v20, %v10805_v60 }
 0x28a   :  { %10798 = vst [vmem:[#allocation45_spill] sm:$0xff] %v10032_v63  ;;  %v10035_v37 = vadd.f32 %v3603_v7, %v3175_v6  ;;  %v3068_v63 = vpop.f32.mrf.mxu1  ;;  %v10807_v7 = vld [vmem:[#allocation16_spill] sm:$0xff] }
 0x28b   :  { %v6719_v35 = vpop.f32.mrf.mxu0  ;;  %v3179_v6 = vadd.f32 %v3068_v63, %v10807_v7 }
 0x28c   :  { %10800 = vst [vmem:[#allocation27_spill] sm:$0xff] %v10035_v37  ;;  %v10038_v11 = vadd.f32 %v6719_v35, %v3178_v28  ;;  %v6657_v37 = vpop.f32.mrf.mxu1  ;;  %v10809_v35 = vld [vmem:[#allocation17_spill] sm:$0xff] }
 0x28d   :  { %v3606_v59 = vpop.f32.mrf.mxu0  ;;  %v3182_v28 = vadd.f32 %v6657_v37, %v10809_v35 }
 0x28e   :  { %10802 = vst [vmem:[#allocation26_spill] sm:$0xff] %v10038_v11  ;;  %v10041_v29 = vadd.f32 %v3606_v59, %v3176_v10  ;;  %v3071_v11 = vpop.f32.mrf.mxu1  ;;  %v10811_v59 = vld [vmem:[#allocation40_spill] sm:$0xff] }
 0x28f   :  { %v6722_v17 = vpop.f32.mrf.mxu0  ;;  %v3180_v10 = vadd.f32 %v3071_v11, %v10811_v59 }
 0x290   :  { %10804 = vst [vmem:[#allocation28_spill] sm:$0xff] %v10041_v29  ;;  %v10044_v34 = vadd.f32 %v6722_v17, %v3181_v46  ;;  %v6660_v29 = vpop.f32.mrf.mxu1  ;;  %v10813_v17 = vld [vmem:[#allocation41_spill] sm:$0xff] }
 0x291   :  { %v3619_v22 = vpop.f32.mrf.mxu0  ;;  %v3185_v46 = vadd.f32 %v6660_v29, %v10813_v17 }
 0x292   :  { %10806 = vst [vmem:[#allocation31_spill] sm:$0xff] %v10044_v34  ;;  %v10047_v19 = vadd.f32 %v3619_v22, %v3179_v6  ;;  %v3084_v34 = vpop.f32.mrf.mxu1  ;;  %v10814_v22 = vld [vmem:[#allocation19_spill] sm:$0xff] }
 0x293   :  { %v6723_v31 = vpop.f32.mrf.mxu0  ;;  %v3183_v6 = vadd.f32 %v3084_v34, %v10814_v22 }
 0x294   :  { %10808 = vst [vmem:[#allocation29_spill] sm:$0xff] %v10047_v19  ;;  %v10050_v56 = vadd.f32 %v6723_v31, %v3182_v28  ;;  %v6661_v19 = vpop.f32.mrf.mxu1  ;;  %v10815_v31 = vld [vmem:[#allocation18_spill] sm:$0xff] }
 0x295   :  { %v3622_v53 = vpop.f32.mrf.mxu0  ;;  %v3186_v28 = vadd.f32 %v6661_v19, %v10815_v31 }
 0x296   :  { %10810 = vst [vmem:[#allocation30_spill] sm:$0xff] %v10050_v56  ;;  %v10053_v60 = vadd.f32 %v3622_v53, %v3180_v10  ;;  %v3087_v56 = vpop.f32.mrf.mxu1  ;;  %v10816_v53 = vld [vmem:[#allocation20_spill] sm:$0xff] }
 0x297   :  { %v6726_v20 = vpop.f32.mrf.mxu0  ;;  %v3184_v10 = vadd.f32 %v3087_v56, %v10816_v53 }
 0x298   :  { %10812 = vst [vmem:[#allocation32_spill] sm:$0xff] %v10053_v60  ;;  %v10056_v7 = vadd.f32 %v6726_v20, %v3185_v46  ;;  %v6664_v60 = vpop.f32.mrf.mxu1 }
 0x299   :  { %v3635_v63 = vpop.f32.mrf.mxu0  ;;  %v3189_v20 = vadd.f32 %v6664_v60, %v9167_v40 }
 0x29a   :  { %v10059_v35 = vadd.f32 %v3635_v63, %v3183_v6  ;;  %v3100_v46 = vpop.f32.mrf.mxu1 }
 0x29b   :  { %v6727_v37 = vpop.f32.mrf.mxu0  ;;  %v3187_v63 = vadd.f32 %v3100_v46, %v9170_v39 }
 0x29c   :  { %v10062_v59 = vadd.f32 %v6727_v37, %v3186_v28  ;;  %v6665_v6 = vpop.f32.mrf.mxu1 }
 0x29d   :  { %v3638_v11 = vpop.f32.mrf.mxu0  ;;  %v3190_v37 = vadd.f32 %v6665_v6, %v9173_v25 }
 0x29e   :  { %v10065_v17 = vadd.f32 %v3638_v11, %v3184_v10  ;;  %v3103_v28 = vpop.f32.mrf.mxu1 }
 0x29f   :  { %v6730_v29 = vpop.f32.mrf.mxu0  ;;  %v3188_v11 = vadd.f32 %v3103_v28, %v9178_v48 }
 0x2a0   :  { %v10068_v22 = vadd.f32 %v6730_v29, %v3189_v20  ;;  %v6668_v10 = vpop.f32.mrf.mxu1 }
 0x2a1   :  { %v3651_v34 = vpop.f32.mrf.mxu0  ;;  %v3193_v29 = vadd.f32 %v6668_v10, %v9196_v24 }
 0x2a2   :  { %v10071_v31 = vadd.f32 %v3651_v34, %v3187_v63  ;;  %v3116_v20 = vpop.f32.mrf.mxu1 }
 0x2a3   :  { %v6731_v19 = vpop.f32.mrf.mxu0  ;;  %v3191_v34 = vadd.f32 %v3116_v20, %v9199_v4  ;;  %v10095_v4 = vld [vmem:[%s10552_s2] ss:$0 sm:$0xff] }
 0x2a4   :  { %v10074_v53 = vadd.f32 %v6731_v19, %v3190_v37  ;;  %v6669_v63 = vpop.f32.mrf.mxu1 }
 0x2a5   :  { %v3654_v56 = vpop.f32.mrf.mxu0  ;;  %v3194_v19 = vadd.f32 %v6669_v63, %v9202_v21 }
 0x2a6   :  { %v10077_v60 = vadd.f32 %v3654_v56, %v3188_v11  ;;  %v3119_v37 = vpop.f32.mrf.mxu1 }
 0x2a7   :  { %v6734_v40 = vpop.f32.mrf.mxu0  ;;  %v3192_v56 = vadd.f32 %v3119_v37, %v9208_v30  ;;  %v10101_v30 = vld [vmem:[%s10553_s3] ss:$0 sm:$0xff] }
 0x2a8   :  { %v10080_v46 = vadd.f32 %v6734_v40, %v3193_v29  ;;  %v6740_v11 = vpop.f32.mrf.mxu1 }
 0x2a9   :  { %v3667_v39 = vpop.f32.mrf.mxu0  ;;  %v4234_v40 = vadd.f32 %v6740_v11, %v9226_v12 }
 0x2aa   :  { %v10083_v6 = vadd.f32 %v3667_v39, %v3191_v34  ;;  %v3977_v29 = vpop.f32.mrf.mxu1 }
 0x2ab   :  { %v6735_v25 = vpop.f32.mrf.mxu0  ;;  %v4232_v39 = vadd.f32 %v3977_v29, %v9229_v47 }
 0x2ac   :  { %10817 = vst [vmem:[#allocation34_spill] sm:$0xff] %v10083_v6  ;;  %v10086_v28 = vadd.f32 %v6735_v25, %v3194_v19  ;;  %v6741_v34 = vpop.f32.mrf.mxu1 }
 0x2ad   :  { %v3670_v48 = vpop.f32.mrf.mxu0  ;;  %v4235_v19 = vadd.f32 %v6741_v34, %v9232_v45 }
 0x2ae   :  { %10818 = vst [vmem:[#allocation33_spill] sm:$0xff] %v10086_v28  ;;  %v10089_v10 = vadd.f32 %v3670_v48, %v3192_v56  ;;  %v3980_v37 = vpop.f32.mrf.mxu1 }
 0x2af   :  { %v6806_v24 = vpop.f32.mrf.mxu0  ;;  %v4233_v47 = vadd.f32 %v3980_v37, %v9240_v49 }
 0x2b0   :  { %10819 = vst [vmem:[#allocation37_spill] sm:$0xff] %v10089_v10  ;;  %v4784_v21 = vadd.f32 %v6806_v24, %v4234_v40  ;;  %v6744_v40 = vpop.f32.mrf.mxu1 }
 0x2b1   :  { %v4527_v20 = vpop.f32.mrf.mxu0 }
 0x2b2   :  { %v4855_v25 = vmul.f32 %v10095_v4, %v4784_v21  ;;  %v4782_v12 = vadd.f32 %v4527_v20, %v4232_v39  ;;  %v4238_v20 = vadd.f32 %v6744_v40, %v9634_v15  ;;  %v3993_v45 = vpop.f32.mrf.mxu1 }
 0x2b3   :  { %v6807_v63 = vpop.f32.mrf.mxu0 }
 0x2b4   :  { %v4926_v56 = vadd.f32 %v10101_v30, %v4855_v25  ;;  %v4853_v11 = vmul.f32 %v10095_v4, %v4782_v12  ;;  %v4785_v24 = vadd.f32 %v6807_v63, %v4235_v19  ;;  %v4236_v25 = vadd.f32 %v3993_v45, %v9641_v27  ;;  %v6745_v19 = vpop.f32.mrf.mxu1 }
 0x2b5   :  { %v4530_v48 = vpop.f32.mrf.mxu0 }
 0x2b6   :  { %v4990_v10 = vmax.f32 %v4926_v56, 0.0  ;;  %v4924_v28 = vadd.f32 %v10101_v30, %v4853_v11  ;;  %v4856_v6 = vmul.f32 %v10095_v4, %v4785_v24  ;;  %v4783_v21 = vadd.f32 %v4530_v48, %v4233_v47 }
 0x2b7   :  { %v6810_v29 = vpop.f32.mrf.mxu0 }
 0x2b8   :  { %5915 = vst.msk [vmem:[%s10551_s4 + $0x31] sm:$0xff] %vm5052_vm3, %v4990_v10  ;;  %v4988_v34 = vmax.f32 %v4924_v28, 0.0  ;;  %v4927_v49 = vadd.f32 %v10101_v30, %v4856_v6  ;;  %v4854_v63 = vmul.f32 %v10095_v4, %v4783_v21  ;;  %v4788_v12 = vadd.f32 %v6810_v29, %v4238_v20  ;;  %v3996_v10 = vpop.f32.mrf.mxu1 }
 0x2b9   :  { %v4543_v39 = vpop.f32.mrf.mxu0  ;;  %v4239_v28 = vadd.f32 %v6745_v19, %v9826_v55  ;;  %v4237_v40 = vadd.f32 %v3996_v10, %v9832_v52 }
 0x2ba   :  { %5913 = vst.msk [vmem:[%s10551_s4 + $0x19] sm:$0xff] %vm5052_vm3, %v4988_v34  ;;  %v4991_v15 = vmax.f32 %v4927_v49, 0.0  ;;  %v4925_v48 = vadd.f32 %v10101_v30, %v4854_v63  ;;  %v4786_v56 = vadd.f32 %v4543_v39, %v4236_v25  ;;  %v4859_v6 = vmul.f32 %v10095_v4, %v4788_v12  ;;  %v6748_v21 = vpop.f32.mrf.mxu1 }
 0x2bb   :  { %v6811_v37 = vpop.f32.mrf.mxu0  ;;  %v4242_v34 = vadd.f32 %v6748_v21, %v9850_v33 }
 0x2bc   :  { %5916 = vst.msk [vmem:[%s10551_s4 + $0x39] sm:$0xff] %vm5052_vm3, %v4991_v15  ;;  %v4989_v27 = vmax.f32 %v4925_v48, 0.0  ;;  %v4857_v24 = vmul.f32 %v10095_v4, %v4786_v56  ;;  %v4789_v47 = vadd.f32 %v6811_v37, %v4239_v28  ;;  %v4930_v29 = vadd.f32 %v10101_v30, %v4859_v6  ;;  %v4009_v63 = vpop.f32.mrf.mxu1 }
 0x2bd   :  { %v4546_v11 = vpop.f32.mrf.mxu0  ;;  %v4240_v15 = vadd.f32 %v4009_v63, %v9853_v16 }
 0x2be   :  { %5914 = vst.msk [vmem:[%s10551_s4 + $0x21] sm:$0xff] %vm5052_vm3, %v4989_v27  ;;  %v4928_v55 = vadd.f32 %v10101_v30, %v4857_v24  ;;  %v4860_v45 = vmul.f32 %v10095_v4, %v4789_v47  ;;  %v4787_v39 = vadd.f32 %v4546_v11, %v4237_v40  ;;  %v4994_v49 = vmax.f32 %v4930_v29, 0.0  ;;  %v6749_v48 = vpop.f32.mrf.mxu1 }
 0x2bf   :  { %v6814_v20 = vpop.f32.mrf.mxu0  ;;  %v4243_v10 = vadd.f32 %v6749_v48, %v9856_v38 }
 0x2c0   :  { %v4992_v52 = vmax.f32 %v4928_v55, 0.0  ;;  %v4931_v12 = vadd.f32 %v10101_v30, %v4860_v45  ;;  %v4858_v19 = vmul.f32 %v10095_v4, %v4787_v39  ;;  %v4792_v37 = vadd.f32 %v6814_v20, %v4242_v34  ;;  %5919 = vst.msk [vmem:[%s10551_s4 + $0x61] sm:$0xff] %vm5052_vm3, %v4994_v49  ;;  %v4012_v27 = vpop.f32.mrf.mxu1 }
 0x2c1   :  { %v4559_v25 = vpop.f32.mrf.mxu0  ;;  %v4241_v29 = vadd.f32 %v4012_v27, %v9862_v36 }
 0x2c2   :  { %5917 = vst.msk [vmem:[%s10551_s4 + $0x49] sm:$0xff] %vm5052_vm3, %v4992_v52  ;;  %v4995_v33 = vmax.f32 %v4931_v12, 0.0  ;;  %v4929_v28 = vadd.f32 %v10101_v30, %v4858_v19  ;;  %v4863_v6 = vmul.f32 %v10095_v4, %v4792_v37  ;;  %v4790_v11 = vadd.f32 %v4559_v25, %v4240_v15  ;;  %v6752_v20 = vpop.f32.mrf.mxu1 }
 0x2c3   :  { %v6815_v56 = vpop.f32.mrf.mxu0  ;;  %v4246_v34 = vadd.f32 %v6752_v20, %v9880_v43 }
 0x2c4   :  { %5920 = vst.msk [vmem:[%s10551_s4 + $0x69] sm:$0xff] %vm5052_vm3, %v4995_v33  ;;  %v4993_v16 = vmax.f32 %v4929_v28, 0.0  ;;  %v4934_v47 = vadd.f32 %v10101_v30, %v4863_v6  ;;  %v4793_v40 = vadd.f32 %v6815_v56, %v4243_v10  ;;  %v4861_v21 = vmul.f32 %v10095_v4, %v4790_v11  ;;  %v4025_v63 = vpop.f32.mrf.mxu1 }
 0x2c5   :  { %v4562_v24 = vpop.f32.mrf.mxu0  ;;  %v4244_v19 = vadd.f32 %v4025_v63, %v9883_v50 }
 0x2c6   :  { %5918 = vst.msk [vmem:[%s10551_s4 + $0x51] sm:$0xff] %vm5052_vm3, %v4993_v16  ;;  %v4998_v38 = vmax.f32 %v4934_v47, 0.0  ;;  %v4864_v45 = vmul.f32 %v10095_v4, %v4793_v40  ;;  %v4791_v39 = vadd.f32 %v4562_v24, %v4241_v29  ;;  %v4932_v49 = vadd.f32 %v10101_v30, %v4861_v21  ;;  %v6753_v15 = vpop.f32.mrf.mxu1 }
 0x2c7   :  { %v6818_v55 = vpop.f32.mrf.mxu0  ;;  %v4247_v6 = vadd.f32 %v6753_v15, %v9886_v8 }
 0x2c8   :  { %5923 = vst.msk [vmem:[%s10551_s4 + $0x91] sm:$0xff] %vm5052_vm3, %v4998_v38  ;;  %v4935_v36 = vadd.f32 %v10101_v30, %v4864_v45  ;;  %v4862_v52 = vmul.f32 %v10095_v4, %v4791_v39  ;;  %v4796_v12 = vadd.f32 %v6818_v55, %v4246_v34  ;;  %v4996_v37 = vmax.f32 %v4932_v49, 0.0  ;;  %v4028_v10 = vpop.f32.mrf.mxu1 }
 0x2c9   :  { %v4575_v25 = vpop.f32.mrf.mxu0  ;;  %v4245_v16 = vadd.f32 %v4028_v10, %v9892_v26 }
 0x2ca   :  { %v4999_v43 = vmax.f32 %v4935_v36, 0.0  ;;  %v4933_v56 = vadd.f32 %v10101_v30, %v4862_v52  ;;  %v4867_v33 = vmul.f32 %v10095_v4, %v4796_v12  ;;  %v4794_v28 = vadd.f32 %v4575_v25, %v4244_v19  ;;  %5921 = vst.msk [vmem:[%s10551_s4 + $0x79] sm:$0xff] %vm5052_vm3, %v4996_v37  ;;  %v6756_v40 = vpop.f32.mrf.mxu1 }
 0x2cb   :  { %v6819_v48 = vpop.f32.mrf.mxu0  ;;  %v4250_v55 = vadd.f32 %v6756_v40, %v9910_v14 }
 0x2cc   :  { %5924 = vst.msk [vmem:[%s10551_s4 + $0x99] sm:$0xff] %vm5052_vm3, %v4999_v43  ;;  %v4997_v50 = vmax.f32 %v4933_v56, 0.0  ;;  %v4938_v27 = vadd.f32 %v10101_v30, %v4867_v33  ;;  %v4865_v24 = vmul.f32 %v10095_v4, %v4794_v28  ;;  %v4797_v47 = vadd.f32 %v6819_v48, %v4247_v6  ;;  %v4041_v45 = vpop.f32.mrf.mxu1 }
 0x2cd   :  { %v4578_v11 = vpop.f32.mrf.mxu0  ;;  %v4248_v63 = vadd.f32 %v4041_v45, %v9913_v62 }
 0x2ce   :  { %5922 = vst.msk [vmem:[%s10551_s4 + $0x81] sm:$0xff] %vm5052_vm3, %v4997_v50  ;;  %v5002_v8 = vmax.f32 %v4938_v27, 0.0  ;;  %v4936_v21 = vadd.f32 %v10101_v30, %v4865_v24  ;;  %v4795_v20 = vadd.f32 %v4578_v11, %v4245_v16  ;;  %v4868_v38 = vmul.f32 %v10095_v4, %v4797_v47  ;;  %v6757_v36 = vpop.f32.mrf.mxu1 }
 0x2cf   :  { %v6822_v29 = vpop.f32.mrf.mxu0  ;;  %v4251_v37 = vadd.f32 %v6757_v36, %v9916_v18 }
 0x2d0   :  { %5927 = vst.msk [vmem:[%s10551_s4 + $0xc1] sm:$0xff] %vm5052_vm3, %v5002_v8  ;;  %v5000_v26 = vmax.f32 %v4936_v21, 0.0  ;;  %v4866_v34 = vmul.f32 %v10095_v4, %v4795_v20  ;;  %v4800_v49 = vadd.f32 %v6822_v29, %v4250_v55  ;;  %v4939_v25 = vadd.f32 %v10101_v30, %v4868_v38  ;;  %v4044_v48 = vpop.f32.mrf.mxu1 }
 0x2d1   :  { %v4591_v39 = vpop.f32.mrf.mxu0  ;;  %v4249_v6 = vadd.f32 %v4044_v48, %v9922_v54 }
 0x2d2   :  { %5925 = vst.msk [vmem:[%s10551_s4 + $0xa9] sm:$0xff] %vm5052_vm3, %v5000_v26  ;;  %v4937_v14 = vadd.f32 %v10101_v30, %v4866_v34  ;;  %v4871_v12 = vmul.f32 %v10095_v4, %v4800_v49  ;;  %v4798_v19 = vadd.f32 %v4591_v39, %v4248_v63  ;;  %v5003_v15 = vmax.f32 %v4939_v25, 0.0  ;;  %v6760_v10 = vpop.f32.mrf.mxu1 }
 0x2d3   :  { %v6823_v52 = vpop.f32.mrf.mxu0  ;;  %v4254_v24 = vadd.f32 %v6760_v10, %v9940_v42 }
 0x2d4   :  { %v5001_v62 = vmax.f32 %v4937_v14, 0.0  ;;  %v4942_v56 = vadd.f32 %v10101_v30, %v4871_v12  ;;  %v4869_v33 = vmul.f32 %v10095_v4, %v4798_v19  ;;  %v4801_v28 = vadd.f32 %v6823_v52, %v4251_v37  ;;  %5928 = vst.msk [vmem:[%s10551_s4 + $0xc9] sm:$0xff] %vm5052_vm3, %v5003_v15  ;;  %v4057_v47 = vpop.f32.mrf.mxu1 }
 0x2d5   :  { %v4594_v43 = vpop.f32.mrf.mxu0  ;;  %v4252_v21 = vadd.f32 %v4057_v47, %v9943_v61 }
 0x2d6   :  { %5926 = vst.msk [vmem:[%s10551_s4 + $0xb1] sm:$0xff] %vm5052_vm3, %v5001_v62  ;;  %v5006_v18 = vmax.f32 %v4942_v56, 0.0  ;;  %v4940_v50 = vadd.f32 %v10101_v30, %v4869_v33  ;;  %v4872_v27 = vmul.f32 %v10095_v4, %v4801_v28  ;;  %v4799_v16 = vadd.f32 %v4594_v43, %v4249_v6  ;;  %v6761_v55 = vpop.f32.mrf.mxu1 }
 0x2d7   :  { %v6826_v11 = vpop.f32.mrf.mxu0  ;;  %v4255_v26 = vadd.f32 %v6761_v55, %v9946_v2 }
 0x2d8   :  { %5931 = vst.msk [vmem:[%s10551_s4 + $0xf1] sm:$0xff] %vm5052_vm3, %v5006_v18  ;;  %v5004_v54 = vmax.f32 %v4940_v50, 0.0  ;;  %v4943_v29 = vadd.f32 %v10101_v30, %v4872_v27  ;;  %v4804_v8 = vadd.f32 %v6826_v11, %v4254_v24  ;;  %v4870_v20 = vmul.f32 %v10095_v4, %v4799_v16  ;;  %v4060_v49 = vpop.f32.mrf.mxu1 }
 0x2d9   :  { %v4607_v40 = vpop.f32.mrf.mxu0  ;;  %v4253_v52 = vadd.f32 %v4060_v49, %v9955_v44 }
 0x2da   :  { %5929 = vst.msk [vmem:[%s10551_s4 + $0xd9] sm:$0xff] %vm5052_vm3, %v5004_v54  ;;  %v5007_v42 = vmax.f32 %v4943_v29, 0.0  ;;  %v4875_v45 = vmul.f32 %v10095_v4, %v4804_v8  ;;  %v4802_v39 = vadd.f32 %v4607_v40, %v4252_v21  ;;  %v4941_v34 = vadd.f32 %v10101_v30, %v4870_v20  ;;  %v6764_v12 = vpop.f32.mrf.mxu1 }
 0x2db   :  { %v6827_v38 = vpop.f32.mrf.mxu0  ;;  %v4258_v43 = vadd.f32 %v6764_v12, %v9970_v51 }
 0x2dc   :  { %5932 = vst.msk [vmem:[%s10551_s4 + $0xf9] sm:$0xff] %vm5052_vm3, %v5007_v42  ;;  %v4946_v61 = vadd.f32 %v10101_v30, %v4875_v45  ;;  %v4873_v25 = vmul.f32 %v10095_v4, %v4802_v39  ;;  %v4805_v36 = vadd.f32 %v6827_v38, %v4255_v26  ;;  %v5005_v14 = vmax.f32 %v4941_v34, 0.0  ;;  %v4073_v62 = vpop.f32.mrf.mxu1 }
 0x2dd   :  { %v4610_v63 = vpop.f32.mrf.mxu0  ;;  %v4256_v6 = vadd.f32 %v4073_v62, %v9973_v3 }
 0x2de   :  { %v5010_v2 = vmax.f32 %v4946_v61, 0.0  ;;  %v4944_v37 = vadd.f32 %v10101_v30, %v4873_v25  ;;  %v4876_v15 = vmul.f32 %v10095_v4, %v4805_v36  ;;  %v4803_v48 = vadd.f32 %v4610_v63, %v4253_v52  ;;  %5930 = vst.msk [vmem:[%s10551_s4 + $0xe1] sm:$0xff] %vm5052_vm3, %v5005_v14  ;;  %v6765_v11 = vpop.f32.mrf.mxu1 }
 0x2df   :  { %v6830_v19 = vpop.f32.mrf.mxu0  ;;  %v4259_v24 = vadd.f32 %v6765_v11, %v9976_v41 }
 0x2e0   :  { %5935 = vst.msk [vmem:[%s10551_s4 + $0x121] sm:$0xff] %vm5052_vm3, %v5010_v2  ;;  %v5008_v44 = vmax.f32 %v4944_v37, 0.0  ;;  %v4947_v33 = vadd.f32 %v10101_v30, %v4876_v15  ;;  %v4874_v28 = vmul.f32 %v10095_v4, %v4803_v48  ;;  %v4808_v10 = vadd.f32 %v6830_v19, %v4258_v43  ;;  %v4076_v47 = vpop.f32.mrf.mxu1 }
 0x2e1   :  { %v4623_v56 = vpop.f32.mrf.mxu0  ;;  %v4257_v8 = vadd.f32 %v4076_v47, %v9981_v0 }
 0x2e2   :  { %5933 = vst.msk [vmem:[%s10551_s4 + $0x109] sm:$0xff] %vm5052_vm3, %v5008_v44  ;;  %v5011_v51 = vmax.f32 %v4947_v33, 0.0  ;;  %v4945_v50 = vadd.f32 %v10101_v30, %v4874_v28  ;;  %v4806_v27 = vadd.f32 %v4623_v56, %v4256_v6  ;;  %v4879_v16 = vmul.f32 %v10095_v4, %v4808_v10  ;;  %v6768_v20 = vpop.f32.mrf.mxu1 }
 0x2e3   :  { %v6831_v18 = vpop.f32.mrf.mxu0  ;;  %v4262_v45 = vadd.f32 %v6768_v20, %v9984_v13 }
 0x2e4   :  { %5936 = vst.msk [vmem:[%s10551_s4 + $0x129] sm:$0xff] %vm5052_vm3, %v5011_v51  ;;  %v5009_v3 = vmax.f32 %v4945_v50, 0.0  ;;  %v4877_v54 = vmul.f32 %v10095_v4, %v4806_v27  ;;  %v4809_v29 = vadd.f32 %v6831_v18, %v4259_v24  ;;  %v4950_v21 = vadd.f32 %v10101_v30, %v4879_v16  ;;  %v4089_v26 = vpop.f32.mrf.mxu1 }
 0x2e5   :  { %v4626_v40 = vpop.f32.mrf.mxu0  ;;  %v4260_v25 = vadd.f32 %v4089_v26, %v9987_v57 }
 0x2e6   :  { %5934 = vst.msk [vmem:[%s10551_s4 + $0x111] sm:$0xff] %vm5052_vm3, %v5009_v3  ;;  %v4948_v41 = vadd.f32 %v10101_v30, %v4877_v54  ;;  %v4880_v38 = vmul.f32 %v10095_v4, %v4809_v29  ;;  %v4807_v42 = vadd.f32 %v4626_v40, %v4257_v8  ;;  %v5014_v39 = vmax.f32 %v4950_v21, 0.0  ;;  %v6769_v36 = vpop.f32.mrf.mxu1 }
 0x2e7   :  { %v6834_v55 = vpop.f32.mrf.mxu0  ;;  %v4263_v19 = vadd.f32 %v6769_v36, %v9990_v32 }
 0x2e8   :  { %v5012_v0 = vmax.f32 %v4948_v41, 0.0  ;;  %v4951_v49 = vadd.f32 %v10101_v30, %v4880_v38  ;;  %v4878_v63 = vmul.f32 %v10095_v4, %v4807_v42  ;;  %v4812_v61 = vadd.f32 %v6834_v55, %v4262_v45  ;;  %5939 = vst.msk [vmem:[%s10551_s4 + $0x151] sm:$0xff] %vm5052_vm3, %v5014_v39  ;;  %v4092_v37 = vpop.f32.mrf.mxu1 }
 0x2e9   :  { %v4639_v34 = vpop.f32.mrf.mxu0  ;;  %v4261_v62 = vadd.f32 %v4092_v37, %v9993_v5 }
 0x2ea   :  { %5937 = vst.msk [vmem:[%s10551_s4 + $0x139] sm:$0xff] %vm5052_vm3, %v5012_v0  ;;  %v5015_v13 = vmax.f32 %v4951_v49, 0.0  ;;  %v4949_v14 = vadd.f32 %v10101_v30, %v4878_v63  ;;  %v4883_v12 = vmul.f32 %v10095_v4, %v4812_v61  ;;  %v4810_v2 = vadd.f32 %v4639_v34, %v4260_v25  ;;  %v6772_v44 = vpop.f32.mrf.mxu1  ;;  %v10820_v0 = vld [vmem:[#allocation21_spill] sm:$0xff] }
 0x2eb   :  { %v6835_v52 = vpop.f32.mrf.mxu0  ;;  %v4266_v10 = vadd.f32 %v6772_v44, %v9996_v9 }
 0x2ec   :  { %5940 = vst.msk [vmem:[%s10551_s4 + $0x159] sm:$0xff] %vm5052_vm3, %v5015_v13  ;;  %v5013_v57 = vmax.f32 %v4949_v14, 0.0  ;;  %v4954_v48 = vadd.f32 %v10101_v30, %v4883_v12  ;;  %v4813_v43 = vadd.f32 %v6835_v52, %v4263_v19  ;;  %v4881_v56 = vmul.f32 %v10095_v4, %v4810_v2  ;;  %v4105_v18 = vpop.f32.mrf.mxu1  ;;  %v10821_v13 = vld [vmem:[#allocation42_spill] sm:$0xff] }
 0x2ed   :  { %v4642_v15 = vpop.f32.mrf.mxu0  ;;  %v4264_v24 = vadd.f32 %v4105_v18, %v9999_v23 }
 0x2ee   :  { %5938 = vst.msk [vmem:[%s10551_s4 + $0x141] sm:$0xff] %vm5052_vm3, %v5013_v57  ;;  %v5018_v32 = vmax.f32 %v4954_v48, 0.0  ;;  %v4884_v28 = vmul.f32 %v10095_v4, %v4813_v43  ;;  %v4811_v6 = vadd.f32 %v4642_v15, %v4261_v62  ;;  %v4952_v11 = vadd.f32 %v10101_v30, %v4881_v56  ;;  %v6773_v47 = vpop.f32.mrf.mxu1  ;;  %v10822_v48 = vld [vmem:[#allocation43_spill] sm:$0xff] }
 0x2ef   :  { %v6838_v33 = vpop.f32.mrf.mxu0  ;;  %v4267_v8 = vadd.f32 %v6773_v47, %v10002_v1 }
 0x2f0   :  { %5943 = vst.msk [vmem:[%s10551_s4 + $0x181] sm:$0xff] %vm5052_vm3, %v5018_v32  ;;  %v4955_v5 = vadd.f32 %v10101_v30, %v4884_v28  ;;  %v4882_v50 = vmul.f32 %v10095_v4, %v4811_v6  ;;  %v4816_v27 = vadd.f32 %v6838_v33, %v4266_v10  ;;  %v5016_v16 = vmax.f32 %v4952_v11, 0.0  ;;  %v4108_v21 = vpop.f32.mrf.mxu1  ;;  %v10823_v10 = vld [vmem:[#allocation23_spill] sm:$0xff] }
 0x2f1   :  { %v4655_v51 = vpop.f32.mrf.mxu0  ;;  %v4265_v38 = vadd.f32 %v4108_v21, %v10005_v58 }
 0x2f2   :  { %v5019_v9 = vmax.f32 %v4955_v5, 0.0  ;;  %v4953_v3 = vadd.f32 %v10101_v30, %v4882_v50  ;;  %v4887_v54 = vmul.f32 %v10095_v4, %v4816_v27  ;;  %v4814_v29 = vadd.f32 %v4655_v51, %v4264_v24  ;;  %5941 = vst.msk [vmem:[%s10551_s4 + $0x169] sm:$0xff] %vm5052_vm3, %v5016_v16  ;;  %v6776_v45 = vpop.f32.mrf.mxu1  ;;  %v10824_v24 = vld [vmem:[#allocation22_spill] sm:$0xff] }
 0x2f3   :  { %v6839_v40 = vpop.f32.mrf.mxu0  ;;  %v4270_v49 = vadd.f32 %v6776_v45, %v10820_v0  ;;  %v10826_v45 = vld [vmem:[#allocation25_spill] sm:$0xff] }
 0x2f4   :  { %5944 = vst.msk [vmem:[%s10551_s4 + $0x189] sm:$0xff] %vm5052_vm3, %v5019_v9  ;;  %v5017_v23 = vmax.f32 %v4953_v3, 0.0  ;;  %v4958_v55 = vadd.f32 %v10101_v30, %v4887_v54  ;;  %v4885_v41 = vmul.f32 %v10095_v4, %v4814_v29  ;;  %v4817_v42 = vadd.f32 %v6839_v40, %v4267_v8  ;;  %v4121_v61 = vpop.f32.mrf.mxu1  ;;  %v10825_v8 = vld [vmem:[#allocation24_spill] sm:$0xff] }
 0x2f5   :  { %v4658_v20 = vpop.f32.mrf.mxu0  ;;  %v4268_v14 = vadd.f32 %v4121_v61, %v10821_v13  ;;  %v10827_v61 = vld [vmem:[#allocation44_spill] sm:$0xff] }
 0x2f6   :  { %5942 = vst.msk [vmem:[%s10551_s4 + $0x171] sm:$0xff] %vm5052_vm3, %v5017_v23  ;;  %v5022_v1 = vmax.f32 %v4958_v55, 0.0  ;;  %v4956_v26 = vadd.f32 %v10101_v30, %v4885_v41  ;;  %v4815_v34 = vadd.f32 %v4658_v20, %v4265_v38  ;;  %v4888_v63 = vmul.f32 %v10095_v4, %v4817_v42  ;;  %v6777_v19 = vpop.f32.mrf.mxu1 }
 0x2f7   :  { %v6842_v39 = vpop.f32.mrf.mxu0  ;;  %v4271_v43 = vadd.f32 %v6777_v19, %v10822_v48 }
 0x2f8   :  { %5947 = vst.msk [vmem:[%s10551_s4 + $0x1e1] sm:$0xff] %vm5052_vm3, %v5022_v1  ;;  %v5020_v58 = vmax.f32 %v4956_v26, 0.0  ;;  %v4886_v36 = vmul.f32 %v10095_v4, %v4815_v34  ;;  %v4820_v52 = vadd.f32 %v6842_v39, %v4270_v49  ;;  %v4959_v12 = vadd.f32 %v10101_v30, %v4888_v63  ;;  %v4124_v56 = vpop.f32.mrf.mxu1 }
 0x2f9   :  { %v4671_v25 = vpop.f32.mrf.mxu0  ;;  %v4269_v11 = vadd.f32 %v4124_v56, %v10823_v10  ;;  %v10829_v56 = vld [vmem:[#allocation27_spill] sm:$0xff] }
 0x2fa   :  { %5945 = vst.msk [vmem:[%s10551_s4 + $0x1c9] sm:$0xff] %vm5052_vm3, %v5020_v58  ;;  %v4957_v37 = vadd.f32 %v10101_v30, %v4886_v36  ;;  %v4891_v15 = vmul.f32 %v10095_v4, %v4820_v52  ;;  %v4818_v57 = vadd.f32 %v4671_v25, %v4268_v14  ;;  %v5023_v62 = vmax.f32 %v4959_v12, 0.0  ;;  %v6780_v18 = vpop.f32.mrf.mxu1 }
 0x2fb   :  { %v6843_v2 = vpop.f32.mrf.mxu0  ;;  %v4274_v16 = vadd.f32 %v6780_v18, %v10824_v24  ;;  %v10830_v18 = vld [vmem:[#allocation26_spill] sm:$0xff] }
 0x2fc   :  { %v5021_v33 = vmax.f32 %v4957_v37, 0.0  ;;  %v4962_v32 = vadd.f32 %v10101_v30, %v4891_v15  ;;  %v4889_v28 = vmul.f32 %v10095_v4, %v4818_v57  ;;  %v4821_v6 = vadd.f32 %v6843_v2, %v4271_v43  ;;  %5948 = vst.msk [vmem:[%s10551_s4 + $0x1e9] sm:$0xff] %vm5052_vm3, %v5023_v62  ;;  %v4137_v40 = vpop.f32.mrf.mxu1  ;;  %v10828_v2 = vld [vmem:[#allocation45_spill] sm:$0xff] }
 0x2fd   :  { %v4674_v44 = vpop.f32.mrf.mxu0  ;;  %v4272_v21 = vadd.f32 %v4137_v40, %v10825_v8  ;;  %v10831_v40 = vld [vmem:[#allocation28_spill] sm:$0xff] }
 0x2fe   :  { %5946 = vst.msk [vmem:[%s10551_s4 + $0x1d1] sm:$0xff] %vm5052_vm3, %v5021_v33  ;;  %v5026_v5 = vmax.f32 %v4962_v32, 0.0  ;;  %v4960_v50 = vadd.f32 %v10101_v30, %v4889_v28  ;;  %v4892_v27 = vmul.f32 %v10095_v4, %v4821_v6  ;;  %v4819_v47 = vadd.f32 %v4674_v44, %v4269_v11  ;;  %v6781_v23 = vpop.f32.mrf.mxu1 }
 0x2ff   :  { %v6846_v51 = vpop.f32.mrf.mxu0  ;;  %v4275_v39 = vadd.f32 %v6781_v23, %v10826_v45  ;;  %v10832_v23 = vld [vmem:[#allocation31_spill] sm:$0xff] }
 0x300   :  { %5951 = vst.msk [vmem:[%s10551_s4 + $0x211] sm:$0xff] %vm5052_vm3, %v5026_v5  ;;  %v5024_v3 = vmax.f32 %v4960_v50, 0.0  ;;  %v4963_v54 = vadd.f32 %v10101_v30, %v4892_v27  ;;  %v4824_v29 = vadd.f32 %v6846_v51, %v4274_v16  ;;  %v4890_v20 = vmul.f32 %v10095_v4, %v4819_v47  ;;  %v4140_v26 = vpop.f32.mrf.mxu1 }
 0x301   :  { %v4687_v9 = vpop.f32.mrf.mxu0  ;;  %v4273_v25 = vadd.f32 %v4140_v26, %v10827_v61 }
 0x302   :  { %5949 = vst.msk [vmem:[%s10551_s4 + $0x1f9] sm:$0xff] %vm5052_vm3, %v5024_v3  ;;  %v5027_v41 = vmax.f32 %v4963_v54, 0.0  ;;  %v4895_v38 = vmul.f32 %v10095_v4, %v4824_v29  ;;  %v4822_v42 = vadd.f32 %v4687_v9, %v4272_v21  ;;  %v4961_v1 = vadd.f32 %v10101_v30, %v4890_v20  ;;  %v6784_v36 = vpop.f32.mrf.mxu1 }
 0x303   :  { %v6847_v55 = vpop.f32.mrf.mxu0  ;;  %v4278_v37 = vadd.f32 %v6784_v36, %v10828_v2  ;;  %v10834_v36 = vld [vmem:[#allocation30_spill] sm:$0xff] }
 0x304   :  { %5952 = vst.msk [vmem:[%s10551_s4 + $0x219] sm:$0xff] %vm5052_vm3, %v5027_v41  ;;  %v4966_v0 = vadd.f32 %v10101_v30, %v4895_v38  ;;  %v4893_v49 = vmul.f32 %v10095_v4, %v4822_v42  ;;  %v4825_v63 = vadd.f32 %v6847_v55, %v4275_v39  ;;  %v5025_v58 = vmax.f32 %v4961_v1, 0.0  ;;  %v4153_v15 = vpop.f32.mrf.mxu1 }
 0x305   :  { %v4690_v34 = vpop.f32.mrf.mxu0  ;;  %v4276_v44 = vadd.f32 %v4153_v15, %v10829_v56  ;;  %v10835_v15 = vld [vmem:[#allocation32_spill] sm:$0xff] }
 0x306   :  { %v5030_v13 = vmax.f32 %v4966_v0, 0.0  ;;  %v4964_v14 = vadd.f32 %v10101_v30, %v4893_v49  ;;  %v4896_v12 = vmul.f32 %v10095_v4, %v4825_v63  ;;  %v4823_v19 = vadd.f32 %v4690_v34, %v4273_v25  ;;  %5950 = vst.msk [vmem:[%s10551_s4 + $0x201] sm:$0xff] %vm5052_vm3, %v5025_v58  ;;  %v6785_v32 = vpop.f32.mrf.mxu1  ;;  %v10833_v34 = vld [vmem:[#allocation29_spill] sm:$0xff] }
 0x307   :  { %v6850_v52 = vpop.f32.mrf.mxu0  ;;  %v4279_v51 = vadd.f32 %v6785_v32, %v10830_v18 }
 0x308   :  { %5955 = vst.msk [vmem:[%s10551_s4 + $0x241] sm:$0xff] %vm5052_vm3, %v5030_v13  ;;  %v5028_v48 = vmax.f32 %v4964_v14, 0.0  ;;  %v4967_v43 = vadd.f32 %v10101_v30, %v4896_v12  ;;  %v4894_v62 = vmul.f32 %v10095_v4, %v4823_v19  ;;  %v4828_v33 = vadd.f32 %v6850_v52, %v4278_v37  ;;  %v4156_v50 = vpop.f32.mrf.mxu1 }
 0x309   :  { %v4703_v57 = vpop.f32.mrf.mxu0  ;;  %v4277_v9 = vadd.f32 %v4156_v50, %v10831_v40 }
 0x30a   :  { %5953 = vst.msk [vmem:[%s10551_s4 + $0x229] sm:$0xff] %vm5052_vm3, %v5028_v48  ;;  %v5031_v6 = vmax.f32 %v4967_v43, 0.0  ;;  %v4965_v10 = vadd.f32 %v10101_v30, %v4894_v62  ;;  %v4826_v11 = vadd.f32 %v4703_v57, %v4276_v44  ;;  %v4899_v5 = vmul.f32 %v10095_v4, %v4828_v33  ;;  %v6788_v54 = vpop.f32.mrf.mxu1 }
 0x30b   :  { %v6851_v28 = vpop.f32.mrf.mxu0  ;;  %v4282_v55 = vadd.f32 %v6788_v54, %v10832_v23 }
 0x30c   :  { %5956 = vst.msk [vmem:[%s10551_s4 + $0x249] sm:$0xff] %vm5052_vm3, %v5031_v6  ;;  %v5029_v24 = vmax.f32 %v4965_v10, 0.0  ;;  %v4897_v16 = vmul.f32 %v10095_v4, %v4826_v11  ;;  %v4829_v47 = vadd.f32 %v6851_v28, %v4279_v51  ;;  %v4970_v3 = vadd.f32 %v10101_v30, %v4899_v5  ;;  %v4169_v38 = vpop.f32.mrf.mxu1 }
 0x30d   :  { %v4706_v27 = vpop.f32.mrf.mxu0  ;;  %v4280_v0 = vadd.f32 %v4169_v38, %v10833_v34 }
 0x30e   :  { %5954 = vst.msk [vmem:[%s10551_s4 + $0x231] sm:$0xff] %vm5052_vm3, %v5029_v24  ;;  %v4968_v8 = vadd.f32 %v10101_v30, %v4897_v16  ;;  %v4900_v21 = vmul.f32 %v10095_v4, %v4829_v47  ;;  %v4827_v20 = vadd.f32 %v4706_v27, %v4277_v9  ;;  %v5034_v41 = vmax.f32 %v4970_v3, 0.0  ;;  %v6789_v49 = vpop.f32.mrf.mxu1 }
 0x30f   :  { %v6854_v29 = vpop.f32.mrf.mxu0  ;;  %v4283_v52 = vadd.f32 %v6789_v49, %v10834_v36 }
 0x310   :  { %v5032_v45 = vmax.f32 %v4968_v8, 0.0  ;;  %v4971_v39 = vadd.f32 %v10101_v30, %v4900_v21  ;;  %v4898_v1 = vmul.f32 %v10095_v4, %v4827_v20  ;;  %v4832_v26 = vadd.f32 %v6854_v29, %v4282_v55  ;;  %5959 = vst.msk [vmem:[%s10551_s4 + $0x271] sm:$0xff] %vm5052_vm3, %v5034_v41  ;;  %v4172_v14 = vpop.f32.mrf.mxu1 }
 0x311   :  { %v4719_v42 = vpop.f32.mrf.mxu0  ;;  %v4281_v57 = vadd.f32 %v4172_v14, %v10835_v15 }
 0x312   :  { %5957 = vst.msk [vmem:[%s10551_s4 + $0x259] sm:$0xff] %vm5052_vm3, %v5032_v45  ;;  %v5035_v61 = vmax.f32 %v4971_v39, 0.0  ;;  %v4969_v25 = vadd.f32 %v10101_v30, %v4898_v1  ;;  %v4903_v58 = vmul.f32 %v10095_v4, %v4832_v26  ;;  %v4830_v13 = vadd.f32 %v4719_v42, %v4280_v0  ;;  %v6792_v43 = vpop.f32.mrf.mxu1 }
 0x313   :  { %v6855_v63 = vpop.f32.mrf.mxu0  ;;  %v4286_v32 = vadd.f32 %v6792_v43, %v10056_v7 }
 0x314   :  { %5960 = vst.msk [vmem:[%s10551_s4 + $0x279] sm:$0xff] %vm5052_vm3, %v5035_v61  ;;  %v5033_v19 = vmax.f32 %v4969_v25, 0.0  ;;  %v4974_v2 = vadd.f32 %v10101_v30, %v4903_v58  ;;  %v4833_v37 = vadd.f32 %v6855_v63, %v4283_v52  ;;  %v4901_v48 = vmul.f32 %v10095_v4, %v4830_v13  ;;  %v4185_v6 = vpop.f32.mrf.mxu1 }
 0x315   :  { %v4722_v12 = vpop.f32.mrf.mxu0  ;;  %v4284_v5 = vadd.f32 %v4185_v6, %v10059_v35  ;;  %v10836_v6 = vld [vmem:[#allocation34_spill] sm:$0xff] }
 0x316   :  { %5958 = vst.msk [vmem:[%s10551_s4 + $0x261] sm:$0xff] %vm5052_vm3, %v5033_v19  ;;  %v5038_v56 = vmax.f32 %v4974_v2, 0.0  ;;  %v4904_v44 = vmul.f32 %v10095_v4, %v4833_v37  ;;  %v4831_v33 = vadd.f32 %v4722_v12, %v4281_v57  ;;  %v4972_v28 = vadd.f32 %v10101_v30, %v4901_v48  ;;  %v6793_v27 = vpop.f32.mrf.mxu1 }
 0x317   :  { %v6858_v62 = vpop.f32.mrf.mxu0  ;;  %v4287_v9 = vadd.f32 %v6793_v27, %v10062_v59  ;;  %v10837_v27 = vld [vmem:[#allocation33_spill] sm:$0xff] }
 0x318   :  { %5963 = vst.msk [vmem:[%s10551_s4 + $0x2a1] sm:$0xff] %vm5052_vm3, %v5038_v56  ;;  %v4975_v11 = vadd.f32 %v10101_v30, %v4904_v44  ;;  %v4902_v18 = vmul.f32 %v10095_v4, %v4831_v33  ;;  %v4836_v51 = vadd.f32 %v6858_v62, %v4286_v32  ;;  %v5036_v50 = vmax.f32 %v4972_v28, 0.0  ;;  %v4188_v3 = vpop.f32.mrf.mxu1 }
 0x319   :  { %v4735_v10 = vpop.f32.mrf.mxu0  ;;  %v4285_v21 = vadd.f32 %v4188_v3, %v10065_v17  ;;  %v10838_v3 = vld [vmem:[#allocation37_spill] sm:$0xff] }
 0x31a   :  { %v5039_v7 = vmax.f32 %v4975_v11, 0.0  ;;  %v4973_v16 = vadd.f32 %v10101_v30, %v4902_v18  ;;  %v4907_v47 = vmul.f32 %v10095_v4, %v4836_v51  ;;  %v4834_v40 = vadd.f32 %v4735_v10, %v4284_v5  ;;  %5961 = vst.msk [vmem:[%s10551_s4 + $0x289] sm:$0xff] %vm5052_vm3, %v5036_v50  ;;  %v6796_v23 = vpop.f32.mrf.mxu1 }
 0x31b   :  { %v6859_v24 = vpop.f32.mrf.mxu0  ;;  %v4290_v42 = vadd.f32 %v6796_v23, %v10068_v22 }
 0x31c   :  { %5964 = vst.msk [vmem:[%s10551_s4 + $0x2a9] sm:$0xff] %vm5052_vm3, %v5039_v7  ;;  %v5037_v35 = vmax.f32 %v4973_v16, 0.0  ;;  %v4978_v29 = vadd.f32 %v10101_v30, %v4907_v47  ;;  %v4905_v8 = vmul.f32 %v10095_v4, %v4834_v40  ;;  %v4837_v20 = vadd.f32 %v6859_v24, %v4287_v9  ;;  %v4201_v39 = vpop.f32.mrf.mxu1 }
 0x31d   :  { %v4738_v54 = vpop.f32.mrf.mxu0  ;;  %v4288_v0 = vadd.f32 %v4201_v39, %v10071_v31 }
 0x31e   :  { %5962 = vst.msk [vmem:[%s10551_s4 + $0x291] sm:$0xff] %vm5052_vm3, %v5037_v35  ;;  %v5042_v59 = vmax.f32 %v4978_v29, 0.0  ;;  %v4976_v41 = vadd.f32 %v10101_v30, %v4905_v8  ;;  %v4835_v38 = vadd.f32 %v4738_v54, %v4285_v21  ;;  %v4908_v45 = vmul.f32 %v10095_v4, %v4837_v20  ;;  %v6797_v63 = vpop.f32.mrf.mxu1 }
 0x31f   :  { %v6862_v55 = vpop.f32.mrf.mxu0  ;;  %v4291_v36 = vadd.f32 %v6797_v63, %v10074_v53 }
 0x320   :  { %5967 = vst.msk [vmem:[%s10551_s4 + $0x2d1] sm:$0xff] %vm5052_vm3, %v5042_v59  ;;  %v5040_v17 = vmax.f32 %v4976_v41, 0.0  ;;  %v4906_v26 = vmul.f32 %v10095_v4, %v4835_v38  ;;  %v4840_v34 = vadd.f32 %v6862_v55, %v4290_v42  ;;  %v4979_v49 = vadd.f32 %v10101_v30, %v4908_v45  ;;  %v4204_v13 = vpop.f32.mrf.mxu1 }
 0x321   :  { %v4751_v1 = vpop.f32.mrf.mxu0  ;;  %v4289_v37 = vadd.f32 %v4204_v13, %v10077_v60 }
 0x322   :  { %5965 = vst.msk [vmem:[%s10551_s4 + $0x2b9] sm:$0xff] %vm5052_vm3, %v5040_v17  ;;  %v4977_v22 = vadd.f32 %v10101_v30, %v4906_v26  ;;  %v4911_v25 = vmul.f32 %v10095_v4, %v4840_v34  ;;  %v4838_v58 = vadd.f32 %v4751_v1, %v4288_v0  ;;  %v5043_v52 = vmax.f32 %v4979_v49, 0.0  ;;  %v6800_v15 = vpop.f32.mrf.mxu1 }
 0x323   :  { %v6863_v61 = vpop.f32.mrf.mxu0  ;;  %v4294_v62 = vadd.f32 %v6800_v15, %v10080_v46 }
 0x324   :  { %v5041_v31 = vmax.f32 %v4977_v22, 0.0  ;;  %v4982_v12 = vadd.f32 %v10101_v30, %v4911_v25  ;;  %v4909_v19 = vmul.f32 %v10095_v4, %v4838_v58  ;;  %v4841_v2 = vadd.f32 %v6863_v61, %v4291_v36  ;;  %5968 = vst.msk [vmem:[%s10551_s4 + $0x2d9] sm:$0xff] %vm5052_vm3, %v5043_v52  ;;  %v4217_v44 = vpop.f32.mrf.mxu1 }
 0x325   :  { %v4754_v14 = vpop.f32.mrf.mxu0  ;;  %v4292_v10 = vadd.f32 %v4217_v44, %v10836_v6 }
 0x326   :  { %5966 = vst.msk [vmem:[%s10551_s4 + $0x2c1] sm:$0xff] %vm5052_vm3, %v5041_v31  ;;  %v5046_v53 = vmax.f32 %v4982_v12, 0.0  ;;  %v4980_v48 = vadd.f32 %v10101_v30, %v4909_v19  ;;  %v4912_v43 = vmul.f32 %v10095_v4, %v4841_v2  ;;  %v4839_v56 = vadd.f32 %v4754_v14, %v4289_v37  ;;  %v6801_v18 = vpop.f32.mrf.mxu1 }
 0x327   :  { %v6866_v57 = vpop.f32.mrf.mxu0  ;;  %v4295_v24 = vadd.f32 %v6801_v18, %v10837_v27 }
 0x328   :  { %5971 = vst.msk [vmem:[%s10551_s4 + $0x301] sm:$0xff] %vm5052_vm3, %v5046_v53  ;;  %v5044_v60 = vmax.f32 %v4980_v48, 0.0  ;;  %v4983_v32 = vadd.f32 %v10101_v30, %v4912_v43  ;;  %v4844_v28 = vadd.f32 %v6866_v57, %v4294_v62  ;;  %v4910_v11 = vmul.f32 %v10095_v4, %v4839_v56  ;;  %v4220_v16 = vpop.f32.mrf.mxu1 }
 0x329   :  { %v4767_v33 = vpop.f32.mrf.mxu0  ;;  %v4293_v54 = vadd.f32 %v4220_v16, %v10838_v3 }
 0x32a   :  { %5969 = vst.msk [vmem:[%s10551_s4 + $0x2e9] sm:$0xff] %vm5052_vm3, %v5044_v60  ;;  %v5047_v46 = vmax.f32 %v4983_v32, 0.0  ;;  %v4915_v5 = vmul.f32 %v10095_v4, %v4844_v28  ;;  %v4842_v50 = vadd.f32 %v4767_v33, %v4292_v10  ;;  %v4981_v7 = vadd.f32 %v10101_v30, %v4910_v11 }
 0x32b   :  { %v6867_v51 = vpop.f32.mrf.mxu0 }
 0x32c   :  { %5972 = vst.msk [vmem:[%s10551_s4 + $0x309] sm:$0xff] %vm5052_vm3, %v5047_v46  ;;  %v4986_v47 = vadd.f32 %v10101_v30, %v4915_v5  ;;  %v4913_v40 = vmul.f32 %v10095_v4, %v4842_v50  ;;  %v4845_v9 = vadd.f32 %v6867_v51, %v4295_v24  ;;  %v5045_v35 = vmax.f32 %v4981_v7, 0.0 }
 0x32d   :  { %v4770_v29 = vpop.f32.mrf.mxu0 }
 0x32e   :  { %v5050_v8 = vmax.f32 %v4986_v47, 0.0  ;;  %v4984_v21 = vadd.f32 %v10101_v30, %v4913_v40  ;;  %v4916_v20 = vmul.f32 %v10095_v4, %v4845_v9  ;;  %v4843_v23 = vadd.f32 %v4770_v29, %v4293_v54  ;;  %5970 = vst.msk [vmem:[%s10551_s4 + $0x2f1] sm:$0xff] %vm5052_vm3, %v5045_v35 }
 0x330   :  { %5975 = vst.msk [vmem:[%s10551_s4 + $0x331] sm:$0xff] %vm5052_vm3, %v5050_v8  ;;  %v5048_v55 = vmax.f32 %v4984_v21, 0.0  ;;  %v4987_v59 = vadd.f32 %v10101_v30, %v4916_v20  ;;  %v4914_v41 = vmul.f32 %v10095_v4, %v4843_v23 }
 0x332   :  { %5973 = vst.msk [vmem:[%s10551_s4 + $0x319] sm:$0xff] %vm5052_vm3, %v5048_v55  ;;  %v5051_v38 = vmax.f32 %v4987_v59, 0.0  ;;  %v4985_v42 = vadd.f32 %v10101_v30, %v4914_v41 }
 0x334   :  { %5976 = vst.msk [vmem:[%s10551_s4 + $0x339] sm:$0xff] %vm5052_vm3, %v5051_v38  ;;  %v5049_v45 = vmax.f32 %v4985_v42, 0.0 }
 0x336   :  { %5974 = vst.msk [vmem:[%s10551_s4 + $0x321] sm:$0xff] %vm5052_vm3, %v5049_v45 }

// kernel: _lambda_.5
= control target key start
LH: loop header
LB: loop body
LE: loop exit
PB: predicated region body
PF: predicated region fallthrough
CT: control target
= control target key end

     0   :  { %vm319_vm0 = vcmask 1043456   ;;  %vm222_vm1 = vcmask 64512   ;;  %vm5739_vm2 = vcmask 58368   ;;  %s12195_s1 = inlined_call_operand.vmem [shape: bf16[9,8,8], index: 1, kind: input, shape index: {}]   ;;  %s12196_s0 = inlined_call_operand.vmem [shape: f32[1,2,18,18,8], index: 0, kind: input, shape index: {}]   ;;  %s12197_s4 = inlined_call_operand.vmem [shape: bf16[8,8], index: 4, kind: input, shape index: {}]   ;;  %s12198_s6 = inlined_call_operand.vmem [shape: f32[2,18,18,8], index: 6, kind: output, shape index: {0}]   ;;  %s12199_s2 = inlined_call_operand.vmem [shape: f32[1,8], index: 2, kind: input, shape index: {}]   ;;  %s12200_s5 = inlined_call_operand.<no memory space> [shape: f32[1], index: 5, kind: input, shape index: {}]   ;;  %s12201_s3 = inlined_call_operand.vmem [shape: f32[1,8], index: 3, kind: input, shape index: {}]   ;;  %s12202_s7 = inlined_call_operand.vmem [shape: f32[2,16,16,8], index: 7, kind: output, shape index: {1}]  }
   0x1   :  { %v5919_v0 = vld [vmem:[%s12195_s1 + $0x4] sm:$0xf]  ;;  %v123_v1 = vld [vmem:[%s12195_s1] sm:$0xf]  ;;  %v125_v5 = vld [vmem:[%s12196_s0 + $0x9] sm:$0xff] }
   0x2   :  { %v124_v2 = vld [vmem:[%s12196_s0 + $0x1] sm:$0xff]  ;;  %7687 = vmatprep.subr.msk.bf16.mxu0 %vm319_vm0, %v5919_v0  ;;  %7688 = vmatprep.subr.msk.bf16.mxu1 %vm319_vm0, %v123_v1  ;;  %v321_v3 = vsel %vm319_vm0, %v5919_v0, 0  ;;  %v709_v4 = vsel %vm319_vm0, %v123_v1, 0  ;;  %v126_v10 = vld [vmem:[%s12196_s0 + $0x19] sm:$0xff]  ;;  %v128_v16 = vld [vmem:[%s12196_s0 + $0x31] sm:$0xff] }
   0x3   :  { %v27_v6 = vld [vmem:[%s12196_s0] sm:$0xff]  ;;  %v28_v7 = vld [vmem:[%s12196_s0 + $0x8] sm:$0xff]  ;;  %7028 = vmatpush3.bf16.msra.mxu0 %v321_v3  ;;  %7094 = vmatpush3.bf16.msra.mxu1 %v709_v4  ;;  %v188_v8 = vpack.c.bf16 %v125_v5, %v124_v2  ;;  %v29_v12 = vld [vmem:[%s12196_s0 + $0x18] sm:$0xff] }
   0x4   :  { %v91_v9 = vpack.c.bf16 %v28_v7, %v27_v6  ;;  %v127_v11 = vld [vmem:[%s12196_s0 + $0x21] sm:$0xff]  ;;  %v129_v19 = vld [vmem:[%s12196_s0 + $0x39] sm:$0xff]  ;;  %v31_v20 = vld [vmem:[%s12196_s0 + $0x30] sm:$0xff] }
   0x5   :  { %v189_v13 = vpack.c.bf16 %v127_v11, %v126_v10  ;;  %v30_v14 = vld [vmem:[%s12196_s0 + $0x20] sm:$0xff]  ;;  %v5984_v15 = vld [vmem:[%s12195_s1 + $0x8] sm:$0xf]  ;;  %7029 = vmatprep.mubr.msk.bf16.mxu0 %vm222_vm1, %v188_v8  ;;  %v32_v21 = vld [vmem:[%s12196_s0 + $0x38] sm:$0xff]  ;;  %v190_v22 = vpack.c.bf16 %v129_v19, %v128_v16 }
   0x6   :  { %7095 = vmatprep.mubr.msk.bf16.mxu1 %vm222_vm1, %v91_v9  ;;  %v7911_v17 = vpack.c.bf16 %v30_v14, %v29_v12  ;;  %v1195_v18 = vsel %vm319_vm0, %v5984_v15, 0  ;;  %7689 = vmatprep.subr.msk.bf16.mxu0 %vm319_vm0, %v5984_v15  ;;  %v7925_v23 = vpack.c.bf16 %v32_v21, %v31_v20  ;;  %v130_v24 = vld [vmem:[%s12196_s0 + $0x49] sm:$0xff]  ;;  %v131_v25 = vld [vmem:[%s12196_s0 + $0x51] sm:$0xff]  ;;  %v132_v28 = vld [vmem:[%s12196_s0 + $0x61] sm:$0xff] }
   0x7   :  { %7030 = vmatmul.mubr.msk.bf16.vlgmr.msra.gmra.mxu0 %vm222_vm1, %v189_v13  ;;  %v33_v26 = vld [vmem:[%s12196_s0 + $0x48] sm:$0xff]  ;;  %v34_v27 = vld [vmem:[%s12196_s0 + $0x50] sm:$0xff]  ;;  %v35_v30 = vld [vmem:[%s12196_s0 + $0x60] sm:$0xff]  ;;  %v191_v32 = vpack.c.bf16 %v131_v25, %v130_v24 }
   0x8   :  { %7096 = vmatmul.mubr.msk.bf16.vlgmr.msra.gmra.mxu1 %vm222_vm1, %v7911_v17  ;;  %7160 = vmatpush3.bf16.msra.mxu0 %v1195_v18  ;;  %v133_v29 = vld [vmem:[%s12196_s0 + $0x69] sm:$0xff]  ;;  %v7956_v33 = vpack.c.bf16 %v34_v27, %v33_v26  ;;  %v134_v36 = vld [vmem:[%s12196_s0 + $0x79] sm:$0xff]  ;;  %v135_v37 = vld [vmem:[%s12196_s0 + $0x81] sm:$0xff] }
   0x9   :  { %7033 = vmatprep.mubr.msk.bf16.mxu0 %vm222_vm1, %v190_v22  ;;  %7099 = vmatprep.mubr.msk.bf16.mxu1 %vm222_vm1, %v7925_v23  ;;  %v36_v31 = vld [vmem:[%s12196_s0 + $0x68] sm:$0xff]  ;;  %v192_v34 = vpack.c.bf16 %v133_v29, %v132_v28  ;;  %v37_v38 = vld [vmem:[%s12196_s0 + $0x78] sm:$0xff]  ;;  %v38_v39 = vld [vmem:[%s12196_s0 + $0x80] sm:$0xff]  ;;  %v193_v44 = vpack.c.bf16 %v135_v37, %v134_v36 }
   0xa   :  { %v7958_v35 = vpack.c.bf16 %v36_v31, %v35_v30  ;;  %v136_v40 = vld [vmem:[%s12196_s0 + $0x91] sm:$0xff]  ;;  %v137_v41 = vld [vmem:[%s12196_s0 + $0x99] sm:$0xff]  ;;  %v7990_v45 = vpack.c.bf16 %v38_v39, %v37_v38  ;;  %v138_v48 = vld [vmem:[%s12196_s0 + $0xa9] sm:$0xff] }
   0xb   :  { %v39_v42 = vld [vmem:[%s12196_s0 + $0x90] sm:$0xff]  ;;  %v40_v43 = vld [vmem:[%s12196_s0 + $0x98] sm:$0xff]  ;;  %v194_v46 = vpack.c.bf16 %v137_v41, %v136_v40  ;;  %v41_v50 = vld [vmem:[%s12196_s0 + $0xa8] sm:$0xff] }
   0xc   :  { %v7992_v47 = vpack.c.bf16 %v40_v43, %v39_v42  ;;  %v139_v49 = vld [vmem:[%s12196_s0 + $0xb1] sm:$0xff]  ;;  %v140_v52 = vld [vmem:[%s12196_s0 + $0xc1] sm:$0xff]  ;;  %v141_v53 = vld [vmem:[%s12196_s0 + $0xc9] sm:$0xff] }
   0xd   :  { %v42_v51 = vld [vmem:[%s12196_s0 + $0xb0] sm:$0xff]  ;;  %v43_v54 = vld [vmem:[%s12196_s0 + $0xc0] sm:$0xff]  ;;  %v44_v55 = vld [vmem:[%s12196_s0 + $0xc8] sm:$0xff]  ;;  %v195_v56 = vpack.c.bf16 %v139_v49, %v138_v48  ;;  %v196_v58 = vpack.c.bf16 %v141_v53, %v140_v52 }
   0xe   :  { %v8024_v57 = vpack.c.bf16 %v42_v51, %v41_v50  ;;  %v8026_v59 = vpack.c.bf16 %v44_v55, %v43_v54  ;;  %v142_v60 = vld [vmem:[%s12196_s0 + $0xd9] sm:$0xff]  ;;  %v143_v61 = vld [vmem:[%s12196_s0 + $0xe1] sm:$0xff]  ;;  %v144_v0 = vld [vmem:[%s12196_s0 + $0xf1] sm:$0xff] }
   0xf   :  { %7034 = vmatmul.mubr.msk.bf16.gmra.mxu0 %vm222_vm1, %v191_v32  ;;  %v45_v62 = vld [vmem:[%s12196_s0 + $0xd8] sm:$0xff]  ;;  %v46_v63 = vld [vmem:[%s12196_s0 + $0xe0] sm:$0xff]  ;;  %v47_v2 = vld [vmem:[%s12196_s0 + $0xf0] sm:$0xff]  ;;  %v197_v4 = vpack.c.bf16 %v143_v61, %v142_v60 }
  0x10   :  { %7100 = vmatmul.mubr.msk.bf16.gmra.mxu1 %vm222_vm1, %v7956_v33  ;;  %7037 = vmatprep.mubr.msk.bf16.mxu0 %vm222_vm1, %v192_v34  ;;  %v145_v1 = vld [vmem:[%s12196_s0 + $0xf9] sm:$0xff]  ;;  %v8058_v5 = vpack.c.bf16 %v46_v63, %v45_v62  ;;  %v146_v8 = vld [vmem:[%s12196_s0 + $0x109] sm:$0xff]  ;;  %v147_v9 = vld [vmem:[%s12196_s0 + $0x111] sm:$0xff] }
  0x11   :  { %7103 = vmatprep.mubr.msk.bf16.mxu1 %vm222_vm1, %v7958_v35  ;;  %v48_v3 = vld [vmem:[%s12196_s0 + $0xf8] sm:$0xff]  ;;  %v198_v6 = vpack.c.bf16 %v145_v1, %v144_v0  ;;  %v49_v10 = vld [vmem:[%s12196_s0 + $0x108] sm:$0xff]  ;;  %v50_v11 = vld [vmem:[%s12196_s0 + $0x110] sm:$0xff]  ;;  %v199_v16 = vpack.c.bf16 %v147_v9, %v146_v8 }
  0x12   :  { %v8060_v7 = vpack.c.bf16 %v48_v3, %v47_v2  ;;  %v148_v12 = vld [vmem:[%s12196_s0 + $0x121] sm:$0xff]  ;;  %v149_v13 = vld [vmem:[%s12196_s0 + $0x129] sm:$0xff]  ;;  %v8092_v18 = vpack.c.bf16 %v50_v11, %v49_v10  ;;  %v150_v25 = vld [vmem:[%s12196_s0 + $0x139] sm:$0xff] }
  0x13   :  { %v51_v14 = vld [vmem:[%s12196_s0 + $0x120] sm:$0xff]  ;;  %v52_v15 = vld [vmem:[%s12196_s0 + $0x128] sm:$0xff]  ;;  %v200_v19 = vpack.c.bf16 %v149_v13, %v148_v12  ;;  %v8105_v24 = vld [vmem:[%s12195_s1 + $0x10] sm:$0xf] }
  0x14   :  { %v8094_v20 = vpack.c.bf16 %v52_v15, %v51_v14  ;;  %v6081_v21 = vld [vmem:[%s12195_s1 + $0xc] sm:$0xf]  ;;  %v151_v26 = vld [vmem:[%s12196_s0 + $0x141] sm:$0xff]  ;;  %v53_v27 = vld [vmem:[%s12196_s0 + $0x138] sm:$0xff]  ;;  %7691 = vmatprep.subr.msk.bf16.mxu0 %vm319_vm0, %v8105_v24 }
  0x15   :  { %7690 = vmatprep.subr.msk.bf16.mxu1 %vm319_vm0, %v6081_v21  ;;  %v1746_v22 = vsel %vm319_vm0, %v6081_v21, 0  ;;  %v54_v28 = vld [vmem:[%s12196_s0 + $0x140] sm:$0xff]  ;;  %v152_v29 = vld [vmem:[%s12196_s0 + $0x151] sm:$0xff]  ;;  %v201_v34 = vpack.c.bf16 %v151_v26, %v150_v25  ;;  %v154_v39 = vld [vmem:[%s12196_s0 + $0x169] sm:$0xff] }
  0x16   :  { %7226 = vmatpush3.bf16.msra.mxu1 %v1746_v22  ;;  %v153_v30 = vld [vmem:[%s12196_s0 + $0x159] sm:$0xff]  ;;  %v55_v31 = vld [vmem:[%s12196_s0 + $0x150] sm:$0xff]  ;;  %v8138_v36 = vpack.c.bf16 %v54_v28, %v53_v27  ;;  %v57_v41 = vld [vmem:[%s12196_s0 + $0x168] sm:$0xff] }
  0x17   :  { %7038 = vmatmul.mubr.msk.bf16.gmra.mxu0 %vm222_vm1, %v193_v44  ;;  %v56_v32 = vld [vmem:[%s12196_s0 + $0x158] sm:$0xff]  ;;  %v202_v37 = vpack.c.bf16 %v153_v30, %v152_v29  ;;  %v58_v42 = vld [vmem:[%s12196_s0 + $0x170] sm:$0xff]  ;;  %v61_v55 = vld [vmem:[%s12196_s0 + $0x1c8] sm:$0xff] }
  0x18   :  { %7104 = vmatmul.mubr.msk.bf16.gmra.mxu1 %vm222_vm1, %v7990_v45  ;;  %7041 = vmatprep.mubr.msk.bf16.mxu0 %vm222_vm1, %v194_v46  ;;  %v8140_v38 = vpack.c.bf16 %v56_v32, %v55_v31  ;;  %v155_v40 = vld [vmem:[%s12196_s0 + $0x171] sm:$0xff]  ;;  %v157_v44 = vld [vmem:[%s12196_s0 + $0x1b9] sm:$0xff]  ;;  %v8172_v50 = vpack.c.bf16 %v58_v42, %v57_v41  ;;  %v158_v53 = vld [vmem:[%s12196_s0 + $0x1c9] sm:$0xff] }
  0x19   :  { %7107 = vmatprep.mubr.msk.bf16.mxu1 %vm222_vm1, %v7992_v47  ;;  %v156_v43 = vld [vmem:[%s12196_s0 + $0x1b1] sm:$0xff]  ;;  %v203_v49 = vpack.c.bf16 %v155_v40, %v154_v39  ;;  %v161_v60 = vld [vmem:[%s12196_s0 + $0x1e9] sm:$0xff]  ;;  %v63_v61 = vld [vmem:[%s12196_s0 + $0x1e0] sm:$0xff] }
  0x1a   :  { %v59_v46 = vld [vmem:[%s12196_s0 + $0x1b0] sm:$0xff]  ;;  %v60_v48 = vld [vmem:[%s12196_s0 + $0x1b8] sm:$0xff]  ;;  %v204_v51 = vpack.c.bf16 %v157_v44, %v156_v43  ;;  %v64_v62 = vld [vmem:[%s12196_s0 + $0x1e8] sm:$0xff] }
  0x1b   :  { %v107_v52 = vpack.c.bf16 %v60_v48, %v59_v46  ;;  %v159_v54 = vld [vmem:[%s12196_s0 + $0x1d1] sm:$0xff]  ;;  %v8205_v2 = vpack.c.bf16 %v64_v62, %v63_v61  ;;  %v162_v3 = vld [vmem:[%s12196_s0 + $0x1f9] sm:$0xff]  ;;  %v69_v22 = vld [vmem:[%s12196_s0 + $0x228] sm:$0xff] }
  0x1c   :  { %v205_v63 = vpack.c.bf16 %v159_v54, %v158_v53  ;;  %v66_v8 = vld [vmem:[%s12196_s0 + $0x200] sm:$0xff]  ;;  %v164_v9 = vld [vmem:[%s12196_s0 + $0x211] sm:$0xff]  ;;  %v169_v27 = vld [vmem:[%s12196_s0 + $0x249] sm:$0xff] }
  0x1d   :  { %v165_v10 = vld [vmem:[%s12196_s0 + $0x219] sm:$0xff]  ;;  %v67_v11 = vld [vmem:[%s12196_s0 + $0x210] sm:$0xff]  ;;  %v168_v26 = vld [vmem:[%s12196_s0 + $0x241] sm:$0xff] }
  0x1e   :  { %v68_v12 = vld [vmem:[%s12196_s0 + $0x218] sm:$0xff]  ;;  %v208_v15 = vpack.c.bf16 %v165_v10, %v164_v9  ;;  %v70_v25 = vld [vmem:[%s12196_s0 + $0x230] sm:$0xff]  ;;  %v71_v28 = vld [vmem:[%s12196_s0 + $0x240] sm:$0xff]  ;;  %v210_v32 = vpack.c.bf16 %v169_v27, %v168_v26 }
  0x1f   :  { %7042 = vmatmul.mubr.msk.bf16.gmra.mxu0 %vm222_vm1, %v195_v56  ;;  %v62_v56 = vld [vmem:[%s12196_s0 + $0x1d0] sm:$0xff]  ;;  %v72_v29 = vld [vmem:[%s12196_s0 + $0x248] sm:$0xff]  ;;  %v8271_v31 = vpack.c.bf16 %v70_v25, %v69_v22  ;;  %v73_v40 = vld [vmem:[%s12196_s0 + $0x258] sm:$0xff] }
  0x20   :  { %7108 = vmatmul.mubr.msk.bf16.gmra.mxu1 %vm222_vm1, %v8024_v57  ;;  %7045 = vmatprep.mubr.msk.bf16.mxu0 %vm222_vm1, %v196_v58  ;;  %v160_v58 = vld [vmem:[%s12196_s0 + $0x1e1] sm:$0xff]  ;;  %v8203_v0 = vpack.c.bf16 %v62_v56, %v61_v55  ;;  %v167_v21 = vld [vmem:[%s12196_s0 + $0x231] sm:$0xff]  ;;  %v173_v43 = vld [vmem:[%s12196_s0 + $0x279] sm:$0xff] }
  0x21   :  { %7111 = vmatprep.mubr.msk.bf16.mxu1 %vm222_vm1, %v8026_v59  ;;  %v206_v1 = vpack.c.bf16 %v161_v60, %v160_v58  ;;  %v171_v39 = vld [vmem:[%s12196_s0 + $0x261] sm:$0xff]  ;;  %v172_v42 = vld [vmem:[%s12196_s0 + $0x271] sm:$0xff]  ;;  %v174_v53 = vld [vmem:[%s12196_s0 + $0x289] sm:$0xff] }
  0x22   :  { %v74_v41 = vld [vmem:[%s12196_s0 + $0x260] sm:$0xff]  ;;  %v75_v44 = vld [vmem:[%s12196_s0 + $0x270] sm:$0xff]  ;;  %v76_v46 = vld [vmem:[%s12196_s0 + $0x278] sm:$0xff] }
  0x23   :  { %v175_v54 = vld [vmem:[%s12196_s0 + $0x291] sm:$0xff]  ;;  %v77_v55 = vld [vmem:[%s12196_s0 + $0x288] sm:$0xff]  ;;  %v79_v61 = vld [vmem:[%s12196_s0 + $0x2a0] sm:$0xff] }
  0x24   :  { %v78_v56 = vld [vmem:[%s12196_s0 + $0x290] sm:$0xff]  ;;  %v176_v58 = vld [vmem:[%s12196_s0 + $0x2a1] sm:$0xff]  ;;  %v81_v9 = vld [vmem:[%s12196_s0 + $0x2b8] sm:$0xff] }
  0x25   :  { %v177_v60 = vld [vmem:[%s12196_s0 + $0x2a9] sm:$0xff]  ;;  %v82_v10 = vld [vmem:[%s12196_s0 + $0x2c0] sm:$0xff]  ;;  %v183_v27 = vld [vmem:[%s12196_s0 + $0x2f1] sm:$0xff] }
  0x26   :  { %v80_v62 = vld [vmem:[%s12196_s0 + $0x2a8] sm:$0xff] }
  0x27   :  { %7046 = vmatmul.mubr.msk.bf16.gmra.mxu0 %vm222_vm1, %v197_v4  ;;  %v163_v4 = vld [vmem:[%s12196_s0 + $0x201] sm:$0xff]  ;;  %v182_v26 = vld [vmem:[%s12196_s0 + $0x2e9] sm:$0xff] }
  0x28   :  { %7112 = vmatmul.mubr.msk.bf16.gmra.mxu1 %vm222_vm1, %v8058_v5  ;;  %7049 = vmatprep.mubr.msk.bf16.mxu0 %vm222_vm1, %v198_v6  ;;  %v65_v6 = vld [vmem:[%s12196_s0 + $0x1f8] sm:$0xff]  ;;  %v207_v13 = vpack.c.bf16 %v163_v4, %v162_v3  ;;  %v214_v3 = vpack.c.bf16 %v177_v60, %v176_v58  ;;  %v8341_v4 = vpack.c.bf16 %v80_v62, %v79_v61  ;;  %v1003_v61 = vld [vmem:[%s12196_s0 + $0x22] sm:$0xff] }
  0x29   :  { %7115 = vmatprep.mubr.msk.bf16.mxu1 %vm222_vm1, %v8060_v7  ;;  %v8237_v14 = vpack.c.bf16 %v66_v8, %v65_v6  ;;  %v178_v6 = vld [vmem:[%s12196_s0 + $0x2b9] sm:$0xff]  ;;  %v179_v8 = vld [vmem:[%s12196_s0 + $0x2c1] sm:$0xff] }
  0x2a   :  { %v1002_v60 = vld [vmem:[%s12196_s0 + $0x1a] sm:$0xff]  ;;  %v1004_v62 = vld [vmem:[%s12196_s0 + $0x32] sm:$0xff] }
  0x2f   :  { %7050 = vmatmul.mubr.msk.bf16.gmra.mxu0 %vm222_vm1, %v199_v16  ;;  %v8239_v16 = vpack.c.bf16 %v68_v12, %v67_v11  ;;  %v180_v11 = vld [vmem:[%s12196_s0 + $0x2d1] sm:$0xff]  ;;  %v181_v12 = vld [vmem:[%s12196_s0 + $0x2d9] sm:$0xff] }
  0x30   :  { %7116 = vmatmul.mubr.msk.bf16.gmra.mxu1 %vm222_vm1, %v8092_v18  ;;  %7053 = vmatprep.mubr.msk.bf16.mxu0 %vm222_vm1, %v200_v19  ;;  %v166_v19 = vld [vmem:[%s12196_s0 + $0x229] sm:$0xff]  ;;  %v216_v22 = vpack.c.bf16 %v181_v12, %v180_v11  ;;  %v8489_v12 = vld [vmem:[%s12195_s1 + $0x18] sm:$0xf] }
  0x31   :  { %7119 = vmatprep.mubr.msk.bf16.mxu1 %vm222_vm1, %v8094_v20  ;;  %v209_v30 = vpack.c.bf16 %v167_v21, %v166_v19  ;;  %v215_v19 = vpack.c.bf16 %v179_v8, %v178_v6  ;;  %v8373_v21 = vpack.c.bf16 %v82_v10, %v81_v9  ;;  %v2296_v6 = vsel %vm319_vm0, %v8105_v24, 0  ;;  %v6275_v9 = vld [vmem:[%s12195_s1 + $0x14] sm:$0xf]  ;;  %v1006_v24 = vld [vmem:[%s12196_s0 + $0x4a] sm:$0xff]  ;;  %v1008_v11 = vld [vmem:[%s12196_s0 + $0x62] sm:$0xff] }
  0x32   :  { %7692 = vmatprep.subr.msk.bf16.mxu1 %vm319_vm0, %v6275_v9  ;;  %v1007_v10 = vld [vmem:[%s12196_s0 + $0x52] sm:$0xff] }
  0x37   :  { %7054 = vmatmul.mubr.msk.bf16.gmra.mxu0 %vm222_vm1, %v201_v34  ;;  %v8273_v34 = vpack.c.bf16 %v72_v29, %v71_v28  ;;  %v85_v28 = vld [vmem:[%s12196_s0 + $0x2e8] sm:$0xff]  ;;  %v86_v29 = vld [vmem:[%s12196_s0 + $0x2f0] sm:$0xff] }
  0x38   :  { %7120 = vmatmul.mubr.msk.bf16.gmra.mxu1 %vm222_vm1, %v8138_v36  ;;  %7057 = vmatprep.mubr.msk.bf16.mxu0 %vm222_vm1, %v202_v37  ;;  %v170_v37 = vld [vmem:[%s12196_s0 + $0x259] sm:$0xff] }
  0x39   :  { %7123 = vmatprep.mubr.msk.bf16.mxu1 %vm222_vm1, %v8140_v38  ;;  %v211_v48 = vpack.c.bf16 %v171_v39, %v170_v37  ;;  %v87_v37 = vld [vmem:[%s12196_s0 + $0x300] sm:$0xff]  ;;  %v88_v39 = vld [vmem:[%s12196_s0 + $0x308] sm:$0xff] }
  0x3f   :  { %7058 = vmatmul.mubr.msk.bf16.gmra.mxu0 %vm222_vm1, %v203_v49  ;;  %v8305_v49 = vpack.c.bf16 %v74_v41, %v73_v40  ;;  %v217_v40 = vpack.c.bf16 %v183_v27, %v182_v26  ;;  %v8407_v41 = vpack.c.bf16 %v86_v29, %v85_v28  ;;  %v1015_v28 = vld [vmem:[%s12196_s0 + $0xb2] sm:$0xff]  ;;  %v1016_v29 = vld [vmem:[%s12196_s0 + $0xc2] sm:$0xff] }
  0x40   :  { %7124 = vmatmul.mubr.msk.bf16.gmra.mxu1 %vm222_vm1, %v8172_v50  ;;  %7061 = vmatprep.mubr.msk.bf16.mxu0 %vm222_vm1, %v204_v51  ;;  %v212_v51 = vpack.c.bf16 %v173_v43, %v172_v42  ;;  %v8409_v43 = vpack.c.bf16 %v88_v39, %v87_v37  ;;  %v1019_v37 = vld [vmem:[%s12196_s0 + $0xe2] sm:$0xff]  ;;  %v1020_v39 = vld [vmem:[%s12196_s0 + $0xf2] sm:$0xff] }
  0x41   :  { %7127 = vmatprep.mubr.msk.bf16.mxu1 %vm222_vm1, %v107_v52  ;;  %v8307_v52 = vpack.c.bf16 %v76_v46, %v75_v44  ;;  %v186_v44 = vld [vmem:[%s12196_s0 + $0x319] sm:$0xff]  ;;  %v187_v46 = vld [vmem:[%s12196_s0 + $0x321] sm:$0xff] }
  0x47   :  { %7062 = vmatmul.mubr.msk.bf16.gmra.mxu0 %vm222_vm1, %v205_v63  ;;  %v213_v63 = vpack.c.bf16 %v175_v54, %v174_v53  ;;  %v1000_v53 = vld [vmem:[%s12196_s0 + $0x2] sm:$0xff]  ;;  %v1001_v54 = vld [vmem:[%s12196_s0 + $0xa] sm:$0xff] }
  0x48   :  { %7128 = vmatmul.mubr.msk.bf16.gmra.mxu1 %vm222_vm1, %v8203_v0  ;;  %7065 = vmatprep.mubr.msk.bf16.mxu0 %vm222_vm1, %v206_v1  ;;  %v8339_v1 = vpack.c.bf16 %v78_v56, %v77_v55  ;;  %v219_v55 = vpack.c.bf16 %v187_v46, %v186_v44  ;;  %v1064_v58 = vpack.c.bf16 %v1001_v54, %v1000_v53  ;;  %v1023_v44 = vld [vmem:[%s12196_s0 + $0x112] sm:$0xff]  ;;  %v1024_v46 = vld [vmem:[%s12196_s0 + $0x122] sm:$0xff] }
  0x49   :  { %7131 = vmatprep.mubr.msk.bf16.mxu1 %vm222_vm1, %v8205_v2  ;;  %v1027_v53 = vld [vmem:[%s12196_s0 + $0x142] sm:$0xff]  ;;  %v1028_v54 = vld [vmem:[%s12196_s0 + $0x152] sm:$0xff] }
  0x4f   :  { %7066 = vmatmul.mubr.msk.bf16.gmra.mxu0 %vm222_vm1, %v207_v13  ;;  %v83_v13 = vld [vmem:[%s12196_s0 + $0x2d0] sm:$0xff] }
  0x50   :  { %7132 = vmatmul.mubr.msk.bf16.gmra.mxu1 %vm222_vm1, %v8237_v14  ;;  %7069 = vmatprep.mubr.msk.bf16.mxu0 %vm222_vm1, %v208_v15  ;;  %v84_v15 = vld [vmem:[%s12196_s0 + $0x2d8] sm:$0xff] }
  0x51   :  { %7135 = vmatprep.mubr.msk.bf16.mxu1 %vm222_vm1, %v8239_v16  ;;  %v8375_v25 = vpack.c.bf16 %v84_v15, %v83_v13  ;;  %v8493_v13 = vpack.c.bf16 %v1007_v10, %v1006_v24  ;;  %v1010_v15 = vld [vmem:[%s12196_s0 + $0x7a] sm:$0xff]  ;;  %v1035_v24 = vld [vmem:[%s12196_s0 + $0x1d2] sm:$0xff]  ;;  %v1036_v10 = vld [vmem:[%s12196_s0 + $0x1e2] sm:$0xff] }
  0x57   :  { %7070 = vmatmul.mubr.msk.bf16.gmra.mxu0 %vm222_vm1, %v209_v30  ;;  %v184_v30 = vld [vmem:[%s12196_s0 + $0x301] sm:$0xff] }
  0x58   :  { %7136 = vmatmul.mubr.msk.bf16.gmra.mxu1 %vm222_vm1, %v8271_v31  ;;  %7073 = vmatprep.mubr.msk.bf16.mxu0 %vm222_vm1, %v210_v32  ;;  %v185_v32 = vld [vmem:[%s12196_s0 + $0x309] sm:$0xff] }
  0x59   :  { %7139 = vmatprep.mubr.msk.bf16.mxu1 %vm222_vm1, %v8273_v34  ;;  %v218_v42 = vpack.c.bf16 %v185_v32, %v184_v30 }
  0x5f   :  { %7074 = vmatmul.mubr.msk.bf16.gmra.mxu0 %vm222_vm1, %v211_v48  ;;  %v89_v48 = vld [vmem:[%s12196_s0 + $0x318] sm:$0xff] }
  0x60   :  { %7140 = vmatmul.mubr.msk.bf16.gmra.mxu1 %vm222_vm1, %v8305_v49  ;;  %7077 = vmatprep.mubr.msk.bf16.mxu0 %vm222_vm1, %v212_v51  ;;  %v90_v51 = vld [vmem:[%s12196_s0 + $0x320] sm:$0xff] }
  0x61   :  { %7143 = vmatprep.mubr.msk.bf16.mxu1 %vm222_vm1, %v8307_v52  ;;  %v8435_v56 = vpack.c.bf16 %v90_v51, %v89_v48 }
  0x67   :  { %7078 = vmatmul.mubr.msk.bf16.gmra.mxu0 %vm222_vm1, %v213_v63  ;;  %v1005_v63 = vld [vmem:[%s12196_s0 + $0x3a] sm:$0xff] }
  0x68   :  { %7144 = vmatmul.mubr.msk.bf16.gmra.mxu1 %vm222_vm1, %v8339_v1  ;;  %7081 = vmatprep.mubr.msk.bf16.mxu0 %vm222_vm1, %v214_v3  ;;  %v8455_v3 = vpack.c.bf16 %v1003_v61, %v1002_v60  ;;  %v8459_v8 = vpack.c.bf16 %v1005_v63, %v1004_v62  ;;  %v1031_v60 = vld [vmem:[%s12196_s0 + $0x172] sm:$0xff]  ;;  %v6047_v61 = vld [vmem:[%s12196_s0 + $0x180] sm:$0xff] }
  0x69   :  { %7147 = vmatprep.mubr.msk.bf16.mxu1 %vm222_vm1, %v8341_v4  ;;  %v1032_v62 = vld [vmem:[%s12196_s0 + $0x1b2] sm:$0xff]  ;;  %v1033_v63 = vld [vmem:[%s12196_s0 + $0x1ba] sm:$0xff] }
  0x6f   :  { %7082 = vmatmul.mubr.msk.bf16.gmra.mxu0 %vm222_vm1, %v215_v19  ;;  %v1011_v19 = vld [vmem:[%s12196_s0 + $0x82] sm:$0xff] }
  0x70   :  { %7148 = vmatmul.mubr.msk.bf16.gmra.mxu1 %vm222_vm1, %v8373_v21  ;;  %7085 = vmatprep.mubr.msk.bf16.mxu0 %vm222_vm1, %v216_v22  ;;  %v1012_v22 = vld [vmem:[%s12196_s0 + $0x92] sm:$0xff]  ;;  %v8517_v26 = vpack.c.bf16 %v1011_v19, %v1010_v15 }
  0x71   :  { %7151 = vmatprep.mubr.msk.bf16.mxu1 %vm222_vm1, %v8375_v25 }
  0x77   :  { %7086 = vmatmul.mubr.msk.bf16.gmra.mxu0 %vm222_vm1, %v217_v40 }
  0x78   :  { %7152 = vmatmul.mubr.msk.bf16.gmra.mxu1 %vm222_vm1, %v8407_v41  ;;  %7089 = vmatprep.mubr.msk.bf16.mxu0 %vm222_vm1, %v218_v42 }
  0x79   :  { %7155 = vmatprep.mubr.msk.bf16.mxu1 %vm222_vm1, %v8409_v43 }
  0x7f   :  { %7090 = vmatmul.mubr.msk.bf16.gmra.mxu0 %vm222_vm1, %v219_v55 }
  0x80   :  { %7156 = vmatmul.mubr.msk.bf16.gmra.mxu1 %vm222_vm1, %v8435_v56  ;;  %7161 = vmatprep.mubr.msk.bf16.mxu0 %vm222_vm1, %v1064_v58 }
  0x81   :  { %7227 = vmatprep.mubr.msk.bf16.mxu1 %vm222_vm1, %v7911_v17  ;;  %v2846_v17 = vsel %vm319_vm0, %v6275_v9, 0 }
  0x87   :  { %7162 = vmatmul.mubr.msk.bf16.vlgmr.msra.gmra.mxu0 %vm222_vm1, %v8455_v3 }
  0x88   :  { %7292 = vmatpush3.bf16.msra.mxu0 %v2296_v6  ;;  %7228 = vmatmul.mubr.msk.bf16.vlgmr.msra.gmra.mxu1 %vm222_vm1, %v7925_v23  ;;  %v1009_v23 = vld [vmem:[%s12196_s0 + $0x6a] sm:$0xff] }
  0x89   :  { %7165 = vmatprep.mubr.msk.bf16.mxu0 %vm222_vm1, %v8459_v8  ;;  %7231 = vmatprep.mubr.msk.bf16.mxu1 %vm222_vm1, %v7956_v33  ;;  %v8495_v33 = vpack.c.bf16 %v1009_v23, %v1008_v11  ;;  %v1037_v11 = vld [vmem:[%s12196_s0 + $0x1ea] sm:$0xff] }
  0x8a   :  { %7358 = vmatpush3.bf16.msra.mxu1 %v2846_v17  ;;  %7693 = vmatprep.subr.msk.bf16.mxu0 %vm319_vm0, %v8489_v12  ;;  %v1080_v17 = vpack.c.bf16 %v1033_v63, %v1032_v62  ;;  %v8665_v15 = vpack.c.bf16 %v1037_v11, %v1036_v10 }
  0x8f   :  { %7166 = vmatmul.mubr.msk.bf16.gmra.mxu0 %vm222_vm1, %v8493_v13 }
  0x90   :  { %7232 = vmatmul.mubr.msk.bf16.gmra.mxu1 %vm222_vm1, %v7958_v35  ;;  %7169 = vmatprep.mubr.msk.bf16.mxu0 %vm222_vm1, %v8495_v33  ;;  %v1013_v35 = vld [vmem:[%s12196_s0 + $0x9a] sm:$0xff] }
  0x91   :  { %7235 = vmatprep.mubr.msk.bf16.mxu1 %vm222_vm1, %v7990_v45  ;;  %v8519_v27 = vpack.c.bf16 %v1013_v35, %v1012_v22  ;;  %v1014_v45 = vld [vmem:[%s12196_s0 + $0xaa] sm:$0xff]  ;;  %v1039_v35 = vld [vmem:[%s12196_s0 + $0x202] sm:$0xff] }
  0x92   :  { %v8541_v30 = vpack.c.bf16 %v1015_v28, %v1014_v45 }
  0x97   :  { %7170 = vmatmul.mubr.msk.bf16.gmra.mxu0 %vm222_vm1, %v8517_v26 }
  0x98   :  { %7236 = vmatmul.mubr.msk.bf16.gmra.mxu1 %vm222_vm1, %v7992_v47  ;;  %7173 = vmatprep.mubr.msk.bf16.mxu0 %vm222_vm1, %v8519_v27  ;;  %v1017_v47 = vld [vmem:[%s12196_s0 + $0xca] sm:$0xff] }
  0x99   :  { %7239 = vmatprep.mubr.msk.bf16.mxu1 %vm222_vm1, %v8024_v57  ;;  %v8543_v32 = vpack.c.bf16 %v1017_v47, %v1016_v29  ;;  %v1018_v57 = vld [vmem:[%s12196_s0 + $0xda] sm:$0xff] }
  0x9a   :  { %v8565_v40 = vpack.c.bf16 %v1019_v37, %v1018_v57  ;;  %v1041_v29 = vld [vmem:[%s12196_s0 + $0x21a] sm:$0xff] }
  0x9f   :  { %7174 = vmatmul.mubr.msk.bf16.gmra.mxu0 %vm222_vm1, %v8541_v30 }
  0xa0   :  { %7240 = vmatmul.mubr.msk.bf16.gmra.mxu1 %vm222_vm1, %v8026_v59  ;;  %7177 = vmatprep.mubr.msk.bf16.mxu0 %vm222_vm1, %v8543_v32  ;;  %v1021_v59 = vld [vmem:[%s12196_s0 + $0xfa] sm:$0xff] }
  0xa1   :  { %7243 = vmatprep.mubr.msk.bf16.mxu1 %vm222_vm1, %v8058_v5  ;;  %v8567_v42 = vpack.c.bf16 %v1021_v59, %v1020_v39  ;;  %v1022_v5 = vld [vmem:[%s12196_s0 + $0x10a] sm:$0xff] }
  0xa2   :  { %v8589_v48 = vpack.c.bf16 %v1023_v44, %v1022_v5 }
  0xa7   :  { %7178 = vmatmul.mubr.msk.bf16.gmra.mxu0 %vm222_vm1, %v8565_v40 }
  0xa8   :  { %7244 = vmatmul.mubr.msk.bf16.gmra.mxu1 %vm222_vm1, %v8060_v7  ;;  %7181 = vmatprep.mubr.msk.bf16.mxu0 %vm222_vm1, %v8567_v42  ;;  %v1025_v7 = vld [vmem:[%s12196_s0 + $0x12a] sm:$0xff] }
  0xa9   :  { %7247 = vmatprep.mubr.msk.bf16.mxu1 %vm222_vm1, %v8092_v18  ;;  %v8591_v51 = vpack.c.bf16 %v1025_v7, %v1024_v46  ;;  %v1026_v18 = vld [vmem:[%s12196_s0 + $0x13a] sm:$0xff] }
  0xaa   :  { %v8613_v55 = vpack.c.bf16 %v1027_v53, %v1026_v18 }
  0xaf   :  { %7182 = vmatmul.mubr.msk.bf16.gmra.mxu0 %vm222_vm1, %v8589_v48 }
  0xb0   :  { %7248 = vmatmul.mubr.msk.bf16.gmra.mxu1 %vm222_vm1, %v8094_v20  ;;  %7185 = vmatprep.mubr.msk.bf16.mxu0 %vm222_vm1, %v8591_v51  ;;  %v1029_v20 = vld [vmem:[%s12196_s0 + $0x15a] sm:$0xff] }
  0xb1   :  { %7251 = vmatprep.mubr.msk.bf16.mxu1 %vm222_vm1, %v8138_v36  ;;  %v8615_v58 = vpack.c.bf16 %v1029_v20, %v1028_v54  ;;  %v1030_v36 = vld [vmem:[%s12196_s0 + $0x16a] sm:$0xff]  ;;  %v1043_v20 = vld [vmem:[%s12196_s0 + $0x232] sm:$0xff] }
  0xb2   :  { %v8643_v6 = vpack.c.bf16 %v1031_v60, %v1030_v36  ;;  %v1042_v54 = vld [vmem:[%s12196_s0 + $0x22a] sm:$0xff] }
  0xb7   :  { %7186 = vmatmul.mubr.msk.bf16.gmra.mxu0 %vm222_vm1, %v8613_v55 }
  0xb8   :  { %7252 = vmatmul.mubr.msk.bf16.gmra.mxu1 %vm222_vm1, %v8140_v38  ;;  %7189 = vmatprep.mubr.msk.bf16.mxu0 %vm222_vm1, %v8615_v58  ;;  %v6048_v38 = vld [vmem:[%s12196_s0 + $0x188] sm:$0xff] }
  0xb9   :  { %7255 = vmatprep.mubr.msk.bf16.mxu1 %vm222_vm1, %v8172_v50  ;;  %v1630_v9 = vpack.c.bf16 %v6048_v38, %v6047_v61  ;;  %v1034_v50 = vld [vmem:[%s12196_s0 + $0x1ca] sm:$0xff] }
  0xba   :  { %v8663_v23 = vpack.c.bf16 %v1035_v24, %v1034_v50  ;;  %v1045_v61 = vld [vmem:[%s12196_s0 + $0x24a] sm:$0xff] }
  0xbf   :  { %7190 = vmatmul.mubr.msk.bf16.gmra.mxu0 %vm222_vm1, %v8643_v6 }
  0xc0   :  { %7256 = vmatmul.mubr.msk.bf16.gmra.mxu1 %vm222_vm1, %v1630_v9  ;;  %7193 = vmatprep.mubr.msk.bf16.mxu0 %vm222_vm1, %v1080_v17  ;;  %v8723_v9 = vpack.c.bf16 %v1043_v20, %v1042_v54 }
  0xc1   :  { %7259 = vmatprep.mubr.msk.bf16.mxu1 %vm222_vm1, %v8203_v0  ;;  %v1038_v0 = vld [vmem:[%s12196_s0 + $0x1fa] sm:$0xff] }
  0xc2   :  { %v8691_v39 = vpack.c.bf16 %v1039_v35, %v1038_v0  ;;  %v1046_v0 = vld [vmem:[%s12196_s0 + $0x25a] sm:$0xff]  ;;  %v1047_v35 = vld [vmem:[%s12196_s0 + $0x262] sm:$0xff] }
  0xc7   :  { %v7031_v19 = vpop.f32.mrf.mxu0  ;;  %7194 = vmatmul.mubr.msk.bf16.gmra.mxu0 %vm222_vm1, %v8663_v23 }
  0xc8   :  { %v7097_v22 = vpop.f32.mrf.mxu1  ;;  %7260 = vmatmul.mubr.msk.bf16.gmra.mxu1 %vm222_vm1, %v8205_v2  ;;  %7197 = vmatprep.mubr.msk.bf16.mxu0 %vm222_vm1, %v8665_v15  ;;  %v1040_v2 = vld [vmem:[%s12196_s0 + $0x212] sm:$0xff] }
  0xc9   :  { %v8679_v45 = vadd.f32 %v7097_v22, %v7031_v19  ;;  %v357_v28 = vpop.f32.mrf.mxu0  ;;  %7263 = vmatprep.mubr.msk.bf16.mxu1 %vm222_vm1, %v8237_v14  ;;  %v8693_v5 = vpack.c.bf16 %v1041_v29, %v1040_v2  ;;  %v1049_v29 = vld [vmem:[%s12196_s0 + $0x27a] sm:$0xff] }
  0xca   :  { %v745_v47 = vpop.f32.mrf.mxu1 }
  0xcb   :  { %v8689_v57 = vadd.f32 %v745_v47, %v357_v28  ;;  %v7032_v37 = vpop.f32.mrf.mxu0 }
  0xcc   :  { %v7098_v59 = vpop.f32.mrf.mxu1 }
  0xcd   :  { %v8695_v44 = vadd.f32 %v7098_v59, %v7032_v37  ;;  %v360_v14 = vpop.f32.mrf.mxu0 }
  0xce   :  { %v748_v46 = vpop.f32.mrf.mxu1 }
  0xcf   :  { %v8697_v7 = vadd.f32 %v748_v46, %v360_v14  ;;  %v7035_v18 = vpop.f32.mrf.mxu0  ;;  %7198 = vmatmul.mubr.msk.bf16.gmra.mxu0 %vm222_vm1, %v8691_v39  ;;  %v8755_v14 = vpack.c.bf16 %v1047_v35, %v1046_v0 }
  0xd0   :  { %v7101_v53 = vpop.f32.mrf.mxu1  ;;  %7264 = vmatmul.mubr.msk.bf16.gmra.mxu1 %vm222_vm1, %v8239_v16  ;;  %7201 = vmatprep.mubr.msk.bf16.mxu0 %vm222_vm1, %v8693_v5  ;;  %v1044_v16 = vld [vmem:[%s12196_s0 + $0x242] sm:$0xff] }
  0xd1   :  { %v8711_v36 = vadd.f32 %v7101_v53, %v7035_v18  ;;  %v373_v60 = vpop.f32.mrf.mxu0  ;;  %7267 = vmatprep.mubr.msk.bf16.mxu1 %vm222_vm1, %v8271_v31  ;;  %v8725_v50 = vpack.c.bf16 %v1045_v61, %v1044_v16  ;;  %v1050_v61 = vld [vmem:[%s12196_s0 + $0x28a] sm:$0xff] }
  0xd2   :  { %v761_v38 = vpop.f32.mrf.mxu1 }
  0xd3   :  { %v8721_v62 = vadd.f32 %v761_v38, %v373_v60  ;;  %v7036_v63 = vpop.f32.mrf.mxu0  ;;  %v1051_v38 = vld [vmem:[%s12196_s0 + $0x292] sm:$0xff] }
  0xd4   :  { %v7102_v17 = vpop.f32.mrf.mxu1  ;;  %v8787_v0 = vpack.c.bf16 %v1051_v38, %v1050_v61  ;;  %v1057_v61 = vld [vmem:[%s12196_s0 + $0x2da] sm:$0xff] }
  0xd5   :  { %v8727_v24 = vadd.f32 %v7102_v17, %v7036_v63  ;;  %v376_v31 = vpop.f32.mrf.mxu0 }
  0xd6   :  { %v764_v10 = vpop.f32.mrf.mxu1 }
  0xd7   :  { %v8729_v11 = vadd.f32 %v764_v10, %v376_v31  ;;  %v7039_v19 = vpop.f32.mrf.mxu0  ;;  %7202 = vmatmul.mubr.msk.bf16.gmra.mxu0 %vm222_vm1, %v8723_v9  ;;  %v1053_v31 = vld [vmem:[%s12196_s0 + $0x2aa] sm:$0xff] }
  0xd8   :  { %v7105_v22 = vpop.f32.mrf.mxu1  ;;  %7268 = vmatmul.mubr.msk.bf16.gmra.mxu1 %vm222_vm1, %v8273_v34  ;;  %7205 = vmatprep.mubr.msk.bf16.mxu0 %vm222_vm1, %v8725_v50  ;;  %v1048_v34 = vld [vmem:[%s12196_s0 + $0x272] sm:$0xff] }
  0xd9   :  { %v8743_v28 = vadd.f32 %v7105_v22, %v7039_v19  ;;  %v389_v2 = vpop.f32.mrf.mxu0  ;;  %7271 = vmatprep.mubr.msk.bf16.mxu1 %vm222_vm1, %v8305_v49  ;;  %v8757_v18 = vpack.c.bf16 %v1049_v29, %v1048_v34 }
  0xda   :  { %v777_v47 = vpop.f32.mrf.mxu1 }
  0xdb   :  { %v8753_v37 = vadd.f32 %v777_v47, %v389_v2  ;;  %v7040_v59 = vpop.f32.mrf.mxu0 }
  0xdc   :  { %v7106_v46 = vpop.f32.mrf.mxu1 }
  0xdd   :  { %v8759_v53 = vadd.f32 %v7106_v46, %v7040_v59  ;;  %v392_v49 = vpop.f32.mrf.mxu0 }
  0xde   :  { %v780_v54 = vpop.f32.mrf.mxu1 }
  0xdf   :  { %v8761_v20 = vadd.f32 %v780_v54, %v392_v49  ;;  %v7043_v60 = vpop.f32.mrf.mxu0  ;;  %7206 = vmatmul.mubr.msk.bf16.gmra.mxu0 %vm222_vm1, %v8755_v14  ;;  %v1054_v49 = vld [vmem:[%s12196_s0 + $0x2ba] sm:$0xff]  ;;  %v1055_v54 = vld [vmem:[%s12196_s0 + $0x2c2] sm:$0xff] }
  0xe0   :  { %v7109_v16 = vpop.f32.mrf.mxu1  ;;  %7272 = vmatmul.mubr.msk.bf16.gmra.mxu1 %vm222_vm1, %v8307_v52  ;;  %7209 = vmatprep.mubr.msk.bf16.mxu0 %vm222_vm1, %v8757_v18  ;;  %v1052_v52 = vld [vmem:[%s12196_s0 + $0x2a2] sm:$0xff] }
  0xe1   :  { %v8775_v63 = vadd.f32 %v7109_v16, %v7043_v60  ;;  %v405_v17 = vpop.f32.mrf.mxu0  ;;  %7275 = vmatprep.mubr.msk.bf16.mxu1 %vm222_vm1, %v8339_v1  ;;  %v8789_v2 = vpack.c.bf16 %v1053_v31, %v1052_v52  ;;  %v8819_v31 = vpack.c.bf16 %v1055_v54, %v1054_v49  ;;  %v1058_v49 = vld [vmem:[%s12196_s0 + $0x2ea] sm:$0xff]  ;;  %v1059_v54 = vld [vmem:[%s12196_s0 + $0x2f2] sm:$0xff] }
  0xe2   :  { %v793_v10 = vpop.f32.mrf.mxu1 }
  0xe3   :  { %v8785_v19 = vadd.f32 %v793_v10, %v405_v17  ;;  %v7044_v22 = vpop.f32.mrf.mxu0 }
  0xe4   :  { %v7110_v35 = vpop.f32.mrf.mxu1 }
  0xe5   :  { %v8791_v34 = vadd.f32 %v7110_v35, %v7044_v22  ;;  %v408_v1 = vpop.f32.mrf.mxu0 }
  0xe6   :  { %v796_v29 = vpop.f32.mrf.mxu1 }
  0xe7   :  { %v8793_v47 = vadd.f32 %v796_v29, %v408_v1  ;;  %v7047_v59 = vpop.f32.mrf.mxu0  ;;  %7210 = vmatmul.mubr.msk.bf16.gmra.mxu0 %vm222_vm1, %v8787_v0 }
  0xe8   :  { %v7113_v46 = vpop.f32.mrf.mxu1  ;;  %7276 = vmatmul.mubr.msk.bf16.gmra.mxu1 %vm222_vm1, %v8341_v4  ;;  %7213 = vmatprep.mubr.msk.bf16.mxu0 %vm222_vm1, %v8789_v2  ;;  %v1056_v4 = vld [vmem:[%s12196_s0 + $0x2d2] sm:$0xff] }
  0xe9   :  { %v8807_v60 = vadd.f32 %v7113_v46, %v7047_v59  ;;  %v421_v16 = vpop.f32.mrf.mxu0  ;;  %7279 = vmatprep.mubr.msk.bf16.mxu1 %vm222_vm1, %v8373_v21  ;;  %v8821_v22 = vpack.c.bf16 %v1057_v61, %v1056_v4  ;;  %v1061_v61 = vld [vmem:[%s12196_s0 + $0x30a] sm:$0xff] }
  0xea   :  { %v809_v38 = vpop.f32.mrf.mxu1 }
  0xeb   :  { %v8817_v17 = vadd.f32 %v809_v38, %v421_v16  ;;  %v7048_v52 = vpop.f32.mrf.mxu0  ;;  %12217 = vst [vmem:[#allocation4_spill] sm:$0xff] %v8821_v22 }
  0xec   :  { %v7114_v10 = vpop.f32.mrf.mxu1 }
  0xed   :  { %12216 = vst [vmem:[#allocation3_spill] sm:$0xff] %v8817_v17  ;;  %v8823_v35 = vadd.f32 %v7114_v10, %v7048_v52  ;;  %v424_v21 = vpop.f32.mrf.mxu0 }
  0xee   :  { %v812_v1 = vpop.f32.mrf.mxu1 }
  0xef   :  { %12218 = vst [vmem:[#allocation5_spill] sm:$0xff] %v8823_v35  ;;  %v8825_v29 = vadd.f32 %v812_v1, %v424_v21  ;;  %v7051_v59 = vpop.f32.mrf.mxu0  ;;  %7214 = vmatmul.mubr.msk.bf16.gmra.mxu0 %vm222_vm1, %v8819_v31  ;;  %v8851_v21 = vpack.c.bf16 %v1059_v54, %v1058_v49  ;;  %v1062_v49 = vld [vmem:[%s12196_s0 + $0x31a] sm:$0xff]  ;;  %v6079_v54 = vld [vmem:[%s12196_s0 + $0x330] sm:$0xff] }
  0xf0   :  { %v7117_v46 = vpop.f32.mrf.mxu1  ;;  %7280 = vmatmul.mubr.msk.bf16.gmra.mxu1 %vm222_vm1, %v8375_v25  ;;  %7217 = vmatprep.mubr.msk.bf16.mxu0 %vm222_vm1, %v8821_v22  ;;  %v1060_v25 = vld [vmem:[%s12196_s0 + $0x302] sm:$0xff] }
  0xf1   :  { %12219 = vst [vmem:[#allocation6_spill] sm:$0xff] %v8825_v29  ;;  %v8839_v16 = vadd.f32 %v7117_v46, %v7051_v59  ;;  %v437_v4 = vpop.f32.mrf.mxu0  ;;  %7283 = vmatprep.mubr.msk.bf16.mxu1 %vm222_vm1, %v8407_v41  ;;  %12222 = vst [vmem:[#allocation9_spill] sm:$0xff] %v8851_v21  ;;  %v8853_v59 = vpack.c.bf16 %v1061_v61, %v1060_v25  ;;  %v6114_v61 = vld [vmem:[%s12196_s0 + $0x19] sm:$0xff] }
  0xf2   :  { %v825_v38 = vpop.f32.mrf.mxu1 }
  0xf3   :  { %12220 = vst [vmem:[#allocation7_spill] sm:$0xff] %v8839_v16  ;;  %v8849_v52 = vadd.f32 %v825_v38, %v437_v4  ;;  %v7052_v10 = vpop.f32.mrf.mxu0  ;;  %12223 = vst [vmem:[#allocation10_spill] sm:$0xff] %v8853_v59  ;;  %v6115_v38 = vld [vmem:[%s12196_s0 + $0x21] sm:$0xff] }
  0xf4   :  { %v7118_v1 = vpop.f32.mrf.mxu1 }
  0xf5   :  { %12221 = vst [vmem:[#allocation8_spill] sm:$0xff] %v8849_v52  ;;  %v8855_v46 = vadd.f32 %v7118_v1, %v7052_v10  ;;  %v440_v41 = vpop.f32.mrf.mxu0 }
  0xf6   :  { %v828_v22 = vpop.f32.mrf.mxu1 }
  0xf7   :  { %12224 = vst [vmem:[#allocation11_spill] sm:$0xff] %v8855_v46  ;;  %v8857_v16 = vadd.f32 %v828_v22, %v440_v41  ;;  %v7055_v29 = vpop.f32.mrf.mxu0  ;;  %7218 = vmatmul.mubr.msk.bf16.gmra.mxu0 %vm222_vm1, %v8851_v21  ;;  %v1063_v22 = vld [vmem:[%s12196_s0 + $0x322] sm:$0xff] }
  0xf8   :  { %v7121_v35 = vpop.f32.mrf.mxu1  ;;  %7284 = vmatmul.mubr.msk.bf16.gmra.mxu1 %vm222_vm1, %v8409_v43  ;;  %7221 = vmatprep.mubr.msk.bf16.mxu0 %vm222_vm1, %v8853_v59  ;;  %v6080_v43 = vld [vmem:[%s12196_s0 + $0x338] sm:$0xff]  ;;  %v2165_v59 = vpack.c.bf16 %v6115_v38, %v6114_v61 }
  0xf9   :  { %12225 = vst [vmem:[#allocation12_spill] sm:$0xff] %v8857_v16  ;;  %v8874_v4 = vadd.f32 %v7121_v35, %v7055_v29  ;;  %v453_v25 = vpop.f32.mrf.mxu0  ;;  %7287 = vmatprep.mubr.msk.bf16.mxu1 %vm222_vm1, %v8435_v56  ;;  %v8889_v29 = vpack.c.bf16 %v1063_v22, %v1062_v49  ;;  %v1646_v56 = vpack.c.bf16 %v6080_v43, %v6079_v54  ;;  %v6116_v49 = vld [vmem:[%s12196_s0 + $0x31] sm:$0xff]  ;;  %v6117_v22 = vld [vmem:[%s12196_s0 + $0x39] sm:$0xff] }
  0xfa   :  { %v841_v10 = vpop.f32.mrf.mxu1  ;;  %v8917_v38 = vpack.c.bf16 %v6117_v22, %v6116_v49 }
  0xfb   :  { %12226 = vst [vmem:[#allocation13_spill] sm:$0xff] %v8874_v4  ;;  %v8887_v1 = vadd.f32 %v841_v10, %v453_v25  ;;  %v7056_v35 = vpop.f32.mrf.mxu0  ;;  %v6118_v25 = vld [vmem:[%s12196_s0 + $0x49] sm:$0xff] }
  0xfc   :  { %v7122_v41 = vpop.f32.mrf.mxu1 }
  0xfd   :  { %v8891_v4 = vadd.f32 %v7122_v41, %v7056_v35  ;;  %v456_v16 = vpop.f32.mrf.mxu0  ;;  %v6469_v41 = vld [vmem:[%s12195_s1 + $0x1c] sm:$0xf] }
  0xfe   :  { %v844_v46 = vpop.f32.mrf.mxu1  ;;  %7694 = vmatprep.subr.msk.bf16.mxu1 %vm319_vm0, %v6469_v41  ;;  %v3947_v22 = vsel %vm319_vm0, %v6469_v41, 0 }
  0xff   :  { %v8893_v52 = vadd.f32 %v844_v46, %v456_v16  ;;  %v7059_v21 = vpop.f32.mrf.mxu0  ;;  %7222 = vmatmul.mubr.msk.bf16.gmra.mxu0 %vm222_vm1, %v8889_v29 }
 0x100   :  { %v7125_v17 = vpop.f32.mrf.mxu1  ;;  %7288 = vmatmul.mubr.msk.bf16.gmra.mxu1 %vm222_vm1, %v1646_v56  ;;  %7293 = vmatprep.mubr.msk.bf16.mxu0 %vm222_vm1, %v2165_v59  ;;  %v6119_v59 = vld [vmem:[%s12196_s0 + $0x51] sm:$0xff] }
 0x101   :  { %v8905_v54 = vadd.f32 %v7125_v17, %v7059_v21  ;;  %v469_v16 = vpop.f32.mrf.mxu0  ;;  %7359 = vmatprep.mubr.msk.bf16.mxu1 %vm222_vm1, %v8455_v3  ;;  %v3397_v3 = vsel %vm319_vm0, %v8489_v12, 0  ;;  %v8923_v35 = vpack.c.bf16 %v6119_v59, %v6118_v25  ;;  %v6120_v12 = vld [vmem:[%s12196_s0 + $0x61] sm:$0xff]  ;;  %v6121_v25 = vld [vmem:[%s12196_s0 + $0x69] sm:$0xff] }
 0x102   :  { %v857_v46 = vpop.f32.mrf.mxu1  ;;  %v8945_v59 = vld [vmem:[%s12195_s1 + $0x20] sm:$0xf] }
 0x103   :  { %v8915_v43 = vadd.f32 %v857_v46, %v469_v16  ;;  %v7060_v61 = vpop.f32.mrf.mxu0  ;;  %12229 = vst [vmem:[#allocation16_spill] sm:$0xff] %v8923_v35 }
 0x104   :  { %v7126_v17 = vpop.f32.mrf.mxu1 }
 0x105   :  { %12227 = vst [vmem:[#allocation14_spill] sm:$0xff] %v8915_v43  ;;  %v8919_v21 = vadd.f32 %v7126_v17, %v7060_v61  ;;  %v472_v10 = vpop.f32.mrf.mxu0 }
 0x106   :  { %v860_v56 = vpop.f32.mrf.mxu1 }
 0x107   :  { %12228 = vst [vmem:[#allocation15_spill] sm:$0xff] %v8919_v21  ;;  %v8929_v16 = vadd.f32 %v860_v56, %v472_v10  ;;  %v7063_v49 = vpop.f32.mrf.mxu0  ;;  %7294 = vmatmul.mubr.msk.bf16.vlgmr.msra.gmra.mxu0 %vm222_vm1, %v8917_v38  ;;  %v6123_v10 = vld [vmem:[%s12196_s0 + $0x81] sm:$0xff] }
 0x108   :  { %v7129_v46 = vpop.f32.mrf.mxu1  ;;  %7424 = vmatpush3.bf16.msra.mxu0 %v3397_v3  ;;  %7360 = vmatmul.mubr.msk.bf16.vlgmr.msra.gmra.mxu1 %vm222_vm1, %v8459_v8  ;;  %v6122_v8 = vld [vmem:[%s12196_s0 + $0x79] sm:$0xff] }
 0x109   :  { %12230 = vst [vmem:[#allocation17_spill] sm:$0xff] %v8929_v16  ;;  %v8947_v61 = vadd.f32 %v7129_v46, %v7063_v49  ;;  %v485_v17 = vpop.f32.mrf.mxu0  ;;  %7297 = vmatprep.mubr.msk.bf16.mxu0 %vm222_vm1, %v8923_v35  ;;  %7363 = vmatprep.mubr.msk.bf16.mxu1 %vm222_vm1, %v8493_v13  ;;  %v8963_v49 = vpack.c.bf16 %v6121_v25, %v6120_v12  ;;  %v6124_v12 = vld [vmem:[%s12196_s0 + $0x91] sm:$0xff] }
 0x10a   :  { %v873_v3 = vpop.f32.mrf.mxu1  ;;  %7490 = vmatpush3.bf16.msra.mxu1 %v3947_v22  ;;  %7695 = vmatprep.subr.msk.bf16.mxu0 %vm319_vm0, %v8945_v59  ;;  %v8965_v13 = vpack.c.bf16 %v6123_v10, %v6122_v8 }
 0x10b   :  { %12231 = vst [vmem:[#allocation18_spill] sm:$0xff] %v8947_v61  ;;  %v8961_v41 = vadd.f32 %v873_v3, %v485_v17  ;;  %v7064_v56 = vpop.f32.mrf.mxu0  ;;  %v6127_v17 = vld [vmem:[%s12196_s0 + $0xb1] sm:$0xff] }
 0x10c   :  { %v7130_v46 = vpop.f32.mrf.mxu1  ;;  %12232 = vst [vmem:[#allocation19_spill] sm:$0xff] %v8965_v13 }
 0x10d   :  { %v8967_v35 = vadd.f32 %v7130_v46, %v7064_v56  ;;  %v488_v61 = vpop.f32.mrf.mxu0 }
 0x10e   :  { %v876_v16 = vpop.f32.mrf.mxu1 }
 0x10f   :  { %12233 = vst [vmem:[#allocation20_spill] sm:$0xff] %v8967_v35  ;;  %v8969_v21 = vadd.f32 %v876_v16, %v488_v61  ;;  %v7067_v43 = vpop.f32.mrf.mxu0  ;;  %7298 = vmatmul.mubr.msk.bf16.gmra.mxu0 %vm222_vm1, %v8963_v49  ;;  %v6125_v16 = vld [vmem:[%s12196_s0 + $0x99] sm:$0xff] }
 0x110   :  { %v7133_v22 = vpop.f32.mrf.mxu1  ;;  %7364 = vmatmul.mubr.msk.bf16.gmra.mxu1 %vm222_vm1, %v8495_v33  ;;  %7301 = vmatprep.mubr.msk.bf16.mxu0 %vm222_vm1, %v8965_v13  ;;  %v6126_v33 = vld [vmem:[%s12196_s0 + $0xa9] sm:$0xff]  ;;  %v8995_v56 = vpack.c.bf16 %v6125_v16, %v6124_v12  ;;  %v6128_v12 = vld [vmem:[%s12196_s0 + $0xc1] sm:$0xff] }
 0x111   :  { %12234 = vst [vmem:[#allocation21_spill] sm:$0xff] %v8969_v21  ;;  %v8983_v25 = vadd.f32 %v7133_v22, %v7067_v43  ;;  %v501_v61 = vpop.f32.mrf.mxu0  ;;  %7367 = vmatprep.mubr.msk.bf16.mxu1 %vm222_vm1, %v8517_v26  ;;  %v8997_v46 = vpack.c.bf16 %v6127_v17, %v6126_v33  ;;  %v6131_v33 = vld [vmem:[%s12196_s0 + $0xe1] sm:$0xff] }
 0x112   :  { %v889_v8 = vpop.f32.mrf.mxu1 }
 0x113   :  { %12235 = vst [vmem:[#allocation22_spill] sm:$0xff] %v8983_v25  ;;  %v8993_v10 = vadd.f32 %v889_v8, %v501_v61  ;;  %v7068_v3 = vpop.f32.mrf.mxu0  ;;  %12236 = vst [vmem:[#allocation23_spill] sm:$0xff] %v8997_v46 }
 0x114   :  { %v7134_v43 = vpop.f32.mrf.mxu1 }
 0x115   :  { %v8999_v22 = vadd.f32 %v7134_v43, %v7068_v3  ;;  %v504_v26 = vpop.f32.mrf.mxu0 }
 0x116   :  { %v892_v13 = vpop.f32.mrf.mxu1 }
 0x117   :  { %12237 = vst [vmem:[#allocation24_spill] sm:$0xff] %v8999_v22  ;;  %v9001_v25 = vadd.f32 %v892_v13, %v504_v26  ;;  %v7071_v21 = vpop.f32.mrf.mxu0  ;;  %7302 = vmatmul.mubr.msk.bf16.gmra.mxu0 %vm222_vm1, %v8995_v56  ;;  %v6129_v13 = vld [vmem:[%s12196_s0 + $0xc9] sm:$0xff] }
 0x118   :  { %v7137_v35 = vpop.f32.mrf.mxu1  ;;  %7368 = vmatmul.mubr.msk.bf16.gmra.mxu1 %vm222_vm1, %v8519_v27  ;;  %7305 = vmatprep.mubr.msk.bf16.mxu0 %vm222_vm1, %v8997_v46  ;;  %v6130_v27 = vld [vmem:[%s12196_s0 + $0xd9] sm:$0xff]  ;;  %v9027_v43 = vpack.c.bf16 %v6129_v13, %v6128_v12  ;;  %v6132_v12 = vld [vmem:[%s12196_s0 + $0xf1] sm:$0xff] }
 0x119   :  { %12238 = vst [vmem:[#allocation25_spill] sm:$0xff] %v9001_v25  ;;  %v9015_v16 = vadd.f32 %v7137_v35, %v7071_v21  ;;  %v517_v61 = vpop.f32.mrf.mxu0  ;;  %7371 = vmatprep.mubr.msk.bf16.mxu1 %vm222_vm1, %v8541_v30  ;;  %v9029_v35 = vpack.c.bf16 %v6131_v33, %v6130_v27  ;;  %v6135_v27 = vld [vmem:[%s12196_s0 + $0x111] sm:$0xff] }
 0x11a   :  { %v905_v17 = vpop.f32.mrf.mxu1 }
 0x11b   :  { %12239 = vst [vmem:[#allocation26_spill] sm:$0xff] %v9015_v16  ;;  %v9025_v8 = vadd.f32 %v905_v17, %v517_v61  ;;  %v7072_v3 = vpop.f32.mrf.mxu0  ;;  %12240 = vst [vmem:[#allocation27_spill] sm:$0xff] %v9029_v35 }
 0x11c   :  { %v7138_v21 = vpop.f32.mrf.mxu1 }
 0x11d   :  { %v9031_v26 = vadd.f32 %v7138_v21, %v7072_v3  ;;  %v520_v30 = vpop.f32.mrf.mxu0 }
 0x11e   :  { %v908_v46 = vpop.f32.mrf.mxu1 }
 0x11f   :  { %12241 = vst [vmem:[#allocation28_spill] sm:$0xff] %v9031_v26  ;;  %v9033_v16 = vadd.f32 %v908_v46, %v520_v30  ;;  %v7075_v25 = vpop.f32.mrf.mxu0  ;;  %7306 = vmatmul.mubr.msk.bf16.gmra.mxu0 %vm222_vm1, %v9027_v43  ;;  %v6133_v46 = vld [vmem:[%s12196_s0 + $0xf9] sm:$0xff] }
 0x120   :  { %v7141_v22 = vpop.f32.mrf.mxu1  ;;  %7372 = vmatmul.mubr.msk.bf16.gmra.mxu1 %vm222_vm1, %v8543_v32  ;;  %7309 = vmatprep.mubr.msk.bf16.mxu0 %vm222_vm1, %v9029_v35  ;;  %v6134_v32 = vld [vmem:[%s12196_s0 + $0x109] sm:$0xff]  ;;  %v9059_v21 = vpack.c.bf16 %v6133_v46, %v6132_v12  ;;  %v6136_v12 = vld [vmem:[%s12196_s0 + $0x121] sm:$0xff] }
 0x121   :  { %12242 = vst [vmem:[#allocation29_spill] sm:$0xff] %v9033_v16  ;;  %v9047_v13 = vadd.f32 %v7141_v22, %v7075_v25  ;;  %v533_v61 = vpop.f32.mrf.mxu0  ;;  %7375 = vmatprep.mubr.msk.bf16.mxu1 %vm222_vm1, %v8565_v40  ;;  %v9061_v22 = vpack.c.bf16 %v6135_v27, %v6134_v32  ;;  %v6139_v32 = vld [vmem:[%s12196_s0 + $0x141] sm:$0xff] }
 0x122   :  { %v921_v33 = vpop.f32.mrf.mxu1 }
 0x123   :  { %12243 = vst [vmem:[#allocation30_spill] sm:$0xff] %v9047_v13  ;;  %v9057_v17 = vadd.f32 %v921_v33, %v533_v61  ;;  %v7076_v3 = vpop.f32.mrf.mxu0  ;;  %12244 = vst [vmem:[#allocation31_spill] sm:$0xff] %v9061_v22 }
 0x124   :  { %v7142_v25 = vpop.f32.mrf.mxu1 }
 0x125   :  { %v9063_v30 = vadd.f32 %v7142_v25, %v7076_v3  ;;  %v536_v40 = vpop.f32.mrf.mxu0 }
 0x126   :  { %v924_v35 = vpop.f32.mrf.mxu1 }
 0x127   :  { %12245 = vst [vmem:[#allocation32_spill] sm:$0xff] %v9063_v30  ;;  %v9065_v13 = vadd.f32 %v924_v35, %v536_v40  ;;  %v7079_v16 = vpop.f32.mrf.mxu0  ;;  %7310 = vmatmul.mubr.msk.bf16.gmra.mxu0 %vm222_vm1, %v9059_v21  ;;  %v6137_v35 = vld [vmem:[%s12196_s0 + $0x129] sm:$0xff] }
 0x128   :  { %v7145_v26 = vpop.f32.mrf.mxu1  ;;  %7376 = vmatmul.mubr.msk.bf16.gmra.mxu1 %vm222_vm1, %v8567_v42  ;;  %7313 = vmatprep.mubr.msk.bf16.mxu0 %vm222_vm1, %v9061_v22  ;;  %v6138_v42 = vld [vmem:[%s12196_s0 + $0x139] sm:$0xff]  ;;  %v9091_v25 = vpack.c.bf16 %v6137_v35, %v6136_v12  ;;  %v6140_v12 = vld [vmem:[%s12196_s0 + $0x151] sm:$0xff] }
 0x129   :  { %12246 = vst [vmem:[#allocation33_spill] sm:$0xff] %v9065_v13  ;;  %v9079_v46 = vadd.f32 %v7145_v26, %v7079_v16  ;;  %v549_v61 = vpop.f32.mrf.mxu0  ;;  %7379 = vmatprep.mubr.msk.bf16.mxu1 %vm222_vm1, %v8589_v48  ;;  %v9093_v26 = vpack.c.bf16 %v6139_v32, %v6138_v42  ;;  %v6143_v42 = vld [vmem:[%s12196_s0 + $0x171] sm:$0xff] }
 0x12a   :  { %v937_v27 = vpop.f32.mrf.mxu1 }
 0x12b   :  { %12247 = vst [vmem:[#allocation34_spill] sm:$0xff] %v9079_v46  ;;  %v9089_v33 = vadd.f32 %v937_v27, %v549_v61  ;;  %v7080_v3 = vpop.f32.mrf.mxu0  ;;  %12249 = vst [vmem:[#allocation36_spill] sm:$0xff] %v9093_v26 }
 0x12c   :  { %v7146_v16 = vpop.f32.mrf.mxu1 }
 0x12d   :  { %12248 = vst [vmem:[#allocation35_spill] sm:$0xff] %v9089_v33  ;;  %v9095_v40 = vadd.f32 %v7146_v16, %v7080_v3  ;;  %v552_v48 = vpop.f32.mrf.mxu0 }
 0x12e   :  { %v940_v22 = vpop.f32.mrf.mxu1 }
 0x12f   :  { %12250 = vst [vmem:[#allocation37_spill] sm:$0xff] %v9095_v40  ;;  %v9097_v46 = vadd.f32 %v940_v22, %v552_v48  ;;  %v7083_v13 = vpop.f32.mrf.mxu0  ;;  %7314 = vmatmul.mubr.msk.bf16.gmra.mxu0 %vm222_vm1, %v9091_v25  ;;  %v6141_v22 = vld [vmem:[%s12196_s0 + $0x159] sm:$0xff] }
 0x130   :  { %v7149_v30 = vpop.f32.mrf.mxu1  ;;  %7380 = vmatmul.mubr.msk.bf16.gmra.mxu1 %vm222_vm1, %v8591_v51  ;;  %7317 = vmatprep.mubr.msk.bf16.mxu0 %vm222_vm1, %v9093_v26  ;;  %v6142_v51 = vld [vmem:[%s12196_s0 + $0x169] sm:$0xff]  ;;  %v2178_v16 = vpack.c.bf16 %v6141_v22, %v6140_v12  ;;  %v6144_v12 = vld [vmem:[%s12196_s0 + $0x181] sm:$0xff] }
 0x131   :  { %12251 = vst [vmem:[#allocation38_spill] sm:$0xff] %v9097_v46  ;;  %v9111_v35 = vadd.f32 %v7149_v30, %v7083_v13  ;;  %v565_v61 = vpop.f32.mrf.mxu0  ;;  %7383 = vmatprep.mubr.msk.bf16.mxu1 %vm222_vm1, %v8613_v55  ;;  %v9123_v13 = vpack.c.bf16 %v6143_v42, %v6142_v51  ;;  %v6145_v22 = vld [vmem:[%s12196_s0 + $0x189] sm:$0xff] }
 0x132   :  { %v953_v32 = vpop.f32.mrf.mxu1  ;;  %v6146_v42 = vld [vmem:[%s12196_s0 + $0x1c9] sm:$0xff] }
 0x133   :  { %12252 = vst [vmem:[#allocation39_spill] sm:$0xff] %v9111_v35  ;;  %v9121_v27 = vadd.f32 %v953_v32, %v565_v61  ;;  %v7084_v3 = vpop.f32.mrf.mxu0  ;;  %12254 = vst [vmem:[#allocation41_spill] sm:$0xff] %v9123_v13  ;;  %v6147_v32 = vld [vmem:[%s12196_s0 + $0x1d1] sm:$0xff] }
 0x134   :  { %v7150_v48 = vpop.f32.mrf.mxu1 }
 0x135   :  { %12253 = vst [vmem:[#allocation40_spill] sm:$0xff] %v9121_v27  ;;  %v9125_v30 = vadd.f32 %v7150_v48, %v7084_v3  ;;  %v568_v26 = vpop.f32.mrf.mxu0 }
 0x136   :  { %v956_v55 = vpop.f32.mrf.mxu1 }
 0x137   :  { %12255 = vst [vmem:[#allocation42_spill] sm:$0xff] %v9125_v30  ;;  %v9127_v35 = vadd.f32 %v956_v55, %v568_v26  ;;  %v7087_v46 = vpop.f32.mrf.mxu0  ;;  %7318 = vmatmul.mubr.msk.bf16.gmra.mxu0 %vm222_vm1, %v2178_v16  ;;  %v6241_v26 = vld [vmem:[%s12196_s0 + $0x182] sm:$0xff] }
 0x138   :  { %v7153_v40 = vpop.f32.mrf.mxu1  ;;  %7384 = vmatmul.mubr.msk.bf16.gmra.mxu1 %vm222_vm1, %v8615_v58  ;;  %7321 = vmatprep.mubr.msk.bf16.mxu0 %vm222_vm1, %v9123_v13  ;;  %v6242_v58 = vld [vmem:[%s12196_s0 + $0x18a] sm:$0xff] }
 0x139   :  { %12256 = vst [vmem:[#allocation43_spill] sm:$0xff] %v9127_v35  ;;  %v9143_v61 = vadd.f32 %v7153_v40, %v7087_v46  ;;  %v581_v51 = vpop.f32.mrf.mxu0  ;;  %7387 = vmatprep.mubr.msk.bf16.mxu1 %vm222_vm1, %v8643_v6  ;;  %v2180_v40 = vpack.c.bf16 %v6145_v22, %v6144_v12  ;;  %v2730_v55 = vpack.c.bf16 %v6242_v58, %v6241_v26  ;;  %v6148_v12 = vld [vmem:[%s12196_s0 + $0x1e1] sm:$0xff]  ;;  %v6149_v22 = vld [vmem:[%s12196_s0 + $0x1e9] sm:$0xff] }
 0x13a   :  { %v969_v3 = vpop.f32.mrf.mxu1  ;;  %v2181_v6 = vpack.c.bf16 %v6147_v32, %v6146_v42 }
 0x13b   :  { %12257 = vst [vmem:[#allocation44_spill] sm:$0xff] %v9143_v61  ;;  %v9156_v16 = vadd.f32 %v969_v3, %v581_v51  ;;  %v7088_v46 = vpop.f32.mrf.mxu0  ;;  %v6151_v51 = vld [vmem:[%s12196_s0 + $0x201] sm:$0xff]  ;;  %v2182_v3 = vpack.c.bf16 %v6149_v22, %v6148_v12  ;;  %v6152_v12 = vld [vmem:[%s12196_s0 + $0x211] sm:$0xff]  ;;  %v6153_v22 = vld [vmem:[%s12196_s0 + $0x219] sm:$0xff] }
 0x13c   :  { %v7154_v48 = vpop.f32.mrf.mxu1 }
 0x13d   :  { %v9158_v13 = vadd.f32 %v7154_v48, %v7088_v46  ;;  %v584_v61 = vpop.f32.mrf.mxu0 }
 0x13e   :  { %v972_v35 = vpop.f32.mrf.mxu1 }
 0x13f   :  { %v9160_v30 = vadd.f32 %v972_v35, %v584_v61  ;;  %v7091_v27 = vpop.f32.mrf.mxu0  ;;  %7322 = vmatmul.mubr.msk.bf16.gmra.mxu0 %vm222_vm1, %v2180_v40  ;;  %v6150_v61 = vld [vmem:[%s12196_s0 + $0x1f9] sm:$0xff] }
 0x140   :  { %v7157_v33 = vpop.f32.mrf.mxu1  ;;  %7388 = vmatmul.mubr.msk.bf16.gmra.mxu1 %vm222_vm1, %v2730_v55  ;;  %7325 = vmatprep.mubr.msk.bf16.mxu0 %vm222_vm1, %v2181_v6 }
 0x141   :  { %v9171_v26 = vadd.f32 %v7157_v33, %v7091_v27  ;;  %v597_v35 = vpop.f32.mrf.mxu0  ;;  %7391 = vmatprep.mubr.msk.bf16.mxu1 %vm222_vm1, %v8663_v23  ;;  %v9183_v33 = vpack.c.bf16 %v6151_v51, %v6150_v61 }
 0x142   :  { %v985_v58 = vpop.f32.mrf.mxu1 }
 0x143   :  { %12258 = vst [vmem:[#allocation45_spill] sm:$0xff] %v9171_v26  ;;  %v9181_v42 = vadd.f32 %v985_v58, %v597_v35  ;;  %v7092_v32 = vpop.f32.mrf.mxu0  ;;  %12260 = vst [vmem:[#allocation47_spill] sm:$0xff] %v9183_v33 }
 0x144   :  { %v7158_v46 = vpop.f32.mrf.mxu1 }
 0x145   :  { %12259 = vst [vmem:[#allocation46_spill] sm:$0xff] %v9181_v42  ;;  %v9185_v27 = vadd.f32 %v7158_v46, %v7092_v32  ;;  %v600_v40 = vpop.f32.mrf.mxu0 }
 0x146   :  { %v988_v23 = vpop.f32.mrf.mxu1 }
 0x147   :  { %12261 = vst [vmem:[#allocation48_spill] sm:$0xff] %v9185_v27  ;;  %v9187_v48 = vadd.f32 %v988_v23, %v600_v40  ;;  %v7163_v55 = vpop.f32.mrf.mxu0  ;;  %7326 = vmatmul.mubr.msk.bf16.gmra.mxu0 %vm222_vm1, %v2182_v3  ;;  %v2184_v3 = vpack.c.bf16 %v6153_v22, %v6152_v12 }
 0x148   :  { %v1488_v6 = vadd.f32 %v7163_v55, %v8679_v45  ;;  %v7229_v26 = vpop.f32.mrf.mxu1  ;;  %7392 = vmatmul.mubr.msk.bf16.gmra.mxu1 %vm222_vm1, %v8665_v15  ;;  %7329 = vmatprep.mubr.msk.bf16.mxu0 %vm222_vm1, %v9183_v33  ;;  %v6154_v45 = vld [vmem:[%s12196_s0 + $0x229] sm:$0xff]  ;;  %v6155_v15 = vld [vmem:[%s12196_s0 + $0x231] sm:$0xff] }
 0x149   :  { %12262 = vst [vmem:[#allocation49_spill] sm:$0xff] %v9187_v48  ;;  %v1231_v35 = vpop.f32.mrf.mxu0  ;;  %7395 = vmatprep.mubr.msk.bf16.mxu1 %vm222_vm1, %v8691_v39  ;;  %v9215_v23 = vpack.c.bf16 %v6155_v15, %v6154_v45 }
 0x14a   :  { %v1486_v61 = vadd.f32 %v1231_v35, %v8689_v57  ;;  %v9210_v51 = vadd.f32 %v7229_v26, %v1488_v6  ;;  %v1782_v58 = vpop.f32.mrf.mxu1 }
 0x14b   :  { %v7164_v32 = vpop.f32.mrf.mxu0 }
 0x14c   :  { %v1489_v46 = vadd.f32 %v7164_v32, %v8695_v44  ;;  %v9213_v40 = vadd.f32 %v1782_v58, %v1486_v61  ;;  %v7230_v39 = vpop.f32.mrf.mxu1  ;;  %v6156_v44 = vld [vmem:[%s12196_s0 + $0x241] sm:$0xff] }
 0x14d   :  { %v1234_v55 = vpop.f32.mrf.mxu0 }
 0x14e   :  { %v1487_v33 = vadd.f32 %v1234_v55, %v8697_v7  ;;  %v9218_v48 = vadd.f32 %v7230_v39, %v1489_v46  ;;  %v1785_v27 = vpop.f32.mrf.mxu1  ;;  %v6157_v7 = vld [vmem:[%s12196_s0 + $0x249] sm:$0xff] }
 0x14f   :  { %v7167_v42 = vpop.f32.mrf.mxu0  ;;  %7330 = vmatmul.mubr.msk.bf16.gmra.mxu0 %vm222_vm1, %v2184_v3  ;;  %v2186_v35 = vpack.c.bf16 %v6157_v7, %v6156_v44 }
 0x150   :  { %v1492_v57 = vadd.f32 %v7167_v42, %v8711_v36  ;;  %v9222_v26 = vadd.f32 %v1785_v27, %v1487_v33  ;;  %v7233_v6 = vpop.f32.mrf.mxu1  ;;  %7396 = vmatmul.mubr.msk.bf16.gmra.mxu1 %vm222_vm1, %v8693_v5  ;;  %7333 = vmatprep.mubr.msk.bf16.mxu0 %vm222_vm1, %v9215_v23  ;;  %v6158_v36 = vld [vmem:[%s12196_s0 + $0x259] sm:$0xff]  ;;  %v6159_v5 = vld [vmem:[%s12196_s0 + $0x261] sm:$0xff] }
 0x151   :  { %v1247_v12 = vpop.f32.mrf.mxu0  ;;  %7399 = vmatprep.mubr.msk.bf16.mxu1 %vm222_vm1, %v8723_v9  ;;  %v9248_v61 = vpack.c.bf16 %v6159_v5, %v6158_v36 }
 0x152   :  { %v1490_v42 = vadd.f32 %v1247_v12, %v8721_v62  ;;  %v9243_v33 = vadd.f32 %v7233_v6, %v1492_v57  ;;  %v1798_v27 = vpop.f32.mrf.mxu1 }
 0x153   :  { %v7168_v22 = vpop.f32.mrf.mxu0 }
 0x154   :  { %v1493_v45 = vadd.f32 %v7168_v22, %v8727_v24  ;;  %v9246_v15 = vadd.f32 %v1798_v27, %v1490_v42  ;;  %v7234_v9 = vpop.f32.mrf.mxu1  ;;  %v6160_v24 = vld [vmem:[%s12196_s0 + $0x271] sm:$0xff] }
 0x155   :  { %v1250_v58 = vpop.f32.mrf.mxu0 }
 0x156   :  { %v1491_v32 = vadd.f32 %v1250_v58, %v8729_v11  ;;  %v9251_v3 = vadd.f32 %v7234_v9, %v1493_v45  ;;  %v1801_v46 = vpop.f32.mrf.mxu1  ;;  %v6161_v11 = vld [vmem:[%s12196_s0 + $0x279] sm:$0xff] }
 0x157   :  { %v7171_v39 = vpop.f32.mrf.mxu0  ;;  %7334 = vmatmul.mubr.msk.bf16.gmra.mxu0 %vm222_vm1, %v2186_v35  ;;  %v2188_v5 = vpack.c.bf16 %v6161_v11, %v6160_v24 }
 0x158   :  { %v1496_v62 = vadd.f32 %v7171_v39, %v8743_v28  ;;  %v9255_v55 = vadd.f32 %v1801_v46, %v1491_v32  ;;  %v7237_v57 = vpop.f32.mrf.mxu1  ;;  %7400 = vmatmul.mubr.msk.bf16.gmra.mxu1 %vm222_vm1, %v8725_v50  ;;  %7337 = vmatprep.mubr.msk.bf16.mxu0 %vm222_vm1, %v9248_v61  ;;  %v6162_v28 = vld [vmem:[%s12196_s0 + $0x289] sm:$0xff]  ;;  %v6163_v50 = vld [vmem:[%s12196_s0 + $0x291] sm:$0xff] }
 0x159   :  { %v1263_v6 = vpop.f32.mrf.mxu0  ;;  %7403 = vmatprep.mubr.msk.bf16.mxu1 %vm222_vm1, %v8755_v14  ;;  %v9281_v22 = vpack.c.bf16 %v6163_v50, %v6162_v28 }
 0x15a   :  { %v1494_v44 = vadd.f32 %v1263_v6, %v8753_v37  ;;  %v9276_v7 = vadd.f32 %v7237_v57, %v1496_v62  ;;  %v1814_v12 = vpop.f32.mrf.mxu1 }
 0x15b   :  { %v7172_v36 = vpop.f32.mrf.mxu0 }
 0x15c   :  { %v1497_v42 = vadd.f32 %v7172_v36, %v8759_v53  ;;  %v9279_v27 = vadd.f32 %v1814_v12, %v1494_v44  ;;  %v7238_v14 = vpop.f32.mrf.mxu1  ;;  %v6164_v53 = vld [vmem:[%s12196_s0 + $0x2a1] sm:$0xff] }
 0x15d   :  { %v1266_v35 = vpop.f32.mrf.mxu0 }
 0x15e   :  { %v1495_v45 = vadd.f32 %v1266_v35, %v8761_v20  ;;  %v9284_v9 = vadd.f32 %v7238_v14, %v1497_v42  ;;  %v1817_v58 = vpop.f32.mrf.mxu1  ;;  %v6165_v20 = vld [vmem:[%s12196_s0 + $0x2a9] sm:$0xff] }
 0x15f   :  { %v7175_v32 = vpop.f32.mrf.mxu0  ;;  %7338 = vmatmul.mubr.msk.bf16.gmra.mxu0 %vm222_vm1, %v2188_v5  ;;  %v2190_v28 = vpack.c.bf16 %v6165_v20, %v6164_v53 }
 0x160   :  { %v1500_v37 = vadd.f32 %v7175_v32, %v8775_v63  ;;  %v9288_v46 = vadd.f32 %v1817_v58, %v1495_v45  ;;  %v7241_v39 = vpop.f32.mrf.mxu1  ;;  %7404 = vmatmul.mubr.msk.bf16.gmra.mxu1 %vm222_vm1, %v8757_v18  ;;  %7341 = vmatprep.mubr.msk.bf16.mxu0 %vm222_vm1, %v9281_v22  ;;  %v6166_v63 = vld [vmem:[%s12196_s0 + $0x2b9] sm:$0xff]  ;;  %v6167_v18 = vld [vmem:[%s12196_s0 + $0x2c1] sm:$0xff] }
 0x161   :  { %v1279_v62 = vpop.f32.mrf.mxu0  ;;  %7407 = vmatprep.mubr.msk.bf16.mxu1 %vm222_vm1, %v8787_v0  ;;  %v9314_v12 = vpack.c.bf16 %v6167_v18, %v6166_v63  ;;  %v12264_v18 = vld [vmem:[#allocation5_spill] sm:$0xff] }
 0x162   :  { %v1498_v57 = vadd.f32 %v1279_v62, %v8785_v19  ;;  %v9309_v24 = vadd.f32 %v7241_v39, %v1500_v37  ;;  %v1830_v11 = vpop.f32.mrf.mxu1  ;;  %v12263_v37 = vld [vmem:[#allocation3_spill] sm:$0xff] }
 0x163   :  { %v7176_v6 = vpop.f32.mrf.mxu0 }
 0x164   :  { %v1501_v50 = vadd.f32 %v7176_v6, %v8791_v34  ;;  %v9312_v44 = vadd.f32 %v1830_v11, %v1498_v57  ;;  %v7242_v0 = vpop.f32.mrf.mxu1  ;;  %v6168_v34 = vld [vmem:[%s12196_s0 + $0x2d1] sm:$0xff] }
 0x165   :  { %v1282_v36 = vpop.f32.mrf.mxu0 }
 0x166   :  { %v1499_v5 = vadd.f32 %v1282_v36, %v8793_v47  ;;  %v9317_v42 = vadd.f32 %v7242_v0, %v1501_v50  ;;  %v1833_v14 = vpop.f32.mrf.mxu1  ;;  %v6169_v47 = vld [vmem:[%s12196_s0 + $0x2d9] sm:$0xff] }
 0x167   :  { %v7179_v35 = vpop.f32.mrf.mxu0  ;;  %7342 = vmatmul.mubr.msk.bf16.gmra.mxu0 %vm222_vm1, %v2190_v28  ;;  %v2192_v63 = vpack.c.bf16 %v6169_v47, %v6168_v34  ;;  %v12267_v50 = vld [vmem:[#allocation6_spill] sm:$0xff]  ;;  %v12271_v47 = vld [vmem:[#allocation4_spill] sm:$0xff] }
 0x168   :  { %v1504_v19 = vadd.f32 %v7179_v35, %v8807_v60  ;;  %v9321_v45 = vadd.f32 %v1833_v14, %v1499_v5  ;;  %v7245_v58 = vpop.f32.mrf.mxu1  ;;  %7408 = vmatmul.mubr.msk.bf16.gmra.mxu1 %vm222_vm1, %v8789_v2  ;;  %7345 = vmatprep.mubr.msk.bf16.mxu0 %vm222_vm1, %v9314_v12  ;;  %v6170_v60 = vld [vmem:[%s12196_s0 + $0x2e9] sm:$0xff]  ;;  %v6171_v2 = vld [vmem:[%s12196_s0 + $0x2f1] sm:$0xff]  ;;  %v12269_v35 = vld [vmem:[#allocation7_spill] sm:$0xff] }
 0x169   :  { %v1295_v32 = vpop.f32.mrf.mxu0  ;;  %7411 = vmatprep.mubr.msk.bf16.mxu1 %vm222_vm1, %v8819_v31  ;;  %v9347_v6 = vpack.c.bf16 %v6171_v2, %v6170_v60  ;;  %v6173_v60 = vld [vmem:[%s12196_s0 + $0x309] sm:$0xff] }
 0x16a   :  { %v1502_v39 = vadd.f32 %v1295_v32, %v12263_v37  ;;  %v9342_v53 = vadd.f32 %v7245_v58, %v1504_v19  ;;  %v1846_v20 = vpop.f32.mrf.mxu1  ;;  %v6172_v32 = vld [vmem:[%s12196_s0 + $0x301] sm:$0xff]  ;;  %v12272_v37 = vld [vmem:[#allocation9_spill] sm:$0xff] }
 0x16b   :  { %v7180_v62 = vpop.f32.mrf.mxu0  ;;  %12266 = vst [vmem:[#allocation5_spill] sm:$0xff] %v9347_v6 }
 0x16c   :  { %v1505_v57 = vadd.f32 %v7180_v62, %v12264_v18  ;;  %v9345_v11 = vadd.f32 %v1846_v20, %v1502_v39  ;;  %v7246_v31 = vpop.f32.mrf.mxu1  ;;  %v6174_v39 = vld [vmem:[%s12196_s0 + $0x319] sm:$0xff]  ;;  %v6175_v20 = vld [vmem:[%s12196_s0 + $0x321] sm:$0xff] }
 0x16d   :  { %v1298_v28 = vpop.f32.mrf.mxu0  ;;  %v12273_v62 = vld [vmem:[#allocation8_spill] sm:$0xff] }
 0x16e   :  { %12265 = vst [vmem:[#allocation3_spill] sm:$0xff] %v9345_v11  ;;  %v1503_v0 = vadd.f32 %v1298_v28, %v12267_v50  ;;  %v9350_v36 = vadd.f32 %v7246_v31, %v1505_v57  ;;  %v1849_v5 = vpop.f32.mrf.mxu1  ;;  %v2194_v28 = vpack.c.bf16 %v6173_v60, %v6172_v32  ;;  %v12274_v50 = vld [vmem:[#allocation11_spill] sm:$0xff]  ;;  %v12281_v60 = vld [vmem:[#allocation10_spill] sm:$0xff] }
 0x16f   :  { %v7183_v14 = vpop.f32.mrf.mxu0  ;;  %7346 = vmatmul.mubr.msk.bf16.gmra.mxu0 %vm222_vm1, %v2192_v63 }
 0x170   :  { %12268 = vst [vmem:[#allocation6_spill] sm:$0xff] %v9350_v36  ;;  %v1508_v19 = vadd.f32 %v7183_v14, %v12269_v35  ;;  %v9354_v58 = vadd.f32 %v1849_v5, %v1503_v0  ;;  %v7249_v34 = vpop.f32.mrf.mxu1  ;;  %7412 = vmatmul.mubr.msk.bf16.gmra.mxu1 %vm222_vm1, %v12271_v47  ;;  %7349 = vmatprep.mubr.msk.bf16.mxu0 %vm222_vm1, %v9347_v6 }
 0x171   :  { %v1311_v2 = vpop.f32.mrf.mxu0  ;;  %7415 = vmatprep.mubr.msk.bf16.mxu1 %vm222_vm1, %v12272_v37  ;;  %v9380_v35 = vpack.c.bf16 %v6175_v20, %v6174_v39  ;;  %v12277_v37 = vld [vmem:[#allocation12_spill] sm:$0xff]  ;;  %v6176_v39 = vld [vmem:[%s12196_s0 + $0x331] sm:$0xff]  ;;  %v6177_v20 = vld [vmem:[%s12196_s0 + $0x339] sm:$0xff] }
 0x172   :  { %12270 = vst [vmem:[#allocation7_spill] sm:$0xff] %v9354_v58  ;;  %v1506_v63 = vadd.f32 %v1311_v2, %v12273_v62  ;;  %v9375_v18 = vadd.f32 %v7249_v34, %v1508_v19  ;;  %v1862_v57 = vpop.f32.mrf.mxu1  ;;  %v12279_v19 = vld [vmem:[#allocation13_spill] sm:$0xff] }
 0x173   :  { %v7184_v31 = vpop.f32.mrf.mxu0  ;;  %12276 = vst [vmem:[#allocation9_spill] sm:$0xff] %v9380_v35  ;;  %v6308_v62 = vld [vmem:[%s12196_s0 + $0x30] sm:$0xff] }
 0x174   :  { %v1509_v0 = vadd.f32 %v7184_v31, %v12274_v50  ;;  %v9378_v5 = vadd.f32 %v1862_v57, %v1506_v63  ;;  %v7250_v14 = vpop.f32.mrf.mxu1  ;;  %v6309_v63 = vld [vmem:[%s12196_s0 + $0x38] sm:$0xff] }
 0x175   :  { %v1314_v47 = vpop.f32.mrf.mxu0 }
 0x176   :  { %12275 = vst [vmem:[#allocation4_spill] sm:$0xff] %v9378_v5  ;;  %v1507_v6 = vadd.f32 %v1314_v47, %v12277_v37  ;;  %v9383_v58 = vadd.f32 %v7250_v14, %v1509_v0  ;;  %v1865_v36 = vpop.f32.mrf.mxu1  ;;  %v2196_v0 = vpack.c.bf16 %v6177_v20, %v6176_v39  ;;  %v6312_v20 = vld [vmem:[%s12196_s0 + $0x60] sm:$0xff] }
 0x177   :  { %v7187_v11 = vpop.f32.mrf.mxu0  ;;  %7350 = vmatmul.mubr.msk.bf16.gmra.mxu0 %vm222_vm1, %v2194_v28 }
 0x178   :  { %12278 = vst [vmem:[#allocation8_spill] sm:$0xff] %v9383_v58  ;;  %v1512_v34 = vadd.f32 %v7187_v11, %v12279_v19  ;;  %v9387_v2 = vadd.f32 %v1865_v36, %v1507_v6  ;;  %v7253_v32 = vpop.f32.mrf.mxu1  ;;  %7416 = vmatmul.mubr.msk.bf16.gmra.mxu1 %vm222_vm1, %v12281_v60  ;;  %7353 = vmatprep.mubr.msk.bf16.mxu0 %vm222_vm1, %v9380_v35  ;;  %v6273_v11 = vld [vmem:[%s12196_s0 + $0x332] sm:$0xff]  ;;  %v6274_v36 = vld [vmem:[%s12196_s0 + $0x33a] sm:$0xff] }
 0x179   :  { %v1327_v6 = vpop.f32.mrf.mxu0  ;;  %7419 = vmatprep.mubr.msk.bf16.mxu1 %vm222_vm1, %v8889_v29  ;;  %v2746_v37 = vpack.c.bf16 %v6274_v36, %v6273_v11  ;;  %v3266_v19 = vpack.c.bf16 %v6309_v63, %v6308_v62  ;;  %v6313_v11 = vld [vmem:[%s12196_s0 + $0x68] sm:$0xff]  ;;  %v12283_v62 = vld [vmem:[#allocation15_spill] sm:$0xff] }
 0x17a   :  { %12280 = vst [vmem:[#allocation11_spill] sm:$0xff] %v9387_v2  ;;  %v1510_v57 = vadd.f32 %v1327_v6, %v8887_v1  ;;  %v9414_v31 = vadd.f32 %v7253_v32, %v1512_v34  ;;  %v1878_v28 = vpop.f32.mrf.mxu1 }
 0x17b   :  { %v7188_v50 = vpop.f32.mrf.mxu0 }
 0x17c   :  { %v1513_v29 = vadd.f32 %v7188_v50, %v8891_v4  ;;  %v9417_v14 = vadd.f32 %v1878_v28, %v1510_v57  ;;  %v7254_v47 = vpop.f32.mrf.mxu1  ;;  %v6310_v4 = vld [vmem:[%s12196_s0 + $0x48] sm:$0xff]  ;;  %v4497_v50 = vsel %vm319_vm0, %v8945_v59, 0  ;;  %v6314_v59 = vld [vmem:[%s12196_s0 + $0x78] sm:$0xff] }
 0x17d   :  { %v1330_v60 = vpop.f32.mrf.mxu0 }
 0x17e   :  { %v1511_v35 = vadd.f32 %v1330_v60, %v8893_v52  ;;  %v9420_v2 = vadd.f32 %v7254_v47, %v1513_v29  ;;  %v1881_v58 = vpop.f32.mrf.mxu1  ;;  %v6311_v52 = vld [vmem:[%s12196_s0 + $0x50] sm:$0xff] }
 0x17f   :  { %v7191_v5 = vpop.f32.mrf.mxu0  ;;  %7354 = vmatmul.mubr.msk.bf16.gmra.mxu0 %vm222_vm1, %v2196_v0  ;;  %v3267_v36 = vpack.c.bf16 %v6311_v52, %v6310_v4  ;;  %v3268_v0 = vpack.c.bf16 %v6313_v11, %v6312_v20  ;;  %v12284_v29 = vld [vmem:[#allocation17_spill] sm:$0xff]  ;;  %v6317_v20 = vld [vmem:[%s12196_s0 + $0x98] sm:$0xff] }
 0x180   :  { %v1516_v1 = vadd.f32 %v7191_v5, %v8905_v54  ;;  %v9424_v34 = vadd.f32 %v1881_v58, %v1511_v35  ;;  %v7257_v32 = vpop.f32.mrf.mxu1  ;;  %7420 = vmatmul.mubr.msk.bf16.gmra.mxu1 %vm222_vm1, %v2746_v37  ;;  %7425 = vmatprep.mubr.msk.bf16.mxu0 %vm222_vm1, %v3266_v19  ;;  %v12282_v54 = vld [vmem:[#allocation14_spill] sm:$0xff] }
 0x181   :  { %v1343_v39 = vpop.f32.mrf.mxu0  ;;  %7491 = vmatprep.mubr.msk.bf16.mxu1 %vm222_vm1, %v8917_v38 }
 0x182   :  { %v1514_v58 = vadd.f32 %v1343_v39, %v12282_v54  ;;  %v9437_v5 = vadd.f32 %v7257_v32, %v1516_v1  ;;  %v1894_v35 = vpop.f32.mrf.mxu1  ;;  %v12285_v1 = vld [vmem:[#allocation18_spill] sm:$0xff]  ;;  %v12286_v39 = vld [vmem:[#allocation16_spill] sm:$0xff]  ;;  %v6315_v54 = vld [vmem:[%s12196_s0 + $0x80] sm:$0xff] }
 0x183   :  { %v7192_v6 = vpop.f32.mrf.mxu0 }
 0x184   :  { %v1517_v63 = vadd.f32 %v7192_v6, %v12283_v62  ;;  %v9446_v57 = vadd.f32 %v1894_v35, %v1514_v58  ;;  %v7258_v38 = vpop.f32.mrf.mxu1  ;;  %v6316_v35 = vld [vmem:[%s12196_s0 + $0x90] sm:$0xff] }
 0x185   :  { %v1346_v28 = vpop.f32.mrf.mxu0 }
 0x186   :  { %v1515_v47 = vadd.f32 %v1346_v28, %v12284_v29  ;;  %v9451_v37 = vadd.f32 %v7258_v38, %v1517_v63  ;;  %v1897_v19 = vpop.f32.mrf.mxu1  ;;  %v3269_v63 = vpack.c.bf16 %v6315_v54, %v6314_v59  ;;  %v12287_v38 = vld [vmem:[#allocation20_spill] sm:$0xff]  ;;  %v12292_v54 = vld [vmem:[#allocation19_spill] sm:$0xff] }
 0x187   :  { %v7195_v60 = vpop.f32.mrf.mxu0  ;;  %7426 = vmatmul.mubr.msk.bf16.vlgmr.msra.gmra.mxu0 %vm222_vm1, %v3267_v36 }
 0x188   :  { %v1520_v32 = vadd.f32 %v7195_v60, %v12285_v1  ;;  %v9455_v4 = vadd.f32 %v1897_v19, %v1515_v47  ;;  %7556 = vmatpush3.bf16.msra.mxu0 %v4497_v50  ;;  %v7261_v52 = vpop.f32.mrf.mxu1  ;;  %7492 = vmatmul.mubr.msk.bf16.vlgmr.msra.gmra.mxu1 %vm222_vm1, %v12286_v39  ;;  %v12288_v47 = vld [vmem:[#allocation21_spill] sm:$0xff] }
 0x189   :  { %v1359_v58 = vpop.f32.mrf.mxu0  ;;  %7429 = vmatprep.mubr.msk.bf16.mxu0 %vm222_vm1, %v3268_v0  ;;  %7495 = vmatprep.mubr.msk.bf16.mxu1 %vm222_vm1, %v8963_v49  ;;  %v3270_v0 = vpack.c.bf16 %v6317_v20, %v6316_v35  ;;  %v6319_v35 = vld [vmem:[%s12196_s0 + $0xb0] sm:$0xff] }
 0x18a   :  { %v1518_v11 = vadd.f32 %v1359_v58, %v8961_v41  ;;  %v9475_v6 = vadd.f32 %v7261_v52, %v1520_v32  ;;  %v1910_v36 = vpop.f32.mrf.mxu1  ;;  %v12290_v41 = vld [vmem:[#allocation22_spill] sm:$0xff]  ;;  %v6318_v58 = vld [vmem:[%s12196_s0 + $0xa8] sm:$0xff] }
 0x18b   :  { %v7196_v62 = vpop.f32.mrf.mxu0 }
 0x18c   :  { %v1521_v28 = vadd.f32 %v7196_v62, %v12287_v38  ;;  %v9478_v50 = vadd.f32 %v1910_v36, %v1518_v11  ;;  %v7262_v49 = vpop.f32.mrf.mxu1  ;;  %v6320_v11 = vld [vmem:[%s12196_s0 + $0xc0] sm:$0xff]  ;;  %v6321_v36 = vld [vmem:[%s12196_s0 + $0xc8] sm:$0xff] }
 0x18d   :  { %v1362_v29 = vpop.f32.mrf.mxu0 }
 0x18e   :  { %v1519_v19 = vadd.f32 %v1362_v29, %v12288_v47  ;;  %v9481_v60 = vadd.f32 %v7262_v49, %v1521_v28  ;;  %v1913_v1 = vpop.f32.mrf.mxu1  ;;  %v3271_v49 = vpack.c.bf16 %v6319_v35, %v6318_v58  ;;  %v12298_v35 = vld [vmem:[#allocation23_spill] sm:$0xff] }
 0x18f   :  { %v7199_v39 = vpop.f32.mrf.mxu0  ;;  %7430 = vmatmul.mubr.msk.bf16.gmra.mxu0 %vm222_vm1, %v3269_v63 }
 0x190   :  { %12289 = vst [vmem:[#allocation12_spill] sm:$0xff] %v9481_v60  ;;  %v1524_v32 = vadd.f32 %v7199_v39, %v12290_v41  ;;  %v9485_v52 = vadd.f32 %v1913_v1, %v1519_v19  ;;  %v7265_v59 = vpop.f32.mrf.mxu1  ;;  %7496 = vmatmul.mubr.msk.bf16.gmra.mxu1 %vm222_vm1, %v12292_v54  ;;  %7433 = vmatprep.mubr.msk.bf16.mxu0 %vm222_vm1, %v3270_v0  ;;  %v12293_v0 = vld [vmem:[#allocation24_spill] sm:$0xff]  ;;  %v12294_v39 = vld [vmem:[#allocation25_spill] sm:$0xff] }
 0x191   :  { %v1375_v20 = vpop.f32.mrf.mxu0  ;;  %7499 = vmatprep.mubr.msk.bf16.mxu1 %vm222_vm1, %v8995_v56  ;;  %v3272_v19 = vpack.c.bf16 %v6321_v36, %v6320_v11  ;;  %v6323_v11 = vld [vmem:[%s12196_s0 + $0xe0] sm:$0xff] }
 0x192   :  { %12291 = vst [vmem:[#allocation13_spill] sm:$0xff] %v9485_v52  ;;  %v1522_v62 = vadd.f32 %v1375_v20, %v8993_v10  ;;  %v9505_v63 = vadd.f32 %v7265_v59, %v1524_v32  ;;  %v1926_v38 = vpop.f32.mrf.mxu1  ;;  %v12296_v10 = vld [vmem:[#allocation26_spill] sm:$0xff] }
 0x193   :  { %v7200_v28 = vpop.f32.mrf.mxu0  ;;  %v6322_v20 = vld [vmem:[%s12196_s0 + $0xd8] sm:$0xff] }
 0x194   :  { %v1525_v29 = vadd.f32 %v7200_v28, %v12293_v0  ;;  %v9508_v47 = vadd.f32 %v1926_v38, %v1522_v62  ;;  %v7266_v56 = vpop.f32.mrf.mxu1  ;;  %v3273_v0 = vpack.c.bf16 %v6323_v11, %v6322_v20  ;;  %v12304_v11 = vld [vmem:[#allocation27_spill] sm:$0xff] }
 0x195   :  { %v1378_v1 = vpop.f32.mrf.mxu0 }
 0x196   :  { %v1523_v41 = vadd.f32 %v1378_v1, %v12294_v39  ;;  %v9511_v54 = vadd.f32 %v7266_v56, %v1525_v29  ;;  %v1929_v52 = vpop.f32.mrf.mxu1  ;;  %v12299_v29 = vld [vmem:[#allocation28_spill] sm:$0xff] }
 0x197   :  { %v7203_v60 = vpop.f32.mrf.mxu0  ;;  %7434 = vmatmul.mubr.msk.bf16.gmra.mxu0 %vm222_vm1, %v3271_v49 }
 0x198   :  { %12295 = vst [vmem:[#allocation10_spill] sm:$0xff] %v9511_v54  ;;  %v1528_v32 = vadd.f32 %v7203_v60, %v12296_v10  ;;  %v9515_v59 = vadd.f32 %v1929_v52, %v1523_v41  ;;  %v7269_v58 = vpop.f32.mrf.mxu1  ;;  %7500 = vmatmul.mubr.msk.bf16.gmra.mxu1 %vm222_vm1, %v12298_v35  ;;  %7437 = vmatprep.mubr.msk.bf16.mxu0 %vm222_vm1, %v3272_v19  ;;  %v6324_v60 = vld [vmem:[%s12196_s0 + $0xf0] sm:$0xff]  ;;  %v6325_v52 = vld [vmem:[%s12196_s0 + $0xf8] sm:$0xff] }
 0x199   :  { %v1391_v36 = vpop.f32.mrf.mxu0  ;;  %7503 = vmatprep.mubr.msk.bf16.mxu1 %vm222_vm1, %v9027_v43  ;;  %v3274_v1 = vpack.c.bf16 %v6325_v52, %v6324_v60  ;;  %v12300_v41 = vld [vmem:[#allocation29_spill] sm:$0xff] }
 0x19a   :  { %12297 = vst [vmem:[#allocation14_spill] sm:$0xff] %v9515_v59  ;;  %v1526_v62 = vadd.f32 %v1391_v36, %v9025_v8  ;;  %v9535_v38 = vadd.f32 %v7269_v58, %v1528_v32  ;;  %v1942_v28 = vpop.f32.mrf.mxu1  ;;  %v12302_v8 = vld [vmem:[#allocation30_spill] sm:$0xff]  ;;  %v6326_v36 = vld [vmem:[%s12196_s0 + $0x108] sm:$0xff]  ;;  %v6327_v60 = vld [vmem:[%s12196_s0 + $0x110] sm:$0xff] }
 0x19b   :  { %v7204_v49 = vpop.f32.mrf.mxu0 }
 0x19c   :  { %v1529_v56 = vadd.f32 %v7204_v49, %v12299_v29  ;;  %v9538_v19 = vadd.f32 %v1942_v28, %v1526_v62  ;;  %v7270_v43 = vpop.f32.mrf.mxu1  ;;  %v3275_v29 = vpack.c.bf16 %v6327_v60, %v6326_v36  ;;  %v12312_v60 = vld [vmem:[#allocation31_spill] sm:$0xff] }
 0x19d   :  { %v1394_v39 = vpop.f32.mrf.mxu0 }
 0x19e   :  { %v1527_v10 = vadd.f32 %v1394_v39, %v12300_v41  ;;  %v9541_v35 = vadd.f32 %v7270_v43, %v1529_v56  ;;  %v1945_v59 = vpop.f32.mrf.mxu1  ;;  %v12306_v56 = vld [vmem:[#allocation32_spill] sm:$0xff] }
 0x19f   :  { %v7207_v54 = vpop.f32.mrf.mxu0  ;;  %7438 = vmatmul.mubr.msk.bf16.gmra.mxu0 %vm222_vm1, %v3273_v0 }
 0x1a0   :  { %12301 = vst [vmem:[#allocation15_spill] sm:$0xff] %v9541_v35  ;;  %v1532_v32 = vadd.f32 %v7207_v54, %v12302_v8  ;;  %v9545_v58 = vadd.f32 %v1945_v59, %v1527_v10  ;;  %v7273_v20 = vpop.f32.mrf.mxu1  ;;  %7504 = vmatmul.mubr.msk.bf16.gmra.mxu1 %vm222_vm1, %v12304_v11  ;;  %7441 = vmatprep.mubr.msk.bf16.mxu0 %vm222_vm1, %v3274_v1  ;;  %v6328_v54 = vld [vmem:[%s12196_s0 + $0x120] sm:$0xff]  ;;  %v6329_v59 = vld [vmem:[%s12196_s0 + $0x128] sm:$0xff]  ;;  %v12308_v10 = vld [vmem:[#allocation33_spill] sm:$0xff] }
 0x1a1   :  { %v1407_v52 = vpop.f32.mrf.mxu0  ;;  %7507 = vmatprep.mubr.msk.bf16.mxu1 %vm222_vm1, %v9059_v21  ;;  %v3276_v39 = vpack.c.bf16 %v6329_v59, %v6328_v54  ;;  %v6331_v54 = vld [vmem:[%s12196_s0 + $0x140] sm:$0xff] }
 0x1a2   :  { %12303 = vst [vmem:[#allocation17_spill] sm:$0xff] %v9545_v58  ;;  %v1530_v62 = vadd.f32 %v1407_v52, %v9057_v17  ;;  %v9565_v28 = vadd.f32 %v7273_v20, %v1532_v32  ;;  %v1958_v49 = vpop.f32.mrf.mxu1  ;;  %v12310_v17 = vld [vmem:[#allocation34_spill] sm:$0xff] }
 0x1a3   :  { %v7208_v0 = vpop.f32.mrf.mxu0  ;;  %v6330_v52 = vld [vmem:[%s12196_s0 + $0x138] sm:$0xff] }
 0x1a4   :  { %12305 = vst [vmem:[#allocation18_spill] sm:$0xff] %v9565_v28  ;;  %v1533_v43 = vadd.f32 %v7208_v0, %v12306_v56  ;;  %v9568_v1 = vadd.f32 %v1958_v49, %v1530_v62  ;;  %v7274_v21 = vpop.f32.mrf.mxu1  ;;  %v12313_v62 = vld [vmem:[#allocation35_spill] sm:$0xff]  ;;  %v6429_v56 = vld [vmem:[%s12196_s0 + $0x151] sm:$0xff] }
 0x1a5   :  { %v1410_v41 = vpop.f32.mrf.mxu0 }
 0x1a6   :  { %12307 = vst [vmem:[#allocation16_spill] sm:$0xff] %v9568_v1  ;;  %v1531_v8 = vadd.f32 %v1410_v41, %v12308_v10  ;;  %v9571_v11 = vadd.f32 %v7274_v21, %v1533_v43  ;;  %v1961_v58 = vpop.f32.mrf.mxu1  ;;  %v3277_v21 = vpack.c.bf16 %v6331_v54, %v6330_v52  ;;  %v12321_v54 = vld [vmem:[#allocation36_spill] sm:$0xff] }
 0x1a7   :  { %v7211_v35 = vpop.f32.mrf.mxu0  ;;  %7442 = vmatmul.mubr.msk.bf16.gmra.mxu0 %vm222_vm1, %v3275_v29 }
 0x1a8   :  { %12309 = vst [vmem:[#allocation20_spill] sm:$0xff] %v9571_v11  ;;  %v1536_v32 = vadd.f32 %v7211_v35, %v12310_v17  ;;  %v9575_v20 = vadd.f32 %v1961_v58, %v1531_v8  ;;  %v7277_v36 = vpop.f32.mrf.mxu1  ;;  %7508 = vmatmul.mubr.msk.bf16.gmra.mxu1 %vm222_vm1, %v12312_v60  ;;  %7445 = vmatprep.mubr.msk.bf16.mxu0 %vm222_vm1, %v3276_v39  ;;  %v6332_v35 = vld [vmem:[%s12196_s0 + $0x150] sm:$0xff]  ;;  %v6333_v58 = vld [vmem:[%s12196_s0 + $0x158] sm:$0xff]  ;;  %v12319_v11 = vld [vmem:[#allocation39_spill] sm:$0xff] }
 0x1a9   :  { %v1423_v59 = vpop.f32.mrf.mxu0  ;;  %7511 = vmatprep.mubr.msk.bf16.mxu1 %vm222_vm1, %v9091_v25  ;;  %v6430_v25 = vld [vmem:[%s12196_s0 + $0x159] sm:$0xff]  ;;  %v12315_v39 = vld [vmem:[#allocation37_spill] sm:$0xff]  ;;  %v3278_v17 = vpack.c.bf16 %v6333_v58, %v6332_v35  ;;  %v6334_v35 = vld [vmem:[%s12196_s0 + $0x168] sm:$0xff] }
 0x1aa   :  { %12311 = vst [vmem:[#allocation21_spill] sm:$0xff] %v9575_v20  ;;  %v1534_v49 = vadd.f32 %v1423_v59, %v12313_v62  ;;  %v9595_v0 = vadd.f32 %v7277_v36, %v1536_v32  ;;  %v1974_v29 = vpop.f32.mrf.mxu1  ;;  %v3828_v32 = vpack.c.bf16 %v6430_v25, %v6429_v56  ;;  %v12317_v36 = vld [vmem:[#allocation38_spill] sm:$0xff]  ;;  %v6335_v58 = vld [vmem:[%s12196_s0 + $0x170] sm:$0xff] }
 0x1ab   :  { %v7212_v43 = vpop.f32.mrf.mxu0 }
 0x1ac   :  { %12314 = vst [vmem:[#allocation22_spill] sm:$0xff] %v9595_v0  ;;  %v1537_v41 = vadd.f32 %v7212_v43, %v12315_v39  ;;  %v9604_v10 = vadd.f32 %v1974_v29, %v1534_v49  ;;  %v7278_v8 = vpop.f32.mrf.mxu1  ;;  %v6433_v43 = vld [vmem:[%s12196_s0 + $0x181] sm:$0xff] }
 0x1ad   :  { %v1426_v60 = vpop.f32.mrf.mxu0 }
 0x1ae   :  { %12316 = vst [vmem:[#allocation19_spill] sm:$0xff] %v9604_v10  ;;  %v1535_v59 = vadd.f32 %v1426_v60, %v12317_v36  ;;  %v9607_v62 = vadd.f32 %v7278_v8, %v1537_v41  ;;  %v1977_v0 = vpop.f32.mrf.mxu1  ;;  %v3279_v41 = vpack.c.bf16 %v6335_v58, %v6334_v35  ;;  %v12324_v8 = vld [vmem:[#allocation42_spill] sm:$0xff]  ;;  %v12329_v58 = vld [vmem:[#allocation41_spill] sm:$0xff] }
 0x1af   :  { %v7215_v20 = vpop.f32.mrf.mxu0  ;;  %7446 = vmatmul.mubr.msk.bf16.gmra.mxu0 %vm222_vm1, %v3277_v21  ;;  %v6434_v21 = vld [vmem:[%s12196_s0 + $0x189] sm:$0xff] }
 0x1b0   :  { %12318 = vst [vmem:[#allocation24_spill] sm:$0xff] %v9607_v62  ;;  %v1540_v1 = vadd.f32 %v7215_v20, %v12319_v11  ;;  %v9611_v28 = vadd.f32 %v1977_v0, %v1535_v59  ;;  %v7281_v52 = vpop.f32.mrf.mxu1  ;;  %7512 = vmatmul.mubr.msk.bf16.gmra.mxu1 %vm222_vm1, %v12321_v54  ;;  %7449 = vmatprep.mubr.msk.bf16.mxu0 %vm222_vm1, %v3278_v17  ;;  %v6336_v11 = vld [vmem:[%s12196_s0 + $0x180] sm:$0xff]  ;;  %v6337_v20 = vld [vmem:[%s12196_s0 + $0x188] sm:$0xff] }
 0x1b1   :  { %v1439_v49 = vpop.f32.mrf.mxu0  ;;  %7515 = vmatprep.mubr.msk.bf16.mxu1 %vm222_vm1, %v3828_v32  ;;  %v12322_v0 = vld [vmem:[#allocation40_spill] sm:$0xff]  ;;  %v3280_v36 = vpack.c.bf16 %v6337_v20, %v6336_v11  ;;  %v6338_v11 = vld [vmem:[%s12196_s0 + $0x198] sm:$0xff]  ;;  %v6339_v20 = vld [vmem:[%s12196_s0 + $0x1a0] sm:$0xff] }
 0x1b2   :  { %12320 = vst [vmem:[#allocation25_spill] sm:$0xff] %v9611_v28  ;;  %v1538_v29 = vadd.f32 %v1439_v49, %v12322_v0  ;;  %v9630_v56 = vadd.f32 %v7281_v52, %v1540_v1  ;;  %v1990_v25 = vpop.f32.mrf.mxu1  ;;  %v3830_v1 = vpack.c.bf16 %v6434_v21, %v6433_v43  ;;  %v12325_v52 = vld [vmem:[#allocation43_spill] sm:$0xff]  ;;  %v12327_v28 = vld [vmem:[#allocation44_spill] sm:$0xff] }
 0x1b3   :  { %v7216_v39 = vpop.f32.mrf.mxu0  ;;  %v6341_v43 = vld [vmem:[%s12196_s0 + $0x1e8] sm:$0xff] }
 0x1b4   :  { %12323 = vst [vmem:[#allocation26_spill] sm:$0xff] %v9630_v56  ;;  %v1541_v17 = vadd.f32 %v7216_v39, %v12324_v8  ;;  %v9639_v60 = vadd.f32 %v1990_v25, %v1538_v29  ;;  %v7282_v32 = vpop.f32.mrf.mxu1  ;;  %v6340_v25 = vld [vmem:[%s12196_s0 + $0x1e0] sm:$0xff] }
 0x1b5   :  { %v1442_v59 = vpop.f32.mrf.mxu0  ;;  %v6437_v8 = vld [vmem:[%s12196_s0 + $0x1e1] sm:$0xff] }
 0x1b6   :  { %v1539_v54 = vadd.f32 %v1442_v59, %v12325_v52  ;;  %v9642_v49 = vadd.f32 %v7282_v32, %v1541_v17  ;;  %v1993_v0 = vpop.f32.mrf.mxu1  ;;  %v6438_v17 = vld [vmem:[%s12196_s0 + $0x1e9] sm:$0xff] }
 0x1b7   :  { %v7219_v56 = vpop.f32.mrf.mxu0  ;;  %7450 = vmatmul.mubr.msk.bf16.gmra.mxu0 %vm222_vm1, %v3279_v41 }
 0x1b8   :  { %12326 = vst [vmem:[#allocation23_spill] sm:$0xff] %v9642_v49  ;;  %v1544_v62 = vadd.f32 %v7219_v56, %v12327_v28  ;;  %v9646_v10 = vadd.f32 %v1993_v0, %v1539_v54  ;;  %v7285_v35 = vpop.f32.mrf.mxu1  ;;  %7516 = vmatmul.mubr.msk.bf16.gmra.mxu1 %vm222_vm1, %v12329_v58  ;;  %7453 = vmatprep.mubr.msk.bf16.mxu0 %vm222_vm1, %v3280_v36  ;;  %v6435_v28 = vld [vmem:[%s12196_s0 + $0x199] sm:$0xff]  ;;  %v6436_v56 = vld [vmem:[%s12196_s0 + $0x1a1] sm:$0xff] }
 0x1b9   :  { %v1455_v29 = vpop.f32.mrf.mxu0  ;;  %7519 = vmatprep.mubr.msk.bf16.mxu1 %vm222_vm1, %v3830_v1  ;;  %v3281_v36 = vpack.c.bf16 %v6339_v20, %v6338_v11  ;;  %v3831_v54 = vpack.c.bf16 %v6436_v56, %v6435_v28  ;;  %v3832_v0 = vpack.c.bf16 %v6438_v17, %v6437_v8  ;;  %v6342_v20 = vld [vmem:[%s12196_s0 + $0x1f8] sm:$0xff] }
 0x1ba   :  { %12328 = vst [vmem:[#allocation28_spill] sm:$0xff] %v9646_v10  ;;  %v1542_v21 = vadd.f32 %v1455_v29, %v9156_v16  ;;  %v9671_v39 = vadd.f32 %v7285_v35, %v1544_v62  ;;  %v2006_v41 = vpop.f32.mrf.mxu1  ;;  %v3282_v16 = vpack.c.bf16 %v6341_v43, %v6340_v25  ;;  %v12331_v10 = vld [vmem:[#allocation45_spill] sm:$0xff]  ;;  %v6345_v56 = vld [vmem:[%s12196_s0 + $0x218] sm:$0xff] }
 0x1bb   :  { %v7220_v32 = vpop.f32.mrf.mxu0  ;;  %v12332_v25 = vld [vmem:[#allocation46_spill] sm:$0xff] }
 0x1bc   :  { %12330 = vst [vmem:[#allocation29_spill] sm:$0xff] %v9671_v39  ;;  %v1545_v59 = vadd.f32 %v7220_v32, %v9158_v13  ;;  %v9680_v1 = vadd.f32 %v2006_v41, %v1542_v21  ;;  %v7286_v52 = vpop.f32.mrf.mxu1  ;;  %v6441_v41 = vld [vmem:[%s12196_s0 + $0x211] sm:$0xff]  ;;  %v6442_v8 = vld [vmem:[%s12196_s0 + $0x219] sm:$0xff] }
 0x1bd   :  { %v1458_v62 = vpop.f32.mrf.mxu0 }
 0x1be   :  { %v1543_v35 = vadd.f32 %v1458_v62, %v9160_v30  ;;  %v9683_v58 = vadd.f32 %v7286_v52, %v1545_v59  ;;  %v2009_v29 = vpop.f32.mrf.mxu1  ;;  %v6343_v30 = vld [vmem:[%s12196_s0 + $0x200] sm:$0xff] }
 0x1bf   :  { %v7223_v39 = vpop.f32.mrf.mxu0  ;;  %7454 = vmatmul.mubr.msk.bf16.gmra.mxu0 %vm222_vm1, %v3281_v36  ;;  %v3283_v32 = vpack.c.bf16 %v6343_v30, %v6342_v20  ;;  %v12333_v36 = vld [vmem:[#allocation48_spill] sm:$0xff] }
 0x1c0   :  { %v1548_v49 = vadd.f32 %v7223_v39, %v12331_v10  ;;  %v9687_v11 = vadd.f32 %v2009_v29, %v1543_v35  ;;  %v7289_v13 = vpop.f32.mrf.mxu1  ;;  %7520 = vmatmul.mubr.msk.bf16.gmra.mxu1 %vm222_vm1, %v3831_v54  ;;  %7457 = vmatprep.mubr.msk.bf16.mxu0 %vm222_vm1, %v3282_v16  ;;  %v6344_v10 = vld [vmem:[%s12196_s0 + $0x210] sm:$0xff] }
 0x1c1   :  { %v1471_v28 = vpop.f32.mrf.mxu0  ;;  %7523 = vmatprep.mubr.msk.bf16.mxu1 %vm222_vm1, %v3832_v0  ;;  %v3284_v16 = vpack.c.bf16 %v6345_v56, %v6344_v10  ;;  %v12334_v0 = vld [vmem:[#allocation49_spill] sm:$0xff]  ;;  %v6346_v10 = vld [vmem:[%s12196_s0 + $0x228] sm:$0xff] }
 0x1c2   :  { %v1546_v43 = vadd.f32 %v1471_v28, %v12332_v25  ;;  %v9705_v21 = vadd.f32 %v7289_v13, %v1548_v49  ;;  %v2022_v39 = vpop.f32.mrf.mxu1  ;;  %v3834_v49 = vpack.c.bf16 %v6442_v8, %v6441_v41  ;;  %v6347_v56 = vld [vmem:[%s12196_s0 + $0x230] sm:$0xff] }
 0x1c3   :  { %v7224_v17 = vpop.f32.mrf.mxu0 }
 0x1c4   :  { %v1549_v59 = vadd.f32 %v7224_v17, %v12333_v36  ;;  %v9714_v52 = vadd.f32 %v2022_v39, %v1546_v43  ;;  %v7290_v54 = vpop.f32.mrf.mxu1  ;;  %v12335_v17 = vld [vmem:[#allocation47_spill] sm:$0xff]  ;;  %v6349_v39 = vld [vmem:[%s12196_s0 + $0x248] sm:$0xff] }
 0x1c5   :  { %v1474_v62 = vpop.f32.mrf.mxu0  ;;  %v6445_v36 = vld [vmem:[%s12196_s0 + $0x241] sm:$0xff] }
 0x1c6   :  { %v1547_v35 = vadd.f32 %v1474_v62, %v12334_v0  ;;  %v9717_v29 = vadd.f32 %v7290_v54, %v1549_v59  ;;  %v2025_v13 = vpop.f32.mrf.mxu1  ;;  %v6446_v59 = vld [vmem:[%s12196_s0 + $0x249] sm:$0xff] }
 0x1c7   :  { %v7295_v28 = vpop.f32.mrf.mxu0  ;;  %7458 = vmatmul.mubr.msk.bf16.gmra.mxu0 %vm222_vm1, %v3283_v32 }
 0x1c8   :  { %v9720_v25 = vadd.f32 %v2025_v13, %v1547_v35  ;;  %v2589_v20 = vadd.f32 %v7295_v28, %v9210_v51  ;;  %v7361_v30 = vpop.f32.mrf.mxu1  ;;  %7524 = vmatmul.mubr.msk.bf16.gmra.mxu1 %vm222_vm1, %v12335_v17  ;;  %7461 = vmatprep.mubr.msk.bf16.mxu0 %vm222_vm1, %v3284_v16  ;;  %v6348_v51 = vld [vmem:[%s12196_s0 + $0x240] sm:$0xff]  ;;  %v3285_v16 = vpack.c.bf16 %v6347_v56, %v6346_v10 }
 0x1c9   :  { %v2332_v43 = vpop.f32.mrf.mxu0  ;;  %7527 = vmatprep.mubr.msk.bf16.mxu1 %vm222_vm1, %v3834_v49  ;;  %v3286_v35 = vpack.c.bf16 %v6349_v39, %v6348_v51  ;;  %v3836_v13 = vpack.c.bf16 %v6446_v59, %v6445_v36  ;;  %v6450_v36 = vld [vmem:[%s12196_s0 + $0x279] sm:$0xff] }
 0x1ca   :  { %v2587_v41 = vadd.f32 %v2332_v43, %v9213_v40  ;;  %v9740_v8 = vadd.f32 %v7361_v30, %v2589_v20  ;;  %v2882_v32 = vpop.f32.mrf.mxu1 }
 0x1cb   :  { %v7296_v54 = vpop.f32.mrf.mxu0 }
 0x1cc   :  { %12336 = vst [vmem:[#allocation30_spill] sm:$0xff] %v9740_v8  ;;  %v2590_v62 = vadd.f32 %v7296_v54, %v9218_v48  ;;  %v9749_v49 = vadd.f32 %v2882_v32, %v2587_v41  ;;  %v7362_v0 = vpop.f32.mrf.mxu1  ;;  %v6350_v48 = vld [vmem:[%s12196_s0 + $0x258] sm:$0xff] }
 0x1cd   :  { %v2335_v40 = vpop.f32.mrf.mxu0  ;;  %v6449_v32 = vld [vmem:[%s12196_s0 + $0x271] sm:$0xff] }
 0x1ce   :  { %v2588_v28 = vadd.f32 %v2335_v40, %v9222_v26  ;;  %v9752_v20 = vadd.f32 %v7362_v0, %v2590_v62  ;;  %v2885_v30 = vpop.f32.mrf.mxu1  ;;  %v6351_v26 = vld [vmem:[%s12196_s0 + $0x260] sm:$0xff]  ;;  %v3838_v40 = vpack.c.bf16 %v6450_v36, %v6449_v32 }
 0x1cf   :  { %v7299_v17 = vpop.f32.mrf.mxu0  ;;  %7462 = vmatmul.mubr.msk.bf16.gmra.mxu0 %vm222_vm1, %v3285_v16  ;;  %v3287_v54 = vpack.c.bf16 %v6351_v26, %v6350_v48 }
 0x1d0   :  { %v2593_v43 = vadd.f32 %v7299_v17, %v9243_v33  ;;  %v9756_v8 = vadd.f32 %v2885_v30, %v2588_v28  ;;  %v7365_v10 = vpop.f32.mrf.mxu1  ;;  %7528 = vmatmul.mubr.msk.bf16.gmra.mxu1 %vm222_vm1, %v9215_v23  ;;  %7465 = vmatprep.mubr.msk.bf16.mxu0 %vm222_vm1, %v3286_v35  ;;  %v6352_v33 = vld [vmem:[%s12196_s0 + $0x270] sm:$0xff]  ;;  %v6353_v23 = vld [vmem:[%s12196_s0 + $0x278] sm:$0xff] }
 0x1d1   :  { %v2348_v56 = vpop.f32.mrf.mxu0  ;;  %7531 = vmatprep.mubr.msk.bf16.mxu1 %vm222_vm1, %v3836_v13  ;;  %v3288_v35 = vpack.c.bf16 %v6353_v23, %v6352_v33 }
 0x1d2   :  { %v2591_v51 = vadd.f32 %v2348_v56, %v9246_v15  ;;  %v9775_v39 = vadd.f32 %v7365_v10, %v2593_v43  ;;  %v2898_v41 = vpop.f32.mrf.mxu1 }
 0x1d3   :  { %v7300_v59 = vpop.f32.mrf.mxu0 }
 0x1d4   :  { %v2594_v16 = vadd.f32 %v7300_v59, %v9251_v3  ;;  %v9784_v62 = vadd.f32 %v2898_v41, %v2591_v51  ;;  %v7366_v0 = vpop.f32.mrf.mxu1  ;;  %v6354_v3 = vld [vmem:[%s12196_s0 + $0x288] sm:$0xff] }
 0x1d5   :  { %v2351_v15 = vpop.f32.mrf.mxu0  ;;  %v6453_v51 = vld [vmem:[%s12196_s0 + $0x2a1] sm:$0xff]  ;;  %v6454_v41 = vld [vmem:[%s12196_s0 + $0x2a9] sm:$0xff] }
 0x1d6   :  { %v2592_v13 = vadd.f32 %v2351_v15, %v9255_v55  ;;  %v9787_v28 = vadd.f32 %v7366_v0, %v2594_v16  ;;  %v2901_v30 = vpop.f32.mrf.mxu1  ;;  %v6355_v55 = vld [vmem:[%s12196_s0 + $0x290] sm:$0xff] }
 0x1d7   :  { %v7303_v17 = vpop.f32.mrf.mxu0  ;;  %7466 = vmatmul.mubr.msk.bf16.gmra.mxu0 %vm222_vm1, %v3287_v54  ;;  %v3289_v36 = vpack.c.bf16 %v6355_v55, %v6354_v3 }
 0x1d8   :  { %v2597_v43 = vadd.f32 %v7303_v17, %v9276_v7  ;;  %v9791_v10 = vadd.f32 %v2901_v30, %v2592_v13  ;;  %v7369_v48 = vpop.f32.mrf.mxu1  ;;  %7532 = vmatmul.mubr.msk.bf16.gmra.mxu1 %vm222_vm1, %v9248_v61  ;;  %7469 = vmatprep.mubr.msk.bf16.mxu0 %vm222_vm1, %v3288_v35  ;;  %v6356_v7 = vld [vmem:[%s12196_s0 + $0x2a0] sm:$0xff]  ;;  %v6357_v61 = vld [vmem:[%s12196_s0 + $0x2a8] sm:$0xff]  ;;  %v3840_v35 = vpack.c.bf16 %v6454_v41, %v6453_v51 }
 0x1d9   :  { %v2364_v26 = vpop.f32.mrf.mxu0  ;;  %7535 = vmatprep.mubr.msk.bf16.mxu1 %vm222_vm1, %v3838_v40  ;;  %v3290_v0 = vpack.c.bf16 %v6357_v61, %v6356_v7  ;;  %v6457_v61 = vld [vmem:[%s12196_s0 + $0x2d1] sm:$0xff] }
 0x1da   :  { %v2595_v56 = vadd.f32 %v2364_v26, %v9279_v27  ;;  %v9810_v33 = vadd.f32 %v7369_v48, %v2597_v43  ;;  %v2914_v23 = vpop.f32.mrf.mxu1 }
 0x1db   :  { %v7304_v32 = vpop.f32.mrf.mxu0 }
 0x1dc   :  { %v2598_v59 = vadd.f32 %v7304_v32, %v9284_v9  ;;  %v9819_v54 = vadd.f32 %v2914_v23, %v2595_v56  ;;  %v7370_v16 = vpop.f32.mrf.mxu1  ;;  %v6358_v9 = vld [vmem:[%s12196_s0 + $0x2b8] sm:$0xff] }
 0x1dd   :  { %v2367_v27 = vpop.f32.mrf.mxu0  ;;  %v6458_v56 = vld [vmem:[%s12196_s0 + $0x2d9] sm:$0xff] }
 0x1de   :  { %v2596_v15 = vadd.f32 %v2367_v27, %v9288_v46  ;;  %v9822_v40 = vadd.f32 %v7370_v16, %v2598_v59  ;;  %v2917_v13 = vpop.f32.mrf.mxu1  ;;  %v6359_v46 = vld [vmem:[%s12196_s0 + $0x2c0] sm:$0xff]  ;;  %v3842_v16 = vpack.c.bf16 %v6458_v56, %v6457_v61  ;;  %v12338_v56 = vld [vmem:[#allocation6_spill] sm:$0xff] }
 0x1df   :  { %v7307_v30 = vpop.f32.mrf.mxu0  ;;  %7470 = vmatmul.mubr.msk.bf16.gmra.mxu0 %vm222_vm1, %v3289_v36  ;;  %v3291_v51 = vpack.c.bf16 %v6359_v46, %v6358_v9  ;;  %v12337_v9 = vld [vmem:[#allocation3_spill] sm:$0xff] }
 0x1e0   :  { %v2601_v17 = vadd.f32 %v7307_v30, %v9309_v24  ;;  %v9826_v43 = vadd.f32 %v2917_v13, %v2596_v15  ;;  %v7373_v48 = vpop.f32.mrf.mxu1  ;;  %7536 = vmatmul.mubr.msk.bf16.gmra.mxu1 %vm222_vm1, %v9281_v22  ;;  %7473 = vmatprep.mubr.msk.bf16.mxu0 %vm222_vm1, %v3290_v0  ;;  %v6360_v24 = vld [vmem:[%s12196_s0 + $0x2d0] sm:$0xff]  ;;  %v6361_v22 = vld [vmem:[%s12196_s0 + $0x2d8] sm:$0xff] }
 0x1e1   :  { %v2380_v3 = vpop.f32.mrf.mxu0  ;;  %7539 = vmatprep.mubr.msk.bf16.mxu1 %vm222_vm1, %v3840_v35  ;;  %v3292_v59 = vpack.c.bf16 %v6361_v22, %v6360_v24  ;;  %v6461_v22 = vld [vmem:[%s12196_s0 + $0x301] sm:$0xff] }
 0x1e2   :  { %v2599_v55 = vadd.f32 %v2380_v3, %v9312_v44  ;;  %v9845_v26 = vadd.f32 %v7373_v48, %v2601_v17  ;;  %v2930_v7 = vpop.f32.mrf.mxu1 }
 0x1e3   :  { %v7308_v23 = vpop.f32.mrf.mxu0 }
 0x1e4   :  { %v2602_v41 = vadd.f32 %v7308_v23, %v9317_v42  ;;  %v9854_v32 = vadd.f32 %v2930_v7, %v2599_v55  ;;  %v7374_v36 = vpop.f32.mrf.mxu1  ;;  %v6362_v42 = vld [vmem:[%s12196_s0 + $0x2e8] sm:$0xff] }
 0x1e5   :  { %v2383_v44 = vpop.f32.mrf.mxu0  ;;  %v6462_v55 = vld [vmem:[%s12196_s0 + $0x309] sm:$0xff] }
 0x1e6   :  { %v2600_v0 = vadd.f32 %v2383_v44, %v9321_v45  ;;  %v9857_v27 = vadd.f32 %v7374_v36, %v2602_v41  ;;  %v2933_v35 = vpop.f32.mrf.mxu1  ;;  %v6363_v45 = vld [vmem:[%s12196_s0 + $0x2f0] sm:$0xff]  ;;  %v3844_v44 = vpack.c.bf16 %v6462_v55, %v6461_v22  ;;  %v12341_v22 = vld [vmem:[#allocation4_spill] sm:$0xff] }
 0x1e7   :  { %v7311_v15 = vpop.f32.mrf.mxu0  ;;  %7474 = vmatmul.mubr.msk.bf16.gmra.mxu0 %vm222_vm1, %v3291_v51  ;;  %v3293_v61 = vpack.c.bf16 %v6363_v45, %v6362_v42 }
 0x1e8   :  { %v2605_v13 = vadd.f32 %v7311_v15, %v9342_v53  ;;  %v9861_v30 = vadd.f32 %v2933_v35, %v2600_v0  ;;  %v7377_v17 = vpop.f32.mrf.mxu1  ;;  %7540 = vmatmul.mubr.msk.bf16.gmra.mxu1 %vm222_vm1, %v9314_v12  ;;  %7477 = vmatprep.mubr.msk.bf16.mxu0 %vm222_vm1, %v3292_v59  ;;  %v6364_v53 = vld [vmem:[%s12196_s0 + $0x300] sm:$0xff]  ;;  %v6365_v12 = vld [vmem:[%s12196_s0 + $0x308] sm:$0xff] }
 0x1e9   :  { %v2396_v48 = vpop.f32.mrf.mxu0  ;;  %7543 = vmatprep.mubr.msk.bf16.mxu1 %vm222_vm1, %v3842_v16  ;;  %v3294_v36 = vpack.c.bf16 %v6365_v12, %v6364_v53  ;;  %v5284_v16 = vld [vmem:[%s12197_s4] sm:$0xf]  ;;  %v12340_v53 = vld [vmem:[#allocation5_spill] sm:$0xff]  ;;  %v6366_v12 = vld [vmem:[%s12196_s0 + $0x318] sm:$0xff] }
 0x1ea   :  { %v2603_v46 = vadd.f32 %v2396_v48, %v12337_v9  ;;  %v9880_v3 = vadd.f32 %v7377_v17, %v2605_v13  ;;  %v2946_v24 = vpop.f32.mrf.mxu1  ;;  %v12339_v0 = vld [vmem:[#allocation7_spill] sm:$0xff]  ;;  %7696 = vmatprep.subr.msk.bf16.mxu1 %vm319_vm0, %v5284_v16  ;;  %v5382_v17 = vsel %vm319_vm0, %v5284_v16, 0 }
 0x1eb   :  { %v7312_v7 = vpop.f32.mrf.mxu0  ;;  %7622 = vmatpush3.bf16.msra.mxu1 %v5382_v17  ;;  %v6367_v9 = vld [vmem:[%s12196_s0 + $0x320] sm:$0xff] }
 0x1ec   :  { %v2606_v23 = vadd.f32 %v7312_v7, %v12338_v56  ;;  %v9889_v51 = vadd.f32 %v2946_v24, %v2603_v46  ;;  %v7378_v41 = vpop.f32.mrf.mxu1  ;;  %v6369_v24 = vld [vmem:[%s12196_s0 + $0x338] sm:$0xff] }
 0x1ed   :  { %v2399_v59 = vpop.f32.mrf.mxu0  ;;  %v6465_v56 = vld [vmem:[%s12196_s0 + $0x331] sm:$0xff] }
 0x1ee   :  { %v9895_v35 = vadd.f32 %v2399_v59, %v12339_v0  ;;  %v9897_v15 = vadd.f32 %v7378_v41, %v2606_v23  ;;  %v9899_v13 = vpop.f32.mrf.mxu1  ;;  %v6466_v23 = vld [vmem:[%s12196_s0 + $0x339] sm:$0xff]  ;;  %v12343_v59 = vld [vmem:[#allocation8_spill] sm:$0xff] }
 0x1ef   :  { %v7315_v42 = vpop.f32.mrf.mxu0  ;;  %7478 = vmatmul.mubr.msk.bf16.gmra.mxu0 %vm222_vm1, %v3293_v61 }
 0x1f0   :  { %v2609_v45 = vadd.f32 %v7315_v42, %v9375_v18  ;;  %v7381_v48 = vpop.f32.mrf.mxu1  ;;  %7544 = vmatmul.mubr.msk.bf16.gmra.mxu1 %vm222_vm1, %v12340_v53  ;;  %7481 = vmatprep.mubr.msk.bf16.mxu0 %vm222_vm1, %v3294_v36  ;;  %v6368_v18 = vld [vmem:[%s12196_s0 + $0x330] sm:$0xff]  ;;  %v3295_v36 = vpack.c.bf16 %v6367_v9, %v6366_v12 }
 0x1f1   :  { %v2412_v46 = vpop.f32.mrf.mxu0  ;;  %7547 = vmatprep.mubr.msk.bf16.mxu1 %vm222_vm1, %v3844_v44  ;;  %v3296_v17 = vpack.c.bf16 %v6369_v24, %v6368_v18  ;;  %v6370_v18 = vld [vmem:[%s12196_s0 + $0x348] sm:$0xff]  ;;  %v6371_v24 = vld [vmem:[%s12196_s0 + $0x350] sm:$0xff] }
 0x1f2   :  { %v2607_v55 = vadd.f32 %v2412_v46, %v12341_v22  ;;  %v9922_v7 = vadd.f32 %v7381_v48, %v2609_v45  ;;  %v2962_v61 = vpop.f32.mrf.mxu1  ;;  %v3846_v45 = vpack.c.bf16 %v6466_v23, %v6465_v56  ;;  %v12345_v48 = vld [vmem:[#allocation11_spill] sm:$0xff] }
 0x1f3   :  { %v7316_v41 = vpop.f32.mrf.mxu0  ;;  %v6503_v56 = vld [vmem:[%s12196_s0 + $0x3a] sm:$0xff] }
 0x1f4   :  { %12342 = vst [vmem:[#allocation27_spill] sm:$0xff] %v9922_v7  ;;  %v2610_v44 = vadd.f32 %v7316_v41, %v12343_v59  ;;  %v9931_v16 = vadd.f32 %v2962_v61, %v2607_v55  ;;  %v7382_v0 = vpop.f32.mrf.mxu1  ;;  %v12349_v41 = vld [vmem:[#allocation9_spill] sm:$0xff] }
 0x1f5   :  { %v2415_v42 = vpop.f32.mrf.mxu0  ;;  %v6467_v55 = vld [vmem:[%s12196_s0 + $0x349] sm:$0xff] }
 0x1f6   :  { %12344 = vst [vmem:[#allocation32_spill] sm:$0xff] %v9931_v16  ;;  %v9934_v53 = vadd.f32 %v2415_v42, %v12345_v48  ;;  %v9936_v46 = vadd.f32 %v7382_v0, %v2610_v44  ;;  %v9938_v22 = vpop.f32.mrf.mxu1  ;;  %v3297_v0 = vpack.c.bf16 %v6371_v24, %v6370_v18  ;;  %v6506_v18 = vld [vmem:[%s12196_s0 + $0x62] sm:$0xff] }
 0x1f7   :  { %12348 = vst [vmem:[#allocation31_spill] sm:$0xff] %v9938_v22  ;;  %v7319_v7 = vpop.f32.mrf.mxu0  ;;  %7482 = vmatmul.mubr.msk.bf16.gmra.mxu0 %vm222_vm1, %v3295_v36 }
 0x1f8   :  { %12346 = vst [vmem:[#allocation33_spill] sm:$0xff] %v9934_v53  ;;  %12347 = vst [vmem:[#allocation34_spill] sm:$0xff] %v9936_v46  ;;  %v2613_v12 = vadd.f32 %v7319_v7, %v9414_v31  ;;  %v7385_v9 = vpop.f32.mrf.mxu1  ;;  %7548 = vmatmul.mubr.msk.bf16.gmra.mxu1 %vm222_vm1, %v12349_v41  ;;  %7485 = vmatprep.mubr.msk.bf16.mxu0 %vm222_vm1, %v3296_v17  ;;  %v6468_v31 = vld [vmem:[%s12196_s0 + $0x351] sm:$0xff] }
 0x1f9   :  { %v2428_v61 = vpop.f32.mrf.mxu0  ;;  %7551 = vmatprep.mubr.msk.bf16.mxu1 %vm222_vm1, %v3846_v45  ;;  %v6502_v7 = vld [vmem:[%s12196_s0 + $0x32] sm:$0xff]  ;;  %v3847_v48 = vpack.c.bf16 %v6468_v31, %v6467_v55 }
 0x1fa   :  { %v2611_v23 = vadd.f32 %v2428_v61, %v9417_v14  ;;  %v9965_v36 = vadd.f32 %v7385_v9, %v2613_v12  ;;  %v2978_v59 = vpop.f32.mrf.mxu1  ;;  %v4366_v41 = vpack.c.bf16 %v6503_v56, %v6502_v7 }
 0x1fb   :  { %v7320_v44 = vpop.f32.mrf.mxu0 }
 0x1fc   :  { %v2614_v17 = vadd.f32 %v7320_v44, %v9420_v2  ;;  %v9968_v42 = vadd.f32 %v2978_v59, %v2611_v23  ;;  %v7386_v45 = vpop.f32.mrf.mxu1  ;;  %v6504_v2 = vld [vmem:[%s12196_s0 + $0x4a] sm:$0xff] }
 0x1fd   :  { %v2431_v46 = vpop.f32.mrf.mxu0 }
 0x1fe   :  { %v9971_v22 = vadd.f32 %v2431_v46, %v9424_v34  ;;  %v9973_v53 = vadd.f32 %v7386_v45, %v2614_v17  ;;  %v9975_v16 = vpop.f32.mrf.mxu1  ;;  %v6505_v34 = vld [vmem:[%s12196_s0 + $0x52] sm:$0xff] }
 0x1ff   :  { %v7323_v14 = vpop.f32.mrf.mxu0  ;;  %7486 = vmatmul.mubr.msk.bf16.gmra.mxu0 %vm222_vm1, %v3297_v0  ;;  %v4367_v7 = vpack.c.bf16 %v6505_v34, %v6504_v2 }
 0x200   :  { %v2617_v12 = vadd.f32 %v7323_v14, %v9437_v5  ;;  %v7389_v9 = vpop.f32.mrf.mxu1  ;;  %7552 = vmatmul.mubr.msk.bf16.gmra.mxu1 %vm222_vm1, %v3847_v48  ;;  %7557 = vmatprep.mubr.msk.bf16.mxu0 %vm222_vm1, %v4366_v41  ;;  %v6507_v5 = vld [vmem:[%s12196_s0 + $0x6a] sm:$0xff] }
 0x201   :  { %v2444_v46 = vpop.f32.mrf.mxu0  ;;  %v4368_v44 = vpack.c.bf16 %v6507_v5, %v6506_v18 }
 0x202   :  { %v2615_v24 = vadd.f32 %v2444_v46, %v9446_v57  ;;  %v9994_v55 = vadd.f32 %v7389_v9, %v2617_v12  ;;  %v2994_v61 = vpop.f32.mrf.mxu1  ;;  %v6510_v9 = vld [vmem:[%s12196_s0 + $0x92] sm:$0xff] }
 0x203   :  { %v7324_v31 = vpop.f32.mrf.mxu0 }
 0x204   :  { %v2618_v56 = vadd.f32 %v7324_v31, %v9451_v37  ;;  %v9997_v23 = vadd.f32 %v2994_v61, %v2615_v24  ;;  %v7390_v59 = vpop.f32.mrf.mxu1  ;;  %v6508_v37 = vld [vmem:[%s12196_s0 + $0x7a] sm:$0xff]  ;;  %v12351_v24 = vld [vmem:[#allocation12_spill] sm:$0xff] }
 0x205   :  { %v2447_v0 = vpop.f32.mrf.mxu0 }
 0x206   :  { %v10000_v17 = vadd.f32 %v2447_v0, %v9455_v4  ;;  %v10002_v45 = vadd.f32 %v7390_v59, %v2618_v56  ;;  %v10004_v48 = vpop.f32.mrf.mxu1  ;;  %v6509_v4 = vld [vmem:[%s12196_s0 + $0x82] sm:$0xff] }
 0x207   :  { %v7327_v57 = vpop.f32.mrf.mxu0  ;;  %7558 = vmatmul.mubr.msk.bf16.vlgmr.msra.gmra.mxu0 %vm222_vm1, %v4367_v7  ;;  %v4369_v5 = vpack.c.bf16 %v6509_v4, %v6508_v37  ;;  %v6512_v37 = vld [vmem:[%s12196_s0 + $0xaa] sm:$0xff]  ;;  %v6513_v4 = vld [vmem:[%s12196_s0 + $0xb2] sm:$0xff] }
 0x208   :  { %12350 = vst [vmem:[#allocation35_spill] sm:$0xff] %v10002_v45  ;;  %v2621_v41 = vadd.f32 %v7327_v57, %v9475_v6  ;;  %v7393_v14 = vpop.f32.mrf.mxu1  ;;  %7561 = vmatprep.mubr.msk.bf16.mxu0 %vm222_vm1, %v4368_v44  ;;  %v6511_v6 = vld [vmem:[%s12196_s0 + $0x9a] sm:$0xff]  ;;  %v12352_v44 = vld [vmem:[#allocation13_spill] sm:$0xff] }
 0x209   :  { %v2460_v12 = vpop.f32.mrf.mxu0  ;;  %v4370_v56 = vpack.c.bf16 %v6511_v6, %v6510_v9  ;;  %v6514_v9 = vld [vmem:[%s12196_s0 + $0xc2] sm:$0xff] }
 0x20a   :  { %v2619_v2 = vadd.f32 %v2460_v12, %v9478_v50  ;;  %v10022_v34 = vadd.f32 %v7393_v14, %v2621_v41  ;;  %v3010_v46 = vpop.f32.mrf.mxu1 }
 0x20b   :  { %v7328_v18 = vpop.f32.mrf.mxu0 }
 0x20c   :  { %v2622_v61 = vadd.f32 %v7328_v18, %v12351_v24  ;;  %v10025_v31 = vadd.f32 %v3010_v46, %v2619_v2  ;;  %v7394_v7 = vpop.f32.mrf.mxu1  ;;  %v12356_v24 = vld [vmem:[#allocation10_spill] sm:$0xff] }
 0x20d   :  { %v2463_v59 = vpop.f32.mrf.mxu0 }
 0x20e   :  { %v10028_v0 = vadd.f32 %v2463_v59, %v12352_v44  ;;  %v10030_v57 = vadd.f32 %v7394_v7, %v2622_v61  ;;  %v10032_v45 = vpop.f32.mrf.mxu1 }
 0x20f   :  { %12355 = vst [vmem:[#allocation39_spill] sm:$0xff] %v10032_v45  ;;  %v7331_v50 = vpop.f32.mrf.mxu0  ;;  %7562 = vmatmul.mubr.msk.bf16.gmra.mxu0 %vm222_vm1, %v4369_v5  ;;  %v4371_v5 = vpack.c.bf16 %v6513_v4, %v6512_v37  ;;  %v6516_v37 = vld [vmem:[%s12196_s0 + $0xda] sm:$0xff]  ;;  %v6517_v4 = vld [vmem:[%s12196_s0 + $0xe2] sm:$0xff] }
 0x210   :  { %12353 = vst [vmem:[#allocation37_spill] sm:$0xff] %v10028_v0  ;;  %12354 = vst [vmem:[#allocation38_spill] sm:$0xff] %v10030_v57  ;;  %v2625_v41 = vadd.f32 %v7331_v50, %v9505_v63  ;;  %v7397_v14 = vpop.f32.mrf.mxu1  ;;  %7565 = vmatprep.mubr.msk.bf16.mxu0 %vm222_vm1, %v4370_v56  ;;  %v6515_v63 = vld [vmem:[%s12196_s0 + $0xca] sm:$0xff]  ;;  %v12357_v50 = vld [vmem:[#allocation14_spill] sm:$0xff] }
 0x211   :  { %v2476_v12 = vpop.f32.mrf.mxu0  ;;  %v4372_v59 = vpack.c.bf16 %v6515_v63, %v6514_v9  ;;  %v6518_v9 = vld [vmem:[%s12196_s0 + $0xf2] sm:$0xff] }
 0x212   :  { %v2623_v6 = vadd.f32 %v2476_v12, %v9508_v47  ;;  %v10050_v2 = vadd.f32 %v7397_v14, %v2625_v41  ;;  %v3026_v46 = vpop.f32.mrf.mxu1 }
 0x213   :  { %v7332_v18 = vpop.f32.mrf.mxu0 }
 0x214   :  { %v2626_v61 = vadd.f32 %v7332_v18, %v12356_v24  ;;  %v10053_v7 = vadd.f32 %v3026_v46, %v2623_v6  ;;  %v7398_v56 = vpop.f32.mrf.mxu1  ;;  %v12362_v24 = vld [vmem:[#allocation15_spill] sm:$0xff] }
 0x215   :  { %v2479_v44 = vpop.f32.mrf.mxu0 }
 0x216   :  { %v10056_v57 = vadd.f32 %v2479_v44, %v12357_v50  ;;  %v10058_v45 = vadd.f32 %v7398_v56, %v2626_v61  ;;  %v10060_v0 = vpop.f32.mrf.mxu1 }
 0x217   :  { %12360 = vst [vmem:[#allocation42_spill] sm:$0xff] %v10060_v0  ;;  %v7335_v47 = vpop.f32.mrf.mxu0  ;;  %7566 = vmatmul.mubr.msk.bf16.gmra.mxu0 %vm222_vm1, %v4371_v5  ;;  %v4373_v5 = vpack.c.bf16 %v6517_v4, %v6516_v37  ;;  %v6520_v4 = vld [vmem:[%s12196_s0 + $0x10a] sm:$0xff] }
 0x218   :  { %12358 = vst [vmem:[#allocation36_spill] sm:$0xff] %v10056_v57  ;;  %12359 = vst [vmem:[#allocation40_spill] sm:$0xff] %v10058_v45  ;;  %v2629_v41 = vadd.f32 %v7335_v47, %v9535_v38  ;;  %v7401_v14 = vpop.f32.mrf.mxu1  ;;  %7569 = vmatprep.mubr.msk.bf16.mxu0 %vm222_vm1, %v4372_v59  ;;  %v6519_v38 = vld [vmem:[%s12196_s0 + $0xfa] sm:$0xff]  ;;  %v12364_v47 = vld [vmem:[#allocation17_spill] sm:$0xff] }
 0x219   :  { %v2492_v12 = vpop.f32.mrf.mxu0  ;;  %v4374_v44 = vpack.c.bf16 %v6519_v38, %v6518_v9  ;;  %v6522_v38 = vld [vmem:[%s12196_s0 + $0x122] sm:$0xff] }
 0x21a   :  { %v2627_v63 = vadd.f32 %v2492_v12, %v9538_v19  ;;  %v10078_v6 = vadd.f32 %v7401_v14, %v2629_v41  ;;  %v3042_v46 = vpop.f32.mrf.mxu1  ;;  %v12368_v41 = vld [vmem:[#allocation18_spill] sm:$0xff] }
 0x21b   :  { %v7336_v18 = vpop.f32.mrf.mxu0  ;;  %v6521_v12 = vld [vmem:[%s12196_s0 + $0x112] sm:$0xff] }
 0x21c   :  { %12361 = vst [vmem:[#allocation43_spill] sm:$0xff] %v10078_v6  ;;  %v2630_v61 = vadd.f32 %v7336_v18, %v12362_v24  ;;  %v10081_v56 = vadd.f32 %v3042_v46, %v2627_v63  ;;  %v7402_v59 = vpop.f32.mrf.mxu1  ;;  %v6523_v63 = vld [vmem:[%s12196_s0 + $0x12a] sm:$0xff] }
 0x21d   :  { %v2495_v50 = vpop.f32.mrf.mxu0  ;;  %v12369_v46 = vld [vmem:[#allocation16_spill] sm:$0xff] }
 0x21e   :  { %12363 = vst [vmem:[#allocation44_spill] sm:$0xff] %v10081_v56  ;;  %v10084_v45 = vadd.f32 %v2495_v50, %v12364_v47  ;;  %v10086_v0 = vadd.f32 %v7402_v59, %v2630_v61  ;;  %v10088_v57 = vpop.f32.mrf.mxu1  ;;  %v4375_v59 = vpack.c.bf16 %v6521_v12, %v6520_v4  ;;  %v6524_v12 = vld [vmem:[%s12196_s0 + $0x13a] sm:$0xff] }
 0x21f   :  { %12367 = vst [vmem:[#allocation46_spill] sm:$0xff] %v10088_v57  ;;  %v7339_v19 = vpop.f32.mrf.mxu0  ;;  %7570 = vmatmul.mubr.msk.bf16.gmra.mxu0 %vm222_vm1, %v4373_v5  ;;  %v12373_v57 = vld [vmem:[#allocation21_spill] sm:$0xff] }
 0x220   :  { %12365 = vst [vmem:[#allocation41_spill] sm:$0xff] %v10084_v45  ;;  %12366 = vst [vmem:[#allocation45_spill] sm:$0xff] %v10086_v0  ;;  %v2633_v14 = vadd.f32 %v7339_v19, %v12368_v41  ;;  %v7405_v37 = vpop.f32.mrf.mxu1  ;;  %7573 = vmatprep.mubr.msk.bf16.mxu0 %vm222_vm1, %v4374_v44  ;;  %v12371_v44 = vld [vmem:[#allocation20_spill] sm:$0xff]  ;;  %v4376_v41 = vpack.c.bf16 %v6523_v63, %v6522_v38  ;;  %v6526_v38 = vld [vmem:[%s12196_s0 + $0x152] sm:$0xff] }
 0x221   :  { %v2508_v9 = vpop.f32.mrf.mxu0  ;;  %v6527_v63 = vld [vmem:[%s12196_s0 + $0x15a] sm:$0xff] }
 0x222   :  { %v2631_v18 = vadd.f32 %v2508_v9, %v12369_v46  ;;  %v10106_v5 = vadd.f32 %v7405_v37, %v2633_v14  ;;  %v3058_v24 = vpop.f32.mrf.mxu1  ;;  %v12377_v14 = vld [vmem:[#allocation22_spill] sm:$0xff]  ;;  %v12378_v46 = vld [vmem:[#allocation19_spill] sm:$0xff] }
 0x223   :  { %v7340_v61 = vpop.f32.mrf.mxu0 }
 0x224   :  { %12370 = vst [vmem:[#allocation48_spill] sm:$0xff] %v10106_v5  ;;  %v2634_v50 = vadd.f32 %v7340_v61, %v12371_v44  ;;  %v10109_v47 = vadd.f32 %v3058_v24, %v2631_v18  ;;  %v7406_v19 = vpop.f32.mrf.mxu1 }
 0x225   :  { %v2511_v0 = vpop.f32.mrf.mxu0 }
 0x226   :  { %12372 = vst [vmem:[#allocation49_spill] sm:$0xff] %v10109_v47  ;;  %v10112_v45 = vadd.f32 %v2511_v0, %v12373_v57  ;;  %v10114_v56 = vadd.f32 %v7406_v19, %v2634_v50  ;;  %v10116_v6 = vpop.f32.mrf.mxu1  ;;  %v6525_v0 = vld [vmem:[%s12196_s0 + $0x142] sm:$0xff] }
 0x227   :  { %12376 = vst [vmem:[#allocation6_spill] sm:$0xff] %v10116_v6  ;;  %v7343_v9 = vpop.f32.mrf.mxu0  ;;  %7574 = vmatmul.mubr.msk.bf16.gmra.mxu0 %vm222_vm1, %v4375_v59  ;;  %v4377_v44 = vpack.c.bf16 %v6525_v0, %v6524_v12  ;;  %v12379_v50 = vld [vmem:[#allocation24_spill] sm:$0xff]  ;;  %v12381_v6 = vld [vmem:[#allocation25_spill] sm:$0xff] }
 0x228   :  { %12374 = vst [vmem:[#allocation47_spill] sm:$0xff] %v10112_v45  ;;  %12375 = vst [vmem:[#allocation3_spill] sm:$0xff] %v10114_v56  ;;  %v2637_v37 = vadd.f32 %v7343_v9, %v12377_v14  ;;  %v7409_v4 = vpop.f32.mrf.mxu1  ;;  %7577 = vmatprep.mubr.msk.bf16.mxu0 %vm222_vm1, %v4376_v41  ;;  %v4378_v14 = vpack.c.bf16 %v6527_v63, %v6526_v38  ;;  %v6528_v0 = vld [vmem:[%s12196_s0 + $0x16a] sm:$0xff]  ;;  %v6530_v38 = vld [vmem:[%s12196_s0 + $0x182] sm:$0xff] }
 0x229   :  { %v2524_v57 = vpop.f32.mrf.mxu0  ;;  %v6531_v63 = vld [vmem:[%s12196_s0 + $0x18a] sm:$0xff] }
 0x22a   :  { %v2635_v18 = vadd.f32 %v2524_v57, %v12378_v46  ;;  %v10134_v24 = vadd.f32 %v7409_v4, %v2637_v37  ;;  %v3074_v61 = vpop.f32.mrf.mxu1  ;;  %v12385_v37 = vld [vmem:[#allocation26_spill] sm:$0xff] }
 0x22b   :  { %v7344_v59 = vpop.f32.mrf.mxu0 }
 0x22c   :  { %v2638_v19 = vadd.f32 %v7344_v59, %v12379_v50  ;;  %v10137_v41 = vadd.f32 %v3074_v61, %v2635_v18  ;;  %v7410_v9 = vpop.f32.mrf.mxu1  ;;  %v12386_v50 = vld [vmem:[#allocation23_spill] sm:$0xff] }
 0x22d   :  { %v2527_v56 = vpop.f32.mrf.mxu0 }
 0x22e   :  { %12380 = vst [vmem:[#allocation7_spill] sm:$0xff] %v10137_v41  ;;  %v10140_v45 = vadd.f32 %v2527_v56, %v12381_v6  ;;  %v10142_v47 = vadd.f32 %v7410_v9, %v2638_v19  ;;  %v10144_v5 = vpop.f32.mrf.mxu1  ;;  %v6529_v6 = vld [vmem:[%s12196_s0 + $0x172] sm:$0xff] }
 0x22f   :  { %12384 = vst [vmem:[#allocation8_spill] sm:$0xff] %v10144_v5  ;;  %v7347_v57 = vpop.f32.mrf.mxu0  ;;  %7578 = vmatmul.mubr.msk.bf16.gmra.mxu0 %vm222_vm1, %v4377_v44  ;;  %v4379_v44 = vpack.c.bf16 %v6529_v6, %v6528_v0  ;;  %v6532_v6 = vld [vmem:[%s12196_s0 + $0x19a] sm:$0xff] }
 0x230   :  { %12382 = vst [vmem:[#allocation5_spill] sm:$0xff] %v10140_v45  ;;  %12383 = vst [vmem:[#allocation4_spill] sm:$0xff] %v10142_v47  ;;  %v2641_v4 = vadd.f32 %v7347_v57, %v12385_v37  ;;  %v7413_v12 = vpop.f32.mrf.mxu1  ;;  %7581 = vmatprep.mubr.msk.bf16.mxu0 %vm222_vm1, %v4378_v14  ;;  %v4380_v57 = vpack.c.bf16 %v6531_v63, %v6530_v38  ;;  %v12387_v47 = vld [vmem:[#allocation28_spill] sm:$0xff] }
 0x231   :  { %v2540_v56 = vpop.f32.mrf.mxu0  ;;  %v6534_v38 = vld [vmem:[%s12196_s0 + $0x1e2] sm:$0xff]  ;;  %v6535_v63 = vld [vmem:[%s12196_s0 + $0x1ea] sm:$0xff] }
 0x232   :  { %v2639_v46 = vadd.f32 %v2540_v56, %v9639_v60  ;;  %v10162_v18 = vadd.f32 %v7413_v12, %v2641_v4  ;;  %v3090_v61 = vpop.f32.mrf.mxu1  ;;  %v12390_v4 = vld [vmem:[#allocation29_spill] sm:$0xff] }
 0x233   :  { %v7348_v59 = vpop.f32.mrf.mxu0 }
 0x234   :  { %v2642_v19 = vadd.f32 %v7348_v59, %v12386_v50  ;;  %v10165_v9 = vadd.f32 %v3090_v61, %v2639_v46  ;;  %v7414_v14 = vpop.f32.mrf.mxu1 }
 0x235   :  { %v2543_v37 = vpop.f32.mrf.mxu0 }
 0x236   :  { %v10168_v5 = vadd.f32 %v2543_v37, %v12387_v47  ;;  %v10170_v45 = vadd.f32 %v7414_v14, %v2642_v19  ;;  %v10172_v41 = vpop.f32.mrf.mxu1  ;;  %v6533_v47 = vld [vmem:[%s12196_s0 + $0x1a2] sm:$0xff]  ;;  %v4382_v37 = vpack.c.bf16 %v6535_v63, %v6534_v38 }
 0x237   :  { %12389 = vst [vmem:[#allocation9_spill] sm:$0xff] %v10172_v41  ;;  %v7351_v60 = vpop.f32.mrf.mxu0  ;;  %7582 = vmatmul.mubr.msk.bf16.gmra.mxu0 %vm222_vm1, %v4379_v44  ;;  %v4381_v50 = vpack.c.bf16 %v6533_v47, %v6532_v6  ;;  %v6538_v47 = vld [vmem:[%s12196_s0 + $0x212] sm:$0xff] }
 0x238   :  { %12388 = vst [vmem:[#allocation11_spill] sm:$0xff] %v10170_v45  ;;  %v2645_v12 = vadd.f32 %v7351_v60, %v12390_v4  ;;  %v7417_v0 = vpop.f32.mrf.mxu1  ;;  %7585 = vmatprep.mubr.msk.bf16.mxu0 %vm222_vm1, %v4380_v57 }
 0x239   :  { %v2556_v56 = vpop.f32.mrf.mxu0 }
 0x23a   :  { %v2643_v46 = vadd.f32 %v2556_v56, %v9680_v1  ;;  %v10190_v61 = vadd.f32 %v7417_v0, %v2645_v12  ;;  %v3106_v59 = vpop.f32.mrf.mxu1 }
 0x23b   :  { %v7352_v44 = vpop.f32.mrf.mxu0 }
 0x23c   :  { %v2646_v19 = vadd.f32 %v7352_v44, %v9683_v58  ;;  %v10193_v14 = vadd.f32 %v3106_v59, %v2643_v46  ;;  %v7418_v57 = vpop.f32.mrf.mxu1  ;;  %v6536_v58 = vld [vmem:[%s12196_s0 + $0x1fa] sm:$0xff] }
 0x23d   :  { %v2559_v60 = vpop.f32.mrf.mxu0 }
 0x23e   :  { %v10196_v4 = vadd.f32 %v2559_v60, %v9687_v11  ;;  %v10198_v45 = vadd.f32 %v7418_v57, %v2646_v19  ;;  %v10200_v41 = vpop.f32.mrf.mxu1  ;;  %v6537_v11 = vld [vmem:[%s12196_s0 + $0x202] sm:$0xff] }
 0x23f   :  { %v7355_v1 = vpop.f32.mrf.mxu0  ;;  %7586 = vmatmul.mubr.msk.bf16.gmra.mxu0 %vm222_vm1, %v4381_v50  ;;  %v4383_v59 = vpack.c.bf16 %v6537_v11, %v6536_v58 }
 0x240   :  { %12391 = vst [vmem:[#allocation12_spill] sm:$0xff] %v10198_v45  ;;  %v2649_v12 = vadd.f32 %v7355_v1, %v9705_v21  ;;  %v7421_v0 = vpop.f32.mrf.mxu1  ;;  %7589 = vmatprep.mubr.msk.bf16.mxu0 %vm222_vm1, %v4382_v37  ;;  %v6539_v21 = vld [vmem:[%s12196_s0 + $0x21a] sm:$0xff] }
 0x241   :  { %v2572_v6 = vpop.f32.mrf.mxu0  ;;  %v4384_v57 = vpack.c.bf16 %v6539_v21, %v6538_v47  ;;  %v6543_v47 = vld [vmem:[%s12196_s0 + $0x24a] sm:$0xff] }
 0x242   :  { %v2647_v56 = vadd.f32 %v2572_v6, %v9714_v52  ;;  %v10218_v38 = vadd.f32 %v7421_v0, %v2649_v12  ;;  %v3122_v63 = vpop.f32.mrf.mxu1  ;;  %v12392_v12 = vld [vmem:[#allocation30_spill] sm:$0xff]  ;;  %v6542_v6 = vld [vmem:[%s12196_s0 + $0x242] sm:$0xff] }
 0x243   :  { %v7356_v46 = vpop.f32.mrf.mxu0 }
 0x244   :  { %v2650_v44 = vadd.f32 %v7356_v46, %v9717_v29  ;;  %v10221_v50 = vadd.f32 %v3122_v63, %v2647_v56  ;;  %v7422_v19 = vpop.f32.mrf.mxu1  ;;  %v6540_v29 = vld [vmem:[%s12196_s0 + $0x22a] sm:$0xff] }
 0x245   :  { %v2575_v37 = vpop.f32.mrf.mxu0 }
 0x246   :  { %v10224_v60 = vadd.f32 %v2575_v37, %v9720_v25  ;;  %v10226_v1 = vadd.f32 %v7422_v19, %v2650_v44  ;;  %v10228_v45 = vpop.f32.mrf.mxu1  ;;  %v6541_v25 = vld [vmem:[%s12196_s0 + $0x232] sm:$0xff]  ;;  %v4386_v19 = vpack.c.bf16 %v6543_v47, %v6542_v6  ;;  %v6547_v6 = vld [vmem:[%s12196_s0 + $0x27a] sm:$0xff] }
 0x247   :  { %v7427_v52 = vpop.f32.mrf.mxu0  ;;  %7590 = vmatmul.mubr.msk.bf16.gmra.mxu0 %vm222_vm1, %v4383_v59  ;;  %v4385_v46 = vpack.c.bf16 %v6541_v25, %v6540_v29  ;;  %v7828_v29 = vmov 0.0  }
 0x248   :  { %v10232_v0 = vadd.f32 %v7427_v52, %v12392_v12  ;;  %v10234_v58 = vpop.f32.mrf.mxu1  ;;  %7593 = vmatprep.mubr.msk.bf16.mxu0 %vm222_vm1, %v4384_v57  ;;  %5744 = vst.msk [vmem:[%s12198_s6 + $0x30] sm:$0xff] %vm222_vm1, %v7828_v29  ;;  %5745 = vst.msk [vmem:[%s12198_s6 + $0x38] sm:$0xff] %vm222_vm1, %v7828_v29 }
 0x249   :  { %v3433_v11 = vpop.f32.mrf.mxu0  ;;  %5737 = vst.msk [vmem:[%s12198_s6] sm:$0xff] %vm222_vm1, %v7828_v29  ;;  %5738 = vst.msk [vmem:[%s12198_s6 + $0x8] sm:$0xff] %vm222_vm1, %v7828_v29 }
 0x24a   :  { %v10250_v21 = vadd.f32 %v3433_v11, %v9749_v49  ;;  %v10252_v56 = vpop.f32.mrf.mxu1  ;;  %5741 = vst.msk [vmem:[%s12198_s6 + $0x18] sm:$0xff] %vm222_vm1, %v7828_v29  ;;  %5742 = vst.msk [vmem:[%s12198_s6 + $0x20] sm:$0xff] %vm222_vm1, %v7828_v29  ;;  %v6546_v11 = vld [vmem:[%s12196_s0 + $0x272] sm:$0xff] }
 0x24b   :  { %v7428_v63 = vpop.f32.mrf.mxu0  ;;  %5747 = vst.msk [vmem:[%s12198_s6 + $0x48] sm:$0xff] %vm222_vm1, %v7828_v29  ;;  %5748 = vst.msk [vmem:[%s12198_s6 + $0x50] sm:$0xff] %vm222_vm1, %v7828_v29 }
 0x24c   :  { %v10255_v59 = vadd.f32 %v7428_v63, %v9752_v20  ;;  %v10257_v44 = vpop.f32.mrf.mxu1  ;;  %v10272_v20 = vld [vmem:[%s12196_s0 + $0x25a] sm:$0xff]  ;;  %5750 = vst.msk [vmem:[%s12198_s6 + $0x60] sm:$0xff] %vm222_vm1, %v7828_v29  ;;  %5751 = vst.msk [vmem:[%s12198_s6 + $0x68] sm:$0xff] %vm222_vm1, %v7828_v29 }
 0x24d   :  { %v3436_v57 = vpop.f32.mrf.mxu0  ;;  %5753 = vst.msk [vmem:[%s12198_s6 + $0x78] sm:$0xff] %vm222_vm1, %v7828_v29  ;;  %5754 = vst.msk [vmem:[%s12198_s6 + $0x80] sm:$0xff] %vm222_vm1, %v7828_v29 }
 0x24e   :  { %v10260_v37 = vadd.f32 %v3436_v57, %v9756_v8  ;;  %v10262_v52 = vpop.f32.mrf.mxu1  ;;  %v10277_v8 = vld [vmem:[%s12196_s0 + $0x262] sm:$0xff]  ;;  %5756 = vst.msk [vmem:[%s12198_s6 + $0x90] sm:$0xff] %vm222_vm1, %v7828_v29  ;;  %5757 = vst.msk [vmem:[%s12198_s6 + $0x98] sm:$0xff] %vm222_vm1, %v7828_v29  ;;  %v4388_v57 = vpack.c.bf16 %v6547_v6, %v6546_v11 }
 0x24f   :  { %v7431_v12 = vpop.f32.mrf.mxu0  ;;  %7594 = vmatmul.mubr.msk.bf16.gmra.mxu0 %vm222_vm1, %v4385_v46  ;;  %5759 = vst.msk [vmem:[%s12198_s6 + $0xa8] sm:$0xff] %vm222_vm1, %v7828_v29  ;;  %5760 = vst.msk [vmem:[%s12198_s6 + $0xb0] sm:$0xff] %vm222_vm1, %v7828_v29  ;;  %v4387_v46 = vpack.c.bf16 %v10277_v8, %v10272_v20  ;;  %v6550_v6 = vld [vmem:[%s12196_s0 + $0x2a2] sm:$0xff] }
 0x250   :  { %v10266_v49 = vadd.f32 %v7431_v12, %v9775_v39  ;;  %7597 = vmatprep.mubr.msk.bf16.mxu0 %vm222_vm1, %v4386_v19  ;;  %5762 = vst.msk [vmem:[%s12198_s6 + $0xc0] sm:$0xff] %vm222_vm1, %v7828_v29  ;;  %5763 = vst.msk [vmem:[%s12198_s6 + $0xc8] sm:$0xff] %vm222_vm1, %v7828_v29  ;;  %v10639_v25 = vpop.f32.mrf.mxu1 }
 0x251   :  { %5765 = vst.msk [vmem:[%s12198_s6 + $0xd8] sm:$0xff] %vm222_vm1, %v7828_v29  ;;  %5766 = vst.msk [vmem:[%s12198_s6 + $0xe0] sm:$0xff] %vm222_vm1, %v7828_v29  ;;  %v3449_v39 = vpop.f32.mrf.mxu0 }
 0x252   :  { %5768 = vst.msk [vmem:[%s12198_s6 + $0xf0] sm:$0xff] %vm222_vm1, %v7828_v29  ;;  %5769 = vst.msk [vmem:[%s12198_s6 + $0xf8] sm:$0xff] %vm222_vm1, %v7828_v29  ;;  %v10648_v47 = vadd.f32 %v3449_v39, %v9784_v62  ;;  %v10835_v62 = vpop.f32.mrf.mxu1  ;;  %v6548_v39 = vld [vmem:[%s12196_s0 + $0x28a] sm:$0xff] }
 0x253   :  { %5771 = vst.msk [vmem:[%s12198_s6 + $0x108] sm:$0xff] %vm222_vm1, %v7828_v29  ;;  %5772 = vst.msk [vmem:[%s12198_s6 + $0x110] sm:$0xff] %vm222_vm1, %v7828_v29  ;;  %v7432_v63 = vpop.f32.mrf.mxu0 }
 0x254   :  { %5774 = vst.msk [vmem:[%s12198_s6 + $0x120] sm:$0xff] %vm222_vm1, %v7828_v29  ;;  %5775 = vst.msk [vmem:[%s12198_s6 + $0x128] sm:$0xff] %vm222_vm1, %v7828_v29  ;;  %v10653_v19 = vadd.f32 %v7432_v63, %v9787_v28  ;;  %v10851_v11 = vpop.f32.mrf.mxu1 }
 0x255   :  { %5777 = vst.msk [vmem:[%s12198_s6 + $0x138] sm:$0xff] %vm222_vm1, %v7828_v29  ;;  %5778 = vst.msk [vmem:[%s12198_s6 + $0x140] sm:$0xff] %vm222_vm1, %v7828_v29  ;;  %v3452_v28 = vpop.f32.mrf.mxu0 }
 0x256   :  { %5780 = vst.msk [vmem:[%s12198_s6 + $0x150] sm:$0xff] %vm222_vm1, %v7828_v29  ;;  %5781 = vst.msk [vmem:[%s12198_s6 + $0x158] sm:$0xff] %vm222_vm1, %v7828_v29  ;;  %v10838_v12 = vadd.f32 %v3452_v28, %v9791_v10 }
 0x257   :  { %5783 = vst.msk [vmem:[%s12198_s6 + $0x168] sm:$0xff] %vm222_vm1, %v7828_v29  ;;  %5784 = vst.msk [vmem:[%s12198_s6 + $0x170] sm:$0xff] %vm222_vm1, %v7828_v29  ;;  %v7435_v20 = vpop.f32.mrf.mxu0  ;;  %7598 = vmatmul.mubr.msk.bf16.gmra.mxu0 %vm222_vm1, %v4387_v46 }
 0x258   :  { %5786 = vst.msk [vmem:[%s12198_s6 + $0x180] sm:$0xff] %vm222_vm1, %v7828_v29  ;;  %5787 = vst.msk [vmem:[%s12198_s6 + $0x188] sm:$0xff] %vm222_vm1, %v7828_v29  ;;  %v10842_v8 = vadd.f32 %v7435_v20, %v9810_v33  ;;  %7601 = vmatprep.mubr.msk.bf16.mxu0 %vm222_vm1, %v4388_v57  ;;  %v6551_v33 = vld [vmem:[%s12196_s0 + $0x2aa] sm:$0xff] }
 0x259   :  { %5789 = vst.msk [vmem:[%s12198_s6 + $0x198] sm:$0xff] %vm222_vm1, %v7828_v29  ;;  %5790 = vst.msk [vmem:[%s12198_s6 + $0x1a0] sm:$0xff] %vm222_vm1, %v7828_v29  ;;  %v3465_v10 = vpop.f32.mrf.mxu0  ;;  %v4390_v20 = vpack.c.bf16 %v6551_v33, %v6550_v6 }
 0x25a   :  { %5792 = vst.msk [vmem:[%s12198_s6 + $0x1b0] sm:$0xff] %vm222_vm1, %v7828_v29  ;;  %5793 = vst.msk [vmem:[%s12198_s6 + $0x1b8] sm:$0xff] %vm222_vm1, %v7828_v29  ;;  %v10860_v63 = vadd.f32 %v3465_v10, %v9819_v54  ;;  %v6552_v54 = vld [vmem:[%s12196_s0 + $0x2ba] sm:$0xff] }
 0x25b   :  { %5795 = vst.msk [vmem:[%s12198_s6 + $0x1c8] sm:$0xff] %vm222_vm1, %v7828_v29  ;;  %5796 = vst.msk [vmem:[%s12198_s6 + $0x1d0] sm:$0xff] %vm222_vm1, %v7828_v29  ;;  %v7436_v46 = vpop.f32.mrf.mxu0 }
 0x25c   :  { %5798 = vst.msk [vmem:[%s12198_s6 + $0x1e0] sm:$0xff] %vm222_vm1, %v7828_v29  ;;  %5799 = vst.msk [vmem:[%s12198_s6 + $0x1e8] sm:$0xff] %vm222_vm1, %v7828_v29  ;;  %v10863_v28 = vadd.f32 %v7436_v46, %v9822_v40  ;;  %v6553_v40 = vld [vmem:[%s12196_s0 + $0x2c2] sm:$0xff] }
 0x25d   :  { %5801 = vst.msk [vmem:[%s12198_s6 + $0x1f8] sm:$0xff] %vm222_vm1, %v7828_v29  ;;  %5802 = vst.msk [vmem:[%s12198_s6 + $0x200] sm:$0xff] %vm222_vm1, %v7828_v29  ;;  %v4391_v10 = vpack.c.bf16 %v6553_v40, %v6552_v54  ;;  %v6558_v40 = vld [vmem:[%s12196_s0 + $0x302] sm:$0xff] }
 0x25e   :  { %5804 = vst.msk [vmem:[%s12198_s6 + $0x210] sm:$0xff] %vm222_vm1, %v7828_v29  ;;  %5805 = vst.msk [vmem:[%s12198_s6 + $0x218] sm:$0xff] %vm222_vm1, %v7828_v29 }
 0x25f   :  { %5807 = vst.msk [vmem:[%s12198_s6 + $0x228] sm:$0xff] %vm222_vm1, %v7828_v29  ;;  %5808 = vst.msk [vmem:[%s12198_s6 + $0x230] sm:$0xff] %vm222_vm1, %v7828_v29 }
 0x260   :  { %5810 = vst.msk [vmem:[%s12198_s6 + $0x240] sm:$0xff] %vm222_vm1, %v7828_v29  ;;  %5811 = vst.msk [vmem:[%s12198_s6 + $0x248] sm:$0xff] %vm222_vm1, %v7828_v29 }
 0x261   :  { %5813 = vst.msk [vmem:[%s12198_s6 + $0x258] sm:$0xff] %vm222_vm1, %v7828_v29  ;;  %5814 = vst.msk [vmem:[%s12198_s6 + $0x260] sm:$0xff] %vm222_vm1, %v7828_v29 }
 0x262   :  { %5816 = vst.msk [vmem:[%s12198_s6 + $0x270] sm:$0xff] %vm222_vm1, %v7828_v29  ;;  %5817 = vst.msk [vmem:[%s12198_s6 + $0x278] sm:$0xff] %vm222_vm1, %v7828_v29 }
 0x263   :  { %5819 = vst.msk [vmem:[%s12198_s6 + $0x288] sm:$0xff] %vm222_vm1, %v7828_v29  ;;  %5820 = vst.msk [vmem:[%s12198_s6 + $0x290] sm:$0xff] %vm222_vm1, %v7828_v29 }
 0x264   :  { %5822 = vst.msk [vmem:[%s12198_s6 + $0x2a0] sm:$0xff] %vm222_vm1, %v7828_v29  ;;  %5823 = vst.msk [vmem:[%s12198_s6 + $0x2a8] sm:$0xff] %vm222_vm1, %v7828_v29 }
 0x265   :  { %5825 = vst.msk [vmem:[%s12198_s6 + $0x2b8] sm:$0xff] %vm222_vm1, %v7828_v29  ;;  %5826 = vst.msk [vmem:[%s12198_s6 + $0x2c0] sm:$0xff] %vm222_vm1, %v7828_v29 }
 0x266   :  { %5828 = vst.msk [vmem:[%s12198_s6 + $0x2d0] sm:$0xff] %vm222_vm1, %v7828_v29  ;;  %5829 = vst.msk [vmem:[%s12198_s6 + $0x2d8] sm:$0xff] %vm222_vm1, %v7828_v29 }
 0x267   :  { %5831 = vst.msk [vmem:[%s12198_s6 + $0x2e8] sm:$0xff] %vm222_vm1, %v7828_v29  ;;  %5832 = vst.msk [vmem:[%s12198_s6 + $0x2f0] sm:$0xff] %vm222_vm1, %v7828_v29 }
 0x268   :  { %5834 = vst.msk [vmem:[%s12198_s6 + $0x300] sm:$0xff] %vm222_vm1, %v7828_v29  ;;  %5835 = vst.msk [vmem:[%s12198_s6 + $0x308] sm:$0xff] %vm222_vm1, %v7828_v29 }
 0x269   :  { %5837 = vst.msk [vmem:[%s12198_s6 + $0x318] sm:$0xff] %vm222_vm1, %v7828_v29  ;;  %5838 = vst.msk [vmem:[%s12198_s6 + $0x320] sm:$0xff] %vm222_vm1, %v7828_v29 }
 0x26a   :  { %5840 = vst.msk [vmem:[%s12198_s6 + $0x330] sm:$0xff] %vm222_vm1, %v7828_v29  ;;  %5841 = vst.msk [vmem:[%s12198_s6 + $0x338] sm:$0xff] %vm222_vm1, %v7828_v29 }
 0x26b   :  { %5843 = vst.msk [vmem:[%s12198_s6 + $0x348] sm:$0xff] %vm222_vm1, %v7828_v29  ;;  %5844 = vst.msk [vmem:[%s12198_s6 + $0x350] sm:$0xff] %vm222_vm1, %v7828_v29 }
 0x26c   :  { %12393 = vst [vmem:[#allocation13_spill] sm:$0xff] %v10653_v19  ;;  %5746 = vst.msk [vmem:[%s12198_s6 + $0x40] sm:$0x3] %vm5739_vm2, %v7828_v29 }
 0x26d   :  { %5740 = vst.msk [vmem:[%s12198_s6 + $0x10] sm:$0x3] %vm5739_vm2, %v7828_v29  ;;  %5743 = vst.msk [vmem:[%s12198_s6 + $0x28] sm:$0x3] %vm5739_vm2, %v7828_v29 }
 0x26e   :  { %5749 = vst.msk [vmem:[%s12198_s6 + $0x58] sm:$0x3] %vm5739_vm2, %v7828_v29  ;;  %5752 = vst.msk [vmem:[%s12198_s6 + $0x70] sm:$0x3] %vm5739_vm2, %v7828_v29 }
 0x26f   :  { %5755 = vst.msk [vmem:[%s12198_s6 + $0x88] sm:$0x3] %vm5739_vm2, %v7828_v29  ;;  %5758 = vst.msk [vmem:[%s12198_s6 + $0xa0] sm:$0x3] %vm5739_vm2, %v7828_v29 }
 0x270   :  { %5761 = vst.msk [vmem:[%s12198_s6 + $0xb8] sm:$0x3] %vm5739_vm2, %v7828_v29  ;;  %5764 = vst.msk [vmem:[%s12198_s6 + $0xd0] sm:$0x3] %vm5739_vm2, %v7828_v29 }
 0x271   :  { %5767 = vst.msk [vmem:[%s12198_s6 + $0xe8] sm:$0x3] %vm5739_vm2, %v7828_v29  ;;  %5770 = vst.msk [vmem:[%s12198_s6 + $0x100] sm:$0x3] %vm5739_vm2, %v7828_v29 }
 0x272   :  { %5773 = vst.msk [vmem:[%s12198_s6 + $0x118] sm:$0x3] %vm5739_vm2, %v7828_v29  ;;  %5776 = vst.msk [vmem:[%s12198_s6 + $0x130] sm:$0x3] %vm5739_vm2, %v7828_v29 }
 0x273   :  { %5779 = vst.msk [vmem:[%s12198_s6 + $0x148] sm:$0x3] %vm5739_vm2, %v7828_v29  ;;  %5782 = vst.msk [vmem:[%s12198_s6 + $0x160] sm:$0x3] %vm5739_vm2, %v7828_v29 }
 0x274   :  { %5785 = vst.msk [vmem:[%s12198_s6 + $0x178] sm:$0x3] %vm5739_vm2, %v7828_v29  ;;  %5788 = vst.msk [vmem:[%s12198_s6 + $0x190] sm:$0x3] %vm5739_vm2, %v7828_v29 }
 0x275   :  { %5791 = vst.msk [vmem:[%s12198_s6 + $0x1a8] sm:$0x3] %vm5739_vm2, %v7828_v29  ;;  %5794 = vst.msk [vmem:[%s12198_s6 + $0x1c0] sm:$0x3] %vm5739_vm2, %v7828_v29 }
 0x276   :  { %5797 = vst.msk [vmem:[%s12198_s6 + $0x1d8] sm:$0x3] %vm5739_vm2, %v7828_v29  ;;  %5800 = vst.msk [vmem:[%s12198_s6 + $0x1f0] sm:$0x3] %vm5739_vm2, %v7828_v29 }
 0x277   :  { %5803 = vst.msk [vmem:[%s12198_s6 + $0x208] sm:$0x3] %vm5739_vm2, %v7828_v29  ;;  %5806 = vst.msk [vmem:[%s12198_s6 + $0x220] sm:$0x3] %vm5739_vm2, %v7828_v29 }
 0x278   :  { %5809 = vst.msk [vmem:[%s12198_s6 + $0x238] sm:$0x3] %vm5739_vm2, %v7828_v29  ;;  %5812 = vst.msk [vmem:[%s12198_s6 + $0x250] sm:$0x3] %vm5739_vm2, %v7828_v29 }
 0x279   :  { %5815 = vst.msk [vmem:[%s12198_s6 + $0x268] sm:$0x3] %vm5739_vm2, %v7828_v29  ;;  %5818 = vst.msk [vmem:[%s12198_s6 + $0x280] sm:$0x3] %vm5739_vm2, %v7828_v29 }
 0x27a   :  { %5821 = vst.msk [vmem:[%s12198_s6 + $0x298] sm:$0x3] %vm5739_vm2, %v7828_v29  ;;  %5824 = vst.msk [vmem:[%s12198_s6 + $0x2b0] sm:$0x3] %vm5739_vm2, %v7828_v29 }
 0x27b   :  { %5827 = vst.msk [vmem:[%s12198_s6 + $0x2c8] sm:$0x3] %vm5739_vm2, %v7828_v29  ;;  %5830 = vst.msk [vmem:[%s12198_s6 + $0x2e0] sm:$0x3] %vm5739_vm2, %v7828_v29 }
 0x27c   :  { %5833 = vst.msk [vmem:[%s12198_s6 + $0x2f8] sm:$0x3] %vm5739_vm2, %v7828_v29  ;;  %5836 = vst.msk [vmem:[%s12198_s6 + $0x310] sm:$0x3] %vm5739_vm2, %v7828_v29 }
 0x27d   :  { %5839 = vst.msk [vmem:[%s12198_s6 + $0x328] sm:$0x3] %vm5739_vm2, %v7828_v29  ;;  %5842 = vst.msk [vmem:[%s12198_s6 + $0x340] sm:$0x3] %vm5739_vm2, %v7828_v29 }
 0x27e   :  { %5845 = vst.msk [vmem:[%s12198_s6 + $0x358] sm:$0x3] %vm5739_vm2, %v7828_v29  ;;  %12394 = vst [vmem:[#allocation10_spill] sm:$0xff] %v10835_v62  ;;  %v6549_v29 = vld [vmem:[%s12196_s0 + $0x292] sm:$0xff] }
 0x27f   :  { %12395 = vst [vmem:[#allocation14_spill] sm:$0xff] %v10838_v12  ;;  %12396 = vst [vmem:[#allocation15_spill] sm:$0xff] %v10842_v8  ;;  %v4389_v57 = vpack.c.bf16 %v6549_v29, %v6548_v39  ;;  %v10865_v8 = vpop.f32.mrf.mxu1  ;;  %v3468_v12 = vpop.f32.mrf.mxu0 }
 0x280   :  { %12397 = vst [vmem:[#allocation17_spill] sm:$0xff] %v10851_v11  ;;  %v10868_v11 = vadd.f32 %v3468_v12, %v9826_v43  ;;  %v6554_v12 = vld [vmem:[%s12196_s0 + $0x2d2] sm:$0xff] }
 0x281   :  { %v7439_v19 = vpop.f32.mrf.mxu0  ;;  %7602 = vmatmul.mubr.msk.bf16.gmra.mxu0 %vm222_vm1, %v4389_v57  ;;  %v10881_v39 = vpop.f32.mrf.mxu1 }
 0x282   :  { %12398 = vst [vmem:[#allocation18_spill] sm:$0xff] %v10868_v11  ;;  %v10872_v62 = vadd.f32 %v7439_v19, %v9845_v26  ;;  %7605 = vmatprep.mubr.msk.bf16.mxu0 %vm222_vm1, %v4390_v20  ;;  %v6555_v26 = vld [vmem:[%s12196_s0 + $0x2da] sm:$0xff] }
 0x283   :  { %v3481_v43 = vpop.f32.mrf.mxu0  ;;  %v4392_v33 = vpack.c.bf16 %v6555_v26, %v6554_v12  ;;  %v10895_v46 = vpop.f32.mrf.mxu1  ;;  %v3154_v26 = vadd.f32 %v9899_v13, %v9895_v35  ;;  %v6560_v35 = vld [vmem:[%s12196_s0 + $0x31a] sm:$0xff] }
 0x284   :  { %12399 = vst [vmem:[#allocation16_spill] sm:$0xff] %v10872_v62  ;;  %v10890_v19 = vadd.f32 %v3481_v43, %v9854_v32  ;;  %v6556_v32 = vld [vmem:[%s12196_s0 + $0x2ea] sm:$0xff] }
 0x285   :  { %v7440_v29 = vpop.f32.mrf.mxu0  ;;  %v10911_v54 = vpop.f32.mrf.mxu1 }
 0x286   :  { %12400 = vst [vmem:[#allocation20_spill] sm:$0xff] %v10890_v19  ;;  %v10893_v6 = vadd.f32 %v7440_v29, %v9857_v27  ;;  %v6557_v27 = vld [vmem:[%s12196_s0 + $0x2f2] sm:$0xff] }
 0x287   :  { %v3484_v57 = vpop.f32.mrf.mxu0  ;;  %v4393_v12 = vpack.c.bf16 %v6557_v27, %v6556_v32  ;;  %v6562_v27 = vld [vmem:[%s12196_s0 + $0x332] sm:$0xff] }
 0x288   :  { %12401 = vst [vmem:[#allocation21_spill] sm:$0xff] %v10893_v6  ;;  %v10898_v20 = vadd.f32 %v3484_v57, %v9861_v30  ;;  %v12407_v6 = vld [vmem:[#allocation27_spill] sm:$0xff] }
 0x289   :  { %v7443_v62 = vpop.f32.mrf.mxu0  ;;  %7606 = vmatmul.mubr.msk.bf16.gmra.mxu0 %vm222_vm1, %v4391_v10 }
 0x28a   :  { %12402 = vst [vmem:[#allocation22_spill] sm:$0xff] %v10898_v20  ;;  %v10902_v11 = vadd.f32 %v7443_v62, %v9880_v3  ;;  %7609 = vmatprep.mubr.msk.bf16.mxu0 %vm222_vm1, %v4392_v33  ;;  %v6559_v3 = vld [vmem:[%s12196_s0 + $0x30a] sm:$0xff]  ;;  %v10927_v33 = vpop.f32.mrf.mxu1 }
 0x28b   :  { %v3497_v30 = vpop.f32.mrf.mxu0  ;;  %v4394_v10 = vpack.c.bf16 %v6559_v3, %v6558_v40 }
 0x28c   :  { %12403 = vst [vmem:[#allocation19_spill] sm:$0xff] %v10902_v11  ;;  %v10920_v62 = vadd.f32 %v3497_v30, %v9889_v51  ;;  %v10942_v13 = vpop.f32.mrf.mxu1 }
 0x28d   :  { %v7444_v43 = vpop.f32.mrf.mxu0 }
 0x28e   :  { %12404 = vst [vmem:[#allocation24_spill] sm:$0xff] %v10920_v62  ;;  %v10925_v29 = vadd.f32 %v7444_v43, %v9897_v15  ;;  %v6561_v15 = vld [vmem:[%s12196_s0 + $0x322] sm:$0xff]  ;;  %v12410_v43 = vld [vmem:[#allocation33_spill] sm:$0xff] }
 0x28f   :  { %v3500_v57 = vpop.f32.mrf.mxu0  ;;  %v4395_v3 = vpack.c.bf16 %v6561_v15, %v6560_v35  ;;  %v6564_v35 = vld [vmem:[%s12196_s0 + $0x34a] sm:$0xff]  ;;  %v6565_v15 = vld [vmem:[%s12196_s0 + $0x352] sm:$0xff] }
 0x290   :  { %12405 = vst [vmem:[#allocation25_spill] sm:$0xff] %v10925_v29  ;;  %v10929_v11 = vadd.f32 %v3500_v57, %v3154_v26 }
 0x291   :  { %v7447_v20 = vpop.f32.mrf.mxu0  ;;  %7610 = vmatmul.mubr.msk.bf16.gmra.mxu0 %vm222_vm1, %v4393_v12  ;;  %v12411_v12 = vld [vmem:[#allocation31_spill] sm:$0xff] }
 0x292   :  { %12406 = vst [vmem:[#allocation26_spill] sm:$0xff] %v10929_v11  ;;  %v10933_v51 = vadd.f32 %v7447_v20, %v12407_v6  ;;  %7613 = vmatprep.mubr.msk.bf16.mxu0 %vm222_vm1, %v4394_v10  ;;  %v6563_v6 = vld [vmem:[%s12196_s0 + $0x33a] sm:$0xff]  ;;  %v12409_v20 = vld [vmem:[#allocation32_spill] sm:$0xff]  ;;  %v3158_v26 = vadd.f32 %v12411_v12, %v12410_v43  ;;  %v10958_v11 = vpop.f32.mrf.mxu1 }
 0x293   :  { %v3513_v32 = vpop.f32.mrf.mxu0  ;;  %v12412_v10 = vld [vmem:[#allocation34_spill] sm:$0xff] }
 0x294   :  { %12408 = vst [vmem:[#allocation23_spill] sm:$0xff] %v10933_v51  ;;  %v10951_v30 = vadd.f32 %v3513_v32, %v12409_v20  ;;  %v4396_v51 = vpack.c.bf16 %v6563_v6, %v6562_v27  ;;  %v10973_v27 = vpop.f32.mrf.mxu1 }
 0x295   :  { %v7448_v40 = vpop.f32.mrf.mxu0 }
 0x296   :  { %v10956_v57 = vadd.f32 %v7448_v40, %v12412_v10  ;;  %v4397_v40 = vpack.c.bf16 %v6565_v15, %v6564_v35 }
 0x297   :  { %v3516_v29 = vpop.f32.mrf.mxu0 }
 0x298   :  { %v10960_v62 = vadd.f32 %v3516_v29, %v3158_v26 }
 0x299   :  { %v7451_v19 = vpop.f32.mrf.mxu0  ;;  %7614 = vmatmul.mubr.msk.bf16.gmra.mxu0 %vm222_vm1, %v4395_v3 }
 0x29a   :  { %v10964_v32 = vadd.f32 %v7451_v19, %v9965_v36  ;;  %7617 = vmatprep.mubr.msk.bf16.mxu0 %vm222_vm1, %v4396_v51  ;;  %v3162_v36 = vadd.f32 %v9975_v16, %v9971_v22  ;;  %v10983_v51 = vpop.f32.mrf.mxu1  ;;  %v12418_v22 = vld [vmem:[#allocation35_spill] sm:$0xff] }
 0x29b   :  { %v3529_v29 = vpop.f32.mrf.mxu0 }
 0x29c   :  { %v10976_v6 = vadd.f32 %v3529_v29, %v9968_v42  ;;  %v10991_v42 = vpop.f32.mrf.mxu1 }
 0x29d   :  { %v7452_v20 = vpop.f32.mrf.mxu0 }
 0x29e   :  { %12413 = vst [vmem:[#allocation28_spill] sm:$0xff] %v10976_v6  ;;  %v10981_v19 = vadd.f32 %v7452_v20, %v9973_v53  ;;  %v3166_v53 = vadd.f32 %v10004_v48, %v10000_v17  ;;  %v11001_v29 = vpop.f32.mrf.mxu1  ;;  %v12423_v17 = vld [vmem:[#allocation37_spill] sm:$0xff]  ;;  %v12424_v48 = vld [vmem:[#allocation39_spill] sm:$0xff] }
 0x29f   :  { %v3532_v3 = vpop.f32.mrf.mxu0 }
 0x2a0   :  { %12414 = vst [vmem:[#allocation29_spill] sm:$0xff] %v10981_v19  ;;  %v10985_v43 = vadd.f32 %v3532_v3, %v3162_v36  ;;  %v11008_v3 = vpop.f32.mrf.mxu1 }
 0x2a1   :  { %v7455_v12 = vpop.f32.mrf.mxu0  ;;  %7618 = vmatmul.mubr.msk.bf16.gmra.mxu0 %vm222_vm1, %v4397_v40 }
 0x2a2   :  { %12415 = vst [vmem:[#allocation30_spill] sm:$0xff] %v10985_v43  ;;  %v10989_v26 = vadd.f32 %v7455_v12, %v9994_v55 }
 0x2a3   :  { %v3545_v10 = vpop.f32.mrf.mxu0 }
 0x2a4   :  { %12416 = vst [vmem:[#allocation27_spill] sm:$0xff] %v10989_v26  ;;  %v10994_v35 = vadd.f32 %v3545_v10, %v9997_v23 }
 0x2a5   :  { %v7456_v16 = vpop.f32.mrf.mxu0 }
 0x2a6   :  { %12417 = vst [vmem:[#allocation32_spill] sm:$0xff] %v10994_v35  ;;  %v10999_v15 = vadd.f32 %v7456_v16, %v12418_v22  ;;  %v3170_v16 = vadd.f32 %v12424_v48, %v12423_v17  ;;  %v12425_v22 = vld [vmem:[#allocation38_spill] sm:$0xff]  ;;  %v11018_v35 = vpop.f32.mrf.mxu1  ;;  %v12430_v17 = vld [vmem:[#allocation36_spill] sm:$0xff] }
 0x2a7   :  { %v3548_v20 = vpop.f32.mrf.mxu0  ;;  %v12431_v48 = vld [vmem:[#allocation42_spill] sm:$0xff] }
 0x2a8   :  { %12419 = vst [vmem:[#allocation33_spill] sm:$0xff] %v10999_v15  ;;  %v11003_v40 = vadd.f32 %v3548_v20, %v3166_v53 }
 0x2a9   :  { %v7459_v55 = vpop.f32.mrf.mxu0 }
 0x2aa   :  { %12420 = vst [vmem:[#allocation31_spill] sm:$0xff] %v11003_v40  ;;  %v11006_v36 = vadd.f32 %v7459_v55, %v10022_v34 }
 0x2ab   :  { %v3561_v23 = vpop.f32.mrf.mxu0 }
 0x2ac   :  { %12421 = vst [vmem:[#allocation34_spill] sm:$0xff] %v11006_v36  ;;  %v11011_v12 = vadd.f32 %v3561_v23, %v10025_v31  ;;  %v11025_v36 = vpop.f32.mrf.mxu1 }
 0x2ad   :  { %v7460_v10 = vpop.f32.mrf.mxu0 }
 0x2ae   :  { %12422 = vst [vmem:[#allocation35_spill] sm:$0xff] %v11011_v12  ;;  %v11016_v15 = vadd.f32 %v7460_v10, %v12425_v22  ;;  %v3174_v10 = vadd.f32 %v12431_v48, %v12430_v17  ;;  %v12432_v22 = vld [vmem:[#allocation40_spill] sm:$0xff]  ;;  %v11035_v40 = vpop.f32.mrf.mxu1  ;;  %v12439_v17 = vld [vmem:[#allocation41_spill] sm:$0xff]  ;;  %v12440_v48 = vld [vmem:[#allocation46_spill] sm:$0xff] }
 0x2af   :  { %v3564_v53 = vpop.f32.mrf.mxu0 }
 0x2b0   :  { %12426 = vst [vmem:[#allocation37_spill] sm:$0xff] %v11016_v15  ;;  %v11020_v20 = vadd.f32 %v3564_v53, %v3170_v16 }
 0x2b1   :  { %v7463_v34 = vpop.f32.mrf.mxu0 }
 0x2b2   :  { %12427 = vst [vmem:[#allocation39_spill] sm:$0xff] %v11020_v20  ;;  %v11023_v55 = vadd.f32 %v7463_v34, %v10050_v2  ;;  %v12435_v34 = vld [vmem:[#allocation43_spill] sm:$0xff]  ;;  %v11042_v20 = vpop.f32.mrf.mxu1 }
 0x2b3   :  { %v3577_v31 = vpop.f32.mrf.mxu0 }
 0x2b4   :  { %12428 = vst [vmem:[#allocation38_spill] sm:$0xff] %v11023_v55  ;;  %v11028_v23 = vadd.f32 %v3577_v31, %v10053_v7  ;;  %v12437_v31 = vld [vmem:[#allocation44_spill] sm:$0xff]  ;;  %v11052_v43 = vpop.f32.mrf.mxu1 }
 0x2b5   :  { %v7464_v12 = vpop.f32.mrf.mxu0 }
 0x2b6   :  { %12429 = vst [vmem:[#allocation50_spill] sm:$0xff] %v11028_v23  ;;  %v11033_v15 = vadd.f32 %v7464_v12, %v12432_v22  ;;  %v3178_v12 = vadd.f32 %v12440_v48, %v12439_v17  ;;  %v12441_v22 = vld [vmem:[#allocation45_spill] sm:$0xff]  ;;  %v12448_v17 = vld [vmem:[#allocation47_spill] sm:$0xff]  ;;  %v12449_v48 = vld [vmem:[#allocation6_spill] sm:$0xff] }
 0x2b7   :  { %v3580_v16 = vpop.f32.mrf.mxu0 }
 0x2b8   :  { %12433 = vst [vmem:[#allocation36_spill] sm:$0xff] %v11033_v15  ;;  %v11037_v53 = vadd.f32 %v3580_v16, %v3174_v10 }
 0x2b9   :  { %v7467_v2 = vpop.f32.mrf.mxu0 }
 0x2ba   :  { %12434 = vst [vmem:[#allocation42_spill] sm:$0xff] %v11037_v53  ;;  %v11040_v55 = vadd.f32 %v7467_v2, %v12435_v34  ;;  %v12444_v34 = vld [vmem:[#allocation48_spill] sm:$0xff]  ;;  %v11059_v53 = vpop.f32.mrf.mxu1 }
 0x2bb   :  { %v3593_v7 = vpop.f32.mrf.mxu0 }
 0x2bc   :  { %12436 = vst [vmem:[#allocation40_spill] sm:$0xff] %v11040_v55  ;;  %v11045_v23 = vadd.f32 %v3593_v7, %v12437_v31  ;;  %v12446_v31 = vld [vmem:[#allocation49_spill] sm:$0xff]  ;;  %v11069_v6 = vpop.f32.mrf.mxu1 }
 0x2bd   :  { %v7468_v26 = vpop.f32.mrf.mxu0  ;;  %12452 = vst [vmem:[#allocation49_spill] sm:$0xff] %v11069_v6 }
 0x2be   :  { %12438 = vst [vmem:[#allocation43_spill] sm:$0xff] %v11045_v23  ;;  %v11050_v15 = vadd.f32 %v7468_v26, %v12441_v22  ;;  %v3182_v26 = vadd.f32 %v12449_v48, %v12448_v17  ;;  %v12450_v22 = vld [vmem:[#allocation3_spill] sm:$0xff]  ;;  %v12456_v17 = vld [vmem:[#allocation5_spill] sm:$0xff]  ;;  %v12457_v48 = vld [vmem:[#allocation8_spill] sm:$0xff] }
 0x2bf   :  { %v3596_v10 = vpop.f32.mrf.mxu0 }
 0x2c0   :  { %12442 = vst [vmem:[#allocation44_spill] sm:$0xff] %v11050_v15  ;;  %v11054_v16 = vadd.f32 %v3596_v10, %v3178_v12 }
 0x2c1   :  { %v7471_v2 = vpop.f32.mrf.mxu0 }
 0x2c2   :  { %12443 = vst [vmem:[#allocation41_spill] sm:$0xff] %v11054_v16  ;;  %v11057_v55 = vadd.f32 %v7471_v2, %v12444_v34 }
 0x2c3   :  { %v3609_v7 = vpop.f32.mrf.mxu0 }
 0x2c4   :  { %12445 = vst [vmem:[#allocation46_spill] sm:$0xff] %v11057_v55  ;;  %v11062_v23 = vadd.f32 %v3609_v7, %v12446_v31  ;;  %v11076_v55 = vpop.f32.mrf.mxu1  ;;  %v12454_v31 = vld [vmem:[#allocation7_spill] sm:$0xff] }
 0x2c5   :  { %v7472_v19 = vpop.f32.mrf.mxu0 }
 0x2c6   :  { %12447 = vst [vmem:[#allocation45_spill] sm:$0xff] %v11062_v23  ;;  %v11067_v15 = vadd.f32 %v7472_v19, %v12450_v22  ;;  %v3186_v19 = vadd.f32 %v12457_v48, %v12456_v17  ;;  %v12458_v22 = vld [vmem:[#allocation4_spill] sm:$0xff]  ;;  %v11086_v6 = vpop.f32.mrf.mxu1  ;;  %v12462_v17 = vld [vmem:[#allocation9_spill] sm:$0xff]  ;;  %v12463_v48 = vld [vmem:[#allocation11_spill] sm:$0xff] }
 0x2c7   :  { %v3612_v12 = vpop.f32.mrf.mxu0 }
 0x2c8   :  { %12451 = vst [vmem:[#allocation48_spill] sm:$0xff] %v11067_v15  ;;  %v11071_v10 = vadd.f32 %v3612_v12, %v3182_v26 }
 0x2c9   :  { %v7475_v2 = vpop.f32.mrf.mxu0 }
 0x2ca   :  { %v11074_v34 = vadd.f32 %v7475_v2, %v10134_v24 }
 0x2cb   :  { %v3625_v7 = vpop.f32.mrf.mxu0 }
 0x2cc   :  { %12453 = vst [vmem:[#allocation47_spill] sm:$0xff] %v11074_v34  ;;  %v11079_v23 = vadd.f32 %v3625_v7, %v12454_v31  ;;  %v11093_v34 = vpop.f32.mrf.mxu1 }
 0x2cd   :  { %v7476_v16 = vpop.f32.mrf.mxu0 }
 0x2ce   :  { %12455 = vst [vmem:[#allocation6_spill] sm:$0xff] %v11079_v23  ;;  %v11084_v15 = vadd.f32 %v7476_v16, %v12458_v22  ;;  %v3190_v16 = vadd.f32 %v12462_v17, %v10168_v5  ;;  %v3194_v5 = vadd.f32 %v10200_v41, %v10196_v4  ;;  %v3198_v41 = vadd.f32 %v10228_v45, %v10224_v60 }
 0x2cf   :  { %v3628_v26 = vpop.f32.mrf.mxu0  ;;  %v4239_v45 = vadd.f32 %v10262_v52, %v10260_v37 }
 0x2d0   :  { %12459 = vst [vmem:[#allocation3_spill] sm:$0xff] %v11084_v15  ;;  %v11088_v12 = vadd.f32 %v3628_v26, %v3186_v19  ;;  %v11103_v15 = vpop.f32.mrf.mxu1 }
 0x2d1   :  { %v7479_v24 = vpop.f32.mrf.mxu0 }
 0x2d2   :  { %v11091_v2 = vadd.f32 %v7479_v24, %v10162_v18 }
 0x2d3   :  { %v3641_v7 = vpop.f32.mrf.mxu0 }
 0x2d4   :  { %12460 = vst [vmem:[#allocation7_spill] sm:$0xff] %v11091_v2  ;;  %v11096_v31 = vadd.f32 %v3641_v7, %v10165_v9  ;;  %v11110_v2 = vpop.f32.mrf.mxu1 }
 0x2d5   :  { %v7480_v23 = vpop.f32.mrf.mxu0 }
 0x2d6   :  { %12461 = vst [vmem:[#allocation5_spill] sm:$0xff] %v11096_v31  ;;  %v11101_v22 = vadd.f32 %v7480_v23, %v12463_v48  ;;  %v12466_v23 = vld [vmem:[#allocation12_spill] sm:$0xff]  ;;  %v11120_v48 = vpop.f32.mrf.mxu1 }
 0x2d7   :  { %v3644_v19 = vpop.f32.mrf.mxu0 }
 0x2d8   :  { %v11105_v26 = vadd.f32 %v3644_v19, %v3190_v16 }
 0x2d9   :  { %v7483_v18 = vpop.f32.mrf.mxu0 }
 0x2da   :  { %v11108_v24 = vadd.f32 %v7483_v18, %v10190_v61 }
 0x2db   :  { %v3657_v9 = vpop.f32.mrf.mxu0 }
 0x2dc   :  { %12464 = vst [vmem:[#allocation8_spill] sm:$0xff] %v11108_v24  ;;  %v11113_v7 = vadd.f32 %v3657_v9, %v10193_v14  ;;  %v11127_v24 = vpop.f32.mrf.mxu1 }
 0x2dd   :  { %v7484_v31 = vpop.f32.mrf.mxu0 }
 0x2de   :  { %12465 = vst [vmem:[#allocation4_spill] sm:$0xff] %v11113_v7  ;;  %v11118_v17 = vadd.f32 %v7484_v31, %v12466_v23  ;;  %v11137_v31 = vpop.f32.mrf.mxu1 }
 0x2df   :  { %v3660_v16 = vpop.f32.mrf.mxu0 }
 0x2e0   :  { %v11122_v19 = vadd.f32 %v3660_v16, %v3194_v5  ;;  %v4238_v16 = vadd.f32 %v10252_v56, %v10250_v21  ;;  %v12467_v21 = vld [vmem:[#allocation10_spill] sm:$0xff] }
 0x2e1   :  { %v7487_v61 = vpop.f32.mrf.mxu0  ;;  %v4242_v56 = vadd.f32 %v12467_v21, %v10648_v47  ;;  %v11188_v47 = vld [vmem:[%s12201_s3] ss:$0 sm:$0xff] }
 0x2e2   :  { %v11125_v18 = vadd.f32 %v7487_v61, %v10218_v38  ;;  %v4240_v38 = vadd.f32 %v10234_v58, %v10232_v0  ;;  %v11157_v0 = vstv %s12200_s5  ;;  %v4244_v58 = vadd.f32 %v10639_v25, %v10266_v49  ;;  %v11183_v25 = vpop.f32.mrf.mxu1 }
 0x2e3   :  { %v3673_v14 = vpop.f32.mrf.mxu0  ;;  %v11181_v49 = vadd.f32 %v10911_v54, %v10863_v28  ;;  %v12474_v54 = vld [vmem:[#allocation20_spill] sm:$0xff] }
 0x2e4   :  { %v11130_v9 = vadd.f32 %v3673_v14, %v10221_v50  ;;  %v4241_v50 = vadd.f32 %v10257_v44, %v10255_v59  ;;  %v12468_v59 = vld [vmem:[#allocation13_spill] sm:$0xff]  ;;  %v12471_v14 = vld [vmem:[#allocation15_spill] sm:$0xff]  ;;  %v11201_v21 = vadd.f32 %v10958_v11, %v12474_v54 }
 0x2e5   :  { %v7488_v7 = vpop.f32.mrf.mxu0  ;;  %v12469_v44 = vld [vmem:[#allocation17_spill] sm:$0xff] }
 0x2e6   :  { %v11135_v4 = vadd.f32 %v7488_v7, %v10226_v1  ;;  %v11152_v1 = vld [vmem:[%s12199_s2] ss:$0 sm:$0xff]  ;;  %v11165_v37 = vadd.f32 %v12469_v44, %v12468_v59  ;;  %v12470_v7 = vld [vmem:[#allocation14_spill] sm:$0xff]  ;;  %v12475_v59 = vld [vmem:[#allocation21_spill] sm:$0xff] }
 0x2e7   :  { %v3676_v5 = vpop.f32.mrf.mxu0  ;;  %v11169_v61 = vadd.f32 %v10865_v8, %v12470_v7  ;;  %v11205_v44 = vadd.f32 %v10973_v27, %v12475_v59  ;;  %v12476_v7 = vld [vmem:[#allocation22_spill] sm:$0xff]  ;;  %v12479_v27 = vld [vmem:[#allocation25_spill] sm:$0xff] }
 0x2e8   :  { %v11141_v23 = vadd.f32 %v3676_v5, %v3198_v41  ;;  %v11173_v41 = vadd.f32 %v10881_v39, %v12471_v14  ;;  %v11177_v5 = vadd.f32 %v10895_v46, %v10860_v63  ;;  %v11209_v14 = vadd.f32 %v10983_v51, %v12476_v7  ;;  %v12480_v51 = vld [vmem:[#allocation26_spill] sm:$0xff] }
 0x2e9   :  { %v7559_v60 = vpop.f32.mrf.mxu0  ;;  %v11223_v54 = vadd.f32 %v11008_v3, %v12479_v27  ;;  %v11227_v59 = vadd.f32 %v11018_v35, %v12480_v51  ;;  %v11243_v35 = vadd.f32 %v11042_v20, %v10956_v57  ;;  %v12484_v20 = vld [vmem:[#allocation29_spill] sm:$0xff]  ;;  %v12486_v27 = vld [vmem:[#allocation27_spill] sm:$0xff] }
 0x2ea   :  { %v4790_v52 = vadd.f32 %v7559_v60, %v4240_v38  ;;  %v12472_v38 = vld [vmem:[#allocation18_spill] sm:$0xff]  ;;  %v12473_v60 = vld [vmem:[#allocation16_spill] sm:$0xff]  ;;  %v11274_v51 = vadd.f32 %v11093_v34, %v12486_v27 }
 0x2eb   :  { %v4533_v8 = vpop.f32.mrf.mxu0  ;;  %v11192_v39 = vadd.f32 %v10927_v33, %v12472_v38  ;;  %v11196_v63 = vadd.f32 %v10942_v13, %v12473_v60  ;;  %v12477_v33 = vld [vmem:[#allocation19_spill] sm:$0xff]  ;;  %v12478_v60 = vld [vmem:[#allocation24_spill] sm:$0xff]  ;;  %v12490_v27 = vld [vmem:[#allocation34_spill] sm:$0xff] }
 0x2ec   :  { %v4861_v46 = vmul.f32 %v11152_v1, %v4790_v52  ;;  %v4788_v28 = vadd.f32 %v4533_v8, %v4238_v16  ;;  %v11213_v38 = vadd.f32 %v10991_v42, %v12477_v33  ;;  %v11217_v16 = vadd.f32 %v11001_v29, %v12478_v60  ;;  %v12481_v42 = vld [vmem:[#allocation23_spill] sm:$0xff]  ;;  %v12483_v60 = vld [vmem:[#allocation49_spill] sm:$0xff] }
 0x2ed   :  { %v7560_v13 = vpop.f32.mrf.mxu0  ;;  %v11231_v7 = vadd.f32 %v11025_v36, %v12481_v42  ;;  %v11235_v29 = vadd.f32 %v11035_v40, %v10951_v30  ;;  %v11247_v36 = vadd.f32 %v11052_v43, %v10960_v62  ;;  %v11251_v30 = vadd.f32 %v11059_v53, %v10964_v32  ;;  %v12482_v40 = vld [vmem:[#allocation28_spill] sm:$0xff]  ;;  %v12485_v53 = vld [vmem:[#allocation30_spill] sm:$0xff] }
 0x2ee   :  { %v4932_v11 = vadd.f32 %v11188_v47, %v4861_v46  ;;  %v4859_v52 = vmul.f32 %v11152_v1, %v4788_v28  ;;  %v4791_v8 = vadd.f32 %v7560_v13, %v4241_v50  ;;  %v11237_v46 = vpop.f32.mrf.mxu1  ;;  %v11266_v32 = vadd.f32 %v11076_v55, %v12484_v20  ;;  %v12489_v20 = vld [vmem:[#allocation31_spill] sm:$0xff] }
 0x2ef   :  { %v4536_v28 = vpop.f32.mrf.mxu0 }
 0x2f0   :  { %v4996_v50 = vmax.f32 %v4932_v11, 0.0  ;;  %v4930_v33 = vadd.f32 %v11188_v47, %v4859_v52  ;;  %v4862_v3 = vmul.f32 %v11152_v1, %v4791_v8  ;;  %v4789_v13 = vadd.f32 %v4536_v28, %v4239_v45  ;;  %v7529_v42 = vpop.f32.mrf.mxu1 }
 0x2f1   :  { %v11255_v11 = vadd.f32 %v12483_v60, %v12482_v40  ;;  %v7563_v52 = vpop.f32.mrf.mxu0  ;;  %v11270_v45 = vadd.f32 %v11086_v6, %v12485_v53  ;;  %v12488_v40 = vld [vmem:[#allocation33_spill] sm:$0xff]  ;;  %v11293_v53 = vadd.f32 %v11120_v48, %v12489_v20 }
 0x2f2   :  { %v5062_v8 = vmul.f32 %v11157_v0, %v4996_v50  ;;  %6635 = vst.msk [vmem:[%s12198_s6 + $0x31] sm:$0xff] %vm222_vm1, %v4996_v50  ;;  %v4994_v57 = vmax.f32 %v4930_v33, 0.0  ;;  %v4933_v62 = vadd.f32 %v11188_v47, %v4862_v3  ;;  %v4860_v43 = vmul.f32 %v11152_v1, %v4789_v13  ;;  %v12487_v33 = vld [vmem:[#allocation32_spill] sm:$0xff] }
 0x2f3   :  { %v4794_v28 = vadd.f32 %v7563_v52, %v4244_v58  ;;  %v4549_v50 = vpop.f32.mrf.mxu0  ;;  %v11278_v3 = vadd.f32 %v11103_v15, %v12487_v33  ;;  %v11288_v34 = vadd.f32 %v11110_v2, %v12488_v40  ;;  %v11297_v33 = vadd.f32 %v11127_v24, %v12490_v27 }
 0x2f4   :  { %v5060_v13 = vmul.f32 %v11157_v0, %v4994_v57  ;;  %6633 = vst.msk [vmem:[%s12198_s6 + $0x19] sm:$0xff] %vm222_vm1, %v4994_v57  ;;  %v4997_v6 = vmax.f32 %v4933_v62, 0.0  ;;  %v4931_v55 = vadd.f32 %v11188_v47, %v4860_v43  ;;  %v5128_v58 = vmul.f32 1.442695, %v5062_v8  ;;  %v4127_v8 = vpop.f32.mrf.mxu1 }
 0x2f5   :  { %v4865_v60 = vmul.f32 %v11152_v1, %v4794_v28  ;;  %v4792_v52 = vadd.f32 %v4549_v50, %v4242_v56  ;;  %v7564_v15 = vpop.f32.mrf.mxu0  ;;  %v12491_v50 = vld [vmem:[#allocation35_spill] sm:$0xff] }
 0x2f6   :  { %v5063_v57 = vmul.f32 %v11157_v0, %v4997_v6  ;;  %6636 = vst.msk [vmem:[%s12198_s6 + $0x39] sm:$0xff] %vm222_vm1, %v4997_v6  ;;  %v4995_v2 = vmax.f32 %v4931_v55, 0.0  ;;  %v5124_v62 = vmul.f32 1.442695, %v5060_v13  ;;  %v4795_v48 = vadd.f32 %v7564_v15, %v11165_v37  ;;  %v7530_v27 = vpop.f32.mrf.mxu1 }
 0x2f7   :  { %v4936_v56 = vadd.f32 %v11188_v47, %v4865_v60  ;;  %v4863_v43 = vmul.f32 %v11152_v1, %v4792_v52  ;;  %v4552_v28 = vpop.f32.mrf.mxu0  ;;  %v11309_v24 = vadd.f32 %v11137_v31, %v12491_v50  ;;  %7698 = vpow2.f32 %v5128_v58 }
 0x2f8   :  { %v5130_v40 = vmul.f32 1.442695, %v5063_v57  ;;  %v5061_v20 = vmul.f32 %v11157_v0, %v4995_v2  ;;  %6634 = vst.msk [vmem:[%s12198_s6 + $0x21] sm:$0xff] %vm222_vm1, %v4995_v2  ;;  %v4793_v13 = vadd.f32 %v4552_v28, %v11169_v61  ;;  %v4866_v37 = vmul.f32 %v11152_v1, %v4795_v48  ;;  %v12492_v48 = vld [vmem:[#allocation37_spill] sm:$0xff] }
 0x2f9   :  { %v5000_v6 = vmax.f32 %v4936_v56, 0.0  ;;  %v4934_v55 = vadd.f32 %v11188_v47, %v4863_v43  ;;  %v7567_v60 = vpop.f32.mrf.mxu0 }
 0x2fa   :  { %7700 = vpow2.f32 %v5130_v40  ;;  %v5126_v31 = vmul.f32 1.442695, %v5061_v20  ;;  %v4864_v52 = vmul.f32 %v11152_v1, %v4793_v13  ;;  %v4798_v15 = vadd.f32 %v7567_v60, %v11173_v41  ;;  %v12494_v60 = vld [vmem:[#allocation38_spill] sm:$0xff] }
 0x2fb   :  { %7702 = vpow2.f32 %v5124_v62  ;;  %v5066_v57 = vmul.f32 %v11157_v0, %v5000_v6  ;;  %6639 = vst.msk [vmem:[%s12198_s6 + $0x61] sm:$0xff] %vm222_vm1, %v5000_v6  ;;  %v4998_v61 = vmax.f32 %v4934_v55, 0.0  ;;  %v4937_v58 = vadd.f32 %v11188_v47, %v4866_v37  ;;  %v4565_v2 = vpop.f32.mrf.mxu0  ;;  %v12493_v37 = vld [vmem:[#allocation39_spill] sm:$0xff] }
 0x2fc   :  { %7704 = vpow2.f32 %v5126_v31  ;;  %v4935_v56 = vadd.f32 %v11188_v47, %v4864_v52  ;;  %v4869_v43 = vmul.f32 %v11152_v1, %v4798_v15  ;;  %v4796_v41 = vadd.f32 %v4565_v2, %v11177_v5  ;;  %v12495_v52 = vld [vmem:[#allocation50_spill] sm:$0xff] }
 0x2fd   :  { %v11332_v62 = vadd.f32 %v11183_v25, %v12492_v48  ;;  %v5136_v28 = vmul.f32 1.442695, %v5066_v57  ;;  %v5064_v50 = vmul.f32 %v11157_v0, %v4998_v61  ;;  %6637 = vst.msk [vmem:[%s12198_s6 + $0x49] sm:$0xff] %vm222_vm1, %v4998_v61  ;;  %v5001_v40 = vmax.f32 %v4937_v58, 0.0  ;;  %v7568_v20 = vpop.f32.mrf.mxu0  ;;  %v4130_v57 = vpop.f32.mrf.mxu1 }
 0x2fe   :  { %v4999_v13 = vmax.f32 %v4935_v56, 0.0  ;;  %v4940_v6 = vadd.f32 %v11188_v47, %v4869_v43  ;;  %v4867_v55 = vmul.f32 %v11152_v1, %v4796_v41  ;;  %v4799_v5 = vadd.f32 %v7568_v20, %v11181_v49 }
 0x2ff   :  { %v11344_v25 = vadd.f32 %v11237_v46, %v12493_v37  ;;  %v11347_v31 = vadd.f32 %v7529_v42, %v12494_v60  ;;  %v11350_v15 = vadd.f32 %v4127_v8, %v12495_v52  ;;  %v5067_v61 = vmul.f32 %v11157_v0, %v5001_v40  ;;  %6640 = vst.msk [vmem:[%s12198_s6 + $0x69] sm:$0xff] %vm222_vm1, %v5001_v40  ;;  %v4568_v58 = vpop.f32.mrf.mxu0 }
 0x300   :  { %v5065_v49 = vmul.f32 %v11157_v0, %v4999_v13  ;;  %6638 = vst.msk [vmem:[%s12198_s6 + $0x51] sm:$0xff] %vm222_vm1, %v4999_v13  ;;  %v5004_v46 = vmax.f32 %v4940_v6, 0.0  ;;  %v4938_v42 = vadd.f32 %v11188_v47, %v4867_v55  ;;  %v4870_v8 = vmul.f32 %v11152_v1, %v4799_v5  ;;  %v12496_v6 = vld [vmem:[#allocation36_spill] sm:$0xff] }
 0x301   :  { %7706 = vpow2.f32 %v5136_v28  ;;  %v5132_v2 = vmul.f32 1.442695, %v5064_v50  ;;  %v5138_v56 = vmul.f32 1.442695, %v5067_v61  ;;  %v4797_v43 = vadd.f32 %v4568_v58, %v11192_v39  ;;  %v7571_v41 = vpop.f32.mrf.mxu0  ;;  %v7533_v28 = vpop.f32.mrf.mxu1 }
 0x302   :  { %v5134_v48 = vmul.f32 1.442695, %v5065_v49  ;;  %v5070_v40 = vmul.f32 %v11157_v0, %v5004_v46  ;;  %6643 = vst.msk [vmem:[%s12198_s6 + $0x91] sm:$0xff] %vm222_vm1, %v5004_v46  ;;  %v5002_v20 = vmax.f32 %v4938_v42, 0.0  ;;  %v4941_v13 = vadd.f32 %v11188_v47, %v4870_v8  ;;  %v12497_v46 = vld [vmem:[#allocation42_spill] sm:$0xff]  ;;  %v12498_v8 = vld [vmem:[#allocation40_spill] sm:$0xff] }
 0x303   :  { %v11372_v55 = vadd.f32 %v7530_v27, %v12496_v6  ;;  %7708 = vpow2.f32 %v5138_v56  ;;  %v4868_v50 = vmul.f32 %v11152_v1, %v4797_v43  ;;  %v4802_v39 = vadd.f32 %v7571_v41, %v11196_v63  ;;  %v4581_v5 = vpop.f32.mrf.mxu0 }
 0x304   :  { %7710 = vpow2.f32 %v5134_v48  ;;  %v5144_v37 = vmul.f32 1.442695, %v5070_v40  ;;  %v5068_v60 = vmul.f32 %v11157_v0, %v5002_v20  ;;  %6641 = vst.msk [vmem:[%s12198_s6 + $0x79] sm:$0xff] %vm222_vm1, %v5002_v20  ;;  %v5005_v52 = vmax.f32 %v4941_v13, 0.0  ;;  %v7699_v63 = vpop.eup %7698  ;;  %v4143_v48 = vpop.f32.mrf.mxu1 }
 0x305   :  { %7712 = vpow2.f32 %v5132_v2  ;;  %v4939_v27 = vadd.f32 %v11188_v47, %v4868_v50  ;;  %v4873_v61 = vmul.f32 %v11152_v1, %v4802_v39  ;;  %v4800_v58 = vadd.f32 %v4581_v5, %v11201_v21  ;;  %v7572_v49 = vpop.f32.mrf.mxu0 }
 0x306   :  { %v11385_v42 = vadd.f32 %v4130_v57, %v12497_v46  ;;  %v11388_v56 = vadd.f32 %v7533_v28, %v12498_v8  ;;  %v5071_v43 = vmul.f32 %v11157_v0, %v5005_v52  ;;  %6644 = vst.msk [vmem:[%s12198_s6 + $0x99] sm:$0xff] %vm222_vm1, %v5005_v52  ;;  %v4803_v2 = vadd.f32 %v7572_v49, %v11205_v44 }
 0x307   :  { %v7701_v41 = vpop.eup %7700  ;;  %7714 = vpow2.f32 %v5144_v37  ;;  %v5003_v21 = vmax.f32 %v4939_v27, 0.0  ;;  %v4944_v40 = vadd.f32 %v11188_v47, %v4873_v61  ;;  %v4871_v57 = vmul.f32 %v11152_v1, %v4800_v58  ;;  %v4584_v20 = vpop.f32.mrf.mxu0 }
 0x308   :  { %v7703_v13 = vpop.eup %7702  ;;  %v5253_v6 = vpack.c.bf16 %v7701_v41, %v7699_v63  ;;  %v5140_v28 = vmul.f32 1.442695, %v5068_v60  ;;  %v5146_v50 = vmul.f32 1.442695, %v5071_v43  ;;  %v4874_v39 = vmul.f32 %v11152_v1, %v4803_v2  ;;  %v7534_v63 = vpop.f32.mrf.mxu1 }
 0x309   :  { %v7705_v5 = vpop.eup %7704  ;;  %v5069_v52 = vmul.f32 %v11157_v0, %v5003_v21  ;;  %6642 = vst.msk [vmem:[%s12198_s6 + $0x81] sm:$0xff] %vm222_vm1, %v5003_v21  ;;  %v5008_v44 = vmax.f32 %v4944_v40, 0.0  ;;  %v4942_v37 = vadd.f32 %v11188_v47, %v4871_v57  ;;  %v4801_v27 = vadd.f32 %v4584_v20, %v11209_v14  ;;  %v7575_v61 = vpop.f32.mrf.mxu0 }
 0x30a   :  { %7716 = vpow2.f32 %v5146_v50  ;;  %v4945_v60 = vadd.f32 %v11188_v47, %v4874_v39  ;;  %v4806_v58 = vadd.f32 %v7575_v61, %v11213_v38  ;;  %v5252_v49 = vpack.c.bf16 %v7705_v5, %v7703_v13 }
 0x30b   :  { %v5142_v46 = vmul.f32 1.442695, %v5069_v52  ;;  %v5074_v8 = vmul.f32 %v11157_v0, %v5008_v44  ;;  %6647 = vst.msk [vmem:[%s12198_s6 + $0xc1] sm:$0xff] %vm222_vm1, %v5008_v44  ;;  %v5006_v43 = vmax.f32 %v4942_v37, 0.0  ;;  %v4872_v2 = vmul.f32 %v11152_v1, %v4801_v27  ;;  %v4597_v14 = vpop.f32.mrf.mxu0  ;;  %v12499_v52 = vld [vmem:[#allocation43_spill] sm:$0xff]  ;;  %v4146_v37 = vpop.f32.mrf.mxu1 }
 0x30c   :  { %7718 = vpow2.f32 %v5140_v28  ;;  %v5009_v41 = vmax.f32 %v4945_v60, 0.0  ;;  %v4877_v21 = vmul.f32 %v11152_v1, %v4806_v58  ;;  %v4804_v38 = vadd.f32 %v4597_v14, %v11217_v16  ;;  %7623 = vmatprep.mubr.msk.bf16.mxu1 %vm222_vm1, %v5252_v49 }
 0x30d   :  { %7720 = vpow2.f32 %v5142_v46  ;;  %v5152_v40 = vmul.f32 1.442695, %v5074_v8  ;;  %v5072_v57 = vmul.f32 %v11157_v0, %v5006_v43  ;;  %6645 = vst.msk [vmem:[%s12198_s6 + $0xa9] sm:$0xff] %vm222_vm1, %v5006_v43  ;;  %v4943_v20 = vadd.f32 %v11188_v47, %v4872_v2  ;;  %v7576_v13 = vpop.f32.mrf.mxu0  ;;  %7624 = vmatmul.mubr.msk.bf16.vlgmr.msra.gmra.mxu1 %vm222_vm1, %v5253_v6 }
 0x30e   :  { %v7707_v28 = vpop.eup %7706  ;;  %v5075_v50 = vmul.f32 %v11157_v0, %v5009_v41  ;;  %6648 = vst.msk [vmem:[%s12198_s6 + $0xc9] sm:$0xff] %vm222_vm1, %v5009_v41  ;;  %v4948_v16 = vadd.f32 %v11188_v47, %v4877_v21  ;;  %v4875_v39 = vmul.f32 %v11152_v1, %v4804_v38  ;;  %v4807_v5 = vadd.f32 %v7576_v13, %v11223_v54 }
 0x30f   :  { %v11433_v44 = vadd.f32 %v4143_v48, %v12499_v52  ;;  %7722 = vpow2.f32 %v5152_v40  ;;  %v5148_v6 = vmul.f32 1.442695, %v5072_v57  ;;  %v5007_v27 = vmax.f32 %v4943_v20, 0.0  ;;  %v4600_v61 = vpop.f32.mrf.mxu0  ;;  %v7537_v57 = vpop.f32.mrf.mxu1 }
 0x310   :  { %v7709_v60 = vpop.eup %7708  ;;  %v5154_v58 = vmul.f32 1.442695, %v5075_v50  ;;  %v5012_v49 = vmax.f32 %v4948_v16, 0.0  ;;  %v4946_v46 = vadd.f32 %v11188_v47, %v4875_v39  ;;  %v4878_v8 = vmul.f32 %v11152_v1, %v4807_v5 }
 0x311   :  { %v7711_v43 = vpop.eup %7710  ;;  %7724 = vpow2.f32 %v5148_v6  ;;  %v5073_v2 = vmul.f32 %v11157_v0, %v5007_v27  ;;  %6646 = vst.msk [vmem:[%s12198_s6 + $0xb1] sm:$0xff] %vm222_vm1, %v5007_v27  ;;  %v4805_v54 = vadd.f32 %v4600_v61, %v11227_v59  ;;  %v7579_v48 = vpop.f32.mrf.mxu0  ;;  %v5255_v14 = vpack.c.bf16 %v7709_v60, %v7707_v28  ;;  %v12500_v27 = vld [vmem:[#allocation44_spill] sm:$0xff] }
 0x312   :  { %v7713_v41 = vpop.eup %7712  ;;  %7726 = vpow2.f32 %v5154_v58  ;;  %v5078_v21 = vmul.f32 %v11157_v0, %v5012_v49  ;;  %6651 = vst.msk [vmem:[%s12198_s6 + $0xf1] sm:$0xff] %vm222_vm1, %v5012_v49  ;;  %v5010_v38 = vmax.f32 %v4946_v46, 0.0  ;;  %v4949_v40 = vadd.f32 %v11188_v47, %v4878_v8  ;;  %v12501_v49 = vld [vmem:[#allocation41_spill] sm:$0xff] }
 0x313   :  { %v5150_v20 = vmul.f32 1.442695, %v5073_v2  ;;  %v4876_v13 = vmul.f32 %v11152_v1, %v4805_v54  ;;  %v4810_v59 = vadd.f32 %v7579_v48, %v11231_v7  ;;  %v4613_v50 = vpop.f32.mrf.mxu0  ;;  %v5254_v28 = vpack.c.bf16 %v7711_v43, %v7713_v41  ;;  %v4159_v2 = vpop.f32.mrf.mxu1 }
 0x314   :  { %v11451_v16 = vpop.eup %7714  ;;  %v5160_v39 = vmul.f32 1.442695, %v5078_v21  ;;  %v5076_v5 = vmul.f32 %v11157_v0, %v5010_v38  ;;  %6649 = vst.msk [vmem:[%s12198_s6 + $0xd9] sm:$0xff] %vm222_vm1, %v5010_v38  ;;  %v5013_v52 = vmax.f32 %v4949_v40, 0.0  ;;  %v4808_v6 = vadd.f32 %v4613_v50, %v11235_v29 }
 0x315   :  { %v11460_v61 = vadd.f32 %v7534_v63, %v12500_v27  ;;  %7728 = vpow2.f32 %v5150_v20  ;;  %v4947_v7 = vadd.f32 %v11188_v47, %v4876_v13  ;;  %v4881_v60 = vmul.f32 %v11152_v1, %v4810_v59  ;;  %7627 = vmatprep.mubr.msk.bf16.mxu1 %vm222_vm1, %v5254_v28  ;;  %v7580_v58 = vpop.f32.mrf.mxu0 }
 0x316   :  { %v11466_v46 = vadd.f32 %v4146_v37, %v12501_v49  ;;  %v5156_v8 = vmul.f32 1.442695, %v5076_v5  ;;  %v5079_v43 = vmul.f32 %v11157_v0, %v5013_v52  ;;  %6652 = vst.msk [vmem:[%s12198_s6 + $0xf9] sm:$0xff] %vm222_vm1, %v5013_v52  ;;  %v4879_v29 = vmul.f32 %v11152_v1, %v4808_v6  ;;  %7628 = vmatmul.mubr.msk.bf16.gmra.mxu1 %vm222_vm1, %v5255_v14  ;;  %v7538_v52 = vpop.f32.mrf.mxu1 }
 0x317   :  { %v7717_v63 = vpop.eup %7716  ;;  %7730 = vpow2.f32 %v5160_v39  ;;  %v5011_v54 = vmax.f32 %v4947_v7, 0.0  ;;  %v4952_v48 = vadd.f32 %v11188_v47, %v4881_v60  ;;  %v4811_v37 = vadd.f32 %v7580_v58, %v11243_v35  ;;  %v4616_v41 = vpop.f32.mrf.mxu0 }
 0x318   :  { %7732 = vpow2.f32 %v5156_v8  ;;  %v5162_v21 = vmul.f32 1.442695, %v5079_v43  ;;  %v4950_v38 = vadd.f32 %v11188_v47, %v4879_v29  ;;  %v4809_v40 = vadd.f32 %v4616_v41, %v11247_v36  ;;  %v12502_v29 = vld [vmem:[#allocation46_spill] sm:$0xff] }
 0x319   :  { %v7719_v20 = vpop.eup %7718  ;;  %v5077_v13 = vmul.f32 %v11157_v0, %v5011_v54  ;;  %6650 = vst.msk [vmem:[%s12198_s6 + $0xe1] sm:$0xff] %vm222_vm1, %v5011_v54  ;;  %v5016_v14 = vmax.f32 %v4952_v48, 0.0  ;;  %v4882_v59 = vmul.f32 %v11152_v1, %v4811_v37  ;;  %v7583_v50 = vpop.f32.mrf.mxu0  ;;  %v5257_v35 = vpack.c.bf16 %v7717_v63, %v11451_v16 }
 0x31a   :  { %v7721_v28 = vpop.eup %7720  ;;  %7734 = vpow2.f32 %v5162_v21  ;;  %v5014_v39 = vmax.f32 %v4950_v38, 0.0  ;;  %v4880_v5 = vmul.f32 %v11152_v1, %v4809_v40  ;;  %v4814_v36 = vadd.f32 %v7583_v50, %v11251_v30  ;;  %v12503_v21 = vld [vmem:[#allocation45_spill] sm:$0xff] }
 0x31b   :  { %v5158_v6 = vmul.f32 1.442695, %v5077_v13  ;;  %v5082_v27 = vmul.f32 %v11157_v0, %v5016_v14  ;;  %6655 = vst.msk [vmem:[%s12198_s6 + $0x121] sm:$0xff] %vm222_vm1, %v5016_v14  ;;  %v4953_v7 = vadd.f32 %v11188_v47, %v4882_v59  ;;  %v4629_v60 = vpop.f32.mrf.mxu0  ;;  %v5256_v16 = vpack.c.bf16 %v7721_v28, %v7719_v20  ;;  %v4162_v59 = vpop.f32.mrf.mxu1 }
 0x31c   :  { %v11494_v58 = vpop.eup %7722  ;;  %v5080_v49 = vmul.f32 %v11157_v0, %v5014_v39  ;;  %6653 = vst.msk [vmem:[%s12198_s6 + $0x109] sm:$0xff] %vm222_vm1, %v5014_v39  ;;  %v4951_v30 = vadd.f32 %v11188_v47, %v4880_v5  ;;  %v4885_v8 = vmul.f32 %v11152_v1, %v4814_v36  ;;  %v4812_v43 = vadd.f32 %v4629_v60, %v11255_v11 }
 0x31d   :  { %v11505_v63 = vadd.f32 %v7537_v57, %v12502_v29  ;;  %7736 = vpow2.f32 %v5158_v6  ;;  %v5168_v54 = vmul.f32 1.442695, %v5082_v27  ;;  %v5017_v48 = vmax.f32 %v4953_v7, 0.0  ;;  %7631 = vmatprep.mubr.msk.bf16.mxu1 %vm222_vm1, %v5256_v16  ;;  %v7584_v37 = vpop.f32.mrf.mxu0  ;;  %v12504_v57 = vld [vmem:[#allocation48_spill] sm:$0xff] }
 0x31e   :  { %v7725_v41 = vpop.eup %7724  ;;  %v11509_v38 = vadd.f32 %v4159_v2, %v12503_v21  ;;  %v5015_v40 = vmax.f32 %v4951_v30, 0.0  ;;  %v4956_v20 = vadd.f32 %v11188_v47, %v4885_v8  ;;  %v4883_v13 = vmul.f32 %v11152_v1, %v4812_v43  ;;  %7632 = vmatmul.mubr.msk.bf16.gmra.mxu1 %vm222_vm1, %v5257_v35  ;;  %v7541_v43 = vpop.f32.mrf.mxu1 }
 0x31f   :  { %v7727_v11 = vpop.eup %7726  ;;  %v11515_v14 = vadd.f32 %v7538_v52, %v12504_v57  ;;  %v5164_v50 = vmul.f32 1.442695, %v5080_v49  ;;  %v5083_v28 = vmul.f32 %v11157_v0, %v5017_v48  ;;  %6656 = vst.msk [vmem:[%s12198_s6 + $0x129] sm:$0xff] %vm222_vm1, %v5017_v48  ;;  %v4815_v2 = vadd.f32 %v7584_v37, %v11266_v32  ;;  %v4632_v39 = vpop.f32.mrf.mxu0 }
 0x320   :  { %7738 = vpow2.f32 %v5168_v54  ;;  %v5081_v5 = vmul.f32 %v11157_v0, %v5015_v40  ;;  %6654 = vst.msk [vmem:[%s12198_s6 + $0x111] sm:$0xff] %vm222_vm1, %v5015_v40  ;;  %v5020_v35 = vmax.f32 %v4956_v20, 0.0  ;;  %v4954_v36 = vadd.f32 %v11188_v47, %v4883_v13 }
 0x321   :  { %v5170_v52 = vmul.f32 1.442695, %v5083_v28  ;;  %v4886_v6 = vmul.f32 %v11152_v1, %v4815_v2  ;;  %v4813_v27 = vadd.f32 %v4632_v39, %v11270_v45  ;;  %v7587_v7 = vpop.f32.mrf.mxu0  ;;  %v5259_v32 = vpack.c.bf16 %v7727_v11, %v11494_v58 }
 0x322   :  { %v7729_v60 = vpop.eup %7728  ;;  %v5166_v16 = vmul.f32 1.442695, %v5081_v5  ;;  %v5086_v49 = vmul.f32 %v11157_v0, %v5020_v35  ;;  %6659 = vst.msk [vmem:[%s12198_s6 + $0x151] sm:$0xff] %vm222_vm1, %v5020_v35  ;;  %v5018_v30 = vmax.f32 %v4954_v36, 0.0  ;;  %v4818_v8 = vadd.f32 %v7587_v7, %v11274_v51 }
 0x323   :  { %7740 = vpow2.f32 %v5170_v52  ;;  %v4957_v29 = vadd.f32 %v11188_v47, %v4886_v6  ;;  %v4884_v45 = vmul.f32 %v11152_v1, %v4813_v27  ;;  %v4645_v54 = vpop.f32.mrf.mxu0  ;;  %v5258_v58 = vpack.c.bf16 %v7729_v60, %v7725_v41 }
 0x324   :  { %v11540_v48 = vpop.eup %7730  ;;  %7742 = vpow2.f32 %v5166_v16  ;;  %v5176_v37 = vmul.f32 1.442695, %v5086_v49  ;;  %v5084_v21 = vmul.f32 %v11157_v0, %v5018_v30  ;;  %6657 = vst.msk [vmem:[%s12198_s6 + $0x139] sm:$0xff] %vm222_vm1, %v5018_v30  ;;  %v4889_v51 = vmul.f32 %v11152_v1, %v4818_v8 }
 0x325   :  { %v7733_v40 = vpop.eup %7732  ;;  %7744 = vpow2.f32 %v5164_v50  ;;  %v5021_v20 = vmax.f32 %v4957_v29, 0.0  ;;  %v4955_v13 = vadd.f32 %v11188_v47, %v4884_v45  ;;  %v4816_v41 = vadd.f32 %v4645_v54, %v11278_v3  ;;  %7635 = vmatprep.mubr.msk.bf16.mxu1 %vm222_vm1, %v5258_v58  ;;  %v7588_v11 = vpop.f32.mrf.mxu0 }
 0x326   :  { %v11552_v57 = vadd.f32 %v4162_v59, %v11071_v10  ;;  %v5172_v28 = vmul.f32 1.442695, %v5084_v21  ;;  %v4960_v2 = vadd.f32 %v11188_v47, %v4889_v51  ;;  %v4819_v39 = vadd.f32 %v7588_v11, %v11288_v34  ;;  %7636 = vmatmul.mubr.msk.bf16.gmra.mxu1 %vm222_vm1, %v5259_v32  ;;  %v4175_v50 = vpop.f32.mrf.mxu1 }
 0x327   :  { %v7735_v5 = vpop.eup %7734  ;;  %7746 = vpow2.f32 %v5176_v37  ;;  %v5087_v35 = vmul.f32 %v11157_v0, %v5021_v20  ;;  %6660 = vst.msk [vmem:[%s12198_s6 + $0x159] sm:$0xff] %vm222_vm1, %v5021_v20  ;;  %v5019_v3 = vmax.f32 %v4955_v13, 0.0  ;;  %v4887_v10 = vmul.f32 %v11152_v1, %v4816_v41  ;;  %v4648_v59 = vpop.f32.mrf.mxu0  ;;  %v12505_v41 = vld [vmem:[#allocation47_spill] sm:$0xff] }
 0x328   :  { %7748 = vpow2.f32 %v5172_v28  ;;  %v5024_v36 = vmax.f32 %v4960_v2, 0.0  ;;  %v4890_v34 = vmul.f32 %v11152_v1, %v4819_v39  ;;  %v4817_v52 = vadd.f32 %v4648_v59, %v11293_v53  ;;  %v7542_v29 = vpop.f32.mrf.mxu1  ;;  %v12506_v2 = vld [vmem:[#allocation6_spill] sm:$0xff] }
 0x329   :  { %v5178_v6 = vmul.f32 1.442695, %v5087_v35  ;;  %v5085_v27 = vmul.f32 %v11157_v0, %v5019_v3  ;;  %6658 = vst.msk [vmem:[%s12198_s6 + $0x141] sm:$0xff] %vm222_vm1, %v5019_v3  ;;  %v4958_v7 = vadd.f32 %v11188_v47, %v4887_v10  ;;  %v7591_v32 = vpop.f32.mrf.mxu0  ;;  %v5261_v60 = vpack.c.bf16 %v7735_v5, %v11540_v48  ;;  %v12507_v3 = vld [vmem:[#allocation3_spill] sm:$0xff] }
 0x32a   :  { %v7737_v16 = vpop.eup %7736  ;;  %v5090_v49 = vmul.f32 %v11157_v0, %v5024_v36  ;;  %6663 = vst.msk [vmem:[%s12198_s6 + $0x181] sm:$0xff] %vm222_vm1, %v5024_v36  ;;  %v4961_v53 = vadd.f32 %v11188_v47, %v4890_v34  ;;  %v4888_v30 = vmul.f32 %v11152_v1, %v4817_v52  ;;  %v4822_v8 = vadd.f32 %v7591_v32, %v11297_v33  ;;  %v4178_v10 = vpop.f32.mrf.mxu1 }
 0x32b   :  { %7750 = vpow2.f32 %v5178_v6  ;;  %v5174_v45 = vmul.f32 1.442695, %v5085_v27  ;;  %v5022_v54 = vmax.f32 %v4958_v7, 0.0  ;;  %v4661_v58 = vpop.f32.mrf.mxu0  ;;  %v5260_v48 = vpack.c.bf16 %v7737_v16, %v7733_v40 }
 0x32c   :  { %v5184_v37 = vmul.f32 1.442695, %v5090_v49  ;;  %v5025_v21 = vmax.f32 %v4961_v53, 0.0  ;;  %v4959_v51 = vadd.f32 %v11188_v47, %v4888_v30  ;;  %v4893_v20 = vmul.f32 %v11152_v1, %v4822_v8 }
 0x32d   :  { %v7739_v13 = vpop.eup %7738  ;;  %v11583_v11 = vadd.f32 %v7541_v43, %v12505_v41  ;;  %7752 = vpow2.f32 %v5174_v45  ;;  %v5088_v28 = vmul.f32 %v11157_v0, %v5022_v54  ;;  %6661 = vst.msk [vmem:[%s12198_s6 + $0x169] sm:$0xff] %vm222_vm1, %v5022_v54  ;;  %v4820_v33 = vadd.f32 %v4661_v58, %v11309_v24  ;;  %7639 = vmatprep.mubr.msk.bf16.mxu1 %vm222_vm1, %v5260_v48  ;;  %v7592_v40 = vpop.f32.mrf.mxu0 }
 0x32e   :  { %v11593_v39 = vadd.f32 %v4175_v50, %v12506_v2  ;;  %v5091_v5 = vmul.f32 %v11157_v0, %v5025_v21  ;;  %6664 = vst.msk [vmem:[%s12198_s6 + $0x189] sm:$0xff] %vm222_vm1, %v5025_v21  ;;  %v5023_v43 = vmax.f32 %v4959_v51, 0.0  ;;  %v4964_v35 = vadd.f32 %v11188_v47, %v4893_v20  ;;  %7640 = vmatmul.mubr.msk.bf16.gmra.mxu1 %vm222_vm1, %v5261_v60  ;;  %v7545_v45 = vpop.f32.mrf.mxu1 }
 0x32f   :  { %v11603_v24 = vadd.f32 %v7542_v29, %v12507_v3  ;;  %7754 = vpow2.f32 %v5184_v37  ;;  %v4891_v50 = vmul.f32 %v11152_v1, %v4820_v33  ;;  %v4823_v59 = vadd.f32 %v7592_v40, %v11332_v62  ;;  %v4664_v36 = vpop.f32.mrf.mxu0  ;;  %v12508_v3 = vld [vmem:[#allocation7_spill] sm:$0xff] }
 0x330   :  { %v7741_v34 = vpop.eup %7740  ;;  %v5186_v52 = vmul.f32 1.442695, %v5091_v5  ;;  %v5089_v6 = vmul.f32 %v11157_v0, %v5023_v43  ;;  %6662 = vst.msk [vmem:[%s12198_s6 + $0x171] sm:$0xff] %vm222_vm1, %v5023_v43  ;;  %v5028_v27 = vmax.f32 %v4964_v35, 0.0  ;;  %v4821_v7 = vadd.f32 %v4664_v36, %v11344_v25 }
 0x331   :  { %v7743_v32 = vpop.eup %7742  ;;  %v5180_v60 = vmul.f32 1.442695, %v5088_v28  ;;  %v4962_v16 = vadd.f32 %v11188_v47, %v4891_v50  ;;  %v4894_v49 = vmul.f32 %v11152_v1, %v4823_v59  ;;  %v7595_v62 = vpop.f32.mrf.mxu0  ;;  %v5263_v53 = vpack.c.bf16 %v7741_v34, %v7739_v13 }
 0x332   :  { %v7745_v30 = vpop.eup %7744  ;;  %7756 = vpow2.f32 %v5186_v52  ;;  %v5182_v8 = vmul.f32 1.442695, %v5089_v6  ;;  %v5094_v29 = vmul.f32 %v11157_v0, %v5028_v27  ;;  %6667 = vst.msk [vmem:[%s12198_s6 + $0x1e1] sm:$0xff] %vm222_vm1, %v5028_v27  ;;  %v4892_v25 = vmul.f32 %v11152_v1, %v4821_v7  ;;  %v4191_v59 = vpop.f32.mrf.mxu1 }
 0x333   :  { %v5026_v54 = vmax.f32 %v4962_v16, 0.0  ;;  %v4965_v58 = vadd.f32 %v11188_v47, %v4894_v49  ;;  %v4826_v48 = vadd.f32 %v7595_v62, %v11347_v31  ;;  %v4677_v37 = vpop.f32.mrf.mxu0  ;;  %v5262_v21 = vpack.c.bf16 %v7743_v32, %v7745_v30 }
 0x334   :  { %v11623_v51 = vpop.eup %7746  ;;  %7758 = vpow2.f32 %v5182_v8  ;;  %v5192_v20 = vmul.f32 1.442695, %v5094_v29  ;;  %v4963_v13 = vadd.f32 %v11188_v47, %v4892_v25  ;;  %v4824_v41 = vadd.f32 %v4677_v37, %v11350_v15  ;;  %v7546_v25 = vpop.f32.mrf.mxu1 }
 0x335   :  { %v7749_v28 = vpop.eup %7748  ;;  %7760 = vpow2.f32 %v5180_v60  ;;  %v5092_v33 = vmul.f32 %v11157_v0, %v5026_v54  ;;  %6665 = vst.msk [vmem:[%s12198_s6 + $0x1c9] sm:$0xff] %vm222_vm1, %v5026_v54  ;;  %v5029_v31 = vmax.f32 %v4965_v58, 0.0  ;;  %v4897_v40 = vmul.f32 %v11152_v1, %v4826_v48  ;;  %7643 = vmatprep.mubr.msk.bf16.mxu1 %vm222_vm1, %v5262_v21  ;;  %v7596_v2 = vpop.f32.mrf.mxu0 }
 0x336   :  { %v11635_v5 = vadd.f32 %v4178_v10, %v11088_v12  ;;  %v5027_v43 = vmax.f32 %v4963_v13, 0.0  ;;  %v4895_v15 = vmul.f32 %v11152_v1, %v4824_v41  ;;  %v4827_v35 = vadd.f32 %v7596_v2, %v11372_v55  ;;  %7644 = vmatmul.mubr.msk.bf16.gmra.mxu1 %vm222_vm1, %v5263_v53 }
 0x337   :  { %v11641_v50 = vadd.f32 %v7545_v45, %v12508_v3  ;;  %7762 = vpow2.f32 %v5192_v20  ;;  %v5095_v36 = vmul.f32 %v11157_v0, %v5029_v31  ;;  %6668 = vst.msk [vmem:[%s12198_s6 + $0x1e9] sm:$0xff] %vm222_vm1, %v5029_v31  ;;  %v4968_v12 = vadd.f32 %v11188_v47, %v4897_v40  ;;  %v4680_v10 = vpop.f32.mrf.mxu0 }
 0x338   :  { %v7751_v34 = vpop.eup %7750  ;;  %v5093_v55 = vmul.f32 %v11157_v0, %v5027_v43  ;;  %6666 = vst.msk [vmem:[%s12198_s6 + $0x1d1] sm:$0xff] %vm222_vm1, %v5027_v43  ;;  %v4966_v52 = vadd.f32 %v11188_v47, %v4895_v15  ;;  %v4898_v6 = vmul.f32 %v11152_v1, %v4827_v35  ;;  %v4825_v27 = vadd.f32 %v4680_v10, %v11385_v42  ;;  %v4194_v15 = vpop.f32.mrf.mxu1 }
 0x339   :  { %v5188_v7 = vmul.f32 1.442695, %v5092_v33  ;;  %v5194_v32 = vmul.f32 1.442695, %v5095_v36  ;;  %v5032_v60 = vmax.f32 %v4968_v12, 0.0  ;;  %v7599_v16 = vpop.f32.mrf.mxu0  ;;  %v5265_v49 = vpack.c.bf16 %v7751_v34, %v11623_v51 }
 0x33a   :  { %v7753_v62 = vpop.eup %7752  ;;  %v5190_v53 = vmul.f32 1.442695, %v5093_v55  ;;  %v5030_v30 = vmax.f32 %v4966_v52, 0.0  ;;  %v4969_v8 = vadd.f32 %v11188_v47, %v4898_v6  ;;  %v4896_v29 = vmul.f32 %v11152_v1, %v4825_v27 }
 0x33b   :  { %7764 = vpow2.f32 %v5194_v32  ;;  %v5098_v45 = vmul.f32 %v11157_v0, %v5032_v60  ;;  %6671 = vst.msk [vmem:[%s12198_s6 + $0x211] sm:$0xff] %vm222_vm1, %v5032_v60  ;;  %v4830_v42 = vadd.f32 %v7599_v16, %v11388_v56  ;;  %v4693_v54 = vpop.f32.mrf.mxu0  ;;  %v5264_v58 = vpack.c.bf16 %v7753_v62, %v7749_v28  ;;  %v12509_v28 = vld [vmem:[#allocation5_spill] sm:$0xff]  ;;  %v11713_v62 = vld [vmem:[%s12199_s2] ss:$0 sm:$0xff] }
 0x33c   :  { %v11666_v48 = vpop.eup %7754  ;;  %7766 = vpow2.f32 %v5190_v53  ;;  %v5096_v37 = vmul.f32 %v11157_v0, %v5030_v30  ;;  %6669 = vst.msk [vmem:[%s12198_s6 + $0x1f9] sm:$0xff] %vm222_vm1, %v5030_v30  ;;  %v5033_v21 = vmax.f32 %v4969_v8, 0.0  ;;  %v4967_v51 = vadd.f32 %v11188_v47, %v4896_v29 }
 0x33d   :  { %7768 = vpow2.f32 %v5188_v7  ;;  %v5200_v20 = vmul.f32 1.442695, %v5098_v45  ;;  %v4901_v13 = vmul.f32 %v11152_v1, %v4830_v42  ;;  %v4828_v56 = vadd.f32 %v4693_v54, %v11433_v44  ;;  %7647 = vmatprep.mubr.msk.bf16.mxu1 %vm222_vm1, %v5264_v58  ;;  %v7600_v41 = vpop.f32.mrf.mxu0  ;;  %v11728_v54 = vld [vmem:[%s12201_s3] ss:$0 sm:$0xff] }
 0x33e   :  { %v11678_v33 = vadd.f32 %v4191_v59, %v12509_v28  ;;  %v5099_v31 = vmul.f32 %v11157_v0, %v5033_v21  ;;  %6672 = vst.msk [vmem:[%s12198_s6 + $0x219] sm:$0xff] %vm222_vm1, %v5033_v21  ;;  %v5031_v40 = vmax.f32 %v4967_v51, 0.0  ;;  %v4831_v2 = vadd.f32 %v7600_v41, %v11460_v61  ;;  %7648 = vmatmul.mubr.msk.bf16.gmra.mxu1 %vm222_vm1, %v5265_v49  ;;  %v11703_v49 = vpop.f32.mrf.mxu1 }
 0x33f   :  { %v7757_v43 = vpop.eup %7756  ;;  %v11688_v44 = vadd.f32 %v7546_v25, %v11101_v22  ;;  %v5196_v35 = vmul.f32 1.442695, %v5096_v37  ;;  %v4972_v3 = vadd.f32 %v11188_v47, %v4901_v13  ;;  %v4899_v59 = vmul.f32 %v11152_v1, %v4828_v56  ;;  %v4696_v36 = vpop.f32.mrf.mxu0 }
 0x340   :  { %7770 = vpow2.f32 %v5200_v20  ;;  %v5202_v12 = vmul.f32 1.442695, %v5099_v31  ;;  %v5097_v10 = vmul.f32 %v11157_v0, %v5031_v40  ;;  %6670 = vst.msk [vmem:[%s12198_s6 + $0x201] sm:$0xff] %vm222_vm1, %v5031_v40  ;;  %v4902_v61 = vmul.f32 %v11152_v1, %v4831_v2  ;;  %v4207_v13 = vpop.f32.mrf.mxu1 }
 0x341   :  { %v7759_v22 = vpop.eup %7758  ;;  %v5036_v34 = vmax.f32 %v4972_v3, 0.0  ;;  %v4970_v55 = vadd.f32 %v11188_v47, %v4899_v59  ;;  %v4829_v52 = vadd.f32 %v4696_v36, %v11466_v46  ;;  %v7603_v6 = vpop.f32.mrf.mxu0  ;;  %v5267_v27 = vpack.c.bf16 %v7757_v43, %v11666_v48 }
 0x342   :  { %v7761_v7 = vpop.eup %7760  ;;  %7772 = vpow2.f32 %v5202_v12  ;;  %v5198_v32 = vmul.f32 1.442695, %v5097_v10  ;;  %v4973_v60 = vadd.f32 %v11188_v47, %v4902_v61  ;;  %v4834_v16 = vadd.f32 %v7603_v6, %v11505_v63 }
 0x343   :  { %v5102_v1 = vmul.f32 %v11157_v0, %v5036_v34  ;;  %6675 = vst.msk [vmem:[%s12198_s6 + $0x241] sm:$0xff] %vm222_vm1, %v5036_v34  ;;  %v5034_v46 = vmax.f32 %v4970_v55, 0.0  ;;  %v4900_v53 = vmul.f32 %v11713_v62, %v4829_v52  ;;  %v4709_v47 = vpop.f32.mrf.mxu0  ;;  %v5266_v30 = vpack.c.bf16 %v7759_v22, %v7761_v7  ;;  %v7550_v22 = vpop.f32.mrf.mxu1 }
 0x344   :  { %v11716_v63 = vpop.eup %7762  ;;  %7774 = vpow2.f32 %v5198_v32  ;;  %v5037_v8 = vmax.f32 %v4973_v60, 0.0  ;;  %v4905_v29 = vmul.f32 %v11713_v62, %v4834_v16  ;;  %v4832_v25 = vadd.f32 %v4709_v47, %v11509_v38 }
 0x345   :  { %7776 = vpow2.f32 %v5196_v35  ;;  %v5208_v45 = vmul.f32 1.442695, %v5102_v1  ;;  %v5100_v42 = vmul.f32 %v11157_v0, %v5034_v46  ;;  %6673 = vst.msk [vmem:[%s12198_s6 + $0x229] sm:$0xff] %vm222_vm1, %v5034_v46  ;;  %v4971_v58 = vadd.f32 %v11728_v54, %v4900_v53  ;;  %7651 = vmatprep.mubr.msk.bf16.mxu1 %vm222_vm1, %v5266_v30  ;;  %v7604_v48 = vpop.f32.mrf.mxu0  ;;  %v12510_v1 = vld [vmem:[#allocation8_spill] sm:$0xff] }
 0x346   :  { %v5103_v38 = vmul.f32 %v11157_v0, %v5037_v8  ;;  %6676 = vst.msk [vmem:[%s12198_s6 + $0x249] sm:$0xff] %vm222_vm1, %v5037_v8  ;;  %v4976_v37 = vadd.f32 %v11728_v54, %v4905_v29  ;;  %v4903_v21 = vmul.f32 %v11713_v62, %v4832_v25  ;;  %v4835_v51 = vadd.f32 %v7604_v48, %v11515_v14  ;;  %v12511_v30 = vld [vmem:[#allocation4_spill] sm:$0xff]  ;;  %v4210_v25 = vpop.f32.mrf.mxu1 }
 0x347   :  { %7652 = vmatmul.mubr.msk.bf16.gmra.mxu1 %vm222_vm1, %v5267_v27  ;;  %v11742_v20 = vadd.f32 %v4194_v15, %v11105_v26  ;;  %7778 = vpow2.f32 %v5208_v45  ;;  %v5204_v56 = vmul.f32 1.442695, %v5100_v42  ;;  %v5035_v41 = vmax.f32 %v4971_v58, 0.0  ;;  %v4712_v28 = vpop.f32.mrf.mxu0 }
 0x348   :  { %v7765_v31 = vpop.eup %7764  ;;  %v5210_v40 = vmul.f32 1.442695, %v5103_v38  ;;  %v5040_v2 = vmax.f32 %v4976_v37, 0.0  ;;  %v4974_v43 = vadd.f32 %v11728_v54, %v4903_v21  ;;  %v4906_v35 = vmul.f32 %v11713_v62, %v4835_v51 }
 0x349   :  { %v7767_v3 = vpop.eup %7766  ;;  %7780 = vpow2.f32 %v5204_v56  ;;  %v5101_v14 = vmul.f32 %v11157_v0, %v5035_v41  ;;  %6674 = vst.msk [vmem:[%s12198_s6 + $0x231] sm:$0xff] %vm222_vm1, %v5035_v41  ;;  %v4833_v26 = vadd.f32 %v4712_v28, %v11552_v57  ;;  %v7607_v15 = vpop.f32.mrf.mxu0  ;;  %v5269_v59 = vpack.c.bf16 %v7765_v31, %v11716_v63 }
 0x34a   :  { %v7769_v36 = vpop.eup %7768  ;;  %7782 = vpow2.f32 %v5210_v40  ;;  %v5106_v12 = vmul.f32 %v11157_v0, %v5040_v2  ;;  %6679 = vst.msk [vmem:[%s12198_s6 + $0x271] sm:$0xff] %vm222_vm1, %v5040_v2  ;;  %v5038_v10 = vmax.f32 %v4974_v43, 0.0  ;;  %v4977_v61 = vadd.f32 %v11728_v54, %v4906_v35  ;;  %v7553_v43 = vpop.f32.mrf.mxu1 }
 0x34b   :  { %v5206_v34 = vmul.f32 1.442695, %v5101_v14  ;;  %v4904_v55 = vmul.f32 %v11713_v62, %v4833_v26  ;;  %v4838_v57 = vadd.f32 %v7607_v15, %v11583_v11  ;;  %v4725_v52 = vpop.f32.mrf.mxu0  ;;  %v5268_v6 = vpack.c.bf16 %v7767_v3, %v7769_v36 }
 0x34c   :  { %v5216_v27 = vmul.f32 1.442695, %v5106_v12  ;;  %v5104_v7 = vmul.f32 %v11157_v0, %v5038_v10  ;;  %6677 = vst.msk [vmem:[%s12198_s6 + $0x259] sm:$0xff] %vm222_vm1, %v5038_v10  ;;  %v5041_v32 = vmax.f32 %v4977_v61, 0.0  ;;  %v4836_v60 = vadd.f32 %v4725_v52, %v11593_v39 }
 0x34d   :  { %v7771_v16 = vpop.eup %7770  ;;  %v11769_v46 = vadd.f32 %v11703_v49, %v12510_v1  ;;  %7784 = vpow2.f32 %v5206_v34  ;;  %v4975_v11 = vadd.f32 %v11728_v54, %v4904_v55  ;;  %v4909_v53 = vmul.f32 %v11713_v62, %v4838_v57  ;;  %7655 = vmatprep.mubr.msk.bf16.mxu1 %vm222_vm1, %v5268_v6  ;;  %v7608_v47 = vpop.f32.mrf.mxu0 }
 0x34e   :  { %v11775_v63 = vadd.f32 %v4207_v13, %v12511_v30  ;;  %v5212_v8 = vmul.f32 1.442695, %v5104_v7  ;;  %v5107_v29 = vmul.f32 %v11157_v0, %v5041_v32  ;;  %6680 = vst.msk [vmem:[%s12198_s6 + $0x279] sm:$0xff] %vm222_vm1, %v5041_v32  ;;  %v4907_v39 = vmul.f32 %v11713_v62, %v4836_v60 }
 0x34f   :  { %7656 = vmatmul.mubr.msk.bf16.gmra.mxu1 %vm222_vm1, %v5269_v59  ;;  %v7773_v49 = vpop.eup %7772  ;;  %7786 = vpow2.f32 %v5216_v27  ;;  %v5039_v45 = vmax.f32 %v4975_v11, 0.0  ;;  %v4980_v42 = vadd.f32 %v11728_v54, %v4909_v53  ;;  %v4839_v58 = vadd.f32 %v7608_v47, %v11603_v24  ;;  %v4728_v48 = vpop.f32.mrf.mxu0 }
 0x350   :  { %7788 = vpow2.f32 %v5212_v8  ;;  %v5218_v38 = vmul.f32 1.442695, %v5107_v29  ;;  %v4978_v37 = vadd.f32 %v11728_v54, %v4907_v39  ;;  %v4837_v21 = vadd.f32 %v4728_v48, %v11635_v5 }
 0x351   :  { %v7775_v51 = vpop.eup %7774  ;;  %v5105_v13 = vmul.f32 %v11157_v0, %v5039_v45  ;;  %6678 = vst.msk [vmem:[%s12198_s6 + $0x261] sm:$0xff] %vm222_vm1, %v5039_v45  ;;  %v5044_v56 = vmax.f32 %v4980_v42, 0.0  ;;  %v4910_v41 = vmul.f32 %v11713_v62, %v4839_v58  ;;  %v7611_v28 = vpop.f32.mrf.mxu0  ;;  %v5271_v24 = vpack.c.bf16 %v7773_v49, %v7771_v16 }
 0x352   :  { %v7777_v31 = vpop.eup %7776  ;;  %7790 = vpow2.f32 %v5218_v38  ;;  %v5042_v40 = vmax.f32 %v4978_v37, 0.0  ;;  %v4908_v2 = vmul.f32 %v11713_v62, %v4837_v21  ;;  %v4842_v5 = vadd.f32 %v7611_v28, %v11641_v50 }
 0x353   :  { %v5214_v35 = vmul.f32 1.442695, %v5105_v13  ;;  %v5110_v3 = vmul.f32 %v11157_v0, %v5044_v56  ;;  %6683 = vst.msk [vmem:[%s12198_s6 + $0x2a1] sm:$0xff] %vm222_vm1, %v5044_v56  ;;  %v4981_v14 = vadd.f32 %v11728_v54, %v4910_v41  ;;  %v4741_v26 = vpop.f32.mrf.mxu0  ;;  %v5270_v15 = vpack.c.bf16 %v7775_v51, %v7777_v31 }
 0x354   :  { %v11802_v59 = vpop.eup %7778  ;;  %v5108_v36 = vmul.f32 %v11157_v0, %v5042_v40  ;;  %6681 = vst.msk [vmem:[%s12198_s6 + $0x289] sm:$0xff] %vm222_vm1, %v5042_v40  ;;  %v4979_v50 = vadd.f32 %v11728_v54, %v4908_v2  ;;  %v4913_v12 = vmul.f32 %v11713_v62, %v4842_v5  ;;  %v4840_v10 = vadd.f32 %v4741_v26, %v11678_v33 }
 0x355   :  { %v4297_v61 = vadd.f32 %v7550_v22, %v11118_v17  ;;  %7792 = vpow2.f32 %v5214_v35  ;;  %v5224_v34 = vmul.f32 1.442695, %v5110_v3  ;;  %v5045_v55 = vmax.f32 %v4981_v14, 0.0  ;;  %7659 = vmatprep.mubr.msk.bf16.mxu1 %vm222_vm1, %v5270_v15  ;;  %v7612_v57 = vpop.f32.mrf.mxu0  ;;  %v4223_v22 = vpop.f32.mrf.mxu1 }
 0x356   :  { %v7781_v52 = vpop.eup %7780  ;;  %v11815_v6 = vadd.f32 %v4210_v25, %v11122_v19  ;;  %v5043_v27 = vmax.f32 %v4979_v50, 0.0  ;;  %v4984_v7 = vadd.f32 %v11728_v54, %v4913_v12  ;;  %v4911_v32 = vmul.f32 %v11713_v62, %v4840_v10 }
 0x357   :  { %7660 = vmatmul.mubr.msk.bf16.gmra.mxu1 %vm222_vm1, %v5271_v24  ;;  %v7783_v33 = vpop.eup %7782  ;;  %v11821_v17 = vadd.f32 %v7553_v43, %v11125_v18  ;;  %v5220_v60 = vmul.f32 1.442695, %v5108_v36  ;;  %v5111_v16 = vmul.f32 %v11157_v0, %v5045_v55  ;;  %6684 = vst.msk [vmem:[%s12198_s6 + $0x2a9] sm:$0xff] %vm222_vm1, %v5045_v55  ;;  %v4843_v19 = vadd.f32 %v7612_v57, %v11688_v44  ;;  %v4744_v1 = vpop.f32.mrf.mxu0 }
 0x358   :  { %7794 = vpow2.f32 %v5224_v34  ;;  %v5109_v11 = vmul.f32 %v11157_v0, %v5043_v27  ;;  %6682 = vst.msk [vmem:[%s12198_s6 + $0x291] sm:$0xff] %vm222_vm1, %v5043_v27  ;;  %v5048_v18 = vmax.f32 %v4984_v7, 0.0  ;;  %v4982_v53 = vadd.f32 %v11728_v54, %v4911_v32  ;;  %v7554_v58 = vpop.f32.mrf.mxu1 }
 0x359   :  { %v5226_v47 = vmul.f32 1.442695, %v5111_v16  ;;  %v4914_v30 = vmul.f32 %v11713_v62, %v4843_v19  ;;  %v4841_v8 = vadd.f32 %v4744_v1, %v11742_v20  ;;  %v7615_v29 = vpop.f32.mrf.mxu0  ;;  %v5273_v44 = vpack.c.bf16 %v7783_v33, %v11802_v59 }
 0x35a   :  { %v7785_v39 = vpop.eup %7784  ;;  %v5222_v49 = vmul.f32 1.442695, %v5109_v11  ;;  %v5114_v25 = vmul.f32 %v11157_v0, %v5048_v18  ;;  %6687 = vst.msk [vmem:[%s12198_s6 + $0x2d1] sm:$0xff] %vm222_vm1, %v5048_v18  ;;  %v5046_v45 = vmax.f32 %v4982_v53, 0.0  ;;  %v4846_v42 = vadd.f32 %v7615_v29, %v11769_v46  ;;  %v4226_v27 = vpop.f32.mrf.mxu1 }
 0x35b   :  { %7796 = vpow2.f32 %v5226_v47  ;;  %v4985_v48 = vadd.f32 %v11728_v54, %v4914_v30  ;;  %v4912_v20 = vmul.f32 %v11713_v62, %v4841_v8  ;;  %v4757_v38 = vpop.f32.mrf.mxu0  ;;  %v5272_v37 = vpack.c.bf16 %v7785_v39, %v7781_v52 }
 0x35c   :  { %v11846_v21 = vpop.eup %7786  ;;  %7798 = vpow2.f32 %v5222_v49  ;;  %v5232_v51 = vmul.f32 1.442695, %v5114_v25  ;;  %v5112_v13 = vmul.f32 %v11157_v0, %v5046_v45  ;;  %6685 = vst.msk [vmem:[%s12198_s6 + $0x2b9] sm:$0xff] %vm222_vm1, %v5046_v45  ;;  %v4917_v46 = vmul.f32 %v11713_v62, %v4846_v42 }
 0x35d   :  { %v7789_v56 = vpop.eup %7788  ;;  %7800 = vpow2.f32 %v5220_v60  ;;  %v5049_v41 = vmax.f32 %v4985_v48, 0.0  ;;  %v4983_v28 = vadd.f32 %v11728_v54, %v4912_v20  ;;  %v4844_v24 = vadd.f32 %v4757_v38, %v11775_v63  ;;  %7663 = vmatprep.mubr.msk.bf16.mxu1 %vm222_vm1, %v5272_v37  ;;  %v7616_v31 = vpop.f32.mrf.mxu0 }
 0x35e   :  { %v4298_v40 = vadd.f32 %v4223_v22, %v11130_v9  ;;  %v4301_v2 = vadd.f32 %v7554_v58, %v11135_v4  ;;  %v4988_v5 = vadd.f32 %v11728_v54, %v4917_v46  ;;  %v4847_v43 = vadd.f32 %v7616_v31, %v4297_v61 }
 0x35f   :  { %7664 = vmatmul.mubr.msk.bf16.gmra.mxu1 %vm222_vm1, %v5273_v44  ;;  %v7791_v35 = vpop.eup %7790  ;;  %7802 = vpow2.f32 %v5232_v51  ;;  %v5115_v3 = vmul.f32 %v11157_v0, %v5049_v41  ;;  %6688 = vst.msk [vmem:[%s12198_s6 + $0x2d9] sm:$0xff] %vm222_vm1, %v5049_v41  ;;  %v5047_v63 = vmax.f32 %v4983_v28, 0.0  ;;  %v4915_v14 = vmul.f32 %v11713_v62, %v4844_v24  ;;  %v4760_v9 = vpop.f32.mrf.mxu0 }
 0x360   :  { %v5228_v26 = vmul.f32 1.442695, %v5112_v13  ;;  %v5052_v4 = vmax.f32 %v4988_v5, 0.0  ;;  %v4918_v15 = vmul.f32 %v11713_v62, %v4847_v43  ;;  %v4845_v59 = vadd.f32 %v4760_v9, %v11815_v6 }
 0x361   :  { %v5234_v36 = vmul.f32 1.442695, %v5115_v3  ;;  %v5113_v50 = vmul.f32 %v11157_v0, %v5047_v63  ;;  %6686 = vst.msk [vmem:[%s12198_s6 + $0x2c1] sm:$0xff] %vm222_vm1, %v5047_v63  ;;  %v4986_v12 = vadd.f32 %v11728_v54, %v4915_v14  ;;  %v7619_v10 = vpop.f32.mrf.mxu0  ;;  %v5275_v61 = vpack.c.bf16 %v7791_v35, %v11846_v21 }
 0x362   :  { %v7793_v34 = vpop.eup %7792  ;;  %v5118_v55 = vmul.f32 %v11157_v0, %v5052_v4  ;;  %6691 = vst.msk [vmem:[%s12198_s6 + $0x301] sm:$0xff] %vm222_vm1, %v5052_v4  ;;  %v4989_v57 = vadd.f32 %v11728_v54, %v4918_v15  ;;  %v4916_v52 = vmul.f32 %v11713_v62, %v4845_v59  ;;  %v4850_v6 = vadd.f32 %v7619_v10, %v11821_v17 }
 0x363   :  { %7804 = vpow2.f32 %v5234_v36  ;;  %v5230_v7 = vmul.f32 1.442695, %v5113_v50  ;;  %v5050_v32 = vmax.f32 %v4986_v12, 0.0  ;;  %v4773_v33 = vpop.f32.mrf.mxu0  ;;  %v5274_v22 = vpack.c.bf16 %v7793_v34, %v7789_v56 }
 0x364   :  { %7806 = vpow2.f32 %v5228_v26  ;;  %v5053_v60 = vmax.f32 %v4989_v57, 0.0  ;;  %v4987_v16 = vadd.f32 %v11728_v54, %v4916_v52  ;;  %v4921_v19 = vmul.f32 %v11713_v62, %v4850_v6 }
 0x365   :  { %v7795_v1 = vpop.eup %7794  ;;  %7808 = vpow2.f32 %v5230_v7  ;;  %v5240_v11 = vmul.f32 1.442695, %v5118_v55  ;;  %v5116_v18 = vmul.f32 %v11157_v0, %v5050_v32  ;;  %6689 = vst.msk [vmem:[%s12198_s6 + $0x2e9] sm:$0xff] %vm222_vm1, %v5050_v32  ;;  %v4848_v17 = vadd.f32 %v4773_v33, %v4298_v40  ;;  %7667 = vmatprep.mubr.msk.bf16.mxu1 %vm222_vm1, %v5274_v22  ;;  %v7620_v53 = vpop.f32.mrf.mxu0 }
 0x366   :  { %v4299_v47 = vadd.f32 %v4226_v27, %v11141_v23  ;;  %v5119_v30 = vmul.f32 %v11157_v0, %v5053_v60  ;;  %6692 = vst.msk [vmem:[%s12198_s6 + $0x309] sm:$0xff] %vm222_vm1, %v5053_v60  ;;  %v5051_v8 = vmax.f32 %v4987_v16, 0.0  ;;  %v4992_v29 = vadd.f32 %v11728_v54, %v4921_v19 }
 0x367   :  { %7668 = vmatmul.mubr.msk.bf16.gmra.mxu1 %vm222_vm1, %v5275_v61  ;;  %v5236_v44 = vmul.f32 1.442695, %v5116_v18  ;;  %v4919_v39 = vmul.f32 %v11713_v62, %v4848_v17  ;;  %v4851_v49 = vadd.f32 %v7620_v53, %v4301_v2  ;;  %v4776_v25 = vpop.f32.mrf.mxu0  ;;  %7810 = vpow2.f32 %v5240_v11 }
 0x368   :  { %v7797_v45 = vpop.eup %7796  ;;  %v5242_v42 = vmul.f32 1.442695, %v5119_v30  ;;  %v5117_v23 = vmul.f32 %v11157_v0, %v5051_v8  ;;  %6690 = vst.msk [vmem:[%s12198_s6 + $0x2f1] sm:$0xff] %vm222_vm1, %v5051_v8  ;;  %v5056_v58 = vmax.f32 %v4992_v29, 0.0  ;;  %v4849_v48 = vadd.f32 %v4776_v25, %v4299_v47 }
 0x369   :  { %v7799_v20 = vpop.eup %7798  ;;  %v4990_v38 = vadd.f32 %v11728_v54, %v4919_v39  ;;  %v4922_v37 = vmul.f32 %v11713_v62, %v4851_v49  ;;  %v5277_v21 = vpack.c.bf16 %v7797_v45, %v7795_v1 }
 0x36a   :  { %v7801_v51 = vpop.eup %7800  ;;  %7812 = vpow2.f32 %v5242_v42  ;;  %v5238_v13 = vmul.f32 1.442695, %v5117_v23  ;;  %v5122_v46 = vmul.f32 %v11157_v0, %v5056_v58  ;;  %6695 = vst.msk [vmem:[%s12198_s6 + $0x331] sm:$0xff] %vm222_vm1, %v5056_v58  ;;  %v4920_v56 = vmul.f32 %v11713_v62, %v4849_v48 }
 0x36b   :  { %7814 = vpow2.f32 %v5236_v44  ;;  %v5054_v41 = vmax.f32 %v4990_v38, 0.0  ;;  %v4993_v28 = vadd.f32 %v11728_v54, %v4922_v37  ;;  %v5276_v24 = vpack.c.bf16 %v7799_v20, %v7801_v51 }
 0x36c   :  { %v7803_v31 = vpop.eup %7802  ;;  %7816 = vpow2.f32 %v5238_v13  ;;  %v4991_v40 = vadd.f32 %v11728_v54, %v4920_v56  ;;  %v5248_v2 = vmul.f32 1.442695, %v5122_v46 }
 0x36d   :  { %v5120_v5 = vmul.f32 %v11157_v0, %v5054_v41  ;;  %6693 = vst.msk [vmem:[%s12198_s6 + $0x319] sm:$0xff] %vm222_vm1, %v5054_v41  ;;  %v5057_v43 = vmax.f32 %v4993_v28, 0.0  ;;  %7671 = vmatprep.mubr.msk.bf16.mxu1 %vm222_vm1, %v5276_v24 }
 0x36e   :  { %v5055_v62 = vmax.f32 %v4991_v40, 0.0  ;;  %7818 = vpow2.f32 %v5248_v2 }
 0x36f   :  { %7672 = vmatmul.mubr.msk.bf16.gmra.mxu1 %vm222_vm1, %v5277_v21  ;;  %v5244_v35 = vmul.f32 1.442695, %v5120_v5  ;;  %v5123_v3 = vmul.f32 %v11157_v0, %v5057_v43  ;;  %6696 = vst.msk [vmem:[%s12198_s6 + $0x339] sm:$0xff] %vm222_vm1, %v5057_v43 }
 0x370   :  { %v7805_v54 = vpop.eup %7804  ;;  %v5121_v63 = vmul.f32 %v11157_v0, %v5055_v62  ;;  %6694 = vst.msk [vmem:[%s12198_s6 + $0x321] sm:$0xff] %vm222_vm1, %v5055_v62 }
 0x371   :  { %v7807_v14 = vpop.eup %7806  ;;  %v5250_v9 = vmul.f32 1.442695, %v5123_v3  ;;  %v5279_v26 = vpack.c.bf16 %v7805_v54, %v7803_v31  ;;  %7820 = vpow2.f32 %v5244_v35 }
 0x372   :  { %v7809_v4 = vpop.eup %7808  ;;  %v5246_v15 = vmul.f32 1.442695, %v5121_v63 }
 0x373   :  { %7822 = vpow2.f32 %v5250_v9  ;;  %v5278_v59 = vpack.c.bf16 %v7809_v4, %v7807_v14 }
 0x374   :  { %7824 = vpow2.f32 %v5246_v15  ;;  %v7811_v36 = vpop.eup %7810 }
 0x375   :  { %7675 = vmatprep.mubr.msk.bf16.mxu1 %vm222_vm1, %v5278_v59 }
 0x377   :  { %7676 = vmatmul.mubr.msk.bf16.gmra.mxu1 %vm222_vm1, %v5279_v26  ;;  %v7813_v0 = vpop.eup %7812 }
 0x378   :  { %v7815_v50 = vpop.eup %7814  ;;  %v5281_v12 = vpack.c.bf16 %v7813_v0, %v7811_v36 }
 0x379   :  { %v7817_v10 = vpop.eup %7816 }
 0x37a   :  { %v5280_v61 = vpack.c.bf16 %v7817_v10, %v7815_v50 }
 0x37b   :  { %v7819_v34 = vpop.eup %7818 }
 0x37c   :  { %7679 = vmatprep.mubr.msk.bf16.mxu1 %vm222_vm1, %v5280_v61 }
 0x37e   :  { %v7821_v55 = vpop.eup %7820 }
 0x37f   :  { %7680 = vmatmul.mubr.msk.bf16.gmra.mxu1 %vm222_vm1, %v5281_v12 }
 0x380   :  { %v7823_v57 = vpop.eup %7822 }
 0x381   :  { %v7825_v52 = vpop.eup %7824  ;;  %v5283_v6 = vpack.c.bf16 %v7823_v57, %v7819_v34 }
 0x382   :  { %v5282_v27 = vpack.c.bf16 %v7825_v52, %v7821_v55 }
 0x384   :  { %7683 = vmatprep.mubr.msk.bf16.mxu1 %vm222_vm1, %v5282_v27 }
 0x387   :  { %7684 = vmatmul.mubr.msk.bf16.gmra.mxu1 %vm222_vm1, %v5283_v6 }
 0x3cd   :  { %v7625_v7 = vpop.f32.mrf.mxu1 }
 0x3ce   :  { %5675 = vst.msk [vmem:[%s12202_s7 + $0x10] sm:$0xff] %vm222_vm1, %v7625_v7 }
 0x3cf   :  { %v5418_v32 = vpop.f32.mrf.mxu1 }
 0x3d0   :  { %5673 = vst.msk [vmem:[%s12202_s7] sm:$0xff] %vm222_vm1, %v5418_v32 }
 0x3d1   :  { %v7626_v33 = vpop.f32.mrf.mxu1 }
 0x3d2   :  { %5676 = vst.msk [vmem:[%s12202_s7 + $0x18] sm:$0xff] %vm222_vm1, %v7626_v33 }
 0x3d3   :  { %v5421_v22 = vpop.f32.mrf.mxu1 }
 0x3d4   :  { %5674 = vst.msk [vmem:[%s12202_s7 + $0x8] sm:$0xff] %vm222_vm1, %v5421_v22 }
 0x3d6   :  { %v7629_v60 = vpop.f32.mrf.mxu1 }
 0x3d7   :  { %5679 = vst.msk [vmem:[%s12202_s7 + $0x30] sm:$0xff] %vm222_vm1, %v7629_v60 }
 0x3d8   :  { %v5434_v16 = vpop.f32.mrf.mxu1 }
 0x3d9   :  { %5677 = vst.msk [vmem:[%s12202_s7 + $0x20] sm:$0xff] %vm222_vm1, %v5434_v16 }
 0x3da   :  { %v7630_v19 = vpop.f32.mrf.mxu1 }
 0x3db   :  { %5680 = vst.msk [vmem:[%s12202_s7 + $0x38] sm:$0xff] %vm222_vm1, %v7630_v19 }
 0x3dc   :  { %v5437_v1 = vpop.f32.mrf.mxu1 }
 0x3dd   :  { %5678 = vst.msk [vmem:[%s12202_s7 + $0x28] sm:$0xff] %vm222_vm1, %v5437_v1 }
 0x3de   :  { %v7633_v11 = vpop.f32.mrf.mxu1 }
 0x3df   :  { %5683 = vst.msk [vmem:[%s12202_s7 + $0x50] sm:$0xff] %vm222_vm1, %v7633_v11 }
 0x3e0   :  { %v5450_v18 = vpop.f32.mrf.mxu1 }
 0x3e1   :  { %5681 = vst.msk [vmem:[%s12202_s7 + $0x40] sm:$0xff] %vm222_vm1, %v5450_v18 }
 0x3e2   :  { %v7634_v17 = vpop.f32.mrf.mxu1 }
 0x3e3   :  { %5684 = vst.msk [vmem:[%s12202_s7 + $0x58] sm:$0xff] %vm222_vm1, %v7634_v17 }
 0x3e4   :  { %v5453_v53 = vpop.f32.mrf.mxu1 }
 0x3e5   :  { %5682 = vst.msk [vmem:[%s12202_s7 + $0x48] sm:$0xff] %vm222_vm1, %v5453_v53 }
 0x3e6   :  { %v7637_v47 = vpop.f32.mrf.mxu1 }
 0x3e7   :  { %5687 = vst.msk [vmem:[%s12202_s7 + $0x70] sm:$0xff] %vm222_vm1, %v7637_v47 }
 0x3e8   :  { %v5466_v30 = vpop.f32.mrf.mxu1 }
 0x3e9   :  { %5685 = vst.msk [vmem:[%s12202_s7 + $0x60] sm:$0xff] %vm222_vm1, %v5466_v30 }
 0x3ea   :  { %v7638_v8 = vpop.f32.mrf.mxu1 }
 0x3eb   :  { %5688 = vst.msk [vmem:[%s12202_s7 + $0x78] sm:$0xff] %vm222_vm1, %v7638_v8 }
 0x3ec   :  { %v5469_v29 = vpop.f32.mrf.mxu1 }
 0x3ed   :  { %5686 = vst.msk [vmem:[%s12202_s7 + $0x68] sm:$0xff] %vm222_vm1, %v5469_v29 }
 0x3ee   :  { %v7641_v44 = vpop.f32.mrf.mxu1 }
 0x3ef   :  { %5691 = vst.msk [vmem:[%s12202_s7 + $0x90] sm:$0xff] %vm222_vm1, %v7641_v44 }
 0x3f0   :  { %v5482_v39 = vpop.f32.mrf.mxu1 }
 0x3f1   :  { %5689 = vst.msk [vmem:[%s12202_s7 + $0x80] sm:$0xff] %vm222_vm1, %v5482_v39 }
 0x3f2   :  { %v7642_v49 = vpop.f32.mrf.mxu1 }
 0x3f3   :  { %5692 = vst.msk [vmem:[%s12202_s7 + $0x98] sm:$0xff] %vm222_vm1, %v7642_v49 }
 0x3f4   :  { %v5485_v25 = vpop.f32.mrf.mxu1 }
 0x3f5   :  { %5690 = vst.msk [vmem:[%s12202_s7 + $0x88] sm:$0xff] %vm222_vm1, %v5485_v25 }
 0x3f6   :  { %v7645_v45 = vpop.f32.mrf.mxu1 }
 0x3f7   :  { %5695 = vst.msk [vmem:[%s12202_s7 + $0xb0] sm:$0xff] %vm222_vm1, %v7645_v45 }
 0x3f8   :  { %v5498_v42 = vpop.f32.mrf.mxu1 }
 0x3f9   :  { %5693 = vst.msk [vmem:[%s12202_s7 + $0xa0] sm:$0xff] %vm222_vm1, %v5498_v42 }
 0x3fa   :  { %v7646_v23 = vpop.f32.mrf.mxu1 }
 0x3fb   :  { %5696 = vst.msk [vmem:[%s12202_s7 + $0xb8] sm:$0xff] %vm222_vm1, %v7646_v23 }
 0x3fc   :  { %v5501_v58 = vpop.f32.mrf.mxu1 }
 0x3fd   :  { %5694 = vst.msk [vmem:[%s12202_s7 + $0xa8] sm:$0xff] %vm222_vm1, %v5501_v58 }
 0x3fe   :  { %v7649_v48 = vpop.f32.mrf.mxu1 }
 0x3ff   :  { %5699 = vst.msk [vmem:[%s12202_s7 + $0xd0] sm:$0xff] %vm222_vm1, %v7649_v48 }
 0x400   :  { %v5514_v20 = vpop.f32.mrf.mxu1 }
 0x401   :  { %5697 = vst.msk [vmem:[%s12202_s7 + $0xc0] sm:$0xff] %vm222_vm1, %v5514_v20 }
 0x402   :  { %v7650_v38 = vpop.f32.mrf.mxu1 }
 0x403   :  { %5700 = vst.msk [vmem:[%s12202_s7 + $0xd8] sm:$0xff] %vm222_vm1, %v7650_v38 }
 0x404   :  { %v5517_v37 = vpop.f32.mrf.mxu1 }
 0x405   :  { %5698 = vst.msk [vmem:[%s12202_s7 + $0xc8] sm:$0xff] %vm222_vm1, %v5517_v37 }
 0x407   :  { %v7653_v21 = vpop.f32.mrf.mxu1 }
 0x408   :  { %5703 = vst.msk [vmem:[%s12202_s7 + $0xf0] sm:$0xff] %vm222_vm1, %v7653_v21 }
 0x409   :  { %v5530_v51 = vpop.f32.mrf.mxu1 }
 0x40a   :  { %5701 = vst.msk [vmem:[%s12202_s7 + $0xe0] sm:$0xff] %vm222_vm1, %v5530_v51 }
 0x40b   :  { %v7654_v13 = vpop.f32.mrf.mxu1 }
 0x40c   :  { %5704 = vst.msk [vmem:[%s12202_s7 + $0xf8] sm:$0xff] %vm222_vm1, %v7654_v13 }
 0x40d   :  { %v5533_v46 = vpop.f32.mrf.mxu1 }
 0x40e   :  { %5702 = vst.msk [vmem:[%s12202_s7 + $0xe8] sm:$0xff] %vm222_vm1, %v5533_v46 }
 0x40f   :  { %v7657_v56 = vpop.f32.mrf.mxu1 }
 0x410   :  { %5707 = vst.msk [vmem:[%s12202_s7 + $0x110] sm:$0xff] %vm222_vm1, %v7657_v56 }
 0x411   :  { %v5546_v41 = vpop.f32.mrf.mxu1 }
 0x412   :  { %5705 = vst.msk [vmem:[%s12202_s7 + $0x100] sm:$0xff] %vm222_vm1, %v5546_v41 }
 0x413   :  { %v7658_v28 = vpop.f32.mrf.mxu1 }
 0x414   :  { %5708 = vst.msk [vmem:[%s12202_s7 + $0x118] sm:$0xff] %vm222_vm1, %v7658_v28 }
 0x415   :  { %v5549_v24 = vpop.f32.mrf.mxu1 }
 0x416   :  { %5706 = vst.msk [vmem:[%s12202_s7 + $0x108] sm:$0xff] %vm222_vm1, %v5549_v24 }
 0x417   :  { %v7661_v31 = vpop.f32.mrf.mxu1 }
 0x418   :  { %5711 = vst.msk [vmem:[%s12202_s7 + $0x130] sm:$0xff] %vm222_vm1, %v7661_v31 }
 0x419   :  { %v5562_v40 = vpop.f32.mrf.mxu1 }
 0x41a   :  { %5709 = vst.msk [vmem:[%s12202_s7 + $0x120] sm:$0xff] %vm222_vm1, %v5562_v40 }
 0x41b   :  { %v7662_v2 = vpop.f32.mrf.mxu1 }
 0x41c   :  { %5712 = vst.msk [vmem:[%s12202_s7 + $0x138] sm:$0xff] %vm222_vm1, %v7662_v2 }
 0x41d   :  { %v5565_v5 = vpop.f32.mrf.mxu1 }
 0x41e   :  { %5710 = vst.msk [vmem:[%s12202_s7 + $0x128] sm:$0xff] %vm222_vm1, %v5565_v5 }
 0x41f   :  { %v7665_v43 = vpop.f32.mrf.mxu1 }
 0x420   :  { %5715 = vst.msk [vmem:[%s12202_s7 + $0x150] sm:$0xff] %vm222_vm1, %v7665_v43 }
 0x421   :  { %v5578_v62 = vpop.f32.mrf.mxu1 }
 0x422   :  { %5713 = vst.msk [vmem:[%s12202_s7 + $0x140] sm:$0xff] %vm222_vm1, %v5578_v62 }
 0x423   :  { %v7666_v35 = vpop.f32.mrf.mxu1 }
 0x424   :  { %5716 = vst.msk [vmem:[%s12202_s7 + $0x158] sm:$0xff] %vm222_vm1, %v7666_v35 }
 0x425   :  { %v5581_v3 = vpop.f32.mrf.mxu1 }
 0x426   :  { %5714 = vst.msk [vmem:[%s12202_s7 + $0x148] sm:$0xff] %vm222_vm1, %v5581_v3 }
 0x427   :  { %v7669_v54 = vpop.f32.mrf.mxu1 }
 0x428   :  { %5719 = vst.msk [vmem:[%s12202_s7 + $0x170] sm:$0xff] %vm222_vm1, %v7669_v54 }
 0x429   :  { %v5594_v63 = vpop.f32.mrf.mxu1 }
 0x42a   :  { %5717 = vst.msk [vmem:[%s12202_s7 + $0x160] sm:$0xff] %vm222_vm1, %v5594_v63 }
 0x42b   :  { %v7670_v14 = vpop.f32.mrf.mxu1 }
 0x42c   :  { %5720 = vst.msk [vmem:[%s12202_s7 + $0x178] sm:$0xff] %vm222_vm1, %v7670_v14 }
 0x42d   :  { %v5597_v9 = vpop.f32.mrf.mxu1 }
 0x42e   :  { %5718 = vst.msk [vmem:[%s12202_s7 + $0x168] sm:$0xff] %vm222_vm1, %v5597_v9 }
 0x42f   :  { %v7673_v26 = vpop.f32.mrf.mxu1 }
 0x430   :  { %5723 = vst.msk [vmem:[%s12202_s7 + $0x190] sm:$0xff] %vm222_vm1, %v7673_v26 }
 0x431   :  { %v5610_v4 = vpop.f32.mrf.mxu1 }
 0x432   :  { %5721 = vst.msk [vmem:[%s12202_s7 + $0x180] sm:$0xff] %vm222_vm1, %v5610_v4 }
 0x433   :  { %v7674_v15 = vpop.f32.mrf.mxu1 }
 0x434   :  { %5724 = vst.msk [vmem:[%s12202_s7 + $0x198] sm:$0xff] %vm222_vm1, %v7674_v15 }
 0x435   :  { %v5613_v59 = vpop.f32.mrf.mxu1 }
 0x436   :  { %5722 = vst.msk [vmem:[%s12202_s7 + $0x188] sm:$0xff] %vm222_vm1, %v5613_v59 }
 0x437   :  { %v7677_v36 = vpop.f32.mrf.mxu1 }
 0x438   :  { %5727 = vst.msk [vmem:[%s12202_s7 + $0x1b0] sm:$0xff] %vm222_vm1, %v7677_v36 }
 0x439   :  { %v5626_v0 = vpop.f32.mrf.mxu1 }
 0x43a   :  { %5725 = vst.msk [vmem:[%s12202_s7 + $0x1a0] sm:$0xff] %vm222_vm1, %v5626_v0 }
 0x43b   :  { %v7678_v50 = vpop.f32.mrf.mxu1 }
 0x43c   :  { %5728 = vst.msk [vmem:[%s12202_s7 + $0x1b8] sm:$0xff] %vm222_vm1, %v7678_v50 }
 0x43d   :  { %v5629_v12 = vpop.f32.mrf.mxu1 }
 0x43e   :  { %5726 = vst.msk [vmem:[%s12202_s7 + $0x1a8] sm:$0xff] %vm222_vm1, %v5629_v12 }
 0x43f   :  { %v7681_v10 = vpop.f32.mrf.mxu1 }
 0x440   :  { %5731 = vst.msk [vmem:[%s12202_s7 + $0x1d0] sm:$0xff] %vm222_vm1, %v7681_v10 }
 0x441   :  { %v5642_v61 = vpop.f32.mrf.mxu1 }
 0x442   :  { %5729 = vst.msk [vmem:[%s12202_s7 + $0x1c0] sm:$0xff] %vm222_vm1, %v5642_v61 }
 0x443   :  { %v7682_v34 = vpop.f32.mrf.mxu1 }
 0x444   :  { %5732 = vst.msk [vmem:[%s12202_s7 + $0x1d8] sm:$0xff] %vm222_vm1, %v7682_v34 }
 0x445   :  { %v5645_v55 = vpop.f32.mrf.mxu1 }
 0x446   :  { %5730 = vst.msk [vmem:[%s12202_s7 + $0x1c8] sm:$0xff] %vm222_vm1, %v5645_v55 }
 0x447   :  { %v7685_v57 = vpop.f32.mrf.mxu1 }
 0x448   :  { %5735 = vst.msk [vmem:[%s12202_s7 + $0x1f0] sm:$0xff] %vm222_vm1, %v7685_v57 }
 0x449   :  { %v5658_v52 = vpop.f32.mrf.mxu1 }
 0x44a   :  { %5733 = vst.msk [vmem:[%s12202_s7 + $0x1e0] sm:$0xff] %vm222_vm1, %v5658_v52 }
 0x44b   :  { %v7686_v6 = vpop.f32.mrf.mxu1 }
 0x44c   :  { %5736 = vst.msk [vmem:[%s12202_s7 + $0x1f8] sm:$0xff] %vm222_vm1, %v7686_v6 }
 0x44d   :  { %v5661_v27 = vpop.f32.mrf.mxu1 }
 0x44e   :  { %5734 = vst.msk [vmem:[%s12202_s7 + $0x1e8] sm:$0xff] %vm222_vm1, %v5661_v27 }

</bundles_post_ra>
